<compile_context>
chip_gen: v7x
topology: tpu7x:2x2x1
jax: 0.10.0
libtpu: 0.0.40
codegen_flags: <defaults>
</compile_context>

<pallas_src>
import jax
import jax.numpy as jnp
from jax.experimental import pallas as pl
from jax.experimental.pallas import tpu as pltpu

EPS = 1e-5  # torch.nn.BatchNorm2d default


def _make_conv_bn_stats_kernel(H, W, C, Wp, fuse_input_bn_relu):
    """3x3 same-padding conv as im2col + one MXU matmul, plus per-image
    per-channel sum / sum-of-squares of the raw conv output.

    If `fuse_input_bn_relu`, the previous layer's BN affine + ReLU is applied
    (in f32) to the input block before it is staged into the padded buffer.
    """
    f32 = jnp.float32
    bf16 = jnp.bfloat16
    R = H * W

    def kernel(x_ref, scale_ref, shift_ref, w_ref, y_ref, stats_ref,
               pad_ref, col_ref):
        # x_ref      : (1, H, W, C)     f32   one image (NHWC)
        # scale/shift: (1, C)           f32   input-side BN affine (unused if not fused)
        # w_ref      : (9*C, C)         bf16  im2col weight matrix
        # y_ref      : (1, H*W, C)      f32   raw conv output (pre-BN)
        # stats_ref  : (1, 2, C)        f32   row 0 = sum, row 1 = sum of squares
        # pad_ref    : (1, H+2, Wp, C)  bf16  zero-halo padded activations
        # col_ref    : (H*W, 9*C)       bf16  im2col staging buffer

        # ---- zero only the halo (border), never the interior.  Done every
        # grid step: it is tiny vs. the interior, and a persistent-scratch
        # "zero only at program_id==0" init would be skipped on the second
        # TensorCore when the grid axis is megacore-partitioned. ----
        zrow = jnp.zeros((1, 1, Wp, C), bf16)
        zcol = jnp.zeros((1, H + 2, 1, C), bf16)
        pad_ref[:, 0:1, :, :] = zrow
        pad_ref[:, H + 1:H + 2, :, :] = zrow
        pad_ref[:, :, 0:1, :] = zcol
        pad_ref[:, :, W + 1:W + 2, :] = zcol

        # ---- stage (optionally BN-affine + ReLU'd) input into the interior ----
        x = x_ref[...]                                         # (1, H, W, C) f32
        if fuse_input_bn_relu:
            scale = scale_ref[...].reshape(1, 1, 1, C)
            shift = shift_ref[...].reshape(1, 1, 1, C)
            x = jnp.maximum(x * scale + shift, 0.0)
        pad_ref[:, 1:H + 1, 1:W + 1, :] = x.astype(bf16)

        # ---- im2col: 9 tap-shifted windows -> lane-blocks of (R, 9C) ----
        for t in range(9):
            ky, kx = t // 3, t % 3
            col_ref[:, t * C:(t + 1) * C] = (
                pad_ref[:, ky:ky + H, kx:kx + W, :].reshape(R, C))

        # ---- single large MXU matmul: (R, 9C) x (9C, C), f32 accumulation ----
        acc = jnp.dot(col_ref[...], w_ref[...], preferred_element_type=f32)

        y_ref[...] = acc.reshape(1, R, C)

        # ---- single-pass BN partial statistics (per image) ----
        stats_ref[:, 0:1, :] = jnp.sum(acc, axis=0, keepdims=True).reshape(1, 1, C)
        stats_ref[:, 1:2, :] = jnp.sum(acc * acc, axis=0,
                                       keepdims=True).reshape(1, 1, C)

    return kernel


def _make_bn_residual_relu_kernel(C):
    """out = relu(y_raw * scale2 + shift2 + identity), per image."""
    def kernel(y_ref, scale_ref, shift_ref, id_ref, out_ref):
        scale = scale_ref[...].reshape(1, 1, C)
        shift = shift_ref[...].reshape(1, 1, C)
        out_ref[...] = jnp.maximum(y_ref[...] * scale + shift + id_ref[...], 0.0)
    return kernel


def block_forward(x, w1, g1, b1, w2, g2, b2):
    """Pallas implementation of Block.forward (stride=1, downsample=None,
    training-mode BatchNorm).  x: (N, C, H, W) NCHW; weights (C, C, 3, 3) OIHW.
    """
    N, C, H, W = x.shape
    assert w1.shape == (C, C, 3, 3) and w2.shape == (C, C, 3, 3)

    f32 = jnp.float32
    bf16 = jnp.bfloat16
    R = H * W
    R_total = N * R
    Wp = ((W + 2 + 7) // 8) * 8          # sublane-pad the scratch W dim to x8

    x_nhwc = jnp.transpose(x, (0, 2, 3, 1)).astype(f32)          # (N, H, W, C)
    x_flat = x_nhwc.reshape(N, R, C)

    def prep_w(w):
        # OIHW -> (ky, kx, C_in, C_out) -> (9*C_in, C_out); row order matches
        # the im2col column order (tap-major, then input channel).
        return jnp.transpose(w, (2, 3, 1, 0)).reshape(9 * C, C).astype(bf16)

    cparams = pltpu.CompilerParams(dimension_semantics=("parallel",))

    def conv_bn_stats(inp_nhwc, scale, shift, w_mat, fuse):
        return pl.pallas_call(
            _make_conv_bn_stats_kernel(H, W, C, Wp, fuse),
            grid=(N,),
            in_specs=[
                pl.BlockSpec((1, H, W, C), lambda n: (n, 0, 0, 0)),
                pl.BlockSpec((1, C), lambda n: (0, 0)),
                pl.BlockSpec((1, C), lambda n: (0, 0)),
                pl.BlockSpec((9 * C, C), lambda n: (0, 0)),
            ],
            out_specs=[
                pl.BlockSpec((1, R, C), lambda n: (n, 0, 0)),
                pl.BlockSpec((1, 2, C), lambda n: (n, 0, 0)),
            ],
            out_shape=[
                jax.ShapeDtypeStruct((N, R, C), f32),     # raw conv output
                jax.ShapeDtypeStruct((N, 2, C), f32),     # per-image sum/sumsq
            ],
            scratch_shapes=[
                pltpu.VMEM((1, H + 2, Wp, C), bf16),      # zero-halo padded acts
                pltpu.VMEM((R, 9 * C), bf16),             # im2col staging buffer
            ],
            compiler_params=cparams,
        )(inp_nhwc, scale.reshape(1, C), shift.reshape(1, C), w_mat)

    def bn_affine(stats, g, b):
        # Reduce per-image partials -> batch mean / biased var -> per-channel affine.
        s = jnp.sum(stats[:, 0, :], axis=0)
        ss = jnp.sum(stats[:, 1, :], axis=0)
        mean = s / R_total
        var = ss / R_total - mean * mean
        scale = g.astype(f32) * jax.lax.rsqrt(var + EPS)
        shift = b.astype(f32) - mean * scale
        return scale, shift

    ones = jnp.ones((C,), f32)
    zeros = jnp.zeros((C,), f32)

    # pass 1: conv1 + bn1 partial stats
    y1_raw, stats1 = conv_bn_stats(x_nhwc, ones, zeros, prep_w(w1), fuse=False)
    scale1, shift1 = bn_affine(stats1, g1, b1)

    # pass 2: bn1-affine + relu fused into conv2 input staging, + bn2 stats
    y2_raw, stats2 = conv_bn_stats(y1_raw.reshape(N, H, W, C),
                                   scale1, shift1, prep_w(w2), fuse=True)
    scale2, shift2 = bn_affine(stats2, g2, b2)

    # pass 3: bn2-affine + residual add + final relu
    out_flat = pl.pallas_call(
        _make_bn_residual_relu_kernel(C),
        grid=(N,),
        in_specs=[
            pl.BlockSpec((1, R, C), lambda n: (n, 0, 0)),
            pl.BlockSpec((1, C), lambda n: (0, 0)),
            pl.BlockSpec((1, C), lambda n: (0, 0)),
            pl.BlockSpec((1, R, C), lambda n: (n, 0, 0)),
        ],
        out_specs=pl.BlockSpec((1, R, C), lambda n: (n, 0, 0)),
        out_shape=jax.ShapeDtypeStruct((N, R, C), f32),
        compiler_params=cparams,
    )(y2_raw, scale2.reshape(1, C), shift2.reshape(1, C), x_flat)

    return jnp.transpose(out_flat.reshape(N, H, W, C), (0, 3, 1, 2))   # NCHW


def _reference(x, w1, g1, b1, w2, g2, b2):
    """Pure-JAX f32 reference matching PyTorch Block.forward (training-mode BN)."""
    def conv(t, w):
        return jax.lax.conv_general_dilated(
            t, w, window_strides=(1, 1), padding=((1, 1), (1, 1)),
            dimension_numbers=("NCHW", "OIHW", "NCHW"))

    def bn(y, g, b):
        m = y.mean(axis=(0, 2, 3), keepdims=True)
        v = ((y - m) ** 2).mean(axis=(0, 2, 3), keepdims=True)
        return g.reshape(1, -1, 1, 1) * (y - m) / jnp.sqrt(v + EPS) \
            + b.reshape(1, -1, 1, 1)

    out = jax.nn.relu(bn(conv(x, w1), g1, b1))
    out = bn(conv(out, w2), g2, b2)
    return jax.nn.relu(out + x)


if __name__ == "__main__":
    N, C, H, W = 2, 4, 16, 16  # in_channels == out_channels, stride=1

    key = jax.random.PRNGKey(0)
    k_x, k_w1, k_w2 = jax.random.split(key, 3)

    x = jax.random.normal(k_x, (N, C, H, W), dtype=jnp.float32)
    fan_in = C * 3 * 3
    scale = (2.0 / fan_in) ** 0.5  # kaiming-like deterministic init
    w1 = jax.random.normal(k_w1, (C, C, 3, 3), dtype=jnp.float32) * scale
    w2 = jax.random.normal(k_w2, (C, C, 3, 3), dtype=jnp.float32) * scale
    g1 = jnp.ones((C,), jnp.float32)
    b1 = jnp.zeros((C,), jnp.float32)
    g2 = jnp.ones((C,), jnp.float32)
    b2 = jnp.zeros((C,), jnp.float32)

    out = jax.jit(block_forward)(x, w1, g1, b1, w2, g2, b2)
    out = jax.block_until_ready(out)

    ref = _reference(x, w1, g1, b1, w2, g2, b2)
    assert out.shape == (N, C, H, W) and out.dtype == jnp.float32
    # Tolerance loosened vs. the pure-f32 version: MXU operands are bf16
    # (f32 accumulation), per the performance review.
    err = float(jnp.max(jnp.abs(out - ref)))
    assert jnp.allclose(out, ref, rtol=5e-2, atol=5e-2), f"max abs err={err}"

    print("KERNEL_OK")
</pallas_src>

<mosaic_0001>
module attributes {stable_mosaic.version = 11 : i64} {
  func.func @kernel(%arg0: i32, %arg1: memref<1x16x16x4xf32, #tpu.memory_space<vmem>>, %arg2: memref<1x4xf32, #tpu.memory_space<vmem>>, %arg3: memref<1x4xf32, #tpu.memory_space<vmem>>, %arg4: memref<36x4xbf16, #tpu.memory_space<vmem>>, %arg5: memref<1x256x4xf32, #tpu.memory_space<vmem>>, %arg6: memref<1x2x4xf32, #tpu.memory_space<vmem>>, %arg7: memref<1x18x24x4xbf16, #tpu.memory_space<vmem>>, %arg8: memref<256x36xbf16, #tpu.memory_space<vmem>>) attributes {dimension_semantics = [#tpu.dimension_semantics<parallel>], iteration_bounds = array<i64: 2>, scalar_prefetch = 0 : i64, scratch_operands = 2 : i64, tpu.core_type = #tpu.core_type<tc>, window_params = [{transform_indices = @transform_0, window_bounds = array<i64: 1, 16, 16, 4>}, {pipeline_mode = #tpu.pipeline_mode<synchronous>, transform_indices = @transform_1, window_bounds = array<i64: 1, 4>}, {pipeline_mode = #tpu.pipeline_mode<synchronous>, transform_indices = @transform_2, window_bounds = array<i64: 1, 4>}, {pipeline_mode = #tpu.pipeline_mode<synchronous>, transform_indices = @transform_3, window_bounds = array<i64: 36, 4>}, {transform_indices = @transform_4, window_bounds = array<i64: 1, 256, 4>}, {transform_indices = @transform_5, window_bounds = array<i64: 1, 2, 4>}]} {
    %cst = arith.constant 0.000000e+00 : bf16
    %0 = vector.broadcast %cst : bf16 to vector<1x1x24x4xbf16>
    %cst_0 = arith.constant 0.000000e+00 : bf16
    %1 = vector.broadcast %cst_0 : bf16 to vector<1x18x1x4xbf16>
    %c0 = arith.constant 0 : index
    %c0_1 = arith.constant 0 : index
    %c0_2 = arith.constant 0 : index
    %c0_3 = arith.constant 0 : index
    %2 = vector.load %arg7[%c0, %c0_1, %c0_2, %c0_3] : memref<1x18x24x4xbf16, #tpu.memory_space<vmem>>, vector<1x1x24x4xbf16>
    tpu.vector_store %arg7[%c0, %c0_1, %c0_2, %c0_3], %0 {strides = array<i32>} : memref<1x18x24x4xbf16, #tpu.memory_space<vmem>>, vector<1x1x24x4xbf16>,
    %c0_4 = arith.constant 0 : index
    %c17 = arith.constant 17 : index
    %c0_5 = arith.constant 0 : index
    %c0_6 = arith.constant 0 : index
    %3 = vector.load %arg7[%c0_4, %c17, %c0_5, %c0_6] : memref<1x18x24x4xbf16, #tpu.memory_space<vmem>>, vector<1x1x24x4xbf16>
    tpu.vector_store %arg7[%c0_4, %c17, %c0_5, %c0_6], %0 {strides = array<i32>} : memref<1x18x24x4xbf16, #tpu.memory_space<vmem>>, vector<1x1x24x4xbf16>,
    %c0_7 = arith.constant 0 : index
    %c0_8 = arith.constant 0 : index
    %c0_9 = arith.constant 0 : index
    %c0_10 = arith.constant 0 : index
    %4 = vector.load %arg7[%c0_7, %c0_8, %c0_9, %c0_10] : memref<1x18x24x4xbf16, #tpu.memory_space<vmem>>, vector<1x18x1x4xbf16>
    tpu.vector_store %arg7[%c0_7, %c0_8, %c0_9, %c0_10], %1 {strides = array<i32>} : memref<1x18x24x4xbf16, #tpu.memory_space<vmem>>, vector<1x18x1x4xbf16>,
    %c0_11 = arith.constant 0 : index
    %c0_12 = arith.constant 0 : index
    %c17_13 = arith.constant 17 : index
    %c0_14 = arith.constant 0 : index
    %5 = vector.load %arg7[%c0_11, %c0_12, %c17_13, %c0_14] : memref<1x18x24x4xbf16, #tpu.memory_space<vmem>>, vector<1x18x1x4xbf16>
    tpu.vector_store %arg7[%c0_11, %c0_12, %c17_13, %c0_14], %1 {strides = array<i32>} : memref<1x18x24x4xbf16, #tpu.memory_space<vmem>>, vector<1x18x1x4xbf16>,
    %c0_15 = arith.constant 0 : index
    %c0_16 = arith.constant 0 : index
    %c0_17 = arith.constant 0 : index
    %c0_18 = arith.constant 0 : index
    %6 = vector.load %arg1[%c0_15, %c0_16, %c0_17, %c0_18] : memref<1x16x16x4xf32, #tpu.memory_space<vmem>>, vector<1x16x16x4xf32>
    %7 = arith.truncf %6 : vector<1x16x16x4xf32> to vector<1x16x16x4xbf16>
    %c0_19 = arith.constant 0 : index
    %c1 = arith.constant 1 : index
    %c1_20 = arith.constant 1 : index
    %c0_21 = arith.constant 0 : index
    %8 = vector.load %arg7[%c0_19, %c1, %c1_20, %c0_21] : memref<1x18x24x4xbf16, #tpu.memory_space<vmem>>, vector<1x16x16x4xbf16>
    tpu.vector_store %arg7[%c0_19, %c1, %c1_20, %c0_21], %7 {strides = array<i32>} : memref<1x18x24x4xbf16, #tpu.memory_space<vmem>>, vector<1x16x16x4xbf16>,
    %c0_22 = arith.constant 0 : index
    %c0_23 = arith.constant 0 : index
    %c0_24 = arith.constant 0 : index
    %c0_25 = arith.constant 0 : index
    %9 = vector.load %arg7[%c0_22, %c0_23, %c0_24, %c0_25] : memref<1x18x24x4xbf16, #tpu.memory_space<vmem>>, vector<1x16x16x4xbf16>
    %10 = vector.shape_cast %9 : vector<1x16x16x4xbf16> to vector<256x4xbf16>
    %c0_26 = arith.constant 0 : index
    %c0_27 = arith.constant 0 : index
    %11 = vector.load %arg8[%c0_26, %c0_27] : memref<256x36xbf16, #tpu.memory_space<vmem>>, vector<256x4xbf16>
    tpu.vector_store %arg8[%c0_26, %c0_27], %10 {strides = array<i32>} : memref<256x36xbf16, #tpu.memory_space<vmem>>, vector<256x4xbf16>,
    %c0_28 = arith.constant 0 : index
    %c0_29 = arith.constant 0 : index
    %c1_30 = arith.constant 1 : index
    %c0_31 = arith.constant 0 : index
    %12 = vector.load %arg7[%c0_28, %c0_29, %c1_30, %c0_31] : memref<1x18x24x4xbf16, #tpu.memory_space<vmem>>, vector<1x16x16x4xbf16>
    %13 = vector.shape_cast %12 : vector<1x16x16x4xbf16> to vector<256x4xbf16>
    %c0_32 = arith.constant 0 : index
    %c4 = arith.constant 4 : index
    %14 = vector.load %arg8[%c0_32, %c4] : memref<256x36xbf16, #tpu.memory_space<vmem>>, vector<256x4xbf16>
    tpu.vector_store %arg8[%c0_32, %c4], %13 {strides = array<i32>} : memref<256x36xbf16, #tpu.memory_space<vmem>>, vector<256x4xbf16>,
    %c0_33 = arith.constant 0 : index
    %c0_34 = arith.constant 0 : index
    %c2 = arith.constant 2 : index
    %c0_35 = arith.constant 0 : index
    %15 = vector.load %arg7[%c0_33, %c0_34, %c2, %c0_35] : memref<1x18x24x4xbf16, #tpu.memory_space<vmem>>, vector<1x16x16x4xbf16>
    %16 = vector.shape_cast %15 : vector<1x16x16x4xbf16> to vector<256x4xbf16>
    %c0_36 = arith.constant 0 : index
    %c8 = arith.constant 8 : index
    %17 = vector.load %arg8[%c0_36, %c8] : memref<256x36xbf16, #tpu.memory_space<vmem>>, vector<256x4xbf16>
    tpu.vector_store %arg8[%c0_36, %c8], %16 {strides = array<i32>} : memref<256x36xbf16, #tpu.memory_space<vmem>>, vector<256x4xbf16>,
    %c0_37 = arith.constant 0 : index
    %c1_38 = arith.constant 1 : index
    %c0_39 = arith.constant 0 : index
    %c0_40 = arith.constant 0 : index
    %18 = vector.load %arg7[%c0_37, %c1_38, %c0_39, %c0_40] : memref<1x18x24x4xbf16, #tpu.memory_space<vmem>>, vector<1x16x16x4xbf16>
    %19 = vector.shape_cast %18 : vector<1x16x16x4xbf16> to vector<256x4xbf16>
    %c0_41 = arith.constant 0 : index
    %c12 = arith.constant 12 : index
    %20 = vector.load %arg8[%c0_41, %c12] : memref<256x36xbf16, #tpu.memory_space<vmem>>, vector<256x4xbf16>
    tpu.vector_store %arg8[%c0_41, %c12], %19 {strides = array<i32>} : memref<256x36xbf16, #tpu.memory_space<vmem>>, vector<256x4xbf16>,
    %c0_42 = arith.constant 0 : index
    %c1_43 = arith.constant 1 : index
    %c1_44 = arith.constant 1 : index
    %c0_45 = arith.constant 0 : index
    %21 = vector.load %arg7[%c0_42, %c1_43, %c1_44, %c0_45] : memref<1x18x24x4xbf16, #tpu.memory_space<vmem>>, vector<1x16x16x4xbf16>
    %22 = vector.shape_cast %21 : vector<1x16x16x4xbf16> to vector<256x4xbf16>
    %c0_46 = arith.constant 0 : index
    %c16 = arith.constant 16 : index
    %23 = vector.load %arg8[%c0_46, %c16] : memref<256x36xbf16, #tpu.memory_space<vmem>>, vector<256x4xbf16>
    tpu.vector_store %arg8[%c0_46, %c16], %22 {strides = array<i32>} : memref<256x36xbf16, #tpu.memory_space<vmem>>, vector<256x4xbf16>,
    %c0_47 = arith.constant 0 : index
    %c1_48 = arith.constant 1 : index
    %c2_49 = arith.constant 2 : index
    %c0_50 = arith.constant 0 : index
    %24 = vector.load %arg7[%c0_47, %c1_48, %c2_49, %c0_50] : memref<1x18x24x4xbf16, #tpu.memory_space<vmem>>, vector<1x16x16x4xbf16>
    %25 = vector.shape_cast %24 : vector<1x16x16x4xbf16> to vector<256x4xbf16>
    %c0_51 = arith.constant 0 : index
    %c20 = arith.constant 20 : index
    %26 = vector.load %arg8[%c0_51, %c20] : memref<256x36xbf16, #tpu.memory_space<vmem>>, vector<256x4xbf16>
    tpu.vector_store %arg8[%c0_51, %c20], %25 {strides = array<i32>} : memref<256x36xbf16, #tpu.memory_space<vmem>>, vector<256x4xbf16>,
    %c0_52 = arith.constant 0 : index
    %c2_53 = arith.constant 2 : index
    %c0_54 = arith.constant 0 : index
    %c0_55 = arith.constant 0 : index
    %27 = vector.load %arg7[%c0_52, %c2_53, %c0_54, %c0_55] : memref<1x18x24x4xbf16, #tpu.memory_space<vmem>>, vector<1x16x16x4xbf16>
    %28 = vector.shape_cast %27 : vector<1x16x16x4xbf16> to vector<256x4xbf16>
    %c0_56 = arith.constant 0 : index
    %c24 = arith.constant 24 : index
    %29 = vector.load %arg8[%c0_56, %c24] : memref<256x36xbf16, #tpu.memory_space<vmem>>, vector<256x4xbf16>
    tpu.vector_store %arg8[%c0_56, %c24], %28 {strides = array<i32>} : memref<256x36xbf16, #tpu.memory_space<vmem>>, vector<256x4xbf16>,
    %c0_57 = arith.constant 0 : index
    %c2_58 = arith.constant 2 : index
    %c1_59 = arith.constant 1 : index
    %c0_60 = arith.constant 0 : index
    %30 = vector.load %arg7[%c0_57, %c2_58, %c1_59, %c0_60] : memref<1x18x24x4xbf16, #tpu.memory_space<vmem>>, vector<1x16x16x4xbf16>
    %31 = vector.shape_cast %30 : vector<1x16x16x4xbf16> to vector<256x4xbf16>
    %c0_61 = arith.constant 0 : index
    %c28 = arith.constant 28 : index
    %32 = vector.load %arg8[%c0_61, %c28] : memref<256x36xbf16, #tpu.memory_space<vmem>>, vector<256x4xbf16>
    tpu.vector_store %arg8[%c0_61, %c28], %31 {strides = array<i32>} : memref<256x36xbf16, #tpu.memory_space<vmem>>, vector<256x4xbf16>,
    %c0_62 = arith.constant 0 : index
    %c2_63 = arith.constant 2 : index
    %c2_64 = arith.constant 2 : index
    %c0_65 = arith.constant 0 : index
    %33 = vector.load %arg7[%c0_62, %c2_63, %c2_64, %c0_65] : memref<1x18x24x4xbf16, #tpu.memory_space<vmem>>, vector<1x16x16x4xbf16>
    %34 = vector.shape_cast %33 : vector<1x16x16x4xbf16> to vector<256x4xbf16>
    %c0_66 = arith.constant 0 : index
    %c32 = arith.constant 32 : index
    %35 = vector.load %arg8[%c0_66, %c32] : memref<256x36xbf16, #tpu.memory_space<vmem>>, vector<256x4xbf16>
    tpu.vector_store %arg8[%c0_66, %c32], %34 {strides = array<i32>} : memref<256x36xbf16, #tpu.memory_space<vmem>>, vector<256x4xbf16>,
    %c0_67 = arith.constant 0 : index
    %c0_68 = arith.constant 0 : index
    %36 = vector.load %arg8[%c0_67, %c0_68] : memref<256x36xbf16, #tpu.memory_space<vmem>>, vector<256x36xbf16>
    %c0_69 = arith.constant 0 : index
    %c0_70 = arith.constant 0 : index
    %37 = vector.load %arg4[%c0_69, %c0_70] : memref<36x4xbf16, #tpu.memory_space<vmem>>, vector<36x4xbf16>
    %cst_71 = arith.constant dense<0.000000e+00> : vector<256x4xf32>
    %38 = tpu.matmul %36, %37, %cst_71 {dimension_numbers = #tpu.dot_dimension_numbers<[1], [0], [0], [1], [0, 0, 1, 1], [], []>} : vector<256x36xbf16>, vector<36x4xbf16>, vector<256x4xf32> -> vector<256x4xf32>
    %39 = vector.shape_cast %38 : vector<256x4xf32> to vector<1x256x4xf32>
    %c0_72 = arith.constant 0 : index
    %c0_73 = arith.constant 0 : index
    %c0_74 = arith.constant 0 : index
    %40 = vector.load %arg5[%c0_72, %c0_73, %c0_74] : memref<1x256x4xf32, #tpu.memory_space<vmem>>, vector<1x256x4xf32>
    tpu.vector_store %arg5[%c0_72, %c0_73, %c0_74], %39 {strides = array<i32>} : memref<1x256x4xf32, #tpu.memory_space<vmem>>, vector<1x256x4xf32>,
    %cst_75 = arith.constant dense<0.000000e+00> : vector<4xf32>
    %41 = vector.multi_reduction <add>, %38, %cst_75 [0] : vector<256x4xf32> to vector<4xf32>
    %42 = vector.shape_cast %41 : vector<4xf32> to vector<1x4xf32>
    %43 = vector.shape_cast %42 : vector<1x4xf32> to vector<1x1x4xf32>
    %c0_76 = arith.constant 0 : index
    %c0_77 = arith.constant 0 : index
    %c0_78 = arith.constant 0 : index
    %44 = vector.load %arg6[%c0_76, %c0_77, %c0_78] : memref<1x2x4xf32, #tpu.memory_space<vmem>>, vector<1x1x4xf32>
    tpu.vector_store %arg6[%c0_76, %c0_77, %c0_78], %43 {strides = array<i32>} : memref<1x2x4xf32, #tpu.memory_space<vmem>>, vector<1x1x4xf32>,
    %45 = arith.mulf %38, %38 : vector<256x4xf32>
    %cst_79 = arith.constant dense<0.000000e+00> : vector<4xf32>
    %46 = vector.multi_reduction <add>, %45, %cst_79 [0] : vector<256x4xf32> to vector<4xf32>
    %47 = vector.shape_cast %46 : vector<4xf32> to vector<1x4xf32>
    %48 = vector.shape_cast %47 : vector<1x4xf32> to vector<1x1x4xf32>
    %c0_80 = arith.constant 0 : index
    %c1_81 = arith.constant 1 : index
    %c0_82 = arith.constant 0 : index
    %49 = vector.load %arg6[%c0_80, %c1_81, %c0_82] : memref<1x2x4xf32, #tpu.memory_space<vmem>>, vector<1x1x4xf32>
    tpu.vector_store %arg6[%c0_80, %c1_81, %c0_82], %48 {strides = array<i32>} : memref<1x2x4xf32, #tpu.memory_space<vmem>>, vector<1x1x4xf32>,
    return
  }
  func.func @transform_0(%arg0: i32) -> (i32, i32, i32, i32) {
    %c0_i32 = arith.constant 0 : i32
    %c0_i32_0 = arith.constant 0 : i32
    %c0_i32_1 = arith.constant 0 : i32
    %c0_i32_2 = arith.constant 0 : i32
    return %arg0, %c0_i32, %c0_i32_0, %c0_i32_1 : i32, i32, i32, i32
  }
  func.func @transform_1(%arg0: i32) -> (i32, i32) {
    %c0_i32 = arith.constant 0 : i32
    %c0_i32_0 = arith.constant 0 : i32
    %c0_i32_1 = arith.constant 0 : i32
    return %c0_i32, %c0_i32_0 : i32, i32
  }
  func.func @transform_2(%arg0: i32) -> (i32, i32) {
    %c0_i32 = arith.constant 0 : i32
    %c0_i32_0 = arith.constant 0 : i32
    %c0_i32_1 = arith.constant 0 : i32
    return %c0_i32, %c0_i32_0 : i32, i32
  }
  func.func @transform_3(%arg0: i32) -> (i32, i32) {
    %c0_i32 = arith.constant 0 : i32
    %c0_i32_0 = arith.constant 0 : i32
    %c0_i32_1 = arith.constant 0 : i32
    return %c0_i32, %c0_i32_0 : i32, i32
  }
  func.func @transform_4(%arg0: i32) -> (i32, i32, i32) {
    %c0_i32 = arith.constant 0 : i32
    %c0_i32_0 = arith.constant 0 : i32
    %c0_i32_1 = arith.constant 0 : i32
    return %arg0, %c0_i32, %c0_i32_0 : i32, i32, i32
  }
  func.func @transform_5(%arg0: i32) -> (i32, i32, i32) {
    %c0_i32 = arith.constant 0 : i32
    %c0_i32_0 = arith.constant 0 : i32
    %c0_i32_1 = arith.constant 0 : i32
    return %arg0, %c0_i32, %c0_i32_0 : i32, i32, i32
  }
}

module attributes {stable_mosaic.version = 11 : i64} {
  func.func @kernel(%arg0: i32, %arg1: memref<1x16x16x4xf32, #tpu.memory_space<vmem>>, %arg2: memref<1x4xf32, #tpu.memory_space<vmem>>, %arg3: memref<1x4xf32, #tpu.memory_space<vmem>>, %arg4: memref<36x4xbf16, #tpu.memory_space<vmem>>, %arg5: memref<1x256x4xf32, #tpu.memory_space<vmem>>, %arg6: memref<1x2x4xf32, #tpu.memory_space<vmem>>, %arg7: memref<1x18x24x4xbf16, #tpu.memory_space<vmem>>, %arg8: memref<256x36xbf16, #tpu.memory_space<vmem>>) attributes {dimension_semantics = [#tpu.dimension_semantics<parallel>], iteration_bounds = array<i64: 2>, scalar_prefetch = 0 : i64, scratch_operands = 2 : i64, tpu.core_type = #tpu.core_type<tc>, window_params = [{transform_indices = @transform_0, window_bounds = array<i64: 1, 16, 16, 4>}, {pipeline_mode = #tpu.pipeline_mode<synchronous>, transform_indices = @transform_1, window_bounds = array<i64: 1, 4>}, {pipeline_mode = #tpu.pipeline_mode<synchronous>, transform_indices = @transform_2, window_bounds = array<i64: 1, 4>}, {pipeline_mode = #tpu.pipeline_mode<synchronous>, transform_indices = @transform_3, window_bounds = array<i64: 36, 4>}, {transform_indices = @transform_4, window_bounds = array<i64: 1, 256, 4>}, {transform_indices = @transform_5, window_bounds = array<i64: 1, 2, 4>}]} {
    %cst = arith.constant 0.000000e+00 : bf16
    %0 = vector.broadcast %cst : bf16 to vector<1x1x24x4xbf16>
    %cst_0 = arith.constant 0.000000e+00 : bf16
    %1 = vector.broadcast %cst_0 : bf16 to vector<1x18x1x4xbf16>
    %c0 = arith.constant 0 : index
    %c0_1 = arith.constant 0 : index
    %c0_2 = arith.constant 0 : index
    %c0_3 = arith.constant 0 : index
    %2 = vector.load %arg7[%c0, %c0_1, %c0_2, %c0_3] : memref<1x18x24x4xbf16, #tpu.memory_space<vmem>>, vector<1x1x24x4xbf16>
    tpu.vector_store %arg7[%c0, %c0_1, %c0_2, %c0_3], %0 {strides = array<i32>} : memref<1x18x24x4xbf16, #tpu.memory_space<vmem>>, vector<1x1x24x4xbf16>,
    %c0_4 = arith.constant 0 : index
    %c17 = arith.constant 17 : index
    %c0_5 = arith.constant 0 : index
    %c0_6 = arith.constant 0 : index
    %3 = vector.load %arg7[%c0_4, %c17, %c0_5, %c0_6] : memref<1x18x24x4xbf16, #tpu.memory_space<vmem>>, vector<1x1x24x4xbf16>
    tpu.vector_store %arg7[%c0_4, %c17, %c0_5, %c0_6], %0 {strides = array<i32>} : memref<1x18x24x4xbf16, #tpu.memory_space<vmem>>, vector<1x1x24x4xbf16>,
    %c0_7 = arith.constant 0 : index
    %c0_8 = arith.constant 0 : index
    %c0_9 = arith.constant 0 : index
    %c0_10 = arith.constant 0 : index
    %4 = vector.load %arg7[%c0_7, %c0_8, %c0_9, %c0_10] : memref<1x18x24x4xbf16, #tpu.memory_space<vmem>>, vector<1x18x1x4xbf16>
    tpu.vector_store %arg7[%c0_7, %c0_8, %c0_9, %c0_10], %1 {strides = array<i32>} : memref<1x18x24x4xbf16, #tpu.memory_space<vmem>>, vector<1x18x1x4xbf16>,
    %c0_11 = arith.constant 0 : index
    %c0_12 = arith.constant 0 : index
    %c17_13 = arith.constant 17 : index
    %c0_14 = arith.constant 0 : index
    %5 = vector.load %arg7[%c0_11, %c0_12, %c17_13, %c0_14] : memref<1x18x24x4xbf16, #tpu.memory_space<vmem>>, vector<1x18x1x4xbf16>
    tpu.vector_store %arg7[%c0_11, %c0_12, %c17_13, %c0_14], %1 {strides = array<i32>} : memref<1x18x24x4xbf16, #tpu.memory_space<vmem>>, vector<1x18x1x4xbf16>,
    %c0_15 = arith.constant 0 : index
    %c0_16 = arith.constant 0 : index
    %c0_17 = arith.constant 0 : index
    %c0_18 = arith.constant 0 : index
    %6 = vector.load %arg1[%c0_15, %c0_16, %c0_17, %c0_18] : memref<1x16x16x4xf32, #tpu.memory_space<vmem>>, vector<1x16x16x4xf32>
    %c0_19 = arith.constant 0 : index
    %c0_20 = arith.constant 0 : index
    %7 = vector.load %arg2[%c0_19, %c0_20] : memref<1x4xf32, #tpu.memory_space<vmem>>, vector<1x4xf32>
    %8 = vector.shape_cast %7 : vector<1x4xf32> to vector<1x1x1x4xf32>
    %c0_21 = arith.constant 0 : index
    %c0_22 = arith.constant 0 : index
    %9 = vector.load %arg3[%c0_21, %c0_22] : memref<1x4xf32, #tpu.memory_space<vmem>>, vector<1x4xf32>
    %10 = vector.shape_cast %9 : vector<1x4xf32> to vector<1x1x1x4xf32>
    %11 = vector.broadcast %8 : vector<1x1x1x4xf32> to vector<1x16x16x4xf32>
    %12 = arith.mulf %6, %11 : vector<1x16x16x4xf32>
    %13 = vector.broadcast %10 : vector<1x1x1x4xf32> to vector<1x16x16x4xf32>
    %14 = arith.addf %12, %13 : vector<1x16x16x4xf32>
    %cst_23 = arith.constant 0.000000e+00 : f32
    %15 = vector.broadcast %cst_23 : f32 to vector<1x16x16x4xf32>
    %16 = arith.maximumf %14, %15 : vector<1x16x16x4xf32>
    %17 = arith.truncf %16 : vector<1x16x16x4xf32> to vector<1x16x16x4xbf16>
    %c0_24 = arith.constant 0 : index
    %c1 = arith.constant 1 : index
    %c1_25 = arith.constant 1 : index
    %c0_26 = arith.constant 0 : index
    %18 = vector.load %arg7[%c0_24, %c1, %c1_25, %c0_26] : memref<1x18x24x4xbf16, #tpu.memory_space<vmem>>, vector<1x16x16x4xbf16>
    tpu.vector_store %arg7[%c0_24, %c1, %c1_25, %c0_26], %17 {strides = array<i32>} : memref<1x18x24x4xbf16, #tpu.memory_space<vmem>>, vector<1x16x16x4xbf16>,
    %c0_27 = arith.constant 0 : index
    %c0_28 = arith.constant 0 : index
    %c0_29 = arith.constant 0 : index
    %c0_30 = arith.constant 0 : index
    %19 = vector.load %arg7[%c0_27, %c0_28, %c0_29, %c0_30] : memref<1x18x24x4xbf16, #tpu.memory_space<vmem>>, vector<1x16x16x4xbf16>
    %20 = vector.shape_cast %19 : vector<1x16x16x4xbf16> to vector<256x4xbf16>
    %c0_31 = arith.constant 0 : index
    %c0_32 = arith.constant 0 : index
    %21 = vector.load %arg8[%c0_31, %c0_32] : memref<256x36xbf16, #tpu.memory_space<vmem>>, vector<256x4xbf16>
    tpu.vector_store %arg8[%c0_31, %c0_32], %20 {strides = array<i32>} : memref<256x36xbf16, #tpu.memory_space<vmem>>, vector<256x4xbf16>,
    %c0_33 = arith.constant 0 : index
    %c0_34 = arith.constant 0 : index
    %c1_35 = arith.constant 1 : index
    %c0_36 = arith.constant 0 : index
    %22 = vector.load %arg7[%c0_33, %c0_34, %c1_35, %c0_36] : memref<1x18x24x4xbf16, #tpu.memory_space<vmem>>, vector<1x16x16x4xbf16>
    %23 = vector.shape_cast %22 : vector<1x16x16x4xbf16> to vector<256x4xbf16>
    %c0_37 = arith.constant 0 : index
    %c4 = arith.constant 4 : index
    %24 = vector.load %arg8[%c0_37, %c4] : memref<256x36xbf16, #tpu.memory_space<vmem>>, vector<256x4xbf16>
    tpu.vector_store %arg8[%c0_37, %c4], %23 {strides = array<i32>} : memref<256x36xbf16, #tpu.memory_space<vmem>>, vector<256x4xbf16>,
    %c0_38 = arith.constant 0 : index
    %c0_39 = arith.constant 0 : index
    %c2 = arith.constant 2 : index
    %c0_40 = arith.constant 0 : index
    %25 = vector.load %arg7[%c0_38, %c0_39, %c2, %c0_40] : memref<1x18x24x4xbf16, #tpu.memory_space<vmem>>, vector<1x16x16x4xbf16>
    %26 = vector.shape_cast %25 : vector<1x16x16x4xbf16> to vector<256x4xbf16>
    %c0_41 = arith.constant 0 : index
    %c8 = arith.constant 8 : index
    %27 = vector.load %arg8[%c0_41, %c8] : memref<256x36xbf16, #tpu.memory_space<vmem>>, vector<256x4xbf16>
    tpu.vector_store %arg8[%c0_41, %c8], %26 {strides = array<i32>} : memref<256x36xbf16, #tpu.memory_space<vmem>>, vector<256x4xbf16>,
    %c0_42 = arith.constant 0 : index
    %c1_43 = arith.constant 1 : index
    %c0_44 = arith.constant 0 : index
    %c0_45 = arith.constant 0 : index
    %28 = vector.load %arg7[%c0_42, %c1_43, %c0_44, %c0_45] : memref<1x18x24x4xbf16, #tpu.memory_space<vmem>>, vector<1x16x16x4xbf16>
    %29 = vector.shape_cast %28 : vector<1x16x16x4xbf16> to vector<256x4xbf16>
    %c0_46 = arith.constant 0 : index
    %c12 = arith.constant 12 : index
    %30 = vector.load %arg8[%c0_46, %c12] : memref<256x36xbf16, #tpu.memory_space<vmem>>, vector<256x4xbf16>
    tpu.vector_store %arg8[%c0_46, %c12], %29 {strides = array<i32>} : memref<256x36xbf16, #tpu.memory_space<vmem>>, vector<256x4xbf16>,
    %c0_47 = arith.constant 0 : index
    %c1_48 = arith.constant 1 : index
    %c1_49 = arith.constant 1 : index
    %c0_50 = arith.constant 0 : index
    %31 = vector.load %arg7[%c0_47, %c1_48, %c1_49, %c0_50] : memref<1x18x24x4xbf16, #tpu.memory_space<vmem>>, vector<1x16x16x4xbf16>
    %32 = vector.shape_cast %31 : vector<1x16x16x4xbf16> to vector<256x4xbf16>
    %c0_51 = arith.constant 0 : index
    %c16 = arith.constant 16 : index
    %33 = vector.load %arg8[%c0_51, %c16] : memref<256x36xbf16, #tpu.memory_space<vmem>>, vector<256x4xbf16>
    tpu.vector_store %arg8[%c0_51, %c16], %32 {strides = array<i32>} : memref<256x36xbf16, #tpu.memory_space<vmem>>, vector<256x4xbf16>,
    %c0_52 = arith.constant 0 : index
    %c1_53 = arith.constant 1 : index
    %c2_54 = arith.constant 2 : index
    %c0_55 = arith.constant 0 : index
    %34 = vector.load %arg7[%c0_52, %c1_53, %c2_54, %c0_55] : memref<1x18x24x4xbf16, #tpu.memory_space<vmem>>, vector<1x16x16x4xbf16>
    %35 = vector.shape_cast %34 : vector<1x16x16x4xbf16> to vector<256x4xbf16>
    %c0_56 = arith.constant 0 : index
    %c20 = arith.constant 20 : index
    %36 = vector.load %arg8[%c0_56, %c20] : memref<256x36xbf16, #tpu.memory_space<vmem>>, vector<256x4xbf16>
    tpu.vector_store %arg8[%c0_56, %c20], %35 {strides = array<i32>} : memref<256x36xbf16, #tpu.memory_space<vmem>>, vector<256x4xbf16>,
    %c0_57 = arith.constant 0 : index
    %c2_58 = arith.constant 2 : index
    %c0_59 = arith.constant 0 : index
    %c0_60 = arith.constant 0 : index
    %37 = vector.load %arg7[%c0_57, %c2_58, %c0_59, %c0_60] : memref<1x18x24x4xbf16, #tpu.memory_space<vmem>>, vector<1x16x16x4xbf16>
    %38 = vector.shape_cast %37 : vector<1x16x16x4xbf16> to vector<256x4xbf16>
    %c0_61 = arith.constant 0 : index
    %c24 = arith.constant 24 : index
    %39 = vector.load %arg8[%c0_61, %c24] : memref<256x36xbf16, #tpu.memory_space<vmem>>, vector<256x4xbf16>
    tpu.vector_store %arg8[%c0_61, %c24], %38 {strides = array<i32>} : memref<256x36xbf16, #tpu.memory_space<vmem>>, vector<256x4xbf16>,
    %c0_62 = arith.constant 0 : index
    %c2_63 = arith.constant 2 : index
    %c1_64 = arith.constant 1 : index
    %c0_65 = arith.constant 0 : index
    %40 = vector.load %arg7[%c0_62, %c2_63, %c1_64, %c0_65] : memref<1x18x24x4xbf16, #tpu.memory_space<vmem>>, vector<1x16x16x4xbf16>
    %41 = vector.shape_cast %40 : vector<1x16x16x4xbf16> to vector<256x4xbf16>
    %c0_66 = arith.constant 0 : index
    %c28 = arith.constant 28 : index
    %42 = vector.load %arg8[%c0_66, %c28] : memref<256x36xbf16, #tpu.memory_space<vmem>>, vector<256x4xbf16>
    tpu.vector_store %arg8[%c0_66, %c28], %41 {strides = array<i32>} : memref<256x36xbf16, #tpu.memory_space<vmem>>, vector<256x4xbf16>,
    %c0_67 = arith.constant 0 : index
    %c2_68 = arith.constant 2 : index
    %c2_69 = arith.constant 2 : index
    %c0_70 = arith.constant 0 : index
    %43 = vector.load %arg7[%c0_67, %c2_68, %c2_69, %c0_70] : memref<1x18x24x4xbf16, #tpu.memory_space<vmem>>, vector<1x16x16x4xbf16>
    %44 = vector.shape_cast %43 : vector<1x16x16x4xbf16> to vector<256x4xbf16>
    %c0_71 = arith.constant 0 : index
    %c32 = arith.constant 32 : index
    %45 = vector.load %arg8[%c0_71, %c32] : memref<256x36xbf16, #tpu.memory_space<vmem>>, vector<256x4xbf16>
    tpu.vector_store %arg8[%c0_71, %c32], %44 {strides = array<i32>} : memref<256x36xbf16, #tpu.memory_space<vmem>>, vector<256x4xbf16>,
    %c0_72 = arith.constant 0 : index
    %c0_73 = arith.constant 0 : index
    %46 = vector.load %arg8[%c0_72, %c0_73] : memref<256x36xbf16, #tpu.memory_space<vmem>>, vector<256x36xbf16>
    %c0_74 = arith.constant 0 : index
    %c0_75 = arith.constant 0 : index
    %47 = vector.load %arg4[%c0_74, %c0_75] : memref<36x4xbf16, #tpu.memory_space<vmem>>, vector<36x4xbf16>
    %cst_76 = arith.constant dense<0.000000e+00> : vector<256x4xf32>
    %48 = tpu.matmul %46, %47, %cst_76 {dimension_numbers = #tpu.dot_dimension_numbers<[1], [0], [0], [1], [0, 0, 1, 1], [], []>} : vector<256x36xbf16>, vector<36x4xbf16>, vector<256x4xf32> -> vector<256x4xf32>
    %49 = vector.shape_cast %48 : vector<256x4xf32> to vector<1x256x4xf32>
    %c0_77 = arith.constant 0 : index
    %c0_78 = arith.constant 0 : index
    %c0_79 = arith.constant 0 : index
    %50 = vector.load %arg5[%c0_77, %c0_78, %c0_79] : memref<1x256x4xf32, #tpu.memory_space<vmem>>, vector<1x256x4xf32>
    tpu.vector_store %arg5[%c0_77, %c0_78, %c0_79], %49 {strides = array<i32>} : memref<1x256x4xf32, #tpu.memory_space<vmem>>, vector<1x256x4xf32>,
    %cst_80 = arith.constant dense<0.000000e+00> : vector<4xf32>
    %51 = vector.multi_reduction <add>, %48, %cst_80 [0] : vector<256x4xf32> to vector<4xf32>
    %52 = vector.shape_cast %51 : vector<4xf32> to vector<1x4xf32>
    %53 = vector.shape_cast %52 : vector<1x4xf32> to vector<1x1x4xf32>
    %c0_81 = arith.constant 0 : index
    %c0_82 = arith.constant 0 : index
    %c0_83 = arith.constant 0 : index
    %54 = vector.load %arg6[%c0_81, %c0_82, %c0_83] : memref<1x2x4xf32, #tpu.memory_space<vmem>>, vector<1x1x4xf32>
    tpu.vector_store %arg6[%c0_81, %c0_82, %c0_83], %53 {strides = array<i32>} : memref<1x2x4xf32, #tpu.memory_space<vmem>>, vector<1x1x4xf32>,
    %55 = arith.mulf %48, %48 : vector<256x4xf32>
    %cst_84 = arith.constant dense<0.000000e+00> : vector<4xf32>
    %56 = vector.multi_reduction <add>, %55, %cst_84 [0] : vector<256x4xf32> to vector<4xf32>
    %57 = vector.shape_cast %56 : vector<4xf32> to vector<1x4xf32>
    %58 = vector.shape_cast %57 : vector<1x4xf32> to vector<1x1x4xf32>
    %c0_85 = arith.constant 0 : index
    %c1_86 = arith.constant 1 : index
    %c0_87 = arith.constant 0 : index
    %59 = vector.load %arg6[%c0_85, %c1_86, %c0_87] : memref<1x2x4xf32, #tpu.memory_space<vmem>>, vector<1x1x4xf32>
    tpu.vector_store %arg6[%c0_85, %c1_86, %c0_87], %58 {strides = array<i32>} : memref<1x2x4xf32, #tpu.memory_space<vmem>>, vector<1x1x4xf32>,
    return
  }
  func.func @transform_0(%arg0: i32) -> (i32, i32, i32, i32) {
    %c0_i32 = arith.constant 0 : i32
    %c0_i32_0 = arith.constant 0 : i32
    %c0_i32_1 = arith.constant 0 : i32
    %c0_i32_2 = arith.constant 0 : i32
    return %arg0, %c0_i32, %c0_i32_0, %c0_i32_1 : i32, i32, i32, i32
  }
  func.func @transform_1(%arg0: i32) -> (i32, i32) {
    %c0_i32 = arith.constant 0 : i32
    %c0_i32_0 = arith.constant 0 : i32
    %c0_i32_1 = arith.constant 0 : i32
    return %c0_i32, %c0_i32_0 : i32, i32
  }
  func.func @transform_2(%arg0: i32) -> (i32, i32) {
    %c0_i32 = arith.constant 0 : i32
    %c0_i32_0 = arith.constant 0 : i32
    %c0_i32_1 = arith.constant 0 : i32
    return %c0_i32, %c0_i32_0 : i32, i32
  }
  func.func @transform_3(%arg0: i32) -> (i32, i32) {
    %c0_i32 = arith.constant 0 : i32
    %c0_i32_0 = arith.constant 0 : i32
    %c0_i32_1 = arith.constant 0 : i32
    return %c0_i32, %c0_i32_0 : i32, i32
  }
  func.func @transform_4(%arg0: i32) -> (i32, i32, i32) {
    %c0_i32 = arith.constant 0 : i32
    %c0_i32_0 = arith.constant 0 : i32
    %c0_i32_1 = arith.constant 0 : i32
    return %arg0, %c0_i32, %c0_i32_0 : i32, i32, i32
  }
  func.func @transform_5(%arg0: i32) -> (i32, i32, i32) {
    %c0_i32 = arith.constant 0 : i32
    %c0_i32_0 = arith.constant 0 : i32
    %c0_i32_1 = arith.constant 0 : i32
    return %arg0, %c0_i32, %c0_i32_0 : i32, i32, i32
  }
}

module attributes {stable_mosaic.version = 11 : i64} {
  func.func @kernel(%arg0: i32, %arg1: memref<1x256x4xf32, #tpu.memory_space<vmem>>, %arg2: memref<1x4xf32, #tpu.memory_space<vmem>>, %arg3: memref<1x4xf32, #tpu.memory_space<vmem>>, %arg4: memref<1x256x4xf32, #tpu.memory_space<vmem>>, %arg5: memref<1x256x4xf32, #tpu.memory_space<vmem>>) attributes {dimension_semantics = [#tpu.dimension_semantics<parallel>], iteration_bounds = array<i64: 2>, scalar_prefetch = 0 : i64, scratch_operands = 0 : i64, tpu.core_type = #tpu.core_type<tc>, window_params = [{transform_indices = @transform_0, window_bounds = array<i64: 1, 256, 4>}, {pipeline_mode = #tpu.pipeline_mode<synchronous>, transform_indices = @transform_1, window_bounds = array<i64: 1, 4>}, {pipeline_mode = #tpu.pipeline_mode<synchronous>, transform_indices = @transform_2, window_bounds = array<i64: 1, 4>}, {transform_indices = @transform_3, window_bounds = array<i64: 1, 256, 4>}, {transform_indices = @transform_4, window_bounds = array<i64: 1, 256, 4>}]} {
    %c0 = arith.constant 0 : index
    %c0_0 = arith.constant 0 : index
    %0 = vector.load %arg2[%c0, %c0_0] : memref<1x4xf32, #tpu.memory_space<vmem>>, vector<1x4xf32>
    %1 = vector.shape_cast %0 : vector<1x4xf32> to vector<1x1x4xf32>
    %c0_1 = arith.constant 0 : index
    %c0_2 = arith.constant 0 : index
    %2 = vector.load %arg3[%c0_1, %c0_2] : memref<1x4xf32, #tpu.memory_space<vmem>>, vector<1x4xf32>
    %3 = vector.shape_cast %2 : vector<1x4xf32> to vector<1x1x4xf32>
    %c0_3 = arith.constant 0 : index
    %c0_4 = arith.constant 0 : index
    %c0_5 = arith.constant 0 : index
    %4 = vector.load %arg1[%c0_3, %c0_4, %c0_5] : memref<1x256x4xf32, #tpu.memory_space<vmem>>, vector<1x256x4xf32>
    %5 = vector.broadcast %1 : vector<1x1x4xf32> to vector<1x256x4xf32>
    %6 = arith.mulf %4, %5 : vector<1x256x4xf32>
    %7 = vector.broadcast %3 : vector<1x1x4xf32> to vector<1x256x4xf32>
    %8 = arith.addf %6, %7 : vector<1x256x4xf32>
    %c0_6 = arith.constant 0 : index
    %c0_7 = arith.constant 0 : index
    %c0_8 = arith.constant 0 : index
    %9 = vector.load %arg4[%c0_6, %c0_7, %c0_8] : memref<1x256x4xf32, #tpu.memory_space<vmem>>, vector<1x256x4xf32>
    %10 = arith.addf %8, %9 : vector<1x256x4xf32>
    %cst = arith.constant 0.000000e+00 : f32
    %11 = vector.broadcast %cst : f32 to vector<1x256x4xf32>
    %12 = arith.maximumf %10, %11 : vector<1x256x4xf32>
    %c0_9 = arith.constant 0 : index
    %c0_10 = arith.constant 0 : index
    %c0_11 = arith.constant 0 : index
    %13 = vector.load %arg5[%c0_9, %c0_10, %c0_11] : memref<1x256x4xf32, #tpu.memory_space<vmem>>, vector<1x256x4xf32>
    tpu.vector_store %arg5[%c0_9, %c0_10, %c0_11], %12 {strides = array<i32>} : memref<1x256x4xf32, #tpu.memory_space<vmem>>, vector<1x256x4xf32>,
    return
  }
  func.func @transform_0(%arg0: i32) -> (i32, i32, i32) {
    %c0_i32 = arith.constant 0 : i32
    %c0_i32_0 = arith.constant 0 : i32
    %c0_i32_1 = arith.constant 0 : i32
    return %arg0, %c0_i32, %c0_i32_0 : i32, i32, i32
  }
  func.func @transform_1(%arg0: i32) -> (i32, i32) {
    %c0_i32 = arith.constant 0 : i32
    %c0_i32_0 = arith.constant 0 : i32
    %c0_i32_1 = arith.constant 0 : i32
    return %c0_i32, %c0_i32_0 : i32, i32
  }
  func.func @transform_2(%arg0: i32) -> (i32, i32) {
    %c0_i32 = arith.constant 0 : i32
    %c0_i32_0 = arith.constant 0 : i32
    %c0_i32_1 = arith.constant 0 : i32
    return %c0_i32, %c0_i32_0 : i32, i32
  }
  func.func @transform_3(%arg0: i32) -> (i32, i32, i32) {
    %c0_i32 = arith.constant 0 : i32
    %c0_i32_0 = arith.constant 0 : i32
    %c0_i32_1 = arith.constant 0 : i32
    return %arg0, %c0_i32, %c0_i32_0 : i32, i32, i32
  }
  func.func @transform_4(%arg0: i32) -> (i32, i32, i32) {
    %c0_i32 = arith.constant 0 : i32
    %c0_i32_0 = arith.constant 0 : i32
    %c0_i32_1 = arith.constant 0 : i32
    return %arg0, %c0_i32, %c0_i32_0 : i32, i32, i32
  }
}

</mosaic_0001>

<bundles_post_ra>
// kernel: block_forward.5
= control target key start
LH: loop header
LB: loop body
LE: loop exit
PB: predicated region body
PF: predicated region fallthrough
CT: control target
= control target key end

     0   :  { %s583_s15 = smov 0   ;;  %s816_s0 = inlined_call_operand.vmem [shape: f32[2,256,4], index: 0, kind: input, shape index: {}]   ;;  %s817_s1 = inlined_call_operand.vmem [shape: f32[1,4], index: 1, kind: input, shape index: {}]   ;;  %s818_s2 = inlined_call_operand.vmem [shape: f32[1,4], index: 2, kind: input, shape index: {}]   ;;  %s819_s3 = inlined_call_operand.vmem [shape: f32[2,256,4], index: 3, kind: input, shape index: {}]   ;;  %s820_s4 = inlined_call_operand.vmem [shape: f32[2,256,4], index: 4, kind: output, shape index: {}]  }
   0x1 LB: > { %s524_s16 = sadd.s32 4294967295, %s556_s15   ;;  %p528_p0 = scmp.ge.s32.totalorder %s556_s15, 1  ;;  %s556_s15 = sphi %s583_s15, %s14_s15  }
   0x2   : > { %p172_p1 = scmp.lt.s32.totalorder %s556_s15, 3 }
   0x4   : > { %p173_p2 = pnand %p528_p0, %p172_p1 }
   0x5   : > { %p203_p3 = scmp.lt.s32.totalorder (!%p173_p2), %s524_s16, 1  ;;  %v596_v0 = vld [vmem:[%s817_s1] ss:$0 sm:$0xff] (!%p173_p2)  ;;  %vm424_vm0 = vcmask (!%p173_p2), 31744  }
   0x6   : > { %176 = sbr.rel (%p173_p2) target bundleno = 55 (0x37), region = 36  ;;  %v613_v1 = vld [vmem:[%s818_s2] ss:$0 sm:$0xff] (!%p173_p2) }
   0xd   : > { %s822_s16 = smov (!%p203_p3, %s524_s16), 1 }
   0xe   : > { %s591_s17 = sshll.u32 %s822_s16, 8 }
   0xf   : > { %s602_s22 = scalar_lea.vmem %s816_s0, %s591_s17  ;;  %s608_s25 = scalar_lea.vmem %s819_s3, %s591_s17 }
  0x10   : > { %v220_v2 = vld [vmem:[%s602_s22] sm:$0xff]  ;;  %v221_v3 = vld [vmem:[%s602_s22 + $0x8] sm:$0xff]  ;;  %v222_v7 = vld [vmem:[%s602_s22 + $0x10] sm:$0xff]  ;;  %s644_s30 = scalar_lea.vmem %s820_s4, %s591_s17 }
  0x11   : > { %v258_v4 = vmul.f32 %v596_v0, %v220_v2  ;;  %v328_v5 = vld [vmem:[%s608_s25] sm:$0xff]  ;;  %v259_v6 = vmul.f32 %v596_v0, %v221_v3  ;;  %v329_v8 = vld [vmem:[%s608_s25 + $0x8] sm:$0xff]  ;;  %v260_v9 = vmul.f32 %v596_v0, %v222_v7  ;;  %v223_v10 = vld [vmem:[%s602_s22 + $0x18] sm:$0xff] }
  0x12   : > { %v224_v11 = vld [vmem:[%s602_s22 + $0x20] sm:$0xff]  ;;  %v330_v14 = vld [vmem:[%s608_s25 + $0x10] sm:$0xff]  ;;  %v261_v15 = vmul.f32 %v596_v0, %v223_v10  ;;  %v331_v16 = vld [vmem:[%s608_s25 + $0x18] sm:$0xff] }
  0x13   : > { %v296_v12 = vadd.f32 %v613_v1, %v258_v4  ;;  %v297_v13 = vadd.f32 %v613_v1, %v259_v6  ;;  %v262_v17 = vmul.f32 %v596_v0, %v224_v11  ;;  %v225_v18 = vld [vmem:[%s602_s22 + $0x28] sm:$0xff]  ;;  %v298_v19 = vadd.f32 %v613_v1, %v260_v9  ;;  %v332_v20 = vld [vmem:[%s608_s25 + $0x20] sm:$0xff]  ;;  %v226_v22 = vld [vmem:[%s602_s22 + $0x30] sm:$0xff] }
  0x14   : > { %v263_v21 = vmul.f32 %v596_v0, %v225_v18  ;;  %v227_v23 = vld [vmem:[%s602_s22 + $0x38] sm:$0xff]  ;;  %v299_v26 = vadd.f32 %v613_v1, %v261_v15  ;;  %v333_v28 = vld [vmem:[%s608_s25 + $0x28] sm:$0xff]  ;;  %v264_v31 = vmul.f32 %v596_v0, %v226_v22  ;;  %v228_v33 = vld [vmem:[%s602_s22 + $0x40] sm:$0xff] }
  0x15   : > { %v360_v24 = vadd.f32 %v328_v5, %v296_v12  ;;  %v361_v25 = vadd.f32 %v329_v8, %v297_v13  ;;  %v300_v27 = vadd.f32 %v613_v1, %v262_v17  ;;  %v362_v29 = vadd.f32 %v330_v14, %v298_v19  ;;  %v229_v34 = vld [vmem:[%s602_s22 + $0x48] sm:$0xff]  ;;  %v334_v39 = vld [vmem:[%s608_s25 + $0x30] sm:$0xff]  ;;  %v335_v40 = vld [vmem:[%s608_s25 + $0x38] sm:$0xff] }
  0x16   : > { %v301_v30 = vadd.f32 %v613_v1, %v263_v21  ;;  %v265_v32 = vmul.f32 %v596_v0, %v227_v23  ;;  %v363_v37 = vadd.f32 %v331_v16, %v299_v26  ;;  %v230_v41 = vld [vmem:[%s602_s22 + $0x50] sm:$0xff]  ;;  %v302_v44 = vadd.f32 %v613_v1, %v264_v31  ;;  %v231_v46 = vld [vmem:[%s602_s22 + $0x58] sm:$0xff]  ;;  %v232_v47 = vld [vmem:[%s602_s22 + $0x60] sm:$0xff] }
  0x17   : > { %v392_v35 = vmax.f32 %v360_v24, 0.0  ;;  %v393_v36 = vmax.f32 %v361_v25, 0.0  ;;  %v364_v38 = vadd.f32 %v332_v20, %v300_v27  ;;  %v394_v42 = vmax.f32 %v362_v29, 0.0  ;;  %v233_v52 = vld [vmem:[%s602_s22 + $0x68] sm:$0xff]  ;;  %v336_v56 = vld [vmem:[%s608_s25 + $0x40] sm:$0xff]  ;;  %v338_v61 = vld [vmem:[%s608_s25 + $0x50] sm:$0xff] }
  0x18   : > { %v365_v43 = vadd.f32 %v333_v28, %v301_v30  ;;  %v303_v45 = vadd.f32 %v613_v1, %v265_v32  ;;  %v395_v48 = vmax.f32 %v363_v37, 0.0  ;;  %v266_v50 = vmul.f32 %v596_v0, %v228_v33  ;;  %v337_v57 = vld [vmem:[%s608_s25 + $0x48] sm:$0xff]  ;;  %v234_v2 = vld [vmem:[%s602_s22 + $0x70] sm:$0xff]  ;;  %v235_v3 = vld [vmem:[%s602_s22 + $0x78] sm:$0xff] }
  0x19   : > { %425 = vst.msk [vmem:[%s644_s30] sm:$0xff] %vm424_vm0, %v392_v35  ;;  %426 = vst.msk [vmem:[%s644_s30 + $0x8] sm:$0xff] %vm424_vm0, %v393_v36  ;;  %v396_v49 = vmax.f32 %v364_v38, 0.0  ;;  %v267_v51 = vmul.f32 %v596_v0, %v229_v34  ;;  %v366_v54 = vadd.f32 %v334_v39, %v302_v44  ;;  %v268_v58 = vmul.f32 %v596_v0, %v230_v41  ;;  %v339_v7 = vld [vmem:[%s608_s25 + $0x58] sm:$0xff]  ;;  %v340_v8 = vld [vmem:[%s608_s25 + $0x60] sm:$0xff] }
  0x1a   : > { %427 = vst.msk [vmem:[%s644_s30 + $0x10] sm:$0xff] %vm424_vm0, %v394_v42  ;;  %v397_v53 = vmax.f32 %v365_v43, 0.0  ;;  %v367_v55 = vadd.f32 %v335_v40, %v303_v45  ;;  %428 = vst.msk [vmem:[%s644_s30 + $0x18] sm:$0xff] %vm424_vm0, %v395_v48  ;;  %v304_v59 = vadd.f32 %v613_v1, %v266_v50  ;;  %v269_v62 = vmul.f32 %v596_v0, %v231_v46  ;;  %v341_v14 = vld [vmem:[%s608_s25 + $0x68] sm:$0xff]  ;;  %v236_v19 = vld [vmem:[%s602_s22 + $0x80] sm:$0xff] }
  0x1b   : > { %429 = vst.msk [vmem:[%s644_s30 + $0x20] sm:$0xff] %vm424_vm0, %v396_v49  ;;  %v305_v60 = vadd.f32 %v613_v1, %v267_v51  ;;  %v270_v63 = vmul.f32 %v596_v0, %v232_v47  ;;  %v398_v4 = vmax.f32 %v366_v54, 0.0  ;;  %v306_v6 = vadd.f32 %v613_v1, %v268_v58  ;;  %v237_v20 = vld [vmem:[%s602_s22 + $0x88] sm:$0xff]  ;;  %v342_v25 = vld [vmem:[%s608_s25 + $0x70] sm:$0xff]  ;;  %v343_v26 = vld [vmem:[%s608_s25 + $0x78] sm:$0xff] }
  0x1c   : > { %430 = vst.msk [vmem:[%s644_s30 + $0x28] sm:$0xff] %vm424_vm0, %v397_v53  ;;  %v399_v5 = vmax.f32 %v367_v55, 0.0  ;;  %v271_v9 = vmul.f32 %v596_v0, %v233_v52  ;;  %v368_v10 = vadd.f32 %v336_v56, %v304_v59  ;;  %v307_v12 = vadd.f32 %v613_v1, %v269_v62  ;;  %v238_v27 = vld [vmem:[%s602_s22 + $0x90] sm:$0xff]  ;;  %v239_v32 = vld [vmem:[%s602_s22 + $0x98] sm:$0xff]  ;;  %v240_v33 = vld [vmem:[%s602_s22 + $0xa0] sm:$0xff] }
  0x1d   : > { %v369_v11 = vadd.f32 %v337_v57, %v305_v60  ;;  %v308_v13 = vadd.f32 %v613_v1, %v270_v63  ;;  %431 = vst.msk [vmem:[%s644_s30 + $0x30] sm:$0xff] %vm424_vm0, %v398_v4  ;;  %v370_v15 = vadd.f32 %v338_v61, %v306_v6  ;;  %v272_v17 = vmul.f32 %v596_v0, %v234_v2  ;;  %v241_v38 = vld [vmem:[%s602_s22 + $0xa8] sm:$0xff]  ;;  %v344_v42 = vld [vmem:[%s608_s25 + $0x80] sm:$0xff]  ;;  %v346_v47 = vld [vmem:[%s608_s25 + $0x90] sm:$0xff] }
  0x1e   : > { %432 = vst.msk [vmem:[%s644_s30 + $0x38] sm:$0xff] %vm424_vm0, %v399_v5  ;;  %v309_v16 = vadd.f32 %v613_v1, %v271_v9  ;;  %v273_v18 = vmul.f32 %v596_v0, %v235_v3  ;;  %v400_v21 = vmax.f32 %v368_v10, 0.0  ;;  %v371_v23 = vadd.f32 %v339_v7, %v307_v12  ;;  %v345_v43 = vld [vmem:[%s608_s25 + $0x88] sm:$0xff]  ;;  %v242_v50 = vld [vmem:[%s602_s22 + $0xb0] sm:$0xff]  ;;  %v243_v51 = vld [vmem:[%s602_s22 + $0xb8] sm:$0xff] }
  0x1f   : > { %v401_v22 = vmax.f32 %v369_v11, 0.0  ;;  %v372_v24 = vadd.f32 %v340_v8, %v308_v13  ;;  %v402_v28 = vmax.f32 %v370_v15, 0.0  ;;  %v310_v30 = vadd.f32 %v613_v1, %v272_v17  ;;  %v347_v55 = vld [vmem:[%s608_s25 + $0x98] sm:$0xff]  ;;  %v348_v56 = vld [vmem:[%s608_s25 + $0xa0] sm:$0xff]  ;;  %v349_v62 = vld [vmem:[%s608_s25 + $0xa8] sm:$0xff] }
  0x20   : > { %v373_v29 = vadd.f32 %v341_v14, %v309_v16  ;;  %v311_v31 = vadd.f32 %v613_v1, %v273_v18  ;;  %433 = vst.msk [vmem:[%s644_s30 + $0x40] sm:$0xff] %vm424_vm0, %v400_v21  ;;  %v403_v34 = vmax.f32 %v371_v23, 0.0  ;;  %v274_v36 = vmul.f32 %v596_v0, %v236_v19  ;;  %v244_v5 = vld [vmem:[%s602_s22 + $0xc0] sm:$0xff]  ;;  %v245_v6 = vld [vmem:[%s602_s22 + $0xc8] sm:$0xff]  ;;  %v350_v11 = vld [vmem:[%s608_s25 + $0xb0] sm:$0xff] }
  0x21   : > { %434 = vst.msk [vmem:[%s644_s30 + $0x48] sm:$0xff] %vm424_vm0, %v401_v22  ;;  %v404_v35 = vmax.f32 %v372_v24, 0.0  ;;  %v275_v37 = vmul.f32 %v596_v0, %v237_v20  ;;  %435 = vst.msk [vmem:[%s644_s30 + $0x50] sm:$0xff] %vm424_vm0, %v402_v28  ;;  %v374_v40 = vadd.f32 %v342_v25, %v310_v30  ;;  %v276_v44 = vmul.f32 %v596_v0, %v238_v27  ;;  %v351_v12 = vld [vmem:[%s608_s25 + $0xb8] sm:$0xff]  ;;  %v246_v13 = vld [vmem:[%s602_s22 + $0xd0] sm:$0xff] }
  0x22   : > { %v405_v39 = vmax.f32 %v373_v29, 0.0  ;;  %v375_v41 = vadd.f32 %v343_v26, %v311_v31  ;;  %436 = vst.msk [vmem:[%s644_s30 + $0x58] sm:$0xff] %vm424_vm0, %v403_v34  ;;  %v312_v45 = vadd.f32 %v613_v1, %v274_v36  ;;  %v277_v48 = vmul.f32 %v596_v0, %v239_v32  ;;  %v247_v18 = vld [vmem:[%s602_s22 + $0xd8] sm:$0xff]  ;;  %v248_v19 = vld [vmem:[%s602_s22 + $0xe0] sm:$0xff]  ;;  %v249_v24 = vld [vmem:[%s602_s22 + $0xe8] sm:$0xff] }
  0x23   : > { %437 = vst.msk [vmem:[%s644_s30 + $0x60] sm:$0xff] %vm424_vm0, %v404_v35  ;;  %v313_v46 = vadd.f32 %v613_v1, %v275_v37  ;;  %v278_v49 = vmul.f32 %v596_v0, %v240_v33  ;;  %v406_v52 = vmax.f32 %v374_v40, 0.0  ;;  %v314_v54 = vadd.f32 %v613_v1, %v276_v44  ;;  %v352_v28 = vld [vmem:[%s608_s25 + $0xc0] sm:$0xff]  ;;  %v353_v29 = vld [vmem:[%s608_s25 + $0xc8] sm:$0xff]  ;;  %v354_v33 = vld [vmem:[%s608_s25 + $0xd0] sm:$0xff] }
  0x24   : > { %438 = vst.msk [vmem:[%s644_s30 + $0x68] sm:$0xff] %vm424_vm0, %v405_v39  ;;  %v407_v53 = vmax.f32 %v375_v41, 0.0  ;;  %v279_v57 = vmul.f32 %v596_v0, %v241_v38  ;;  %v376_v58 = vadd.f32 %v344_v42, %v312_v45  ;;  %v315_v60 = vadd.f32 %v613_v1, %v277_v48  ;;  %v250_v36 = vld [vmem:[%s602_s22 + $0xf0] sm:$0xff]  ;;  %v251_v37 = vld [vmem:[%s602_s22 + $0xf8] sm:$0xff]  ;;  %v356_v42 = vld [vmem:[%s608_s25 + $0xe0] sm:$0xff] }
  0x25   : > { %v377_v59 = vadd.f32 %v345_v43, %v313_v46  ;;  %v316_v61 = vadd.f32 %v613_v1, %v278_v49  ;;  %439 = vst.msk [vmem:[%s644_s30 + $0x70] sm:$0xff] %vm424_vm0, %v406_v52  ;;  %v378_v63 = vadd.f32 %v346_v47, %v314_v54  ;;  %v280_v3 = vmul.f32 %v596_v0, %v242_v50  ;;  %v355_v41 = vld [vmem:[%s608_s25 + $0xd8] sm:$0xff]  ;;  %v357_v48 = vld [vmem:[%s608_s25 + $0xe8] sm:$0xff] }
  0x26   : > { %440 = vst.msk [vmem:[%s644_s30 + $0x78] sm:$0xff] %vm424_vm0, %v407_v53  ;;  %v317_v2 = vadd.f32 %v613_v1, %v279_v57  ;;  %v281_v4 = vmul.f32 %v596_v0, %v243_v51  ;;  %v408_v7 = vmax.f32 %v376_v58, 0.0  ;;  %v379_v9 = vadd.f32 %v347_v55, %v315_v60  ;;  %v358_v57 = vld [vmem:[%s608_s25 + $0xf0] sm:$0xff]  ;;  %v359_v58 = vld [vmem:[%s608_s25 + $0xf8] sm:$0xff] }
  0x27   : > { %v409_v8 = vmax.f32 %v377_v59, 0.0  ;;  %v380_v10 = vadd.f32 %v348_v56, %v316_v61  ;;  %v410_v14 = vmax.f32 %v378_v63, 0.0  ;;  %v318_v16 = vadd.f32 %v613_v1, %v280_v3 }
  0x28   : > { %v381_v15 = vadd.f32 %v349_v62, %v317_v2  ;;  %v319_v17 = vadd.f32 %v613_v1, %v281_v4  ;;  %441 = vst.msk [vmem:[%s644_s30 + $0x80] sm:$0xff] %vm424_vm0, %v408_v7  ;;  %v411_v20 = vmax.f32 %v379_v9, 0.0  ;;  %v282_v22 = vmul.f32 %v596_v0, %v244_v5 }
  0x29   : > { %442 = vst.msk [vmem:[%s644_s30 + $0x88] sm:$0xff] %vm424_vm0, %v409_v8  ;;  %v412_v21 = vmax.f32 %v380_v10, 0.0  ;;  %v283_v23 = vmul.f32 %v596_v0, %v245_v6  ;;  %443 = vst.msk [vmem:[%s644_s30 + $0x90] sm:$0xff] %vm424_vm0, %v410_v14  ;;  %v382_v26 = vadd.f32 %v350_v11, %v318_v16  ;;  %v284_v30 = vmul.f32 %v596_v0, %v246_v13 }
  0x2a   : > { %v413_v25 = vmax.f32 %v381_v15, 0.0  ;;  %v383_v27 = vadd.f32 %v351_v12, %v319_v17  ;;  %444 = vst.msk [vmem:[%s644_s30 + $0x98] sm:$0xff] %vm424_vm0, %v411_v20  ;;  %v320_v31 = vadd.f32 %v613_v1, %v282_v22  ;;  %v285_v34 = vmul.f32 %v596_v0, %v247_v18 }
  0x2b   : > { %445 = vst.msk [vmem:[%s644_s30 + $0xa0] sm:$0xff] %vm424_vm0, %v412_v21  ;;  %v321_v32 = vadd.f32 %v613_v1, %v283_v23  ;;  %v286_v35 = vmul.f32 %v596_v0, %v248_v19  ;;  %v414_v38 = vmax.f32 %v382_v26, 0.0  ;;  %v322_v40 = vadd.f32 %v613_v1, %v284_v30 }
  0x2c   : > { %446 = vst.msk [vmem:[%s644_s30 + $0xa8] sm:$0xff] %vm424_vm0, %v413_v25  ;;  %v415_v39 = vmax.f32 %v383_v27, 0.0  ;;  %v287_v43 = vmul.f32 %v596_v0, %v249_v24  ;;  %v384_v44 = vadd.f32 %v352_v28, %v320_v31  ;;  %v323_v46 = vadd.f32 %v613_v1, %v285_v34 }
  0x2d   : > { %v385_v45 = vadd.f32 %v353_v29, %v321_v32  ;;  %v324_v47 = vadd.f32 %v613_v1, %v286_v35  ;;  %447 = vst.msk [vmem:[%s644_s30 + $0xb0] sm:$0xff] %vm424_vm0, %v414_v38  ;;  %v386_v49 = vadd.f32 %v354_v33, %v322_v40  ;;  %v288_v51 = vmul.f32 %v596_v0, %v250_v36 }
  0x2e   : > { %448 = vst.msk [vmem:[%s644_s30 + $0xb8] sm:$0xff] %vm424_vm0, %v415_v39  ;;  %v325_v50 = vadd.f32 %v613_v1, %v287_v43  ;;  %v289_v52 = vmul.f32 %v596_v0, %v251_v37  ;;  %v416_v53 = vmax.f32 %v384_v44, 0.0  ;;  %v387_v55 = vadd.f32 %v355_v41, %v323_v46 }
  0x2f   : > { %v417_v54 = vmax.f32 %v385_v45, 0.0  ;;  %v388_v56 = vadd.f32 %v356_v42, %v324_v47  ;;  %v418_v59 = vmax.f32 %v386_v49, 0.0  ;;  %v326_v61 = vadd.f32 %v613_v1, %v288_v51 }
  0x30   : > { %v389_v60 = vadd.f32 %v357_v48, %v325_v50  ;;  %v327_v62 = vadd.f32 %v613_v1, %v289_v52  ;;  %449 = vst.msk [vmem:[%s644_s30 + $0xc0] sm:$0xff] %vm424_vm0, %v416_v53  ;;  %v419_v0 = vmax.f32 %v387_v55, 0.0 }
  0x31   : > { %450 = vst.msk [vmem:[%s644_s30 + $0xc8] sm:$0xff] %vm424_vm0, %v417_v54  ;;  %v420_v63 = vmax.f32 %v388_v56, 0.0  ;;  %451 = vst.msk [vmem:[%s644_s30 + $0xd0] sm:$0xff] %vm424_vm0, %v418_v59  ;;  %v390_v3 = vadd.f32 %v358_v57, %v326_v61 }
  0x32   : > { %v421_v2 = vmax.f32 %v389_v60, 0.0  ;;  %v391_v4 = vadd.f32 %v359_v58, %v327_v62  ;;  %452 = vst.msk [vmem:[%s644_s30 + $0xd8] sm:$0xff] %vm424_vm0, %v419_v0 }
  0x33   : > { %453 = vst.msk [vmem:[%s644_s30 + $0xe0] sm:$0xff] %vm424_vm0, %v420_v63  ;;  %v422_v5 = vmax.f32 %v390_v3, 0.0 }
  0x34   : > { %454 = vst.msk [vmem:[%s644_s30 + $0xe8] sm:$0xff] %vm424_vm0, %v421_v2  ;;  %v423_v6 = vmax.f32 %v391_v4, 0.0 }
  0x35   : > { %455 = vst.msk [vmem:[%s644_s30 + $0xf0] sm:$0xff] %vm424_vm0, %v422_v5 }
  0x36   : > { %456 = vst.msk [vmem:[%s644_s30 + $0xf8] sm:$0xff] %vm424_vm0, %v423_v6 }
  0x37 PF: > { %s14_s15 = sadd.s32 1, %s556_s15  }
  0x38   : > { %p11_p4 = scmp.ge.s32.totalorder %s14_s15, 4  }
  0x3a   :  { %13 = sbr.rel (!%p11_p4) target bundleno = 1 (0x1), region = 69 }

// kernel: block_forward.4
= control target key start
LH: loop header
LB: loop body
LE: loop exit
PB: predicated region body
PF: predicated region fallthrough
CT: control target
= control target key end

     0   :  { %s5155_s18 = smov 0   ;;  %s6745_s0 = inlined_call_operand.vmem [shape: f32[2,16,16,4], index: 0, kind: input, shape index: {}]   ;;  %s6746_s1 = inlined_call_operand.vmem [shape: f32[1,4], index: 1, kind: input, shape index: {}]   ;;  %s6747_s2 = inlined_call_operand.vmem [shape: f32[1,4], index: 2, kind: input, shape index: {}]   ;;  %s6748_s3 = inlined_call_operand.vmem [shape: bf16[36,4], index: 3, kind: input, shape index: {}]   ;;  %s6749_s4 = inlined_call_operand.vmem [shape: f32[2,256,4], index: 4, kind: output, shape index: {0}]   ;;  %s6750_s5 = inlined_call_operand.vmem [shape: f32[2,2,4], index: 5, kind: output, shape index: {1}]  }
   0x1 LB: > { %s4678_s19 = sadd.s32 4294967295, %s5114_s18   ;;  %p4682_p0 = scmp.ge.s32.totalorder %s5114_s18, 1  ;;  %s5114_s18 = sphi %s5155_s18, %s16_s18  }
   0x2   : > { %p190_p1 = scmp.lt.s32.totalorder %s5114_s18, 3 }
   0x4   : > { %p191_p2 = pnand %p4682_p0, %p190_p1 }
   0x5   : > { %vm237_vm0 = vcmask (!%p191_p2), 27648   ;;  %vm6751_vm1 = vcmask (!%p191_p2), 24576   ;;  %vm246_vm2 = vsmask.f32 (!%p191_p2), 256  ;;  %v5116_v0 = vmov (!%p191_p2), 0   ;;  %p222_p3 = scmp.lt.s32.totalorder (!%p191_p2), %s4678_s19, 1 }
   0x6   : > { %194 = sbr.rel (%p191_p2) target bundleno = 789 (0x315), region = 36  ;;  %238 = vst.msk [vmem:[#allocation2] sm:$0xf] (!%p191_p2), %vm237_vm0, %v5116_v0  ;;  %239 = vst.msk [vmem:[#allocation2 + $0x4] sm:$0xf] (!%p191_p2), %vm237_vm0, %v5116_v0  ;;  %vm1822_vm5 = vcmask (!%p191_p2), 1042432  }
   0x7   : > { %240 = vst.msk [vmem:[#allocation2 + $0x8] sm:$0xf] (!%p191_p2), %vm237_vm0, %v5116_v0  ;;  %242 = vst.msk [vmem:[#allocation2 + $0xcc] sm:$0xf] (!%p191_p2), %vm237_vm0, %v5116_v0  ;;  %v254_v2 = vld [vmem:[#allocation2 + $0x18] sm:$0x1] (!%p191_p2) }
   0x8   : > { %243 = vst.msk [vmem:[#allocation2 + $0xd0] sm:$0xf] (!%p191_p2), %vm237_vm0, %v5116_v0  ;;  %244 = vst.msk [vmem:[#allocation2 + $0xd4] sm:$0xf] (!%p191_p2), %vm237_vm0, %v5116_v0  ;;  %vm302_vm4 = vsmask.f32 (!%p191_p2), 7938 }
   0x9   : > { %vm5171_vm3 = vmand (!%p191_p2), %vm6751_vm1, %vm246_vm2  ;;  %vm1823_vm6 = vcmask (!%p191_p2), 1046532   ;;  %v251_v4 = vld [vmem:[#allocation2 + $0xc] sm:$0x1] (!%p191_p2)  ;;  %v5182_v5 = vld [vmem:[%s6746_s1] ss:$0 sm:$0xff] (!%p191_p2)  ;;  %s5117_s28 = smov (!%p191_p2), 8  }
   0xa   : > { %v255_v3 = vsel (!%p191_p2), %vm5171_vm3, 0, %v254_v2  ;;  %v252_v6 = vsel (!%p191_p2), %vm5171_vm3, 0, %v251_v4  ;;  %v257_v7 = vld [vmem:[#allocation2 + $0x24] sm:$0x1] (!%p191_p2)  ;;  %v260_v8 = vld [vmem:[#allocation2 + $0x30] sm:$0x1] (!%p191_p2)  ;;  %vm5188_vm7 = vmand (!%p191_p2), %vm6751_vm1, %vm302_vm4 }
   0xb   : > { %256 = vst [vmem:[#allocation2 + $0x18] sm:$0x1] (!%p191_p2), %v255_v3  ;;  %253 = vst [vmem:[#allocation2 + $0xc] sm:$0x1] (!%p191_p2), %v252_v6  ;;  %v258_v10 = vsel (!%p191_p2), %vm5171_vm3, 0, %v257_v7  ;;  %v261_v11 = vsel (!%p191_p2), %vm5171_vm3, 0, %v260_v8 }
   0xc   : > { %v307_v12 = vld [vmem:[#allocation2 + $0x14] sm:$0x1] (!%p191_p2)  ;;  %vm5198_vm8 = vmor (!%p191_p2), %vm1822_vm5, %vm1823_vm6  ;;  %v5212_v14 = vld [vmem:[%s6747_s2] ss:$0 sm:$0xff] (!%p191_p2)  ;;  %259 = vst [vmem:[#allocation2 + $0x24] sm:$0x1] (!%p191_p2), %v258_v10 }
   0xd   : > { %s6883_s19 = smov (!%p222_p3, %s4678_s19), 1  ;;  %262 = vst [vmem:[#allocation2 + $0x30] sm:$0x1] %v261_v11  ;;  %v308_v15 = vsel %vm5188_vm7, 0, %v307_v12  ;;  %v310_v16 = vld [vmem:[#allocation2 + $0x20] sm:$0x1]  ;;  %vm5265_vm13 = vmand %vm237_vm0, %vm302_vm4 }
   0xe   : > { %s4935_s22 = sshll.u32 %s6883_s19, 8  ;;  %v304_v17 = vld [vmem:[#allocation2 + $0x8] sm:$0x1]  ;;  %v1726_v18 = vld [vmem:[#allocation2] sm:$0xe]  ;;  %v311_v30 = vsel %vm5188_vm7, 0, %v310_v16 }
   0xf   : > { %s5207_s25 = scalar_lea.vmem %s6745_s0, %s4935_s22  ;;  %v1727_v19 = vld [vmem:[#allocation2 + $0x4] sm:$0xf]  ;;  %vm1226_vm9 = vsmask.f32 3328  ;;  %vm1227_vm10 = vsmask.f32 7440 }
  0x10   : > { %309 = vst [vmem:[#allocation2 + $0x14] sm:$0x1] %v308_v15  ;;  %v305_v20 = vsel %vm5188_vm7, 0, %v304_v17  ;;  %v4754_v21 = vrot.slane %v1726_v18, 9  ;;  %v1827_v22 = vrot.slane %v1727_v19, 5  ;;  %v360_v24 = vld [vmem:[%s5207_s25 + $0x10] sm:$0xff]  ;;  %vm5256_vm12 = vmor %vm1226_vm9, %vm1227_vm10 }
  0x11   : > { %v248_v23 = vld [vmem:[#allocation2] sm:$0x1]  ;;  %306 = vst [vmem:[#allocation2 + $0x8] sm:$0x1] %v305_v20  ;;  %v1179_v26 = vld [vmem:[#allocation2 + $0x4] sm:$0xf]  ;;  %v400_v28 = vmul.f32 %v5182_v5, %v360_v24 }
  0x12   : > { %v249_v25 = vsel %vm5171_vm3, 0, %v248_v23  ;;  %v361_v27 = vld [vmem:[%s5207_s25 + $0x18] sm:$0xff]  ;;  %v358_v29 = vld [vmem:[%s5207_s25] sm:$0xff]  ;;  %v5228_v31 = vsel %vm5198_vm8, %v4754_v21, %v1827_v22  ;;  %v1829_v32 = vrot.slane %v1827_v22, 4  ;;  %v1239_v33 = vshll.u32 %v1179_v26, 16  ;;  %v359_v35 = vld [vmem:[%s5207_s25 + $0x8] sm:$0xff] }
  0x13   : > { %250 = vst [vmem:[#allocation2] sm:$0x1] %v249_v25  ;;  %v1243_v34 = vshrl.u32 %v1179_v26, 16  ;;  %312 = vst [vmem:[#allocation2 + $0x20] sm:$0x1] %v311_v30  ;;  %v401_v36 = vmul.f32 %v5182_v5, %v361_v27  ;;  %v438_v37 = vadd.f32 %v5212_v14, %v400_v28  ;;  %v398_v38 = vmul.f32 %v5182_v5, %v358_v29  ;;  %v362_v40 = vld [vmem:[%s5207_s25 + $0x20] sm:$0xff] }
  0x14   : > { %vm596_vm11 = vsmask.f32 4368  ;;  %v399_v39 = vmul.f32 %v5182_v5, %v359_v35  ;;  %v363_v41 = vld [vmem:[%s5207_s25 + $0x28] sm:$0xff]  ;;  %v364_v42 = vld [vmem:[%s5207_s25 + $0x30] sm:$0xff]  ;;  %v5238_v43 = vrot.slane %v1239_v33, 5  ;;  %v402_v45 = vmul.f32 %v5182_v5, %v362_v40  ;;  %v365_v51 = vld [vmem:[%s5207_s25 + $0x38] sm:$0xff] }
  0x15   : > { %v1245_v44 = vrot.slane %v1243_v34, 4  ;;  %v403_v46 = vmul.f32 %v5182_v5, %v363_v41  ;;  %v439_v47 = vadd.f32 %v5212_v14, %v401_v36  ;;  %v470_v48 = vmax.f32 %v438_v37, 0.0  ;;  %v928_v26 = vld [vmem:[#allocation2 + $0x18] sm:$0xf]  ;;  %vm5274_vm14 = vmor %vm246_vm2, %vm596_vm11  ;;  %s5118_s29 = smov 4   ;;  %s5119_s30 = smov 12  }
  0x16   : > { %v436_v49 = vadd.f32 %v5212_v14, %v398_v38  ;;  %v437_v50 = vadd.f32 %v5212_v14, %v399_v39  ;;  %v440_v53 = vadd.f32 %v5212_v14, %v402_v45  ;;  %v404_v55 = vmul.f32 %v5182_v5, %v364_v42  ;;  %v921_v39 = vld [vmem:[#allocation2 + $0xc] sm:$0xf]  ;;  %s5120_s6 = smov 24   ;;  %s5121_s7 = smov 20  }
  0x17   : > { %v1246_v52 = vor.u32 %v1245_v44, %v5238_v43  ;;  %v441_v54 = vadd.f32 %v5212_v14, %v403_v46  ;;  %v471_v56 = vmax.f32 %v439_v47, 0.0  ;;  %v4939_v57 = vpack.c.bf16 %v470_v48, %v470_v48  ;;  %s5122_s8 = smov 32   ;;  %s5123_s9 = smov 16  }
  0x18   : > { %v468_v58 = vmax.f32 %v436_v49, 0.0  ;;  %v469_v59 = vmax.f32 %v437_v50, 0.0  ;;  %v1728_v60 = vld [vmem:[#allocation2 + $0x8] sm:$0x1]  ;;  %v472_v63 = vmax.f32 %v440_v53, 0.0  ;;  %v405_v0 = vmul.f32 %v5182_v5, %v365_v51  ;;  %s5124_s10 = smov 28  }
  0x19   : > { %v1180_v61 = vld [vmem:[#allocation2 + $0x8] sm:$0x1]  ;;  %v1247_v62 = vrot.slane %v1246_v52, 4  ;;  %v5252_v2 = vadd.f32 %v5212_v14, %v404_v55  ;;  %v1830_v3 = vrot.slane %v1728_v60, 5  ;;  %v4940_v7 = vpack.c.bf16 %v471_v56, %v471_v56  ;;  %v313_v55 = vld [vmem:[#allocation2 + $0x2c] sm:$0x1] }
  0x1a   : > { %v1178_v4 = vld [vmem:[#allocation2] sm:$0xf]  ;;  %v1249_v6 = vshll.u32 %v1180_v61, 16  ;;  %v616_v8 = vshrl.u32 %v4939_v57, 16  ;;  %v619_v15 = vshll.u32 %v4939_v57, 16  ;;  %v4937_v16 = vpack.c.bf16 %v468_v58, %v468_v58 }
  0x1b   : > { %v1230_v11 = vshrl.u32 %v1178_v4, 16  ;;  %v1233_v12 = vshll.u32 %v1178_v4, 16  ;;  %v1831_v17 = vsel %vm5198_vm8, %v1829_v32, %v1830_v3  ;;  %v624_v20 = vshrl.u32 %v4940_v7, 16  ;;  %v932_v60 = vld [vmem:[#allocation2 + $0x20] sm:$0x1] }
  0x1c   : > { %v1251_v18 = vrot.slane %v1249_v6, 5  ;;  %v618_v19 = vrot.slane %v616_v8, 7  ;;  %v4770_v21 = vcombine.low %v5228_v31, %v1831_v17  ;;  %v627_v24 = vshll.u32 %v4940_v7, 16  ;;  %v935_v8 = vld [vmem:[#allocation2 + $0x24] sm:$0xf] }
  0x1d   : > { %v1232_v22 = vrot.slane %v1230_v11, 4  ;;  %v1235_v23 = vrot.slane %v1233_v12, 5  ;;  %v626_v30 = vrot.slane %v624_v20, 7  ;;  %v4938_v33 = vpack.c.bf16 %v469_v59, %v469_v59  ;;  %v367_v20 = vld [vmem:[%s5207_s25 + $0x48] sm:$0xff] }
  0x1e   : > { %v1252_v27 = vsel %vm5256_vm12, %v1247_v62, %v1251_v18  ;;  %v621_v28 = vor.u32 %v619_v15, %v618_v19  ;;  %v622_v29 = vrot.slane %v618_v19, 4  ;;  %1985 = vrot.lane.b32.xlu1 %v4770_v21, %s5117_s28  ;;  %v599_v34 = vshrl.u32 %v4937_v16, 16  ;;  %v366_v19 = vld [vmem:[%s5207_s25 + $0x40] sm:$0xff] }
  0x1f   : > { %v1236_v31 = vor.u32 %v1235_v23, %v1232_v22  ;;  %v602_v35 = vshll.u32 %v4937_v16, 16  ;;  %v629_v36 = vor.u32 %v627_v24, %v626_v30  ;;  %v631_v37 = vrot.slane %v626_v30, 4 }
  0x20   : > { %v929_v38 = vsel %vm5265_vm13, %v621_v28, %v928_v26  ;;  %v473_v40 = vmax.f32 %v441_v54, 0.0  ;;  %v601_v42 = vrot.slane %v599_v34, 7  ;;  %v607_v44 = vshrl.u32 %v4938_v33, 16  ;;  %v925_v54 = vld [vmem:[#allocation2 + $0x14] sm:$0x1] }
  0x21   : > { %v1237_v41 = vrot.slane %v1236_v31, 4  ;;  %930 = vst [vmem:[#allocation2 + $0x18] sm:$0xf] %v929_v38  ;;  %v610_v45 = vshll.u32 %v4938_v33, 16  ;;  %v630_v46 = vsel %vm5274_vm14, %v622_v29, %v629_v36  ;;  %v4941_v47 = vpack.c.bf16 %v472_v63, %v472_v63  ;;  %v368_v36 = vld [vmem:[%s5207_s25 + $0x50] sm:$0xff] }
  0x22   : > { %v4942_v48 = vpack.c.bf16 %v473_v40, %v473_v40  ;;  %v443_v49 = vadd.f32 %v5212_v14, %v405_v0  ;;  %931 = vst.msk [vmem:[#allocation2 + $0x1c] sm:$0xf] %vm237_vm0, %v630_v46  ;;  %v604_v51 = vor.u32 %v602_v35, %v601_v42  ;;  %v605_v52 = vrot.slane %v601_v42, 4 }
  0x23   : > { %v1242_v50 = vsel %vm5256_vm12, %v1237_v41, %v5238_v43  ;;  %v609_v53 = vrot.slane %v607_v44, 7  ;;  %v633_v57 = vshrl.u32 %v4941_v47, 16  ;;  %v636_v58 = vshll.u32 %v4941_v47, 16 }
  0x24   : > { %v4738_v56 = vcombine.low %v1242_v50, %v1252_v27  ;;  %v641_v59 = vshrl.u32 %v4942_v48, 16  ;;  %v922_v63 = vsel %vm5265_vm13, %v604_v51, %v921_v39  ;;  %v644_v0 = vshll.u32 %v4942_v48, 16 }
  0x25   : > { %v612_v61 = vor.u32 %v610_v45, %v609_v53  ;;  %v614_v62 = vrot.slane %v609_v53, 4  ;;  %923 = vst [vmem:[#allocation2 + $0xc] sm:$0xf] %v922_v63  ;;  %v635_v43 = vrot.slane %v633_v57, 7  ;;  %v474_v4 = vmax.f32 %v5252_v2, 0.0 }
  0x26   : > { %1661 = vrot.lane.b32.xlu0 %v4738_v56, %s5118_s29  ;;  %v5290_v3 = vrot.slane %v641_v59, 7  ;;  %v475_v6 = vmax.f32 %v443_v49, 0.0  ;;  %v933_v12 = vsel %vm5171_vm3, %v631_v37, %v932_v60  ;;  %v314_v15 = vsel %vm5188_vm7, 0, %v313_v55  ;;  %v942_v37 = vld [vmem:[#allocation2 + $0x30] sm:$0xf] }
  0x27   : > { %v613_v7 = vsel %vm5274_vm14, %v605_v52, %v612_v61  ;;  %v926_v11 = vsel %vm5171_vm3, %v614_v62, %v925_v54  ;;  %v638_v16 = vor.u32 %v636_v58, %v635_v43  ;;  %v639_v17 = vrot.slane %v635_v43, 4  ;;  %934 = vst [vmem:[#allocation2 + $0x20] sm:$0x1] %v933_v12  ;;  %315 = vst [vmem:[#allocation2 + $0x2c] sm:$0x1] %v314_v15  ;;  %v369_v62 = vld [vmem:[%s5207_s25 + $0x58] sm:$0xff] }
  0x28   : > { %924 = vst.msk [vmem:[#allocation2 + $0x10] sm:$0xf] %vm237_vm0, %v613_v7  ;;  %v646_v2 = vor.u32 %v644_v0, %v5290_v3  ;;  %v648_v18 = vrot.slane %v5290_v3, 4  ;;  %927 = vst [vmem:[#allocation2 + $0x14] sm:$0x1] %v926_v11  ;;  %v4943_v21 = vpack.c.bf16 %v474_v4, %v474_v4  ;;  %v4944_v22 = vpack.c.bf16 %v475_v6, %v475_v6 }
  0x29   : > { %v5306_v23 = vld [vmem:[#allocation2 + $0x18] sm:$0xe]  ;;  %v936_v29 = vsel %vm5265_vm13, %v638_v16, %v935_v8  ;;  %v2776_v38 = vld [vmem:[#allocation2 + $0x1c] sm:$0xf]  ;;  %v406_v46 = vmul.f32 %v5182_v5, %v366_v19  ;;  %v407_v47 = vmul.f32 %v5182_v5, %v367_v20  ;;  %v408_v63 = vmul.f32 %v5182_v5, %v368_v36  ;;  %v370_v19 = vld [vmem:[%s5207_s25 + $0x60] sm:$0xff] }
  0x2a   : > { %v5308_v24 = vld [vmem:[#allocation2 + $0x18] sm:$0xe]  ;;  %v647_v28 = vsel %vm5274_vm14, %v639_v17, %v646_v2  ;;  %v4819_v30 = vrot.slane %v5306_v23, 9  ;;  %937 = vst [vmem:[#allocation2 + $0x24] sm:$0xf] %v936_v29  ;;  %v650_v31 = vshrl.u32 %v4943_v21, 16 }
  0x2b   : > { %v5310_v26 = vld [vmem:[#allocation2 + $0x18] sm:$0xf]  ;;  %938 = vst.msk [vmem:[#allocation2 + $0x28] sm:$0xf] %vm237_vm0, %v647_v28  ;;  %v653_v33 = vshll.u32 %v4943_v21, 16  ;;  %v658_v34 = vshrl.u32 %v4944_v22, 16  ;;  %v5339_v17 = vadd.f32 %v5212_v14, %v406_v46  ;;  %v5342_v2 = vadd.f32 %v5212_v14, %v407_v47 }
  0x2c   : > { %v5051_v27 = vld [vmem:[#allocation2 + $0x18] sm:$0xff]   ;;  %v661_v35 = vshll.u32 %v4944_v22, 16  ;;  %v4882_v40 = vrot.slane %v5308_v24, 9  ;;  %v2300_v41 = vshrl.u32 %v5310_v26, 16  ;;  %v652_v42 = vrot.slane %v650_v31, 7 }
  0x2d   : > { %2164 = vrot.lane.b32.xlu1 %v5051_v27, %s5119_s30  ;;  %v3817_v39 = vld [vmem:[#allocation2 + $0x1c] sm:$0xf]  ;;  %v5322_v44 = vrot.slane %v658_v34, 7  ;;  %v1729_v45 = vld [vmem:[#allocation2 + $0xc] sm:$0xe]  ;;  %v2877_v50 = vrot.slane %v2776_v38, 5  ;;  %v5348_v34 = vmul.f32 %v5182_v5, %v369_v62 }
  0x2e   : > { %v4755_v48 = vrot.slane %v1729_v45, 9  ;;  %v2772_v49 = vld [vmem:[#allocation2 + $0xc] sm:$0xe]  ;;  %v3914_v51 = vrot.slane %v3817_v39, 5  ;;  %v5326_v52 = vrot.slane %v2300_v41, 4  ;;  %v5054_v54 = vld [vmem:[#allocation2 + $0x18] sm:$0xff]   ;;  %v655_v55 = vor.u32 %v653_v33, %v652_v42 }
  0x2f   : > { %v5052_v53 = vld [vmem:[#allocation2 + $0xc] sm:$0xff]   ;;  %v656_v56 = vrot.slane %v652_v42, 4  ;;  %v663_v57 = vor.u32 %v661_v35, %v5322_v44  ;;  %v665_v58 = vrot.slane %v5322_v44, 4  ;;  %v1731_v60 = vld [vmem:[#allocation2 + $0x14] sm:$0x1]  ;;  %v4818_v12 = vrot.slane %v2772_v49, 9 }
  0x30   : > { %v1730_v59 = vld [vmem:[#allocation2 + $0x10] sm:$0xf]  ;;  %2162 = vrot.lane.b32.xlu0 %v5052_v53, %s5119_s30  ;;  %v943_v43 = vsel %vm5265_vm13, %v655_v55, %v942_v37  ;;  %v1837_v6 = vrot.slane %v1731_v60, 5  ;;  %v2774_v7 = vld [vmem:[#allocation2 + $0x14] sm:$0x1]  ;;  %v2879_v22 = vrot.slane %v2877_v50, 4  ;;  %v5351_v35 = vadd.f32 %v5212_v14, %v408_v63 }
  0x31   : > { %v2773_v61 = vld [vmem:[#allocation2 + $0x10] sm:$0xf]  ;;  %v664_v0 = vsel %vm5274_vm14, %v656_v56, %v663_v57  ;;  %v1834_v4 = vrot.slane %v1730_v59, 5  ;;  %v2777_v8 = vld [vmem:[#allocation2 + $0x20] sm:$0x1]  ;;  %v2873_v21 = vrot.slane %v2774_v7, 5  ;;  %v5363_v42 = vsel %vm5198_vm8, %v4819_v30, %v2877_v50 }
  0x32   : > { %v5053_v11 = vld [vmem:[#allocation2 + $0x24] sm:$0xff]   ;;  %944 = vst [vmem:[#allocation2 + $0x30] sm:$0xf] %v943_v43  ;;  %945 = vst.msk [vmem:[#allocation2 + $0x34] sm:$0xf] %vm237_vm0, %v664_v0  ;;  %v2870_v20 = vrot.slane %v2773_v61, 5  ;;  %v3915_v14 = vsel %vm5198_vm8, %v4882_v40, %v3914_v51  ;;  %v5376_v40 = vmul.f32 %v5182_v5, %v370_v19 }
  0x33   : > { %v5056_v15 = vld [vmem:[#allocation2 + $0x24] sm:$0xff]   ;;  %v1836_v16 = vrot.slane %v1834_v4, 4  ;;  %3208 = vrot.lane.b32.xlu1 %v5053_v11, %s5120_s6  ;;  %v2880_v24 = vrot.slane %v2777_v8, 5  ;;  %v3818_v27 = vld [vmem:[#allocation2 + $0x20] sm:$0x1]  ;;  %v3916_v28 = vrot.slane %v3914_v51, 4  ;;  %v1835_v36 = vsel %vm5198_vm8, %v4755_v48, %v1834_v4 }
  0x34   : > { %3206 = vrot.lane.b32.xlu0 %v5054_v54, %s5120_s6  ;;  %v3917_v29 = vrot.slane %v3818_v27, 5  ;;  %v939_v31 = vld [vmem:[#allocation2 + $0x2c] sm:$0x1]  ;;  %v1735_v33 = vld [vmem:[#allocation2 + $0x24] sm:$0xe]  ;;  %v2871_v38 = vsel %vm5198_vm8, %v4818_v12, %v2870_v20  ;;  %v2872_v39 = vrot.slane %v2870_v20, 4 }
  0x35   : > { %v1838_v37 = vsel %vm5198_vm8, %v1836_v16, %v1837_v6  ;;  %v1736_v41 = vld [vmem:[#allocation2 + $0x28] sm:$0xf]  ;;  %v940_v46 = vsel %vm5171_vm3, %v648_v18, %v939_v31  ;;  %v3819_v47 = vld [vmem:[#allocation2 + $0x24] sm:$0xe]  ;;  %v2231_v49 = vld [vmem:[#allocation2 + $0x1c] sm:$0xf]  ;;  %v2881_v18 = vsel %vm5198_vm8, %v2879_v22, %v2880_v24 }
  0x36   : > { %v3918_v45 = vsel %vm5198_vm8, %v3916_v28, %v3917_v29  ;;  %v3820_v48 = vld [vmem:[#allocation2 + $0x28] sm:$0xf]  ;;  %v2874_v23 = vsel %vm5198_vm8, %v2872_v39, %v2873_v21  ;;  %941 = vst [vmem:[#allocation2 + $0x2c] sm:$0x1] %v940_v46  ;;  %v4757_v30 = vrot.slane %v1735_v33, 9  ;;  %v1848_v50 = vrot.slane %v1736_v41, 5 }
  0x37   : > { %v2232_v53 = vld [vmem:[#allocation2 + $0x20] sm:$0x1]  ;;  %v1732_v54 = vld [vmem:[#allocation2 + $0x18] sm:$0xe]  ;;  %v4771_v3 = vcombine.low %v1835_v36, %v1838_v37  ;;  %v4834_v55 = vcombine.low %v2871_v38, %v2874_v23  ;;  %v3921_v56 = vrot.slane %v3820_v48, 5  ;;  %v4898_v57 = vcombine.low %v3915_v14, %v3918_v45 }
  0x38   : > { %2166 = vrot.lane.b32.xlu0 %v5056_v15, %s5119_s30  ;;  %v4883_v59 = vrot.slane %v3819_v47, 9  ;;  %v2303_v60 = vshll.u32 %v5310_v26, 16  ;;  %v2309_v61 = vshll.u32 %v2231_v49, 16  ;;  %v1733_v62 = vld [vmem:[#allocation2 + $0x1c] sm:$0xf]  ;;  %v1850_v63 = vrot.slane %v1848_v50, 4 }
  0x39   : > { %v5055_v51 = vld [vmem:[#allocation2 + $0x30] sm:$0xff]   ;;  %v3923_v0 = vrot.slane %v3921_v56, 4  ;;  %v2313_v43 = vshrl.u32 %v2231_v49, 16  ;;  %v2319_v4 = vshll.u32 %v2232_v53, 16  ;;  %v1734_v6 = vld [vmem:[#allocation2 + $0x20] sm:$0x1]  ;;  %v4835_v28 = vcombine.low %v5363_v42, %v2881_v18 }
  0x3a   : > { %2168 = vrot.lane.b32.xlu1 %v5055_v51, %s5119_s30  ;;  %v2305_v7 = vrot.slane %v2303_v60, 5  ;;  %v2311_v8 = vrot.slane %v2309_v61, 5  ;;  %v4756_v11 = vrot.slane %v1732_v54, 9  ;;  %v1841_v12 = vrot.slane %v1733_v62, 5  ;;  %v3274_v15 = vld [vmem:[#allocation2 + $0x24] sm:$0xf] }
  0x3b   : > { %v2315_v16 = vrot.slane %v2313_v43, 4  ;;  %v2321_v19 = vrot.slane %v2319_v4, 5  ;;  %v1844_v26 = vrot.slane %v1734_v6, 5  ;;  %v3344_v20 = vshrl.u32 %v3274_v15, 16  ;;  %v3275_v38 = vld [vmem:[#allocation2 + $0x28] sm:$0xf] }
  0x3c   : > { %3028 = vrot.lane.b32.xlu0 %v4834_v55, %s5121_s7  ;;  %v2306_v21 = vor.u32 %v2305_v7, %v5326_v52  ;;  %v1842_v22 = vsel %vm5198_vm8, %v4756_v11, %v1841_v12  ;;  %v1843_v24 = vrot.slane %v1841_v12, 4  ;;  %v3347_v27 = vshll.u32 %v3274_v15, 16  ;;  %v1181_v53 = vld [vmem:[#allocation2 + $0xc] sm:$0xf]  ;;  %v1182_v54 = vld [vmem:[#allocation2 + $0x10] sm:$0xf] }
  0x3d   : > { %v1737_v29 = vld [vmem:[#allocation2 + $0x2c] sm:$0x1]  ;;  %v1849_v31 = vsel %vm5198_vm8, %v4757_v30, %v1848_v50  ;;  %v3922_v36 = vsel %vm5198_vm8, %v4883_v59, %v3921_v56  ;;  %v2316_v37 = vor.u32 %v2315_v16, %v2311_v8  ;;  %v3346_v47 = vrot.slane %v3344_v20, 4  ;;  %v1183_v56 = vld [vmem:[#allocation2 + $0x14] sm:$0x1] }
  0x3e   : > { %1987 = vrot.lane.b32.xlu1 %v4771_v3, %s5117_s28  ;;  %v3821_v33 = vld [vmem:[#allocation2 + $0x2c] sm:$0x1]  ;;  %v1851_v52 = vrot.slane %v1737_v29, 5  ;;  %v2307_v41 = vrot.slane %v2306_v21, 4  ;;  %v1845_v14 = vsel %vm5198_vm8, %v1843_v24, %v1844_v26  ;;  %v3349_v48 = vrot.slane %v3347_v27, 5 }
  0x3f   : > { %v3924_v39 = vrot.slane %v3821_v33, 5  ;;  %v2317_v42 = vrot.slane %v2316_v37, 4  ;;  %v4772_v45 = vcombine.low %v1842_v22, %v1845_v14  ;;  %v3276_v46 = vld [vmem:[#allocation2 + $0x2c] sm:$0x1]  ;;  %v3353_v50 = vshll.u32 %v3275_v38, 16 }
  0x40   : > { %4072 = vrot.lane.b32.xlu0 %v4898_v57, %s5122_s8  ;;  %v1852_v49 = vsel %vm5198_vm8, %v1850_v63, %v1851_v52  ;;  %v2312_v30 = vsel %vm5256_vm12, %v2307_v41, %v2311_v8  ;;  %v3350_v18 = vor.u32 %v3349_v48, %v3346_v47  ;;  %v3357_v60 = vshrl.u32 %v3275_v38, 16  ;;  %v1184_v4 = vld [vmem:[#allocation2 + $0x18] sm:$0xf]  ;;  %v1185_v12 = vld [vmem:[#allocation2 + $0x1c] sm:$0xf] }
  0x41   : > { %v3925_v23 = vsel %vm5198_vm8, %v3923_v0, %v3924_v39  ;;  %v4773_v51 = vcombine.low %v1849_v31, %v1852_v49  ;;  %v2322_v55 = vsel %vm5256_vm12, %v2317_v42, %v2321_v19  ;;  %v3355_v59 = vrot.slane %v3353_v50, 5  ;;  %v1186_v20 = vld [vmem:[#allocation2 + $0x20] sm:$0x1]  ;;  %v2228_v47 = vld [vmem:[#allocation2 + $0x10] sm:$0xf] }
  0x42   : > { %3030 = vrot.lane.b32.xlu1 %v4835_v28, %s5121_s7  ;;  %v4899_v3 = vcombine.low %v3922_v36, %v3925_v23  ;;  %v4803_v57 = vcombine.low %v2312_v30, %v2322_v55  ;;  %v3363_v61 = vshll.u32 %v3276_v46, 16  ;;  %v3351_v62 = vrot.slane %v3350_v18, 4  ;;  %v2227_v36 = vld [vmem:[#allocation2 + $0xc] sm:$0xf] }
  0x43   : > { %v1254_v63 = vshrl.u32 %v1181_v53, 16  ;;  %v1257_v0 = vshll.u32 %v1181_v53, 16  ;;  %v1263_v43 = vshll.u32 %v1182_v54, 16  ;;  %v3359_v6 = vrot.slane %v3357_v60, 4 }
  0x44   : > { %4074 = vrot.lane.b32.xlu0 %v4899_v3, %s5122_s8  ;;  %v3365_v7 = vrot.slane %v3363_v61, 5  ;;  %v1267_v8 = vshrl.u32 %v1182_v54, 16  ;;  %v1273_v11 = vshll.u32 %v1183_v56, 16  ;;  %v3356_v15 = vsel %vm5256_vm12, %v3351_v62, %v3355_v59  ;;  %v1187_v3 = vld [vmem:[#allocation2 + $0x24] sm:$0xf] }
  0x45   : > { %v1256_v16 = vrot.slane %v1254_v63, 4  ;;  %v1259_v19 = vrot.slane %v1257_v0, 5  ;;  %v1265_v26 = vrot.slane %v1263_v43, 5  ;;  %v3360_v21 = vor.u32 %v3359_v6, %v3355_v59  ;;  %v1188_v63 = vld [vmem:[#allocation2 + $0x28] sm:$0xf] }
  0x46   : > { %1991 = vrot.lane.b32.xlu1 %v4773_v51, %s5117_s28  ;;  %v1269_v22 = vrot.slane %v1267_v8, 4  ;;  %v1275_v24 = vrot.slane %v1273_v11, 5  ;;  %v1278_v27 = vshrl.u32 %v1184_v4, 16  ;;  %v1281_v29 = vshll.u32 %v1184_v4, 16  ;;  %v2229_v51 = vld [vmem:[#allocation2 + $0x14] sm:$0x1] }
  0x47   : > { %v1260_v28 = vor.u32 %v1259_v19, %v1256_v16  ;;  %v1287_v31 = vshll.u32 %v1185_v12, 16  ;;  %v1291_v33 = vshrl.u32 %v1185_v12, 16  ;;  %v3361_v37 = vrot.slane %v3360_v21, 4  ;;  %v1189_v6 = vld [vmem:[#allocation2 + $0x2c] sm:$0x1] }
  0x48   : > { %1989 = vrot.lane.b32.xlu0 %v4772_v45, %s5117_s28  ;;  %v1270_v38 = vor.u32 %v1269_v22, %v1265_v26  ;;  %v1280_v52 = vrot.slane %v1278_v27, 4  ;;  %v1297_v39 = vshll.u32 %v1186_v20, 16  ;;  %v1283_v14 = vrot.slane %v1281_v29, 5  ;;  %v3271_v16 = vld [vmem:[#allocation2 + $0x18] sm:$0xf] }
  0x49   : > { %v1261_v41 = vrot.slane %v1260_v28, 4  ;;  %v1289_v42 = vrot.slane %v1287_v31, 5  ;;  %v1293_v46 = vrot.slane %v1291_v33, 4  ;;  %v3366_v45 = vsel %vm5256_vm12, %v3361_v37, %v3365_v7  ;;  %v3272_v33 = vld [vmem:[#allocation2 + $0x1c] sm:$0xf] }
  0x4a   : > { %2709 = vrot.lane.b32.xlu1 %v4803_v57, %s5123_s9  ;;  %v1271_v48 = vrot.slane %v1270_v38, 4  ;;  %v1299_v49 = vrot.slane %v1297_v39, 5  ;;  %v2276_v23 = vshrl.u32 %v2227_v36, 16  ;;  %v4867_v30 = vcombine.low %v3356_v15, %v3366_v45 }
  0x4b   : > { %v1266_v50 = vsel %vm5256_vm12, %v1261_v41, %v1265_v26  ;;  %v1284_v53 = vor.u32 %v1283_v14, %v1280_v52  ;;  %v1294_v54 = vor.u32 %v1293_v46, %v1289_v42  ;;  %v2279_v56 = vshll.u32 %v2227_v36, 16  ;;  %v3273_v14 = vld [vmem:[#allocation2 + $0x20] sm:$0x1] }
  0x4c   : > { %v1276_v55 = vsel %vm5256_vm12, %v1271_v48, %v1275_v24  ;;  %v2278_v18 = vrot.slane %v2276_v23, 4  ;;  %v2285_v57 = vshll.u32 %v2228_v47, 16  ;;  %v2289_v62 = vshrl.u32 %v2228_v47, 16  ;;  %v2233_v48 = vld [vmem:[#allocation2 + $0x24] sm:$0xf] }
  0x4d   : > { %v4739_v59 = vcombine.low %v1266_v50, %v1276_v55  ;;  %v1285_v60 = vrot.slane %v1284_v53, 4  ;;  %v1295_v61 = vrot.slane %v1294_v54, 4  ;;  %v2281_v0 = vrot.slane %v2279_v56, 5  ;;  %v2234_v55 = vld [vmem:[#allocation2 + $0x28] sm:$0xf] }
  0x4e   : > { %3753 = vrot.lane.b32.xlu1 %v4867_v30, %s5124_s10  ;;  %v2287_v43 = vrot.slane %v2285_v57, 5  ;;  %v2295_v4 = vshll.u32 %v2229_v51, 16  ;;  %v1302_v7 = vshrl.u32 %v1187_v3, 16  ;;  %v2291_v12 = vrot.slane %v2289_v62, 4 }
  0x4f   : > { %1663 = vrot.lane.b32.xlu0 %v4739_v59, %s5118_s29  ;;  %v1290_v8 = vsel %vm5256_vm12, %v1285_v60, %v1289_v42  ;;  %v1300_v11 = vsel %vm5256_vm12, %v1295_v61, %v1299_v49  ;;  %v1305_v15 = vshll.u32 %v1187_v3, 16  ;;  %v2282_v26 = vor.u32 %v2281_v0, %v2278_v18  ;;  %v316_v60 = vld [vmem:[#allocation2 + $0x38] sm:$0x1]  ;;  %v2235_v0 = vld [vmem:[#allocation2 + $0x2c] sm:$0x1] }
  0x50   : > { %v4740_v19 = vcombine.low %v1290_v8, %v1300_v11  ;;  %v2297_v20 = vrot.slane %v2295_v4, 5  ;;  %v1304_v21 = vrot.slane %v1302_v7, 4  ;;  %v2292_v22 = vor.u32 %v2291_v12, %v2287_v43  ;;  %v2236_v11 = vld [vmem:[#allocation2 + $0x30] sm:$0xf] }
  0x51   : > { %v1307_v24 = vrot.slane %v1305_v15, 5  ;;  %v1311_v27 = vshll.u32 %v1188_v63, 16  ;;  %v1315_v28 = vshrl.u32 %v1188_v63, 16  ;;  %v2283_v29 = vrot.slane %v2282_v26, 4  ;;  %v2237_v26 = vld [vmem:[#allocation2 + $0x34] sm:$0xf] }
  0x52   : > { %1665 = vrot.lane.b32.xlu1 %v4740_v19, %s5118_s29  ;;  %v1321_v31 = vshll.u32 %v1189_v6, 16  ;;  %v3320_v36 = vshrl.u32 %v3271_v16, 16  ;;  %v3323_v37 = vshll.u32 %v3271_v16, 16  ;;  %v2293_v38 = vrot.slane %v2292_v22, 4 }
  0x53   : > { %v1308_v52 = vor.u32 %v1307_v24, %v1304_v21  ;;  %v1313_v39 = vrot.slane %v1311_v27, 5  ;;  %v1317_v41 = vrot.slane %v1315_v28, 4  ;;  %v2288_v42 = vsel %vm5256_vm12, %v2283_v29, %v2287_v43  ;;  %v2778_v27 = vld [vmem:[#allocation2 + $0x24] sm:$0xe]  ;;  %v2779_v28 = vld [vmem:[#allocation2 + $0x28] sm:$0xf] }
  0x54   : > { %v1323_v46 = vrot.slane %v1321_v31, 5  ;;  %v3322_v47 = vrot.slane %v3320_v36, 4  ;;  %v3325_v45 = vrot.slane %v3323_v37, 5  ;;  %v2298_v49 = vsel %vm5256_vm12, %v2293_v38, %v2297_v20  ;;  %v2780_v37 = vld [vmem:[#allocation2 + $0x2c] sm:$0x1] }
  0x55   : > { %v1309_v23 = vrot.slane %v1308_v52, 4  ;;  %v1318_v30 = vor.u32 %v1317_v41, %v1313_v39  ;;  %v3329_v50 = vshll.u32 %v3272_v33, 16  ;;  %v4802_v53 = vcombine.low %v2288_v42, %v2298_v49  ;;  %v263_v49 = vld [vmem:[#allocation2 + $0x3c] sm:$0x1] }
  0x56   : > { %v3326_v54 = vor.u32 %v3325_v45, %v3322_v47  ;;  %v3333_v51 = vshrl.u32 %v3272_v33, 16  ;;  %v3339_v3 = vshll.u32 %v3273_v14, 16  ;;  %v2324_v59 = vshrl.u32 %v2233_v48, 16  ;;  %v5440_v45 = vld [vmem:[#allocation2 + $0x30] sm:$0xe] }
  0x57   : > { %v1314_v18 = vsel %vm5256_vm12, %v1309_v23, %v1313_v39  ;;  %v1319_v56 = vrot.slane %v1318_v30, 4  ;;  %v3331_v57 = vrot.slane %v3329_v50, 5  ;;  %2707 = vrot.lane.b32.xlu0 %v4802_v53, %s5123_s9  ;;  %v2327_v43 = vshll.u32 %v2233_v48, 16  ;;  %v5442_v48 = vld [vmem:[#allocation2 + $0x34] sm:$0xf]  ;;  %v371_v23 = vld [vmem:[%s5207_s25 + $0x68] sm:$0xff] }
  0x58   : > { %v3327_v61 = vrot.slane %v3326_v54, 4  ;;  %v3335_v62 = vrot.slane %v3333_v51, 4  ;;  %v3341_v63 = vrot.slane %v3339_v3, 5  ;;  %v2326_v6 = vrot.slane %v2324_v59, 4 }
  0x59   : > { %v1324_v4 = vsel %vm5256_vm12, %v1319_v56, %v1323_v46  ;;  %v2333_v7 = vshll.u32 %v2234_v55, 16  ;;  %v2337_v8 = vshrl.u32 %v2234_v55, 16  ;;  %v2329_v19 = vrot.slane %v2327_v43, 5  ;;  %v3277_v43 = vld [vmem:[#allocation2 + $0x30] sm:$0xf] }
  0x5a   : > { %v4741_v12 = vcombine.low %v1314_v18, %v1324_v4  ;;  %v3332_v15 = vsel %vm5256_vm12, %v3327_v61, %v3331_v57  ;;  %v3336_v16 = vor.u32 %v3335_v62, %v3331_v57  ;;  %v2343_v22 = vshll.u32 %v2235_v0, 16  ;;  %v3278_v4 = vld [vmem:[#allocation2 + $0x34] sm:$0xf] }
  0x5b   : > { %v2335_v20 = vrot.slane %v2333_v7, 5  ;;  %v2339_v21 = vrot.slane %v2337_v8, 4  ;;  %v317_v24 = vsel %vm5188_vm7, 0, %v316_v60  ;;  %v2330_v31 = vor.u32 %v2329_v19, %v2326_v6 }
  0x5c   : > { %1667 = vrot.lane.b32.xlu1 %v4741_v12, %s5118_s29  ;;  %v3337_v29 = vrot.slane %v3336_v16, 4  ;;  %318 = vst [vmem:[#allocation2 + $0x38] sm:$0x1] %v317_v24  ;;  %v2348_v33 = vshrl.u32 %v2236_v11, 16  ;;  %v2351_v36 = vshll.u32 %v2236_v11, 16  ;;  %v2345_v52 = vrot.slane %v2343_v22, 5 }
  0x5d   : > { %v2340_v38 = vor.u32 %v2339_v21, %v2335_v20  ;;  %v2357_v39 = vshll.u32 %v2237_v26, 16  ;;  %v2361_v41 = vshrl.u32 %v2237_v26, 16  ;;  %v2331_v42 = vrot.slane %v2330_v31, 4  ;;  %v319_v26 = vld [vmem:[#allocation2 + $0x44] sm:$0x1] }
  0x5e   : > { %v3342_v14 = vsel %vm5256_vm12, %v3337_v29, %v3341_v63  ;;  %v2350_v46 = vrot.slane %v2348_v33, 4  ;;  %v2353_v47 = vrot.slane %v2351_v36, 5  ;;  %v4820_v55 = vrot.slane %v2778_v27, 9  ;;  %v3822_v21 = vld [vmem:[#allocation2 + $0x30] sm:$0xe] }
  0x5f   : > { %v4866_v30 = vcombine.low %v3332_v15, %v3342_v14  ;;  %v2341_v50 = vrot.slane %v2340_v38, 4  ;;  %v5445_v53 = vrot.slane %v2357_v39, 5  ;;  %v2363_v54 = vrot.slane %v2361_v41, 4  ;;  %v3823_v29 = vld [vmem:[#allocation2 + $0x34] sm:$0xf] }
  0x60   : > { %v2336_v51 = vsel %vm5256_vm12, %v2331_v42, %v2335_v20  ;;  %v2354_v3 = vor.u32 %v2353_v47, %v2350_v46  ;;  %v2884_v18 = vrot.slane %v2779_v28, 5  ;;  %v2887_v59 = vrot.slane %v2780_v37, 5  ;;  %v1190_v37 = vld [vmem:[#allocation2 + $0x30] sm:$0xf] }
  0x61   : > { %3751 = vrot.lane.b32.xlu0 %v4866_v30, %s5124_s10  ;;  %v2346_v56 = vsel %vm5256_vm12, %v2341_v50, %v2345_v52  ;;  %v2364_v57 = vor.u32 %v2363_v54, %v5445_v53  ;;  %v5454_v60 = vmul.f32 %v5182_v5, %v371_v23  ;;  %v4821_v7 = vrot.slane %v5440_v45, 9  ;;  %v5057_v14 = vld [vmem:[#allocation2 + $0x30] sm:$0xff]  }
  0x62   : > { %v4804_v61 = vcombine.low %v2336_v51, %v2346_v56  ;;  %v5456_v62 = vrot.slane %v2354_v3, 4  ;;  %v2885_v63 = vsel %vm5198_vm8, %v4820_v55, %v2884_v18  ;;  %v2886_v0 = vrot.slane %v2884_v18, 4 }
  0x63   : > { %v946_v6 = vld [vmem:[#allocation2 + $0x38] sm:$0x1]  ;;  %v2891_v8 = vrot.slane %v5442_v48, 5  ;;  %v264_v11 = vsel %vm5171_vm3, 0, %v263_v49  ;;  %v476_v5 = vmax.f32 %v5339_v17, 0.0  ;;  %v5469_v15 = vrot.slane %v2364_v57, 4 }
  0x64   : > { %v947_v12 = vsel %vm5171_vm3, %v665_v58, %v946_v6  ;;  %v2888_v16 = vsel %vm5198_vm8, %v2886_v0, %v2887_v59  ;;  %265 = vst [vmem:[#allocation2 + $0x3c] sm:$0x1] %v264_v11  ;;  %v477_v19 = vmax.f32 %v5342_v2, 0.0  ;;  %v2360_v44 = vsel %vm5256_vm12, %v5456_v62, %v5445_v53 }
  0x65   : > { %2711 = vrot.lane.b32.xlu0 %v4804_v61, %s5123_s9  ;;  %948 = vst [vmem:[#allocation2 + $0x38] sm:$0x1] %v947_v12  ;;  %v4836_v17 = vcombine.low %v2885_v63, %v2888_v16  ;;  %v2893_v20 = vrot.slane %v2891_v8, 4  ;;  %v4945_v58 = vpack.c.bf16 %v476_v5, %v476_v5  ;;  %v3368_v24 = vshrl.u32 %v3277_v43, 16  ;;  %v1191_v5 = vld [vmem:[#allocation2 + $0x34] sm:$0xf] }
  0x66   : > { %v4946_v22 = vpack.c.bf16 %v477_v19, %v477_v19  ;;  %v3371_v27 = vshll.u32 %v3277_v43, 16  ;;  %v3377_v28 = vshll.u32 %v3278_v4, 16  ;;  %v3381_v33 = vshrl.u32 %v3278_v4, 16 }
  0x67   : > { %v667_v31 = vshrl.u32 %v4945_v58, 16  ;;  %v670_v2 = vshll.u32 %v4945_v58, 16  ;;  %v320_v36 = vsel %vm5188_vm7, 0, %v319_v26  ;;  %v3370_v39 = vrot.slane %v3368_v24, 4 }
  0x68   : > { %v675_v38 = vshrl.u32 %v4946_v22, 16  ;;  %v678_v52 = vshll.u32 %v4946_v22, 16  ;;  %v3373_v41 = vrot.slane %v3371_v27, 5  ;;  %321 = vst [vmem:[#allocation2 + $0x44] sm:$0x1] %v320_v36  ;;  %v3379_v46 = vrot.slane %v3377_v28, 5 }
  0x69   : > { %3032 = vrot.lane.b32.xlu0 %v4836_v17, %s5121_s7  ;;  %v669_v42 = vrot.slane %v667_v31, 7  ;;  %v3383_v47 = vrot.slane %v3381_v33, 4  ;;  %v4884_v45 = vrot.slane %v3822_v21, 9  ;;  %v3928_v23 = vrot.slane %v3823_v29, 5 }
  0x6a   : > { %v677_v48 = vrot.slane %v675_v38, 7  ;;  %v3374_v49 = vor.u32 %v3373_v41, %v3370_v39  ;;  %v1326_v30 = vshrl.u32 %v1190_v37, 16  ;;  %v1329_v55 = vshll.u32 %v1190_v37, 16  ;;  %v5508_v38 = vld [vmem:[#allocation2 + $0x34] sm:$0xf] }
  0x6b   : > { %v672_v50 = vor.u32 %v670_v2, %v669_v42  ;;  %v673_v54 = vrot.slane %v669_v42, 4  ;;  %v949_v51 = vld [vmem:[#allocation2 + $0x3c] sm:$0xf]  ;;  %v3384_v3 = vor.u32 %v3383_v47, %v3379_v46  ;;  %v5484_v57 = vsel %vm5198_vm8, %v4821_v7, %v2891_v8  ;;  %v5502_v2 = vld [vmem:[#allocation2 + $0x30] sm:$0xe] }
  0x6c   : > { %v2238_v18 = vld [vmem:[#allocation2 + $0x38] sm:$0x1]  ;;  %v680_v59 = vor.u32 %v678_v52, %v677_v48  ;;  %v682_v61 = vrot.slane %v677_v48, 4  ;;  %v3375_v63 = vrot.slane %v3374_v49, 4  ;;  %v5491_v11 = vsel %vm5198_vm8, %v4884_v45, %v3928_v23  ;;  %v266_v42 = vld [vmem:[#allocation2 + $0x48] sm:$0x1] }
  0x6d   : > { %v2783_v56 = vld [vmem:[#allocation2 + $0x38] sm:$0x1]  ;;  %v2367_v0 = vshll.u32 %v2238_v18, 16  ;;  %3210 = vrot.lane.b32.xlu0 %v5057_v14, %s5120_s6  ;;  %v950_v4 = vsel %vm5265_vm13, %v672_v50, %v949_v51  ;;  %v3385_v8 = vrot.slane %v3384_v3, 4  ;;  %v3930_v19 = vrot.slane %v3928_v23, 4  ;;  %v372_v49 = vld [vmem:[%s5207_s25 + $0x70] sm:$0xff] }
  0x6e   : > { %v2894_v43 = vrot.slane %v2783_v56, 5  ;;  %v3279_v6 = vld [vmem:[#allocation2 + $0x38] sm:$0x1]  ;;  %v681_v7 = vsel %vm5274_vm14, %v673_v54, %v680_v59  ;;  %951 = vst [vmem:[#allocation2 + $0x3c] sm:$0xf] %v950_v4  ;;  %v1328_v22 = vrot.slane %v1326_v30, 4  ;;  %v3380_v24 = vsel %vm5256_vm12, %v3375_v63, %v3379_v46 }
  0x6f   : > { %v3387_v12 = vshll.u32 %v3279_v6, 16  ;;  %v3824_v16 = vld [vmem:[#allocation2 + $0x38] sm:$0x1]  ;;  %v2369_v26 = vrot.slane %v2367_v0, 5  ;;  %952 = vst.msk [vmem:[#allocation2 + $0x40] sm:$0xf] %vm237_vm0, %v681_v7 }
  0x70   : > { %v2895_v17 = vsel %vm5198_vm8, %v2893_v20, %v2894_v43  ;;  %v953_v58 = vld [vmem:[#allocation2 + $0x44] sm:$0x1]  ;;  %v3931_v21 = vrot.slane %v3824_v16, 5  ;;  %v1192_v29 = vld [vmem:[#allocation2 + $0x38] sm:$0x1]  ;;  %v1331_v31 = vrot.slane %v1329_v55, 5 }
  0x71   : > { %v3389_v27 = vrot.slane %v3387_v12, 5  ;;  %v954_v28 = vsel %vm5171_vm3, %v682_v61, %v953_v58  ;;  %v2370_v20 = vsel %vm5256_vm12, %v5469_v15, %v2369_v26  ;;  %v4837_v33 = vcombine.low %v5484_v57, %v2895_v17  ;;  %v5510_v52 = vld [vmem:[#allocation2 + $0x38] sm:$0x1]  ;;  %v5533_v57 = vld [vmem:[%s6747_s2] ss:$0 sm:$0xff] }
  0x72   : > { %955 = vst [vmem:[#allocation2 + $0x44] sm:$0x1] %v954_v28  ;;  %v1335_v36 = vshll.u32 %v1191_v5, 16  ;;  %v1339_v37 = vshrl.u32 %v1191_v5, 16  ;;  %v4805_v39 = vcombine.low %v2360_v44, %v2370_v20  ;;  %v3932_v15 = vsel %vm5198_vm8, %v3930_v19, %v3931_v21  ;;  %v5546_v63 = vld [vmem:[%s6746_s1] ss:$0 sm:$0xff] }
  0x73   : > { %v3390_v41 = vsel %vm5256_vm12, %v3385_v8, %v3389_v27  ;;  %v1332_v14 = vor.u32 %v1331_v31, %v1328_v22  ;;  %v1345_v48 = vshll.u32 %v1192_v29, 16  ;;  %v4758_v30 = vrot.slane %v5502_v2, 9 }
  0x74   : > { %v4868_v46 = vcombine.low %v3380_v24, %v3390_v41  ;;  %v1337_v47 = vrot.slane %v1335_v36, 5  ;;  %v1341_v45 = vrot.slane %v1339_v37, 4  ;;  %2713 = vrot.lane.b32.xlu1 %v4805_v39, %s5123_s9  ;;  %v1855_v53 = vrot.slane %v5508_v38, 5 }
  0x75   : > { %v1333_v23 = vrot.slane %v1332_v14, 4  ;;  %v1858_v62 = vrot.slane %v5510_v52, 5  ;;  %v3280_v44 = vld [vmem:[#allocation2 + $0x3c] sm:$0xf]  ;;  %v4900_v50 = vcombine.low %v5491_v11, %v3932_v15  ;;  %v1347_v51 = vrot.slane %v1345_v48, 5 }
  0x76   : > { %3755 = vrot.lane.b32.xlu0 %v4868_v46, %s5124_s10  ;;  %v1342_v54 = vor.u32 %v1341_v45, %v1337_v47  ;;  %v267_v3 = vsel %vm5171_vm3, 0, %v266_v42  ;;  %v5058_v55 = vld [vmem:[#allocation2 + $0x3c] sm:$0xff]   ;;  %v3392_v56 = vshrl.u32 %v3280_v44, 16  ;;  %v5537_v59 = vadd.f32 %v5533_v57, %v5348_v34 }
  0x77   : > { %v3281_v18 = vld [vmem:[#allocation2 + $0x40] sm:$0xf]  ;;  %268 = vst [vmem:[#allocation2 + $0x48] sm:$0x1] %v267_v3  ;;  %v5541_v61 = vadd.f32 %v5533_v57, %v5376_v40  ;;  %v5549_v0 = vmul.f32 %v5546_v63, %v372_v49  ;;  %v3395_v43 = vshll.u32 %v3280_v44, 16  ;;  %v1338_v40 = vsel %vm5256_vm12, %v1333_v23, %v1337_v47 }
  0x78   : > { %v3401_v4 = vshll.u32 %v3281_v18, 16  ;;  %v3405_v6 = vshrl.u32 %v3281_v18, 16  ;;  %v1343_v11 = vrot.slane %v1342_v54, 4  ;;  %v3825_v5 = vld [vmem:[#allocation2 + $0x3c] sm:$0xe]  ;;  %3034 = vrot.lane.b32.xlu1 %v4837_v33, %s5121_s7  ;;  %v3394_v7 = vrot.slane %v3392_v56, 4 }
  0x79   : > { %v3282_v34 = vld [vmem:[#allocation2 + $0x44] sm:$0x1]  ;;  %v3826_v8 = vld [vmem:[#allocation2 + $0x40] sm:$0xf]  ;;  %v4885_v12 = vrot.slane %v3825_v5, 9  ;;  %v5556_v16 = vadd.f32 %v5533_v57, %v5454_v60  ;;  %v3397_v19 = vrot.slane %v3395_v43, 5  ;;  %v1856_v60 = vsel %vm5198_vm8, %v4758_v30, %v1855_v53 }
  0x7a   : > { %v3403_v26 = vrot.slane %v3401_v4, 5  ;;  %v3407_v17 = vrot.slane %v3405_v6, 4  ;;  %v3411_v58 = vshll.u32 %v3282_v34, 16  ;;  %4076 = vrot.lane.b32.xlu0 %v4900_v50, %s5122_s8  ;;  %v3827_v21 = vld [vmem:[#allocation2 + $0x44] sm:$0x1]  ;;  %v1348_v22 = vsel %vm5256_vm12, %v1343_v11, %v1347_v51 }
  0x7b   : > { %v3935_v24 = vrot.slane %v3826_v8, 5  ;;  %v3938_v27 = vrot.slane %v3827_v21, 5  ;;  %v1193_v28 = vld [vmem:[#allocation2 + $0x3c] sm:$0xf]  ;;  %v1194_v29 = vld [vmem:[#allocation2 + $0x40] sm:$0xf]  ;;  %v3398_v31 = vor.u32 %v3397_v19, %v3394_v7  ;;  %v4742_v33 = vcombine.low %v1338_v40, %v1348_v22 }
  0x7c   : > { %v3408_v2 = vor.u32 %v3407_v17, %v3403_v26  ;;  %v3413_v20 = vrot.slane %v3411_v58, 5  ;;  %v1195_v36 = vld [vmem:[#allocation2 + $0x44] sm:$0x1]  ;;  %3212 = vrot.lane.b32.xlu1 %v5058_v55, %s5120_s6  ;;  %v1350_v41 = vshrl.u32 %v1193_v28, 16  ;;  %v1353_v15 = vshll.u32 %v1193_v28, 16 }
  0x7d   : > { %v3936_v37 = vsel %vm5198_vm8, %v4885_v12, %v3935_v24  ;;  %v3937_v39 = vrot.slane %v3935_v24, 4  ;;  %v1741_v14 = vld [vmem:[#allocation2 + $0x3c] sm:$0xe]  ;;  %v1742_v42 = vld [vmem:[#allocation2 + $0x40] sm:$0xf]  ;;  %v3399_v46 = vrot.slane %v3398_v31, 4  ;;  %v5586_v38 = vadd.f32 %v5533_v57, %v5549_v0 }
  0x7e   : > { %v3409_v47 = vrot.slane %v3408_v2, 4  ;;  %v1359_v45 = vshll.u32 %v1194_v29, 16  ;;  %v1363_v48 = vshrl.u32 %v1194_v29, 16  ;;  %v1743_v49 = vld [vmem:[#allocation2 + $0x44] sm:$0x1]  ;;  %v1352_v30 = vrot.slane %v1350_v41, 4 }
  0x7f   : > { %v3939_v23 = vsel %vm5198_vm8, %v3937_v39, %v3938_v27  ;;  %v1355_v44 = vrot.slane %v1353_v15, 5  ;;  %v1369_v50 = vshll.u32 %v1195_v36, 16  ;;  %v3404_v54 = vsel %vm5256_vm12, %v3399_v46, %v3403_v26  ;;  %v2239_v6 = vld [vmem:[#allocation2 + $0x3c] sm:$0xf]  ;;  %v2241_v27 = vld [vmem:[#allocation2 + $0x44] sm:$0x1] }
  0x80   : > { %v3414_v51 = vsel %vm5256_vm12, %v3409_v47, %v3413_v20  ;;  %v4901_v3 = vcombine.low %v3936_v37, %v3939_v23  ;;  %v1361_v55 = vrot.slane %v1359_v45, 5  ;;  %v1365_v43 = vrot.slane %v1363_v48, 4  ;;  %v322_v20 = vld [vmem:[#allocation2 + $0x50] sm:$0x1]  ;;  %v956_v41 = vld [vmem:[#allocation2 + $0x48] sm:$0xf] }
  0x81   : > { %v4869_v18 = vcombine.low %v3404_v54, %v3414_v51  ;;  %v1356_v56 = vor.u32 %v1355_v44, %v1352_v30  ;;  %v1371_v4 = vrot.slane %v1369_v50, 5  ;;  %v1857_v11 = vrot.slane %v1855_v53, 4  ;;  %v2784_v47 = vld [vmem:[#allocation2 + $0x3c] sm:$0xe]  ;;  %v2785_v30 = vld [vmem:[#allocation2 + $0x40] sm:$0xf] }
  0x82   : > { %4078 = vrot.lane.b32.xlu0 %v4901_v3, %s5122_s8  ;;  %v4759_v5 = vrot.slane %v1741_v14, 9  ;;  %v1862_v34 = vrot.slane %v1742_v42, 5  ;;  %v1865_v7 = vrot.slane %v1743_v49, 5  ;;  %v1366_v8 = vor.u32 %v1365_v43, %v1361_v55  ;;  %v2786_v44 = vld [vmem:[#allocation2 + $0x44] sm:$0x1] }
  0x83   : > { %3757 = vrot.lane.b32.xlu1 %v4869_v18, %s5124_s10  ;;  %v1357_v40 = vrot.slane %v1356_v56, 4  ;;  %v478_v12 = vmax.f32 %v5351_v35, 0.0  ;;  %v479_v19 = vmax.f32 %v5537_v59, 0.0  ;;  %v1859_v26 = vsel %vm5198_vm8, %v1857_v11, %v1858_v62  ;;  %v2240_v35 = vld [vmem:[#allocation2 + $0x40] sm:$0xf] }
  0x84   : > { %v1864_v17 = vrot.slane %v1862_v34, 4  ;;  %v2372_v58 = vshrl.u32 %v2239_v6, 16  ;;  %v1367_v21 = vrot.slane %v1366_v8, 4  ;;  %v4774_v22 = vcombine.low %v1856_v60, %v1859_v26  ;;  %v5059_v60 = vld [vmem:[#allocation2 + $0x3c] sm:$0xff]  }
  0x85   : > { %v1362_v53 = vsel %vm5256_vm12, %v1357_v40, %v1361_v55  ;;  %v4947_v24 = vpack.c.bf16 %v478_v12, %v478_v12  ;;  %v1863_v59 = vsel %vm5198_vm8, %v4759_v5, %v1862_v34  ;;  %v4948_v52 = vpack.c.bf16 %v479_v19, %v479_v19  ;;  %v269_v55 = vld [vmem:[#allocation2 + $0x54] sm:$0x1]  ;;  %v272_v40 = vld [vmem:[#allocation2 + $0x60] sm:$0x1] }
  0x86   : > { %v2374_v28 = vrot.slane %v2372_v58, 4  ;;  %v2375_v62 = vshll.u32 %v2239_v6, 16  ;;  %v1372_v0 = vsel %vm5256_vm12, %v1367_v21, %v1371_v4  ;;  %1993 = vrot.lane.b32.xlu0 %v4774_v22, %s5117_s28  ;;  %v1866_v29 = vsel %vm5198_vm8, %v1864_v17, %v1865_v7  ;;  %v325_v6 = vld [vmem:[#allocation2 + $0x5c] sm:$0x1]  ;;  %v5074_v8 = vld [vmem:[%s6748_s3] sm:$0xff]  }
  0x87   : > { %1669 = vrot.lane.b32.xlu1 %v4742_v33, %s5118_s29  ;;  %v684_v31 = vshrl.u32 %v4947_v24, 16  ;;  %v687_v2 = vshll.u32 %v4947_v24, 16  ;;  %v4743_v36 = vcombine.low %v1362_v53, %v1372_v0  ;;  %v692_v37 = vshrl.u32 %v4948_v52, 16  ;;  %4988 = vmatprep.subr.bf16.mxu0 %v5074_v8  ;;  %v5070_v0 = vld [vmem:[#allocation2 + $0xc] sm:$0xff]  }
  0x88   : > { %v695_v39 = vshll.u32 %v4948_v52, 16  ;;  %v2377_v15 = vrot.slane %v2375_v62, 5  ;;  %v2381_v42 = vshll.u32 %v2240_v35, 16  ;;  %v2385_v33 = vshrl.u32 %v2240_v35, 16  ;;  %v5065_v52 = vld [vmem:[#allocation2] sm:$0xff]   ;;  %4989 = vmatpush3.bf16.msra.mxu0 %v5074_v8  ;;  %5026 = vmatprep.subr.bf16.mxu1 %v5074_v8 }
  0x89   : > { %v686_v14 = vrot.slane %v684_v31, 7  ;;  %v2391_v46 = vshll.u32 %v2241_v27, 16  ;;  %v4775_v45 = vcombine.low %v1863_v59, %v1866_v29  ;;  %v694_v48 = vrot.slane %v692_v37, 7  ;;  %v328_v62 = vld [vmem:[#allocation2 + $0x68] sm:$0x1]  ;;  %v5073_v29 = vld [vmem:[#allocation2 + $0x18] sm:$0xff]   ;;  %5029 = vmatpush3.bf16.msra.mxu1 %v5074_v8 }
  0x8a   : > { %v2378_v49 = vor.u32 %v2377_v15, %v2374_v28  ;;  %v323_v23 = vsel %vm5188_vm7, 0, %v322_v20  ;;  %2170 = vrot.lane.b32.xlu0 %v5059_v60, %s5119_s30  ;;  %v2383_v51 = vrot.slane %v2381_v42, 5  ;;  %v2387_v3 = vrot.slane %v2385_v33, 4  ;;  %v375_v42 = vld [vmem:[%s5207_s25 + $0x88] sm:$0xff] }
  0x8b   : > { %1671 = vrot.lane.b32.xlu1 %v4743_v36, %s5118_s29  ;;  %v689_v50 = vor.u32 %v687_v2, %v686_v14  ;;  %v690_v54 = vrot.slane %v686_v14, 4  ;;  %324 = vst [vmem:[#allocation2 + $0x50] sm:$0x1] %v323_v23  ;;  %v697_v18 = vor.u32 %v695_v39, %v694_v48  ;;  %v2393_v43 = vrot.slane %v2391_v46, 5  ;;  %v373_v36 = vld [vmem:[%s5207_s25 + $0x78] sm:$0xff]  ;;  %v374_v14 = vld [vmem:[%s5207_s25 + $0x80] sm:$0xff] }
  0x8c   : > { %v2379_v56 = vrot.slane %v2378_v49, 4  ;;  %v4822_v4 = vrot.slane %v2784_v47, 9  ;;  %v2388_v5 = vor.u32 %v2387_v3, %v2383_v51  ;;  %v2898_v34 = vrot.slane %v2785_v30, 5 }
  0x8d   : > { %v957_v11 = vsel %vm5265_vm13, %v689_v50, %v956_v41  ;;  %v2901_v7 = vrot.slane %v2786_v44, 5  ;;  %v698_v12 = vsel %vm5274_vm14, %v690_v54, %v697_v18  ;;  %v699_v19 = vrot.slane %v694_v48, 4 }
  0x8e   : > { %958 = vst [vmem:[#allocation2 + $0x48] sm:$0xf] %v957_v11  ;;  %v270_v26 = vsel %vm5171_vm3, 0, %v269_v55  ;;  %v480_v17 = vmax.f32 %v5541_v61, 0.0  ;;  %959 = vst.msk [vmem:[#allocation2 + $0x4c] sm:$0xf] %vm237_vm0, %v698_v12  ;;  %v2384_v58 = vsel %vm5256_vm12, %v2379_v56, %v2383_v51  ;;  %v2899_v24 = vsel %vm5198_vm8, %v4822_v4, %v2898_v34 }
  0x8f   : > { %1995 = vrot.lane.b32.xlu1 %v4775_v45, %s5117_s28  ;;  %v2389_v53 = vrot.slane %v2388_v5, 4  ;;  %v2900_v21 = vrot.slane %v2898_v34, 4  ;;  %271 = vst [vmem:[#allocation2 + $0x54] sm:$0x1] %v270_v26  ;;  %v481_v22 = vmax.f32 %v5556_v16, 0.0  ;;  %v326_v61 = vsel %vm5188_vm7, 0, %v325_v6 }
  0x90   : > { %v4949_v35 = vpack.c.bf16 %v480_v17, %v480_v17  ;;  %v273_v59 = vsel %vm5171_vm3, 0, %v272_v40  ;;  %327 = vst [vmem:[#allocation2 + $0x5c] sm:$0x1] %v326_v61  ;;  %v482_v15 = vmax.f32 %v5586_v38, 0.0  ;;  %v329_v47 = vsel %vm5188_vm7, 0, %v328_v62  ;;  %v5075_v45 = vld [vmem:[#allocation2 + $0x24] sm:$0xff]  }
  0x91   : > { %v2394_v27 = vsel %vm5256_vm12, %v2389_v53, %v2393_v43  ;;  %v2902_v16 = vsel %vm5198_vm8, %v2900_v21, %v2901_v7  ;;  %v5627_v28 = vpack.c.bf16 %v481_v22, %v481_v22  ;;  %274 = vst [vmem:[#allocation2 + $0x60] sm:$0x1] %v273_v59  ;;  %vm6752_vm15 = vcmask 31744   ;;  %330 = vst [vmem:[#allocation2 + $0x68] sm:$0x1] %v329_v47  ;;  %v5076_v12 = vld [vmem:[%s6748_s3 + $0x8] sm:$0xff]   ;;  %v5659_v21 = vpop.permute.xlu1 %1985 }
  0x92   : > { %v4806_v60 = vcombine.low %v2384_v58, %v2394_v27  ;;  %v960_v31 = vld [vmem:[#allocation2 + $0x50] sm:$0x1]  ;;  %v701_v2 = vshrl.u32 %v4949_v35, 16  ;;  %v704_v20 = vshll.u32 %v4949_v35, 16  ;;  %v4838_v39 = vcombine.low %v2899_v24, %v2902_v16  ;;  %1162 = vst.msk [vmem:[#allocation3] sm:$0xff] %vm6752_vm15, %v5065_v52  ;;  %1163 = vst.msk [vmem:[#allocation3 + $0x8] sm:$0xff] %vm6752_vm15, %v5070_v0  ;;  %4990 = vmatprep.subr.bf16.mxu0 %v5076_v12 }
  0x93   : > { %v961_v37 = vsel %vm5171_vm3, %v699_v19, %v960_v31  ;;  %v709_v41 = vshrl.u32 %v5627_v28, 16  ;;  %v712_v46 = vshll.u32 %v5627_v28, 16  ;;  %v413_v23 = vmul.f32 %v5546_v63, %v373_v36  ;;  %1164 = vst.msk [vmem:[#allocation3 + $0x10] sm:$0xff] %vm6752_vm15, %v5073_v29  ;;  %1165 = vst.msk [vmem:[#allocation3 + $0x18] sm:$0xff] %vm6752_vm15, %v5075_v45  ;;  %4991 = vmatpush3.bf16.msra.mxu0 %v5076_v12 }
  0x94   : > { %2715 = vrot.lane.b32.xlu0 %v4806_v60, %s5123_s9  ;;  %962 = vst [vmem:[#allocation2 + $0x50] sm:$0x1] %v961_v37  ;;  %v5637_v33 = vrot.slane %v701_v2, 7  ;;  %v414_v51 = vmul.f32 %v5546_v63, %v374_v14  ;;  %v415_v3 = vmul.f32 %v5546_v63, %v375_v42  ;;  %5027 = vmatprep.subr.bf16.mxu1 %v5076_v12  ;;  %vm1709_vm2 = vcmask 64544  }
  0x95   : > { %v2242_v48 = vld [vmem:[#allocation2 + $0x48] sm:$0xf]  ;;  %v2243_v44 = vld [vmem:[#allocation2 + $0x4c] sm:$0xf]  ;;  %v711_v26 = vrot.slane %v709_v41, 7  ;;  %v5657_v53 = vadd.f32 %v5533_v57, %v413_v23  ;;  %5030 = vmatpush3.bf16.msra.mxu1 %v5076_v12  ;;  %vm2033_vm4 = vcmask 97344  }
  0x96   : > { %v2787_v49 = vld [vmem:[#allocation2 + $0x48] sm:$0xe]  ;;  %v2396_v50 = vshrl.u32 %v2242_v48, 16  ;;  %v706_v54 = vor.u32 %v704_v20, %v5637_v33  ;;  %v2399_v55 = vshll.u32 %v2242_v48, 16  ;;  %v2405_v18 = vshll.u32 %v2243_v44, 16 }
  0x97   : > { %v5060_v30 = vld [vmem:[#allocation2 + $0x48] sm:$0xff]   ;;  %v2409_v56 = vshrl.u32 %v2243_v44, 16  ;;  %v4823_v4 = vrot.slane %v2787_v49, 9  ;;  %v707_v8 = vrot.slane %v5637_v33, 4  ;;  %v963_v17 = vld [vmem:[#allocation2 + $0x54] sm:$0xf]  ;;  %v5662_v22 = vadd.f32 %v5533_v57, %v414_v51 }
  0x98   : > { %v2788_v43 = vld [vmem:[#allocation2 + $0x4c] sm:$0xf]  ;;  %2172 = vrot.lane.b32.xlu1 %v5060_v30, %s5119_s30  ;;  %v2398_v6 = vrot.slane %v2396_v50, 4  ;;  %3036 = vrot.lane.b32.xlu0 %v4838_v39, %s5121_s7  ;;  %v2401_v5 = vrot.slane %v2399_v55, 5  ;;  %v2407_v34 = vrot.slane %v2405_v18, 5  ;;  %v964_v52 = vsel %vm5265_vm13, %v706_v54, %v963_v17  ;;  %v5670_v60 = vpop.permute.xlu0 %1661  ;;  %v376_v55 = vld [vmem:[%s5207_s25 + $0x90] sm:$0xff] }
  0x99   : > { %v2905_v11 = vrot.slane %v2788_v43, 5  ;;  %v2411_v7 = vrot.slane %v2409_v56, 4  ;;  %v5061_v40 = vld [vmem:[#allocation2 + $0x48] sm:$0xff]   ;;  %v5667_v16 = vadd.f32 %v5533_v57, %v415_v3  ;;  %v714_v0 = vor.u32 %v712_v46, %v711_v26  ;;  %965 = vst [vmem:[#allocation2 + $0x54] sm:$0xf] %v964_v52  ;;  %1710 = vst.msk [vmem:[#allocation3] sm:$0xff] %vm1709_vm2, %v5670_v60 }
  0x9a   : > { %v3283_v58 = vld [vmem:[#allocation2 + $0x48] sm:$0xf]  ;;  %v2402_v35 = vor.u32 %v2401_v5, %v2398_v6  ;;  %v3284_v27 = vld [vmem:[#allocation2 + $0x4c] sm:$0xf]  ;;  %v716_v29 = vrot.slane %v711_v26, 4  ;;  %v483_v6 = vmax.f32 %v5657_v53, 0.0  ;;  %v5693_v17 = vmul.f32 %v5546_v63, %v376_v55 }
  0x9b   : > { %v2907_v19 = vrot.slane %v2905_v11, 4  ;;  %v2244_v24 = vld [vmem:[#allocation2 + $0x50] sm:$0x1]  ;;  %v2412_v61 = vor.u32 %v2411_v7, %v2407_v34  ;;  %v3416_v36 = vshrl.u32 %v3283_v58, 16  ;;  %v3419_v37 = vshll.u32 %v3283_v58, 16  ;;  %v379_v60 = vld [vmem:[%s5207_s25 + $0xa8] sm:$0xff] }
  0x9c   : > { %v2789_v59 = vld [vmem:[#allocation2 + $0x50] sm:$0x1]  ;;  %v2415_v28 = vshll.u32 %v2244_v24, 16  ;;  %3214 = vrot.lane.b32.xlu0 %v5061_v40, %s5120_s6  ;;  %v2403_v31 = vrot.slane %v2402_v35, 4  ;;  %v2906_v41 = vsel %vm5198_vm8, %v4823_v4, %v2905_v11  ;;  %v715_v14 = vsel %vm5274_vm14, %v707_v8, %v714_v0  ;;  %v967_v33 = vld [vmem:[#allocation2 + $0x5c] sm:$0x1] }
  0x9d   : > { %v2908_v62 = vrot.slane %v2789_v59, 5  ;;  %v2413_v2 = vrot.slane %v2412_v61, 4  ;;  %v3285_v20 = vld [vmem:[#allocation2 + $0x50] sm:$0x1]  ;;  %v3425_v42 = vshll.u32 %v3284_v27, 16  ;;  %v3418_v45 = vrot.slane %v3416_v36, 4 }
  0x9e   : > { %v2417_v39 = vrot.slane %v2415_v28, 5  ;;  %v2408_v46 = vsel %vm5256_vm12, %v2403_v31, %v2407_v34  ;;  %966 = vst.msk [vmem:[#allocation2 + $0x58] sm:$0xf] %vm237_vm0, %v715_v14  ;;  %v3421_v48 = vrot.slane %v3419_v37, 5  ;;  %v3828_v49 = vld [vmem:[#allocation2 + $0x48] sm:$0xe]  ;;  %v968_v43 = vsel %vm5171_vm3, %v716_v29, %v967_v33 }
  0x9f   : > { %v2909_v47 = vsel %vm5198_vm8, %v2907_v19, %v2908_v62  ;;  %v3829_v23 = vld [vmem:[#allocation2 + $0x4c] sm:$0xf]  ;;  %v3427_v44 = vrot.slane %v3425_v42, 5  ;;  %v3429_v50 = vshrl.u32 %v3284_v27, 16  ;;  %v3435_v54 = vshll.u32 %v3285_v20, 16  ;;  %v5683_v3 = vpop.permute.xlu1 %2164  ;;  %2034 = vst.msk [vmem:[#allocation3] sm:$0xff] %vm2033_vm4, %v5659_v21 }
  0xa0   : > { %v2418_v30 = vsel %vm5256_vm12, %v2413_v2, %v2417_v39  ;;  %v1196_v51 = vld [vmem:[#allocation2 + $0x48] sm:$0xf]  ;;  %v3422_v56 = vor.u32 %v3421_v48, %v3418_v45  ;;  %v3830_v4 = vld [vmem:[#allocation2 + $0x50] sm:$0x1]  ;;  %969 = vst [vmem:[#allocation2 + $0x5c] sm:$0x1] %v968_v43  ;;  %v4839_v8 = vcombine.low %v2906_v41, %v2909_v47  ;;  %v5698_v27 = vpack.c.bf16 %v482_v15, %v482_v15 }
  0xa1   : > { %v4807_v18 = vcombine.low %v2408_v46, %v2418_v30  ;;  %v3431_v11 = vrot.slane %v3429_v50, 4  ;;  %v3437_v5 = vrot.slane %v3435_v54, 5  ;;  %v4886_v34 = vrot.slane %v3828_v49, 9  ;;  %v3286_v19 = vld [vmem:[#allocation2 + $0x54] sm:$0xf] }
  0xa2   : > { %v3942_v7 = vrot.slane %v3829_v23, 5  ;;  %v5689_v40 = vpop.permute.xlu0 %2162  ;;  %v3423_v12 = vrot.slane %v3422_v56, 4  ;;  %v1374_v26 = vshrl.u32 %v1196_v51, 16  ;;  %v3440_v24 = vshrl.u32 %v3286_v19, 16  ;;  %v1197_v59 = vld [vmem:[#allocation2 + $0x4c] sm:$0xf] }
  0xa3   : > { %2717 = vrot.lane.b32.xlu1 %v4807_v18, %s5123_s9  ;;  %v3432_v58 = vor.u32 %v3431_v11, %v3427_v44  ;;  %v3443_v35 = vshll.u32 %v3286_v19, 16  ;;  %v3945_v53 = vrot.slane %v3830_v4, 5  ;;  %v1377_v52 = vshll.u32 %v1196_v51, 16  ;;  %v1198_v33 = vld [vmem:[#allocation2 + $0x50] sm:$0x1] }
  0xa4   : > { %v3944_v61 = vrot.slane %v3942_v7, 4  ;;  %v5700_v28 = vpack.c.bf16 %v483_v6, %v483_v6  ;;  %v3428_v62 = vsel %vm5256_vm12, %v3423_v12, %v3427_v44  ;;  %v3943_v31 = vsel %vm5198_vm8, %v4886_v34, %v3942_v7  ;;  %v3831_v45 = vld [vmem:[#allocation2 + $0x54] sm:$0xe] }
  0xa5   : > { %v3433_v0 = vrot.slane %v3432_v58, 4  ;;  %v3287_v29 = vld [vmem:[#allocation2 + $0x58] sm:$0xf]  ;;  %v1376_v2 = vrot.slane %v1374_v26, 4  ;;  %v5706_v20 = vpop.permute.xlu1 %3208  ;;  %v3442_v15 = vrot.slane %v3440_v24, 4  ;;  %v3445_v37 = vrot.slane %v3443_v35, 5 }
  0xa6   : > { %v5708_v36 = vpop.permute.xlu0 %3206  ;;  %v5062_v38 = vld [vmem:[#allocation2 + $0x54] sm:$0xff]   ;;  %v3449_v39 = vshll.u32 %v3287_v29, 16  ;;  %v3453_v41 = vshrl.u32 %v3287_v29, 16  ;;  %v3946_v42 = vsel %vm5198_vm8, %v3944_v61, %v3945_v53  ;;  %v1379_v46 = vrot.slane %v1377_v52, 5 }
  0xa7   : > { %3038 = vrot.lane.b32.xlu1 %v4839_v8, %s5121_s7  ;;  %v3438_v14 = vsel %vm5256_vm12, %v3433_v0, %v3437_v5  ;;  %v1383_v47 = vshll.u32 %v1197_v59, 16  ;;  %v3288_v49 = vld [vmem:[#allocation2 + $0x5c] sm:$0x1]  ;;  %v3446_v23 = vor.u32 %v3445_v37, %v3442_v15  ;;  %v3832_v50 = vld [vmem:[#allocation2 + $0x58] sm:$0xf]  ;;  %v4902_v51 = vcombine.low %v3943_v31, %v3946_v42 }
  0xa8   : > { %v4870_v48 = vcombine.low %v3428_v62, %v3438_v14  ;;  %v3451_v30 = vrot.slane %v3449_v39, 5  ;;  %v3455_v44 = vrot.slane %v3453_v41, 4  ;;  %v3459_v54 = vshll.u32 %v3288_v49, 16  ;;  %v1199_v56 = vld [vmem:[#allocation2 + $0x54] sm:$0xf] }
  0xa9   : > { %v1380_v55 = vor.u32 %v1379_v46, %v1376_v2  ;;  %v1385_v18 = vrot.slane %v1383_v47, 5  ;;  %v3447_v4 = vrot.slane %v3446_v23, 4  ;;  %v1387_v11 = vshrl.u32 %v1197_v59, 16  ;;  %v3833_v34 = vld [vmem:[#allocation2 + $0x5c] sm:$0x1] }
  0xaa   : > { %v5715_v43 = vpop.permute.xlu0 %2166  ;;  %3759 = vrot.lane.b32.xlu0 %v4870_v48, %s5124_s10  ;;  %v3456_v6 = vor.u32 %v3455_v44, %v3451_v30  ;;  %v1393_v5 = vshll.u32 %v1198_v33, 16  ;;  %v1200_v7 = vld [vmem:[#allocation2 + $0x58] sm:$0xf]  ;;  %v3461_v8 = vrot.slane %v3459_v54, 5  ;;  %v4887_v19 = vrot.slane %v3831_v45, 9 }
  0xab   : > { %3216 = vrot.lane.b32.xlu1 %v5062_v38, %s5120_s6  ;;  %v1381_v12 = vrot.slane %v1380_v55, 4  ;;  %v3949_v26 = vrot.slane %v3832_v50, 5  ;;  %v3452_v24 = vsel %vm5256_vm12, %v3447_v4, %v3451_v30  ;;  %v1389_v53 = vrot.slane %v1387_v11, 4  ;;  %v1201_v38 = vld [vmem:[#allocation2 + $0x5c] sm:$0x1] }
  0xac   : > { %v5719_v58 = vpop.permute.xlu1 %2168  ;;  %v3457_v35 = vrot.slane %v3456_v6, 4  ;;  %v1395_v61 = vrot.slane %v1393_v5, 5  ;;  %v3952_v0 = vrot.slane %v3833_v34, 5  ;;  %v1398_v15 = vshrl.u32 %v1199_v56, 16  ;;  %v1744_v39 = vld [vmem:[#allocation2 + $0x48] sm:$0xe] }
  0xad   : > { %v1386_v52 = vsel %vm5256_vm12, %v1381_v12, %v1385_v18  ;;  %v3950_v59 = vsel %vm5198_vm8, %v4887_v19, %v3949_v26  ;;  %v3951_v62 = vrot.slane %v3949_v26, 4  ;;  %v1390_v2 = vor.u32 %v1389_v53, %v1385_v18  ;;  %v1745_v46 = vld [vmem:[#allocation2 + $0x4c] sm:$0xf]  ;;  %v1746_v47 = vld [vmem:[#allocation2 + $0x50] sm:$0x1] }
  0xae   : > { %v5727_v29 = vpop.permute.xlu0 %3028  ;;  %v3462_v31 = vsel %vm5256_vm12, %v3457_v35, %v3461_v8  ;;  %4080 = vrot.lane.b32.xlu0 %v4902_v51, %s5122_s8  ;;  %v1401_v37 = vshll.u32 %v1199_v56, 16  ;;  %v1407_v42 = vshll.u32 %v1200_v7, 16  ;;  %v1411_v33 = vshrl.u32 %v1200_v7, 16  ;;  %v1747_v44 = vld [vmem:[#allocation2 + $0x54] sm:$0xe] }
  0xaf   : > { %v4871_v41 = vcombine.low %v3452_v24, %v3462_v31  ;;  %v3953_v14 = vsel %vm5198_vm8, %v3951_v62, %v3952_v0  ;;  %v1391_v48 = vrot.slane %v1390_v2, 4  ;;  %v1400_v23 = vrot.slane %v1398_v15, 4  ;;  %v1748_v18 = vld [vmem:[#allocation2 + $0x58] sm:$0xf]  ;;  %v1749_v34 = vld [vmem:[#allocation2 + $0x5c] sm:$0x1] }
  0xb0   : > { %v5734_v45 = vpop.permute.xlu1 %1987  ;;  %v4903_v49 = vcombine.low %v3950_v59, %v3953_v14  ;;  %v1403_v30 = vrot.slane %v1401_v37, 5  ;;  %v1409_v50 = vrot.slane %v1407_v42, 5  ;;  %v1413_v54 = vrot.slane %v1411_v33, 4  ;;  %v2245_v62 = vld [vmem:[#allocation2 + $0x54] sm:$0xf] }
  0xb1   : > { %3761 = vrot.lane.b32.xlu1 %v4871_v41, %s5124_s10  ;;  %v1417_v51 = vshll.u32 %v1201_v38, 16  ;;  %v4760_v55 = vrot.slane %v1744_v39, 9  ;;  %v1396_v4 = vsel %vm5256_vm12, %v1391_v48, %v1395_v61  ;;  %v1869_v11 = vrot.slane %v1745_v46, 5  ;;  %v970_v41 = vld [vmem:[#allocation2 + $0x60] sm:$0xf]  ;;  %v5080_v33 = vld [vmem:[#allocation2 + $0x30] sm:$0xff]  }
  0xb2   : > { %v5737_v56 = vpop.permute.xlu0 %4072  ;;  %4082 = vrot.lane.b32.xlu0 %v4903_v49, %s5122_s8  ;;  %v1404_v6 = vor.u32 %v1403_v30, %v1400_v23  ;;  %v1872_v5 = vrot.slane %v1746_v47, 5  ;;  %v4744_v7 = vcombine.low %v1386_v52, %v1396_v4  ;;  %v1414_v8 = vor.u32 %v1413_v54, %v1409_v50  ;;  %v2246_v14 = vld [vmem:[#allocation2 + $0x58] sm:$0xf]  ;;  %v2247_v42 = vld [vmem:[#allocation2 + $0x5c] sm:$0x1]  ;;  %1166 = vst.msk [vmem:[#allocation3 + $0x20] sm:$0xff] %vm6752_vm15, %v5080_v33 }
  0xb3   : > { %v1419_v12 = vrot.slane %v1417_v51, 5  ;;  %v4761_v19 = vrot.slane %v1747_v44, 9  ;;  %v1870_v35 = vsel %vm5198_vm8, %v4760_v55, %v1869_v11  ;;  %v1871_v53 = vrot.slane %v1869_v11, 4  ;;  %v5063_v47 = vld [vmem:[#allocation2 + $0x54] sm:$0xff]   ;;  %v974_v51 = vld [vmem:[#allocation2 + $0x68] sm:$0x1] }
  0xb4   : > { %v5742_v26 = vpop.permute.xlu1 %3030  ;;  %v1405_v24 = vrot.slane %v1404_v6, 4  ;;  %v1876_v59 = vrot.slane %v1748_v18, 5  ;;  %v1415_v61 = vrot.slane %v1414_v8, 4  ;;  %v1879_v0 = vrot.slane %v1749_v34, 5  ;;  %v2790_v11 = vld [vmem:[#allocation2 + $0x54] sm:$0xe] }
  0xb5   : > { %1673 = vrot.lane.b32.xlu1 %v4744_v7, %s5118_s29  ;;  %v718_v31 = vshrl.u32 %v5698_v27, 16  ;;  %v721_v52 = vshll.u32 %v5698_v27, 16  ;;  %v1873_v15 = vsel %vm5198_vm8, %v1871_v53, %v1872_v5  ;;  %v726_v49 = vshrl.u32 %v5700_v28, 16  ;;  %v2791_v5 = vld [vmem:[#allocation2 + $0x58] sm:$0xf] }
  0xb6   : > { %v5749_v2 = vpop.permute.xlu0 %4074  ;;  %v1410_v38 = vsel %vm5256_vm12, %v1405_v24, %v1409_v50  ;;  %v1877_v37 = vsel %vm5198_vm8, %v4761_v19, %v1876_v59  ;;  %v1878_v39 = vrot.slane %v1876_v59, 4  ;;  %v1420_v46 = vsel %vm5256_vm12, %v1415_v61, %v1419_v12  ;;  %v2792_v59 = vld [vmem:[#allocation2 + $0x5c] sm:$0x1]  ;;  %v275_v61 = vld [vmem:[#allocation2 + $0x6c] sm:$0x1] }
  0xb7   : > { %v4776_v27 = vcombine.low %v1870_v35, %v1873_v15  ;;  %v720_v48 = vrot.slane %v718_v31, 7  ;;  %v4745_v30 = vcombine.low %v1410_v38, %v1420_v46  ;;  %v729_v50 = vshll.u32 %v5700_v28, 16  ;;  %v5081_v28 = vld [vmem:[#allocation2 + $0x3c] sm:$0xff]  }
  0xb8   : > { %v5760_v23 = vpop.permute.xlu1 %1991  ;;  %v1880_v44 = vsel %vm5198_vm8, %v1878_v39, %v1879_v0  ;;  %v2420_v54 = vshrl.u32 %v2245_v62, 16  ;;  %v728_v6 = vrot.slane %v726_v49, 7  ;;  %v2423_v7 = vshll.u32 %v2245_v62, 16  ;;  %1167 = vst.msk [vmem:[#allocation3 + $0x28] sm:$0xff] %vm6752_vm15, %v5081_v28 }
  0xb9   : > { %1997 = vrot.lane.b32.xlu0 %v4776_v27, %s5117_s28  ;;  %v4777_v55 = vcombine.low %v1877_v37, %v1880_v44  ;;  %v723_v18 = vor.u32 %v721_v52, %v720_v48  ;;  %v724_v4 = vrot.slane %v720_v48, 4  ;;  %1675 = vrot.lane.b32.xlu1 %v4745_v30, %s5118_s29  ;;  %v2429_v8 = vshll.u32 %v2246_v14, 16  ;;  %v377_v37 = vld [vmem:[%s5207_s25 + $0x98] sm:$0xff] }
  0xba   : > { %v2422_v34 = vrot.slane %v2420_v54, 4  ;;  %v2433_v12 = vshrl.u32 %v2246_v14, 16  ;;  %v731_v19 = vor.u32 %v729_v50, %v728_v6  ;;  %v733_v24 = vrot.slane %v728_v6, 4  ;;  %v5772_v31 = vpop.permute.xlu0 %1989 }
  0xbb   : > { %v971_v35 = vsel %vm5265_vm13, %v723_v18, %v970_v41  ;;  %v2439_v53 = vshll.u32 %v2247_v42, 16  ;;  %v2425_v52 = vrot.slane %v2423_v7, 5  ;;  %v2431_v38 = vrot.slane %v2429_v8, 5  ;;  %v378_v18 = vld [vmem:[%s5207_s25 + $0xa0] sm:$0xff] }
  0xbc   : > { %v5770_v0 = vpop.permute.xlu1 %2709  ;;  %972 = vst [vmem:[#allocation2 + $0x60] sm:$0xf] %v971_v35  ;;  %v2435_v62 = vrot.slane %v2433_v12, 4  ;;  %v4824_v15 = vrot.slane %v2790_v11, 9  ;;  %v732_v39 = vsel %vm5274_vm14, %v724_v4, %v731_v19  ;;  %v975_v14 = vsel %vm5171_vm3, %v733_v24, %v974_v51  ;;  %v380_v4 = vld [vmem:[%s5207_s25 + $0xb0] sm:$0xff] }
  0xbd   : > { %2174 = vrot.lane.b32.xlu0 %v5063_v47, %s5119_s30  ;;  %v2441_v41 = vrot.slane %v2439_v53, 5  ;;  %v2912_v42 = vrot.slane %v2791_v5, 5  ;;  %1999 = vrot.lane.b32.xlu1 %v4777_v55, %s5117_s28  ;;  %973 = vst.msk [vmem:[#allocation2 + $0x64] sm:$0xf] %vm237_vm0, %v732_v39  ;;  %v2426_v33 = vor.u32 %v2425_v52, %v2422_v34  ;;  %976 = vst [vmem:[#allocation2 + $0x68] sm:$0x1] %v975_v14 }
  0xbe   : > { %v2436_v46 = vor.u32 %v2435_v62, %v2431_v38  ;;  %v2915_v27 = vrot.slane %v2792_v59, 5  ;;  %v331_v47 = vld [vmem:[#allocation2 + $0x74] sm:$0x1]  ;;  %v276_v49 = vsel %vm5171_vm3, 0, %v275_v61  ;;  %v484_v30 = vmax.f32 %v5662_v22, 0.0  ;;  %v381_v34 = vld [vmem:[%s5207_s25 + $0xb8] sm:$0xff] }
  0xbf   : > { %v2914_v48 = vrot.slane %v2912_v42, 4  ;;  %v417_v44 = vmul.f32 %v5546_v63, %v377_v37  ;;  %v2427_v54 = vrot.slane %v2426_v33, 4  ;;  %277 = vst [vmem:[#allocation2 + $0x6c] sm:$0x1] %v276_v49  ;;  %v5793_v55 = vadd.f32 %v5533_v57, %v5693_v17 }
  0xc0   : > { %v5789_v50 = vpop.permute.xlu1 %3753  ;;  %v2437_v51 = vrot.slane %v2436_v46, 4  ;;  %v485_v6 = vmax.f32 %v5667_v16, 0.0  ;;  %v5799_v11 = vpack.c.bf16 %v484_v30, %v484_v30  ;;  %vm2210_vm5 = vcmask 130144  }
  0xc1   : > { %v332_v22 = vsel %vm5188_vm7, 0, %v331_v47  ;;  %v1664_v5 = vpop.permute.xlu0 %1663  ;;  %v2432_v17 = vsel %vm5256_vm12, %v2427_v54, %v2431_v38  ;;  %v2913_v16 = vsel %vm5198_vm8, %v4824_v15, %v2912_v42  ;;  %v2916_v8 = vsel %vm5198_vm8, %v2914_v48, %v2915_v27  ;;  %2211 = vst.msk [vmem:[#allocation3] sm:$0xff] %vm2210_vm5, %v5689_v40 }
  0xc2   : > { %v2442_v7 = vsel %vm5256_vm12, %v2437_v51, %v2441_v41  ;;  %333 = vst [vmem:[#allocation2 + $0x74] sm:$0x1] %v332_v22  ;;  %1711 = vst.msk [vmem:[#allocation3 + $0x8] sm:$0xff] %vm1709_vm2, %v1664_v5  ;;  %v418_v19 = vmul.f32 %v5546_v63, %v378_v18  ;;  %v419_v24 = vmul.f32 %v5546_v63, %v379_v60  ;;  %v735_v37 = vshrl.u32 %v5799_v11, 16 }
  0xc3   : > { %v4808_v21 = vcombine.low %v2432_v17, %v2442_v7  ;;  %v2248_v12 = vld [vmem:[#allocation2 + $0x60] sm:$0xf]  ;;  %2035 = vst.msk [vmem:[#allocation3 + $0x8] sm:$0xff] %vm2033_vm4, %v5734_v45  ;;  %v5822_v35 = vmul.f32 %v5546_v63, %v380_v4  ;;  %v5827_v52 = vmul.f32 %v5546_v63, %v381_v34  ;;  %v4840_v62 = vcombine.low %v2913_v16, %v2916_v8 }
  0xc4   : > { %v2793_v28 = vld [vmem:[#allocation2 + $0x60] sm:$0xe]  ;;  %v2444_v53 = vshrl.u32 %v2248_v12, 16  ;;  %v2447_v59 = vshll.u32 %v2248_v12, 16  ;;  %2212 = vst.msk [vmem:[#allocation3 + $0x8] sm:$0xff] %vm2210_vm5, %v5683_v3  ;;  %v1666_v40 = vpop.permute.xlu1 %1665  ;;  %v4954_v15 = vpack.c.bf16 %v485_v6, %v485_v6  ;;  %v5832_v39 = vadd.f32 %v5533_v57, %v417_v44 }
  0xc5   : > { %v4825_v61 = vrot.slane %v2793_v28, 9  ;;  %v5064_v38 = vld [vmem:[#allocation2 + $0x60] sm:$0xff]   ;;  %2719 = vrot.lane.b32.xlu0 %v4808_v21, %s5123_s9  ;;  %1712 = vst.msk [vmem:[#allocation3 + $0x10] sm:$0xff] %vm1709_vm2, %v1666_v40  ;;  %v2250_v41 = vld [vmem:[#allocation2 + $0x68] sm:$0x1]  ;;  %v738_v47 = vshll.u32 %v5799_v11, 16 }
  0xc6   : > { %v2249_v45 = vld [vmem:[#allocation2 + $0x64] sm:$0xf]  ;;  %v2446_v14 = vrot.slane %v2444_v53, 4  ;;  %v2449_v3 = vrot.slane %v2447_v59, 5  ;;  %2036 = vst.msk [vmem:[#allocation3 + $0x10] sm:$0xff] %vm2033_vm4, %v5772_v31  ;;  %2176 = vrot.lane.b32.xlu1 %v5064_v38, %s5119_s30  ;;  %v2463_v63 = vshll.u32 %v2250_v41, 16 }
  0xc7   : > { %v2453_v42 = vshll.u32 %v2249_v45, 16  ;;  %v2457_v33 = vshrl.u32 %v2249_v45, 16  ;;  %v2794_v46 = vld [vmem:[#allocation2 + $0x64] sm:$0xf]  ;;  %v2795_v27 = vld [vmem:[#allocation2 + $0x68] sm:$0x1] }
  0xc8   : > { %v5842_v57 = vld [vmem:[%s6747_s2] ss:$0 sm:$0xff]  ;;  %2213 = vst.msk [vmem:[#allocation3 + $0x10] sm:$0xff] %vm2210_vm5, %v5715_v43  ;;  %v2450_v31 = vor.u32 %v2449_v3, %v2446_v14  ;;  %v2919_v54 = vrot.slane %v2794_v46, 5  ;;  %v2465_v51 = vrot.slane %v2463_v63, 5  ;;  %v2922_v18 = vrot.slane %v2795_v27, 5 }
  0xc9   : > { %v5845_v48 = vadd.f32 %v5842_v57, %v418_v19  ;;  %v5848_v49 = vadd.f32 %v5842_v57, %v419_v24  ;;  %v2455_v30 = vrot.slane %v2453_v42, 5  ;;  %v2459_v44 = vrot.slane %v2457_v33, 4  ;;  %3040 = vrot.lane.b32.xlu0 %v4840_v62, %s5121_s7  ;;  %v5066_v60 = vld [vmem:[#allocation2 + $0x60] sm:$0xff]   ;;  %v977_v17 = vld [vmem:[#allocation2 + $0x6c] sm:$0xf]  ;;  %v5865_v41 = vpop.permute.xlu0 %2707 }
  0xca   : > { %v737_v4 = vrot.slane %v735_v37, 7  ;;  %v743_v6 = vshrl.u32 %v4954_v15, 16  ;;  %v2451_v11 = vrot.slane %v2450_v31, 4  ;;  %v5855_v5 = vsel %vm5198_vm8, %v4825_v61, %v2919_v54  ;;  %v3289_v43 = vld [vmem:[#allocation2 + $0x60] sm:$0xf] }
  0xcb   : > { %v2460_v22 = vor.u32 %v2459_v44, %v2455_v30  ;;  %v2921_v34 = vrot.slane %v2919_v54, 4  ;;  %v746_v21 = vshll.u32 %v4954_v15, 16  ;;  %v3290_v12 = vld [vmem:[#allocation2 + $0x64] sm:$0xf]  ;;  %v3291_v53 = vld [vmem:[#allocation2 + $0x68] sm:$0x1] }
  0xcc   : > { %v740_v7 = vor.u32 %v738_v47, %v737_v4  ;;  %v741_v16 = vrot.slane %v737_v4, 4  ;;  %v745_v8 = vrot.slane %v743_v6, 7  ;;  %v2456_v28 = vsel %vm5256_vm12, %v2451_v11, %v2455_v30  ;;  %v981_v40 = vld [vmem:[#allocation2 + $0x74] sm:$0x1]  ;;  %v3834_v15 = vld [vmem:[#allocation2 + $0x60] sm:$0xe] }
  0xcd   : > { %v2461_v19 = vrot.slane %v2460_v22, 4  ;;  %v2923_v24 = vsel %vm5198_vm8, %v2921_v34, %v2922_v18  ;;  %v3464_v59 = vshrl.u32 %v3289_v43, 16  ;;  %3218 = vrot.lane.b32.xlu0 %v5066_v60, %s5120_s6  ;;  %v3835_v37 = vld [vmem:[#allocation2 + $0x64] sm:$0xf]  ;;  %v3467_v42 = vshll.u32 %v3289_v43, 16 }
  0xce   : > { %v4841_v61 = vcombine.low %v5855_v5, %v2923_v24  ;;  %v748_v38 = vor.u32 %v746_v21, %v745_v8  ;;  %v750_v45 = vrot.slane %v745_v8, 4  ;;  %v978_v62 = vsel %vm5265_vm13, %v740_v7, %v977_v17  ;;  %v3836_v63 = vld [vmem:[#allocation2 + $0x68] sm:$0x1]  ;;  %v1668_v46 = vpop.permute.xlu1 %1667  ;;  %v1202_v44 = vld [vmem:[#allocation2 + $0x60] sm:$0xf] }
  0xcf   : > { %v2466_v14 = vsel %vm5256_vm12, %v2461_v19, %v2465_v51  ;;  %979 = vst [vmem:[#allocation2 + $0x6c] sm:$0xf] %v978_v62  ;;  %v3466_v3 = vrot.slane %v3464_v59, 4  ;;  %v3473_v33 = vshll.u32 %v3290_v12, 16  ;;  %v3477_v31 = vshrl.u32 %v3290_v12, 16  ;;  %1713 = vst.msk [vmem:[#allocation3 + $0x18] sm:$0xff] %vm1709_vm2, %v1668_v46 }
  0xd0   : > { %v4809_v27 = vcombine.low %v2456_v28, %v2466_v14  ;;  %v749_v47 = vsel %vm5274_vm14, %v741_v16, %v748_v38  ;;  %v3483_v30 = vshll.u32 %v3291_v53, 16  ;;  %v1203_v54 = vld [vmem:[#allocation2 + $0x64] sm:$0xf]  ;;  %v3469_v18 = vrot.slane %v3467_v42, 5  ;;  %2037 = vst.msk [vmem:[#allocation3 + $0x18] sm:$0xff] %vm2033_vm4, %v5760_v23 }
  0xd1   : > { %980 = vst.msk [vmem:[#allocation2 + $0x70] sm:$0xf] %vm237_vm0, %v749_v47  ;;  %v3475_v51 = vrot.slane %v3473_v33, 5  ;;  %v982_v60 = vsel %vm5171_vm3, %v750_v45, %v981_v40  ;;  %v4888_v4 = vrot.slane %v3834_v15, 9  ;;  %v3479_v6 = vrot.slane %v3477_v31, 4 }
  0xd2   : > { %2721 = vrot.lane.b32.xlu1 %v4809_v27, %s5123_s9  ;;  %v3485_v11 = vrot.slane %v3483_v30, 5  ;;  %983 = vst [vmem:[#allocation2 + $0x74] sm:$0x1] %v982_v60  ;;  %v3956_v22 = vrot.slane %v3835_v37, 5  ;;  %v3959_v5 = vrot.slane %v3836_v63, 5  ;;  %2214 = vst.msk [vmem:[#allocation3 + $0x18] sm:$0xff] %vm2210_vm5, %v5719_v58  ;;  %v3470_v34 = vor.u32 %v3469_v18, %v3466_v3 }
  0xd3   : > { %v1422_v17 = vshrl.u32 %v1202_v44, 16  ;;  %v1425_v43 = vshll.u32 %v1202_v44, 16  ;;  %v1431_v7 = vshll.u32 %v1203_v54, 16  ;;  %v3480_v16 = vor.u32 %v3479_v6, %v3475_v51  ;;  %v5884_v12 = vpop.permute.xlu0 %3751  ;;  %v1204_v19 = vld [vmem:[#allocation2 + $0x68] sm:$0x1] }
  0xd4   : > { %v5882_v8 = vsel %vm5198_vm8, %v4888_v4, %v3956_v22  ;;  %v3958_v23 = vrot.slane %v3956_v22, 4  ;;  %v1435_v21 = vshrl.u32 %v1203_v54, 16  ;;  %v3471_v28 = vrot.slane %v3470_v34, 4 }
  0xd5   : > { %v1424_v24 = vrot.slane %v1422_v17, 4  ;;  %v1427_v53 = vrot.slane %v1425_v43, 5  ;;  %v1433_v59 = vrot.slane %v1431_v7, 5  ;;  %v3481_v58 = vrot.slane %v3480_v16, 4 }
  0xd6   : > { %3042 = vrot.lane.b32.xlu1 %v4841_v61, %s5121_s7  ;;  %v3292_v40 = vld [vmem:[#allocation2 + $0x6c] sm:$0xf]  ;;  %v3960_v38 = vsel %vm5198_vm8, %v3958_v23, %v3959_v5  ;;  %v1437_v45 = vrot.slane %v1435_v21, 4  ;;  %v5891_v62 = vadd.f32 %v5842_v57, %v5822_v35  ;;  %v3476_v15 = vsel %vm5256_vm12, %v3471_v28, %v3475_v51 }
  0xd7   : > { %v3488_v37 = vshrl.u32 %v3292_v40, 16  ;;  %v3491_v14 = vshll.u32 %v3292_v40, 16  ;;  %v4904_v3 = vcombine.low %v5882_v8, %v3960_v38  ;;  %v3837_v42 = vld [vmem:[#allocation2 + $0x6c] sm:$0xe]  ;;  %v3486_v61 = vsel %vm5256_vm12, %v3481_v58, %v3485_v11  ;;  %v5898_v30 = vpop.permute.xlu0 %2711 }
  0xd8   : > { %v5067_v33 = vld [vmem:[#allocation2 + $0x6c] sm:$0xff]   ;;  %v1428_v46 = vor.u32 %v1427_v53, %v1424_v24  ;;  %v1438_v27 = vor.u32 %v1437_v45, %v1433_v59  ;;  %v1441_v47 = vshll.u32 %v1204_v19, 16  ;;  %v4872_v35 = vcombine.low %v3476_v15, %v3486_v61  ;;  %v1750_v19 = vld [vmem:[#allocation2 + $0x60] sm:$0xe]  ;;  %v1751_v15 = vld [vmem:[#allocation2 + $0x64] sm:$0xf] }
  0xd9   : > { %v3293_v63 = vld [vmem:[#allocation2 + $0x70] sm:$0xf]  ;;  %v1205_v31 = vld [vmem:[#allocation2 + $0x6c] sm:$0xf]  ;;  %v3294_v44 = vld [vmem:[#allocation2 + $0x74] sm:$0x1] }
  0xda   : > { %v3490_v54 = vrot.slane %v3488_v37, 4  ;;  %v3493_v18 = vrot.slane %v3491_v14, 5  ;;  %v3497_v51 = vshll.u32 %v3293_v63, 16  ;;  %3220 = vrot.lane.b32.xlu1 %v5067_v33, %s5120_s6  ;;  %v3501_v60 = vshrl.u32 %v3293_v63, 16  ;;  %v3838_v5 = vld [vmem:[#allocation2 + $0x70] sm:$0xf]  ;;  %3763 = vrot.lane.b32.xlu0 %v4872_v35, %s5124_s10 }
  0xdb   : > { %v3507_v4 = vshll.u32 %v3294_v44, 16  ;;  %v1429_v6 = vrot.slane %v1428_v46, 4  ;;  %v1439_v22 = vrot.slane %v1438_v27, 4  ;;  %v1443_v17 = vrot.slane %v1441_v47, 5  ;;  %v3839_v43 = vld [vmem:[#allocation2 + $0x74] sm:$0x1]  ;;  %v5904_v24 = vpop.permute.xlu0 %3032 }
  0xdc   : > { %v3494_v11 = vor.u32 %v3493_v18, %v3490_v54  ;;  %v3499_v34 = vrot.slane %v3497_v51, 5  ;;  %v4889_v7 = vrot.slane %v3837_v42, 9  ;;  %v3503_v16 = vrot.slane %v3501_v60, 4  ;;  %v1206_v28 = vld [vmem:[#allocation2 + $0x70] sm:$0xf] }
  0xdd   : > { %v3509_v8 = vrot.slane %v3507_v4, 5  ;;  %v1434_v23 = vsel %vm5256_vm12, %v1429_v6, %v1433_v59  ;;  %v3963_v21 = vrot.slane %v3838_v5, 5  ;;  %v1444_v58 = vsel %vm5256_vm12, %v1439_v22, %v1443_v17  ;;  %v1207_v38 = vld [vmem:[#allocation2 + $0x74] sm:$0x1]  ;;  %v1752_v59 = vld [vmem:[#allocation2 + $0x68] sm:$0x1] }
  0xde   : > { %v3495_v53 = vrot.slane %v3494_v11, 4  ;;  %v3966_v40 = vrot.slane %v3839_v43, 5  ;;  %v1446_v45 = vshrl.u32 %v1205_v31, 16  ;;  %v3504_v37 = vor.u32 %v3503_v16, %v3499_v34  ;;  %v1753_v61 = vld [vmem:[#allocation2 + $0x6c] sm:$0xe]  ;;  %4084 = vrot.lane.b32.xlu0 %v4904_v3, %s5122_s8 }
  0xdf   : > { %v4746_v14 = vcombine.low %v1434_v23, %v1444_v58  ;;  %v3964_v42 = vsel %vm5198_vm8, %v4889_v7, %v3963_v21  ;;  %v3965_v33 = vrot.slane %v3963_v21, 4  ;;  %v1449_v27 = vshll.u32 %v1205_v31, 16  ;;  %v1754_v35 = vld [vmem:[#allocation2 + $0x70] sm:$0xf]  ;;  %v278_v60 = vld [vmem:[#allocation2 + $0x78] sm:$0x1]  ;;  %v5917_v43 = vpop.permute.xlu0 %3210 }
  0xe0   : > { %v3500_v63 = vsel %vm5256_vm12, %v3495_v53, %v3499_v34  ;;  %v1448_v46 = vrot.slane %v1446_v45, 4  ;;  %v1455_v47 = vshll.u32 %v1206_v28, 16  ;;  %v3505_v44 = vrot.slane %v3504_v37, 4  ;;  %v1755_v31 = vld [vmem:[#allocation2 + $0x74] sm:$0x1] }
  0xe1   : > { %v3967_v54 = vsel %vm5198_vm8, %v3965_v33, %v3966_v40  ;;  %v1459_v18 = vshrl.u32 %v1206_v28, 16  ;;  %v1465_v51 = vshll.u32 %v1207_v38, 16  ;;  %v1451_v6 = vrot.slane %v1449_v27, 5 }
  0xe2   : > { %v4905_v4 = vcombine.low %v3964_v42, %v3967_v54  ;;  %v1457_v22 = vrot.slane %v1455_v47, 5  ;;  %v4762_v5 = vrot.slane %v1750_v19, 9  ;;  %v3510_v11 = vsel %vm5256_vm12, %v3505_v44, %v3509_v8  ;;  %v2252_v47 = vld [vmem:[#allocation2 + $0x70] sm:$0xf]  ;;  %v5086_v44 = vld [vmem:[#allocation2 + $0x48] sm:$0xff]  }
  0xe3   : > { %v1461_v34 = vrot.slane %v1459_v18, 4  ;;  %v1467_v3 = vrot.slane %v1465_v51, 5  ;;  %v1883_v17 = vrot.slane %v1751_v15, 5  ;;  %v4873_v7 = vcombine.low %v3500_v63, %v3510_v11  ;;  %v2251_v15 = vld [vmem:[#allocation2 + $0x6c] sm:$0xf]  ;;  %1168 = vst.msk [vmem:[#allocation3 + $0x30] sm:$0xff] %vm6752_vm15, %v5086_v44 }
  0xe4   : > { %4086 = vrot.lane.b32.xlu0 %v4905_v4, %s5122_s8  ;;  %v1452_v16 = vor.u32 %v1451_v6, %v1448_v46  ;;  %v1886_v23 = vrot.slane %v1752_v59, 5  ;;  %v4763_v21 = vrot.slane %v1753_v61, 9  ;;  %v1890_v58 = vrot.slane %v1754_v35, 5 }
  0xe5   : > { %v1462_v28 = vor.u32 %v1461_v34, %v1457_v22  ;;  %v1884_v53 = vsel %vm5198_vm8, %v4762_v5, %v1883_v17  ;;  %v1885_v19 = vrot.slane %v1883_v17, 4  ;;  %3765 = vrot.lane.b32.xlu1 %v4873_v7, %s5124_s10  ;;  %v1893_v40 = vrot.slane %v1755_v31, 5  ;;  %v2253_v34 = vld [vmem:[#allocation2 + $0x74] sm:$0x1]  ;;  %v2796_v17 = vld [vmem:[#allocation2 + $0x6c] sm:$0xe] }
  0xe6   : > { %v1453_v8 = vrot.slane %v1452_v16, 4  ;;  %v279_v38 = vsel %vm5171_vm3, 0, %v278_v60  ;;  %v486_v45 = vmax.f32 %v5793_v55, 0.0  ;;  %v5930_v33 = vsel %vm5198_vm8, %v4763_v21, %v1890_v58  ;;  %v334_v55 = vld [vmem:[#allocation2 + $0x80] sm:$0x1]  ;;  %v5935_v35 = vpop.permute.xlu1 %2713 }
  0xe7   : > { %v1463_v37 = vrot.slane %v1462_v28, 4  ;;  %v1887_v42 = vsel %vm5198_vm8, %v1885_v19, %v1886_v23  ;;  %v1892_v59 = vrot.slane %v1890_v58, 4  ;;  %280 = vst [vmem:[#allocation2 + $0x78] sm:$0x1] %v279_v38  ;;  %v487_v46 = vmax.f32 %v5832_v39, 0.0  ;;  %v5087_v58 = vld [vmem:[#allocation2 + $0x54] sm:$0xff]  }
  0xe8   : > { %v1458_v61 = vsel %vm5256_vm12, %v1453_v8, %v1457_v22  ;;  %v4778_v63 = vcombine.low %v1884_v53, %v1887_v42  ;;  %v4955_v27 = vpack.c.bf16 %v486_v45, %v486_v45  ;;  %v2468_v51 = vshrl.u32 %v2251_v15, 16  ;;  %v5941_v4 = vpop.permute.xlu0 %3755  ;;  %v5068_v22 = vld [vmem:[#allocation2 + $0x6c] sm:$0xff]   ;;  %1169 = vst.msk [vmem:[#allocation3 + $0x38] sm:$0xff] %vm6752_vm15, %v5087_v58 }
  0xe9   : > { %v1468_v54 = vsel %vm5256_vm12, %v1463_v37, %v1467_v3  ;;  %v1894_v18 = vsel %vm5198_vm8, %v1892_v59, %v1893_v40  ;;  %v2471_v60 = vshll.u32 %v2251_v15, 16  ;;  %1677 = vrot.lane.b32.xlu1 %v4746_v14, %s5118_s29  ;;  %v4956_v5 = vpack.c.bf16 %v487_v46, %v487_v46  ;;  %v2797_v23 = vld [vmem:[#allocation2 + $0x70] sm:$0xf]  ;;  %v2798_v15 = vld [vmem:[#allocation2 + $0x74] sm:$0x1] }
  0xea   : > { %v4747_v6 = vcombine.low %v1458_v61, %v1468_v54  ;;  %2001 = vrot.lane.b32.xlu0 %v4778_v63, %s5117_s28  ;;  %v4779_v39 = vcombine.low %v5930_v33, %v1894_v18  ;;  %v752_v11 = vshrl.u32 %v4955_v27, 16  ;;  %v755_v3 = vshll.u32 %v4955_v27, 16  ;;  %v3035_v19 = vpop.permute.xlu1 %3034 }
  0xeb   : > { %v2470_v31 = vrot.slane %v2468_v51, 4  ;;  %v2473_v7 = vrot.slane %v2471_v60, 5  ;;  %v2477_v16 = vshll.u32 %v2252_v47, 16  ;;  %v760_v28 = vshrl.u32 %v4956_v5, 16  ;;  %v281_v60 = vld [vmem:[#allocation2 + $0x84] sm:$0x1] }
  0xec   : > { %v754_v21 = vrot.slane %v752_v11, 7  ;;  %v763_v14 = vshll.u32 %v4956_v5, 16  ;;  %v2481_v53 = vshrl.u32 %v2252_v47, 16  ;;  %v2487_v38 = vshll.u32 %v2253_v34, 16 }
  0xed   : > { %v2474_v8 = vor.u32 %v2473_v7, %v2470_v31  ;;  %v2479_v40 = vrot.slane %v2477_v16, 5  ;;  %v335_v45 = vsel %vm5188_vm7, 0, %v334_v55  ;;  %1679 = vrot.lane.b32.xlu1 %v4747_v6, %s5118_s29  ;;  %v762_v33 = vrot.slane %v760_v28, 7  ;;  %v5956_v55 = vpop.permute.xlu0 %4076  ;;  %v5077_v31 = vld [vmem:[%s6748_s3 + $0x10] ss:$0 sps:$4 sm:$0x33]  }
  0xee   : > { %2178 = vrot.lane.b32.xlu0 %v5068_v22, %s5119_s30  ;;  %v757_v37 = vor.u32 %v755_v3, %v754_v21  ;;  %v758_v42 = vrot.slane %v754_v21, 4  ;;  %v984_v59 = vld [vmem:[#allocation2 + $0x78] sm:$0xf]  ;;  %v2483_v61 = vrot.slane %v2481_v53, 4  ;;  %336 = vst [vmem:[#allocation2 + $0x80] sm:$0x1] %v335_v45  ;;  %v5954_v47 = vadd.f32 %v5842_v57, %v5827_v52  ;;  %v3213_v6 = vpop.permute.xlu1 %3212 }
  0xef   : > { %v2475_v63 = vrot.slane %v2474_v8, 4  ;;  %v4826_v46 = vrot.slane %v2796_v17, 9  ;;  %v2926_v27 = vrot.slane %v2797_v23, 5  ;;  %v765_v44 = vor.u32 %v763_v14, %v762_v33  ;;  %v337_v17 = vld [vmem:[#allocation2 + $0x8c] sm:$0x1] }
  0xf0   : > { %v985_v54 = vsel %vm5265_vm13, %v757_v37, %v984_v59  ;;  %v2484_v18 = vor.u32 %v2483_v61, %v2479_v40  ;;  %v2489_v51 = vrot.slane %v2487_v38, 5  ;;  %v767_v22 = vrot.slane %v762_v33, 4  ;;  %v383_v28 = vld [vmem:[%s5207_s25 + $0xc8] sm:$0xff] }
  0xf1   : > { %986 = vst [vmem:[#allocation2 + $0x78] sm:$0xf] %v985_v54  ;;  %v2480_v5 = vsel %vm5256_vm12, %v2475_v63, %v2479_v40  ;;  %v2928_v11 = vrot.slane %v2926_v27, 4  ;;  %v2929_v34 = vrot.slane %v2798_v15, 5  ;;  %2003 = vrot.lane.b32.xlu1 %v4779_v39, %s5117_s28  ;;  %v766_v52 = vsel %vm5274_vm14, %v758_v42, %v765_v44 }
  0xf2   : > { %v2485_v3 = vrot.slane %v2484_v18, 4  ;;  %vm2755_vm6 = vcmask 162944   ;;  %vm6754_vm9 = vcmask 195744   ;;  %987 = vst.msk [vmem:[#allocation2 + $0x7c] sm:$0xf] %vm237_vm0, %v766_v52  ;;  %v5971_v7 = vsel %vm5198_vm8, %v4826_v46, %v2926_v27 }
  0xf3   : > { %v5975_v16 = vsel %vm5198_vm8, %v2928_v11, %v2929_v34  ;;  %vm6753_vm10 = vcmask 228544   ;;  %vm3799_vm11 = vcmask 261344   ;;  %2757 = vst.msk [vmem:[#allocation3 + $0x8] sm:$0xff] %vm2755_vm6, %v5770_v0  ;;  %2756 = vst.msk [vmem:[#allocation3] sm:$0xff] %vm2755_vm6, %v5865_v41  ;;  %vm4120_vm1 = vcmask 294144  }
  0xf4   : > { %2758 = vst.msk [vmem:[#allocation3 + $0x10] sm:$0xff] %vm2755_vm6, %v5898_v30  ;;  %2759 = vst.msk [vmem:[#allocation3 + $0x18] sm:$0xff] %vm2755_vm6, %v5935_v35  ;;  %v2490_v39 = vsel %vm5256_vm12, %v2485_v3, %v2489_v51  ;;  %v282_v23 = vsel %vm5171_vm3, 0, %v281_v60  ;;  %v488_v0 = vmax.f32 %v5845_v48, 0.0  ;;  %v284_v41 = vld [vmem:[#allocation2 + $0x90] sm:$0x1]  ;;  %v4079_v48 = vpop.permute.xlu0 %4078 }
  0xf5   : > { %3078 = vst.msk [vmem:[#allocation3 + $0x8] sm:$0xff] %vm6754_vm9, %v5742_v26  ;;  %3077 = vst.msk [vmem:[#allocation3] sm:$0xff] %vm6754_vm9, %v5727_v29  ;;  %v4810_v30 = vcombine.low %v2480_v5, %v2490_v39  ;;  %v988_v35 = vld [vmem:[#allocation2 + $0x80] sm:$0x1]  ;;  %v489_v26 = vmax.f32 %v5848_v49, 0.0  ;;  %v338_v29 = vsel %vm5188_vm7, 0, %v337_v17  ;;  %v4842_v49 = vcombine.low %v5971_v7, %v5975_v16  ;;  %v3758_v21 = vpop.permute.xlu1 %3757 }
  0xf6   : > { %3079 = vst.msk [vmem:[#allocation3 + $0x10] sm:$0xff] %vm6754_vm9, %v5904_v24  ;;  %3080 = vst.msk [vmem:[#allocation3 + $0x18] sm:$0xff] %vm6754_vm9, %v3035_v19  ;;  %vm4222_vm15 = vcmask 1041408   ;;  %v382_v24 = vld [vmem:[%s5207_s25 + $0xc0] sm:$0xff] }
  0xf7   : > { %3256 = vst.msk [vmem:[#allocation3 + $0x8] sm:$0xff] %vm6753_vm10, %v5706_v20  ;;  %283 = vst [vmem:[#allocation2 + $0x84] sm:$0x1] %v282_v23  ;;  %v989_v20 = vsel %vm5171_vm3, %v767_v22, %v988_v35  ;;  %5032 = vmatprep.subr.msk.bf16.mxu0 %vm4222_vm15, %v5077_v31  ;;  %5033 = vmatprep.subr.msk.bf16.mxu1 %vm4222_vm15, %v5077_v31  ;;  %v6031_v53 = vpack.c.bf16 %v489_v26, %v489_v26 }
  0xf8   : > { %3255 = vst.msk [vmem:[#allocation3] sm:$0xff] %vm6753_vm10, %v5708_v36  ;;  %3257 = vst.msk [vmem:[#allocation3 + $0x10] sm:$0xff] %vm6753_vm10, %v5917_v43  ;;  %v4957_v36 = vpack.c.bf16 %v488_v0, %v488_v0  ;;  %v4224_v43 = vsel %vm4222_vm15, %v5077_v31, 0  ;;  %2723 = vrot.lane.b32.xlu0 %v4810_v30, %s5123_s9  ;;  %v2254_v14 = vld [vmem:[#allocation2 + $0x78] sm:$0xf]  ;;  %v1994_v59 = vpop.permute.xlu0 %1993  ;;  %vm6767_vm15 = vcmask 228544  }
  0xf9   : > { %3258 = vst.msk [vmem:[#allocation3 + $0x18] sm:$0xff] %vm6753_vm10, %v3213_v6  ;;  %339 = vst [vmem:[#allocation2 + $0x8c] sm:$0x1] %v338_v29  ;;  %4993 = vmatpush3.bf16.msra.mxu0 %v4224_v43  ;;  %vm4173_vm10 = vcmask 293888   ;;  %5031 = vmatpush3.bf16.msra.mxu1 %v4224_v43  ;;  %v2492_v58 = vshrl.u32 %v2254_v14, 16  ;;  %v2495_v8 = vshll.u32 %v2254_v14, 16  ;;  %v1670_v42 = vpop.permute.xlu1 %1669 }
  0xfa   : > { %3801 = vst.msk [vmem:[#allocation3 + $0x8] sm:$0xff] %vm3799_vm11, %v5789_v50  ;;  %3800 = vst.msk [vmem:[#allocation3] sm:$0xff] %vm3799_vm11, %v5884_v12  ;;  %v285_v50 = vsel %vm5171_vm3, 0, %v284_v41  ;;  %v490_v12 = vmax.f32 %v5891_v62, 0.0  ;;  %v769_v38 = vshrl.u32 %v4957_v36, 16  ;;  %v5069_v45 = vld [vmem:[#allocation2 + $0x78] sm:$0xff]  }
  0xfb   : > { %3802 = vst.msk [vmem:[#allocation3 + $0x10] sm:$0xff] %vm3799_vm11, %v5941_v4  ;;  %990 = vst [vmem:[#allocation2 + $0x80] sm:$0x1] %v989_v20  ;;  %v491_v4 = vmax.f32 %v5954_v47, 0.0  ;;  %v2255_v15 = vld [vmem:[#allocation2 + $0x7c] sm:$0xf]  ;;  %2180 = vrot.lane.b32.xlu1 %v5069_v45, %s5119_s30 }
  0xfc   : > { %4122 = vst.msk [vmem:[#allocation3 + $0x8] sm:$0xff] %vm4120_vm1, %v5749_v2  ;;  %4121 = vst.msk [vmem:[#allocation3] sm:$0xff] %vm4120_vm1, %v5737_v56  ;;  %v2799_v2 = vld [vmem:[#allocation2 + $0x78] sm:$0xe]  ;;  %v6037_v56 = vld [vmem:[%s6746_s1] ss:$0 sm:$0xff]  ;;  %3044 = vrot.lane.b32.xlu0 %v4842_v49, %s5121_s7  ;;  %v2171_v23 = vpop.permute.xlu0 %2170 }
  0xfd   : > { %3803 = vst.msk [vmem:[#allocation3 + $0x18] sm:$0xff] %vm3799_vm11, %v3758_v21  ;;  %286 = vst [vmem:[#allocation2 + $0x90] sm:$0x1] %v285_v50  ;;  %v422_v19 = vmul.f32 %v6037_v56, %v382_v24  ;;  %v4827_v40 = vrot.slane %v2799_v2, 9  ;;  %v772_v37 = vshll.u32 %v4957_v36, 16  ;;  %v423_v33 = vmul.f32 %v6037_v56, %v383_v28  ;;  %v5071_v54 = vld [vmem:[#allocation2 + $0x78] sm:$0xff]   ;;  %v1672_v39 = vpop.permute.xlu1 %1671 }
  0xfe   : > { %4123 = vst.msk [vmem:[#allocation3 + $0x10] sm:$0xff] %vm4120_vm1, %v5956_v55  ;;  %4124 = vst.msk [vmem:[#allocation3 + $0x18] sm:$0xff] %vm4120_vm1, %v4079_v48  ;;  %v2494_v61 = vrot.slane %v2492_v58, 4  ;;  %v2497_v63 = vrot.slane %v2495_v8, 5  ;;  %v2501_v46 = vshll.u32 %v2255_v15, 16  ;;  %v2505_v27 = vshrl.u32 %v2255_v15, 16 }
  0xff   : > { %v2800_v55 = vld [vmem:[#allocation2 + $0x7c] sm:$0xf]  ;;  %1714 = vst.msk [vmem:[#allocation3 + $0x20] sm:$0xff] %vm1709_vm2, %v1670_v42  ;;  %v771_v18 = vrot.slane %v769_v38, 7  ;;  %v777_v51 = vshrl.u32 %v6031_v53, 16  ;;  %v6046_v60 = vadd.f32 %v5842_v57, %v422_v19  ;;  %v780_v11 = vshll.u32 %v6031_v53, 16 }
 0x100   : > { %v2933_v44 = vrot.slane %v2800_v55, 5  ;;  %2038 = vst.msk [vmem:[#allocation3 + $0x20] sm:$0xff] %vm2033_vm4, %v1994_v59  ;;  %v2498_v6 = vor.u32 %v2497_v63, %v2494_v61  ;;  %v2503_v22 = vrot.slane %v2501_v46, 5  ;;  %v2507_v5 = vrot.slane %v2505_v27, 4  ;;  %v991_v34 = vld [vmem:[#allocation2 + $0x84] sm:$0xf]  ;;  %3222 = vrot.lane.b32.xlu0 %v5071_v54, %s5120_s6 }
 0x101   : > { %v774_v7 = vor.u32 %v772_v37, %v771_v18  ;;  %v775_v16 = vrot.slane %v771_v18, 4  ;;  %v3295_v26 = vld [vmem:[#allocation2 + $0x78] sm:$0xf]  ;;  %1715 = vst.msk [vmem:[#allocation3 + $0x28] sm:$0xff] %vm1709_vm2, %v1672_v39  ;;  %v779_v48 = vrot.slane %v777_v51, 7  ;;  %v6061_v43 = vadd.f32 %v5842_v57, %v423_v33  ;;  %v1996_v57 = vpop.permute.xlu1 %1995 }
 0x102   : > { %v2256_v17 = vld [vmem:[#allocation2 + $0x80] sm:$0x1]  ;;  %v6052_v3 = vsel %vm5198_vm8, %v4827_v40, %v2933_v44  ;;  %v2935_v31 = vrot.slane %v2933_v44, 4  ;;  %v2499_v0 = vrot.slane %v2498_v6, 4  ;;  %v2508_v41 = vor.u32 %v2507_v5, %v2503_v22  ;;  %2215 = vst.msk [vmem:[#allocation3 + $0x20] sm:$0xff] %vm2210_vm5, %v2171_v23 }
 0x103   : > { %v2801_v52 = vld [vmem:[#allocation2 + $0x80] sm:$0x1]  ;;  %v2511_v30 = vshll.u32 %v2256_v17, 16  ;;  %v4137_v29 = vld [vmem:[#allocation3] sm:$0xff]  ;;  %v992_v24 = vsel %vm5265_vm13, %v774_v7, %v991_v34  ;;  %v3512_v36 = vshrl.u32 %v3295_v26, 16  ;;  %v782_v58 = vor.u32 %v780_v11, %v779_v48  ;;  %2039 = vst.msk [vmem:[#allocation3 + $0x28] sm:$0xff] %vm2033_vm4, %v1996_v57 }
 0x104   : > { %v2936_v35 = vrot.slane %v2801_v52, 5  ;;  %v3296_v20 = vld [vmem:[#allocation2 + $0x7c] sm:$0xf]  ;;  %v3297_v49 = vld [vmem:[#allocation2 + $0x80] sm:$0x1]  ;;  %4994 = vmatprep.mubr.msk.bf16.mxu0 %vm4173_vm10, %v4137_v29  ;;  %v2504_v21 = vsel %vm5256_vm12, %v2499_v0, %v2503_v22  ;;  %v2509_v50 = vrot.slane %v2508_v41, 4  ;;  %v6099_v57 = vpack.c.bf16 %v491_v4, %v491_v4 }
 0x105   : > { %v2513_v28 = vrot.slane %v2511_v30, 5  ;;  %993 = vst [vmem:[#allocation2 + $0x84] sm:$0xf] %v992_v24  ;;  %v995_v2 = vld [vmem:[#allocation2 + $0x8c] sm:$0x1]  ;;  %v784_v8 = vrot.slane %v779_v48, 4  ;;  %v783_v46 = vsel %vm5274_vm14, %v775_v16, %v782_v58  ;;  %v6086_v30 = vpack.c.bf16 %v490_v12, %v490_v12 }
 0x106   : > { %v2937_v14 = vsel %vm5198_vm8, %v2935_v31, %v2936_v35  ;;  %v3840_v53 = vld [vmem:[#allocation2 + $0x78] sm:$0xe]  ;;  %v3514_v40 = vrot.slane %v3512_v36, 4  ;;  %v3841_v38 = vld [vmem:[#allocation2 + $0x7c] sm:$0xf]  ;;  %v3515_v37 = vshll.u32 %v3295_v26, 16  ;;  %v2716_v16 = vpop.permute.xlu0 %2715 }
 0x107   : > { %v4843_v19 = vcombine.low %v6052_v3, %v2937_v14  ;;  %v3842_v45 = vld [vmem:[#allocation2 + $0x80] sm:$0x1]  ;;  %v2514_v15 = vsel %vm5256_vm12, %v2509_v50, %v2513_v28  ;;  %v3521_v42 = vshll.u32 %v3296_v20, 16  ;;  %v3525_v33 = vshrl.u32 %v3296_v20, 16  ;;  %v1208_v59 = vld [vmem:[#allocation2 + $0x78] sm:$0xf] }
 0x108   : > { %v4138_v61 = vld [vmem:[#allocation3 + $0x8] sm:$0xff]  ;;  %v4811_v63 = vcombine.low %v2504_v21, %v2514_v15  ;;  %v3531_v27 = vshll.u32 %v3297_v49, 16  ;;  %v996_v55 = vsel %vm5171_vm3, %v784_v8, %v995_v2  ;;  %v1209_v44 = vld [vmem:[#allocation2 + $0x7c] sm:$0xf]  ;;  %v4139_v54 = vld [vmem:[#allocation3 + $0x10] sm:$0xff]  ;;  %v3517_v18 = vrot.slane %v3515_v37, 5 }
 0x109   : > { %4995 = vmatmul.mubr.msk.bf16.vlgmr.msra.gmra.mrb[0].mxu0 %vm4173_vm10, %v4138_v61  ;;  %994 = vst.msk [vmem:[#allocation2 + $0x88] sm:$0xf] %vm237_vm0, %v783_v46  ;;  %v3523_v51 = vrot.slane %v3521_v42, 5  ;;  %v3527_v6 = vrot.slane %v3525_v33, 4  ;;  %997 = vst [vmem:[#allocation2 + $0x8c] sm:$0x1] %v996_v55 }
 0x10a   : > { %v4890_v22 = vrot.slane %v3840_v53, 9  ;;  %4998 = vmatprep.mubr.msk.bf16.mxu0 %vm4173_vm10, %v4139_v54  ;;  %2725 = vrot.lane.b32.xlu1 %v4811_v63, %s5123_s9  ;;  %v3533_v5 = vrot.slane %v3531_v27, 5  ;;  %v3970_v11 = vrot.slane %v3841_v38, 5  ;;  %v3973_v34 = vrot.slane %v3842_v45, 5  ;;  %2760 = vst.msk [vmem:[#allocation3 + $0x20] sm:$0xff] %vm2755_vm6, %v2716_v16  ;;  %v4140_v50 = vld [vmem:[#allocation3 + $0x18] sm:$0xff]  ;;  %v2173_v53 = vpop.permute.xlu1 %2172  ;;  %v3037_v58 = vpop.permute.xlu0 %3036 }
 0x10b   : > { %v1470_v17 = vshrl.u32 %v1208_v59, 16  ;;  %v3518_v52 = vor.u32 %v3517_v18, %v3514_v40  ;;  %v3528_v3 = vor.u32 %v3527_v6, %v3523_v51  ;;  %v1473_v31 = vshll.u32 %v1208_v59, 16  ;;  %v1210_v20 = vld [vmem:[#allocation2 + $0x80] sm:$0x1]  ;;  %2216 = vst.msk [vmem:[#allocation3 + $0x28] sm:$0xff] %vm2210_vm5, %v2173_v53 }
 0x10c   : > { %v1479_v7 = vshll.u32 %v1209_v44, 16  ;;  %v3298_v39 = vld [vmem:[#allocation2 + $0x84] sm:$0xf]  ;;  %v6081_v23 = vsel %vm5198_vm8, %v4890_v22, %v3970_v11  ;;  %v3972_v0 = vrot.slane %v3970_v11, 4  ;;  %v1483_v21 = vshrl.u32 %v1209_v44, 16  ;;  %3081 = vst.msk [vmem:[#allocation3 + $0x20] sm:$0xff] %vm6754_vm9, %v3037_v58 }
 0x10d   : > { %v1472_v41 = vrot.slane %v1470_v17, 4  ;;  %v3519_v35 = vrot.slane %v3518_v52, 4  ;;  %v3529_v26 = vrot.slane %v3528_v3, 4  ;;  %v3536_v29 = vshrl.u32 %v3298_v39, 16  ;;  %v3843_v2 = vld [vmem:[#allocation2 + $0x84] sm:$0xe] }
 0x10e   : > { %v3539_v48 = vshll.u32 %v3298_v39, 16  ;;  %3046 = vrot.lane.b32.xlu1 %v4843_v19, %s5121_s7  ;;  %v3974_v24 = vsel %vm5198_vm8, %v3972_v0, %v3973_v34  ;;  %v1475_v49 = vrot.slane %v1473_v31, 5  ;;  %v1481_v36 = vrot.slane %v1479_v7, 5  ;;  %v1211_v61 = vld [vmem:[#allocation2 + $0x84] sm:$0xf]  ;;  %v3215_v22 = vpop.permute.xlu0 %3214 }
 0x10f   : > { %v3524_v62 = vsel %vm5256_vm12, %v3519_v35, %v3523_v51  ;;  %v3534_v12 = vsel %vm5256_vm12, %v3529_v26, %v3533_v5  ;;  %v3538_v28 = vrot.slane %v3536_v29, 4  ;;  %v1485_v45 = vrot.slane %v1483_v21, 4  ;;  %3259 = vst.msk [vmem:[#allocation3 + $0x20] sm:$0xff] %vm6767_vm15, %v3215_v22  ;;  %v1756_v39 = vld [vmem:[#allocation2 + $0x78] sm:$0xe] }
 0x110   : > { %v3541_v14 = vrot.slane %v3539_v48, 5  ;;  %v5072_v19 = vld [vmem:[#allocation2 + $0x84] sm:$0xff]   ;;  %v4874_v8 = vcombine.low %v3524_v62, %v3534_v12  ;;  %v1476_v38 = vor.u32 %v1475_v49, %v1472_v41  ;;  %v3300_v15 = vld [vmem:[#allocation2 + $0x8c] sm:$0x1]  ;;  %v1489_v59 = vshll.u32 %v1210_v20, 16 }
 0x111   : > { %v3299_v40 = vld [vmem:[#allocation2 + $0x88] sm:$0xf]  ;;  %4999 = vmatmul.mubr.msk.bf16.gmra.mrb[4].mxu0 %vm4173_vm10, %v4140_v50  ;;  %v3555_v47 = vshll.u32 %v3300_v15, 16  ;;  %v4906_v4 = vcombine.low %v6081_v23, %v3974_v24  ;;  %v1486_v46 = vor.u32 %v1485_v45, %v1481_v36  ;;  %v3845_v55 = vld [vmem:[#allocation2 + $0x8c] sm:$0x1]  ;;  %v4891_v17 = vrot.slane %v3843_v2, 9 }
 0x112   : > { %v3542_v37 = vor.u32 %v3541_v14, %v3538_v28  ;;  %v3545_v42 = vshll.u32 %v3299_v40, 16  ;;  %v3549_v33 = vshrl.u32 %v3299_v40, 16  ;;  %3224 = vrot.lane.b32.xlu1 %v5072_v19, %s5120_s6  ;;  %3767 = vrot.lane.b32.xlu0 %v4874_v8, %s5124_s10  ;;  %v1477_v63 = vrot.slane %v1476_v38, 4  ;;  %v3844_v27 = vld [vmem:[#allocation2 + $0x88] sm:$0xf] }
 0x113   : > { %v1491_v51 = vrot.slane %v1489_v59, 5  ;;  %v1212_v6 = vld [vmem:[#allocation2 + $0x88] sm:$0xf]  ;;  %v3557_v5 = vrot.slane %v3555_v47, 5  ;;  %v1487_v34 = vrot.slane %v1486_v46, 4  ;;  %v3977_v31 = vrot.slane %v3844_v27, 5 }
 0x114   : > { %v3543_v44 = vrot.slane %v3542_v37, 4  ;;  %v3547_v54 = vrot.slane %v3545_v42, 5  ;;  %v3551_v18 = vrot.slane %v3549_v33, 4  ;;  %v1482_v11 = vsel %vm5256_vm12, %v1477_v63, %v1481_v36  ;;  %v1213_v16 = vld [vmem:[#allocation2 + $0x8c] sm:$0x1] }
 0x115   : > { %v3980_v7 = vrot.slane %v3845_v55, 5  ;;  %v1492_v23 = vsel %vm5256_vm12, %v1487_v34, %v1491_v51  ;;  %v1494_v0 = vshrl.u32 %v1211_v61, 16  ;;  %v1497_v41 = vshll.u32 %v1211_v61, 16  ;;  %v1757_v20 = vld [vmem:[#allocation2 + $0x7c] sm:$0xf]  ;;  %v2718_v15 = vpop.permute.xlu1 %2717  ;;  %v384_v61 = vld [vmem:[%s5207_s25 + $0xd0] sm:$0xff] }
 0x116   : > { %v3548_v52 = vsel %vm5256_vm12, %v3543_v44, %v3547_v54  ;;  %v3552_v3 = vor.u32 %v3551_v18, %v3547_v54  ;;  %4088 = vrot.lane.b32.xlu0 %v4906_v4, %s5122_s8  ;;  %v1503_v35 = vshll.u32 %v1212_v6, 16  ;;  %v4748_v29 = vcombine.low %v1482_v11, %v1492_v23  ;;  %v1758_v49 = vld [vmem:[#allocation2 + $0x80] sm:$0x1]  ;;  %v1759_v12 = vld [vmem:[#allocation2 + $0x84] sm:$0xe]  ;;  %2761 = vst.msk [vmem:[#allocation3 + $0x28] sm:$0xff] %vm2755_vm6, %v2718_v15 }
 0x117   : > { %v3978_v48 = vsel %vm5198_vm8, %v4891_v17, %v3977_v31  ;;  %v3979_v24 = vrot.slane %v3977_v31, 4  ;;  %v1496_v36 = vrot.slane %v1494_v0, 4  ;;  %v1499_v21 = vrot.slane %v1497_v41, 5  ;;  %v1760_v58 = vld [vmem:[#allocation2 + $0x88] sm:$0xf]  ;;  %v5092_v55 = vld [vmem:[#allocation2 + $0x60] sm:$0xff]  }
 0x118   : > { %v3553_v26 = vrot.slane %v3552_v3, 4  ;;  %v1505_v50 = vrot.slane %v1503_v35, 5  ;;  %v1507_v62 = vshrl.u32 %v1212_v6, 16  ;;  %v1513_v2 = vshll.u32 %v1213_v16, 16  ;;  %v1761_v19 = vld [vmem:[#allocation2 + $0x8c] sm:$0x1] }
 0x119   : > { %v3981_v14 = vsel %vm5198_vm8, %v3979_v24, %v3980_v7  ;;  %v4764_v53 = vrot.slane %v1756_v39, 9  ;;  %v1500_v38 = vor.u32 %v1499_v21, %v1496_v36  ;;  %v1897_v42 = vrot.slane %v1757_v20, 5  ;;  %v2257_v27 = vld [vmem:[#allocation2 + $0x84] sm:$0xf]  ;;  %v2258_v6 = vld [vmem:[#allocation2 + $0x88] sm:$0xf] }
 0x11a   : > { %v3558_v28 = vsel %vm5256_vm12, %v3553_v26, %v3557_v5  ;;  %v4907_v40 = vcombine.low %v3978_v48, %v3981_v14  ;;  %v1509_v45 = vrot.slane %v1507_v62, 4  ;;  %v1515_v37 = vrot.slane %v1513_v2, 5  ;;  %v998_v34 = vld [vmem:[#allocation2 + $0x90] sm:$0xf]  ;;  %v340_v17 = vld [vmem:[#allocation2 + $0x98] sm:$0x1] }
 0x11b   : > { %v4875_v8 = vcombine.low %v3548_v52, %v3558_v28  ;;  %v1900_v33 = vrot.slane %v1758_v49, 5  ;;  %v4765_v59 = vrot.slane %v1759_v12, 9  ;;  %v1501_v47 = vrot.slane %v1500_v38, 4  ;;  %v3039_v52 = vpop.permute.xlu1 %3038  ;;  %v2259_v39 = vld [vmem:[#allocation2 + $0x8c] sm:$0x1]  ;;  %v5078_v20 = vld [vmem:[#allocation2 + $0x84] sm:$0xff]  }
 0x11c   : > { %4090 = vrot.lane.b32.xlu0 %v4907_v40, %s5122_s8  ;;  %v1510_v4 = vor.u32 %v1509_v45, %v1505_v50  ;;  %v1904_v63 = vrot.slane %v1760_v58, 5  ;;  %v1907_v46 = vrot.slane %v1761_v19, 5  ;;  %v1898_v44 = vsel %vm5198_vm8, %v4764_v53, %v1897_v42  ;;  %3082 = vst.msk [vmem:[#allocation3 + $0x28] sm:$0xff] %vm6754_vm9, %v3039_v52  ;;  %v5093_v26 = vld [vmem:[#allocation2 + $0x6c] sm:$0xff]   ;;  %v287_v21 = vld [vmem:[#allocation2 + $0x9c] sm:$0x1]  ;;  %v3760_v14 = vpop.permute.xlu0 %3759 }
 0x11d   : > { %3769 = vrot.lane.b32.xlu1 %v4875_v8, %s5124_s10  ;;  %v1899_v54 = vrot.slane %v1897_v42, 4  ;;  %v786_v18 = vshrl.u32 %v6086_v30, 16  ;;  %v789_v51 = vshll.u32 %v6086_v30, 16  ;;  %v1506_v22 = vsel %vm5256_vm12, %v1501_v47, %v1505_v50  ;;  %v6150_v28 = vld [vmem:[#allocation2 + $0x88] sm:$0xf]  ;;  %3804 = vst.msk [vmem:[#allocation3 + $0x20] sm:$0xff] %vm3799_vm11, %v3760_v14 }
 0x11e   : > { %v1511_v5 = vrot.slane %v1510_v4, 4  ;;  %v1906_v11 = vrot.slane %v1904_v63, 4  ;;  %v6132_v3 = vmul.f32 %v6037_v56, %v384_v61  ;;  %vm6768_vm15 = vcmask 31744   ;;  %v2802_v8 = vld [vmem:[#allocation2 + $0x84] sm:$0xe] }
 0x11f   : > { %1170 = vst.msk [vmem:[#allocation3 + $0x40] sm:$0xff] %vm6768_vm15, %v5092_v55  ;;  %v1901_v31 = vsel %vm5198_vm8, %v1899_v54, %v1900_v33  ;;  %v1905_v30 = vsel %vm5198_vm8, %v4765_v59, %v1904_v63  ;;  %v788_v7 = vrot.slane %v786_v18, 7  ;;  %v794_v16 = vshrl.u32 %v6099_v57, 16  ;;  %1171 = vst.msk [vmem:[#allocation3 + $0x48] sm:$0xff] %vm6768_vm15, %v5093_v26  ;;  %v343_v42 = vld [vmem:[#allocation2 + $0xa4] sm:$0x1] }
 0x120   : > { %v1516_v23 = vsel %vm5256_vm12, %v1511_v5, %v1515_v37  ;;  %v4780_v0 = vcombine.low %v1898_v44, %v1901_v31  ;;  %v797_v41 = vshll.u32 %v6099_v57, 16  ;;  %v2516_v35 = vshrl.u32 %v2257_v27, 16  ;;  %v3217_v57 = vpop.permute.xlu1 %3216  ;;  %v2804_v37 = vld [vmem:[#allocation2 + $0x8c] sm:$0x1]  ;;  %v290_v4 = vld [vmem:[#allocation2 + $0xa8] sm:$0x1]  ;;  %v4081_v44 = vpop.permute.xlu0 %4080 }
 0x121   : > { %1681 = vrot.lane.b32.xlu1 %v4748_v29, %s5118_s29  ;;  %v4749_v48 = vcombine.low %v1506_v22, %v1516_v23  ;;  %v1908_v24 = vsel %vm5198_vm8, %v1906_v11, %v1907_v46  ;;  %v791_v49 = vor.u32 %v789_v51, %v788_v7  ;;  %v792_v36 = vrot.slane %v788_v7, 4  ;;  %v385_v22 = vld [vmem:[%s5207_s25 + $0xd8] sm:$0xff]  ;;  %4125 = vst.msk [vmem:[#allocation3 + $0x20] sm:$0xff] %vm4120_vm1, %v4081_v44  ;;  %v386_v52 = vld [vmem:[%s5207_s25 + $0xe0] sm:$0xff] }
 0x122   : > { %2005 = vrot.lane.b32.xlu0 %v4780_v0, %s5117_s28  ;;  %v6148_v50 = vrot.slane %v794_v16, 7  ;;  %v2518_v29 = vrot.slane %v2516_v35, 4  ;;  %v2519_v62 = vshll.u32 %v2257_v27, 16  ;;  %v2525_v12 = vshll.u32 %v2258_v6, 16 }
 0x123   : > { %v999_v2 = vsel %vm5265_vm13, %v791_v49, %v998_v34  ;;  %v2529_v53 = vshrl.u32 %v2258_v6, 16  ;;  %v2535_v58 = vshll.u32 %v2259_v39, 16  ;;  %v341_v19 = vsel %vm5188_vm7, 0, %v340_v17 }
 0x124   : > { %vm6769_vm9 = vcmask 228544   ;;  %v4781_v40 = vcombine.low %v1905_v30, %v1908_v24  ;;  %v799_v38 = vor.u32 %v797_v41, %v6148_v50  ;;  %1000 = vst [vmem:[#allocation2 + $0x90] sm:$0xf] %v999_v2  ;;  %v2521_v45 = vrot.slane %v2519_v62, 5  ;;  %342 = vst [vmem:[#allocation2 + $0x98] sm:$0x1] %v341_v19  ;;  %v3762_v7 = vpop.permute.xlu1 %3761  ;;  %v4083_v0 = vpop.permute.xlu0 %4082 }
 0x125   : > { %3260 = vst.msk [vmem:[#allocation3 + $0x28] sm:$0xff] %vm6769_vm9, %v3217_v57  ;;  %1683 = vrot.lane.b32.xlu1 %v4749_v48, %s5118_s29  ;;  %v2527_v15 = vrot.slane %v2525_v12, 5  ;;  %v801_v33 = vrot.slane %v6148_v50, 4  ;;  %v2531_v59 = vrot.slane %v2529_v53, 4  ;;  %v2537_v61 = vrot.slane %v2535_v58, 5  ;;  %v387_v41 = vld [vmem:[%s5207_s25 + $0xe8] sm:$0xff]  ;;  %vm6770_vm9 = vmmov %vm6768_vm15 }
 0x126   : > { %v2940_v47 = vrot.slane %v6150_v28, 5  ;;  %2182 = vrot.lane.b32.xlu0 %v5078_v20, %s5119_s30  ;;  %v800_v63 = vsel %vm5274_vm14, %v792_v36, %v799_v38  ;;  %v2522_v46 = vor.u32 %v2521_v45, %v2518_v29  ;;  %v4828_v27 = vrot.slane %v2802_v8, 9  ;;  %3805 = vst.msk [vmem:[#allocation3 + $0x28] sm:$0xff] %vm3799_vm11, %v3762_v7  ;;  %v388_v2 = vld [vmem:[%s5207_s25 + $0xf0] sm:$0xff]  ;;  %vm6771_vm15 = vmmov %vm6770_vm9 }
 0x127   : > { %v288_v55 = vsel %vm5171_vm3, 0, %v287_v21  ;;  %1001 = vst.msk [vmem:[#allocation2 + $0x94] sm:$0xf] %vm237_vm0, %v800_v63  ;;  %v2532_v54 = vor.u32 %v2531_v59, %v2527_v15  ;;  %v2943_v51 = vrot.slane %v2804_v37, 5  ;;  %v492_v6 = vmax.f32 %v6046_v60, 0.0 }
 0x128   : > { %v2942_v18 = vrot.slane %v2940_v47, 4  ;;  %289 = vst [vmem:[#allocation2 + $0x9c] sm:$0x1] %v288_v55  ;;  %v2523_v5 = vrot.slane %v2522_v46, 4  ;;  %v493_v11 = vmax.f32 %v6061_v43, 0.0  ;;  %v344_v34 = vsel %vm5188_vm7, 0, %v343_v42  ;;  %v1674_v14 = vpop.permute.xlu1 %1673 }
 0x129   : > { %2007 = vrot.lane.b32.xlu1 %v4781_v40, %s5117_s28  ;;  %v291_v17 = vsel %vm5171_vm3, 0, %v290_v4  ;;  %v2533_v31 = vrot.slane %v2532_v54, 4  ;;  %v4961_v30 = vpack.c.bf16 %v492_v6, %v492_v6  ;;  %345 = vst [vmem:[#allocation2 + $0xa4] sm:$0x1] %v344_v34  ;;  %v6182_v60 = vld [vmem:[%s6747_s2] ss:$0 sm:$0xff]  ;;  %v425_v23 = vmul.f32 %v6037_v56, %v385_v22 }
 0x12a   : > { %292 = vst [vmem:[#allocation2 + $0xa8] sm:$0x1] %v291_v17  ;;  %v6186_v43 = vadd.f32 %v6182_v60, %v6132_v3  ;;  %v2528_v16 = vsel %vm5256_vm12, %v2523_v5, %v2527_v15  ;;  %v4962_v39 = vpack.c.bf16 %v493_v11, %v493_v11  ;;  %v2941_v3 = vsel %vm5198_vm8, %v4828_v27, %v2940_v47 }
 0x12b   : > { %v2538_v35 = vsel %vm5256_vm12, %v2533_v31, %v2537_v61  ;;  %v1002_v26 = vld [vmem:[#allocation2 + $0x98] sm:$0x1]  ;;  %v2260_v48 = vld [vmem:[#allocation2 + $0x90] sm:$0xf]  ;;  %v2944_v24 = vsel %vm5198_vm8, %v2942_v18, %v2943_v51  ;;  %4126 = vst.msk [vmem:[#allocation3 + $0x28] sm:$0xff] %vm4120_vm1, %v4083_v0  ;;  %v426_v20 = vmul.f32 %v6037_v56, %v386_v52  ;;  %v803_v62 = vshrl.u32 %v4961_v30, 16  ;;  %v1998_v54 = vpop.permute.xlu0 %1997 }
 0x12c   : > { %v4812_v49 = vcombine.low %v2528_v16, %v2538_v35  ;;  %v1003_v36 = vsel %vm5171_vm3, %v801_v33, %v1002_v26  ;;  %v2540_v21 = vshrl.u32 %v2260_v48, 16  ;;  %v2543_v50 = vshll.u32 %v2260_v48, 16  ;;  %v2805_v29 = vld [vmem:[#allocation2 + $0x90] sm:$0xe]  ;;  %1716 = vst.msk [vmem:[#allocation3 + $0x30] sm:$0xff] %vm1709_vm2, %v1674_v14  ;;  %v1676_v5 = vpop.permute.xlu1 %1675 }
 0x12d   : > { %1004 = vst [vmem:[#allocation2 + $0x98] sm:$0x1] %v1003_v36  ;;  %v806_v12 = vshll.u32 %v4961_v30, 16  ;;  %v811_v28 = vshrl.u32 %v4962_v39, 16  ;;  %v494_v57 = vmax.f32 %v6186_v43, 0.0  ;;  %v4844_v8 = vcombine.low %v2941_v3, %v2944_v24  ;;  %2040 = vst.msk [vmem:[#allocation3 + $0x30] sm:$0xff] %vm2033_vm4, %v1998_v54 }
 0x12e   : > { %v5079_v53 = vld [vmem:[#allocation2 + $0x90] sm:$0xff]   ;;  %2727 = vrot.lane.b32.xlu0 %v4812_v49, %s5123_s9  ;;  %v2542_v19 = vrot.slane %v2540_v21, 4  ;;  %v6207_v40 = vadd.f32 %v6182_v60, %v425_v23  ;;  %v427_v38 = vmul.f32 %v6037_v56, %v387_v41  ;;  %v2545_v45 = vrot.slane %v2543_v50, 5  ;;  %1717 = vst.msk [vmem:[#allocation3 + $0x38] sm:$0xff] %vm1709_vm2, %v1676_v5  ;;  %v4141_v49 = vld [vmem:[#allocation3 + $0x20] sm:$0xff] }
 0x12f   : > { %v2261_v58 = vld [vmem:[#allocation2 + $0x94] sm:$0xf]  ;;  %v4829_v33 = vrot.slane %v2805_v29, 9  ;;  %2184 = vrot.lane.b32.xlu1 %v5079_v53, %s5119_s30  ;;  %v805_v61 = vrot.slane %v803_v62, 7  ;;  %v6212_v47 = vrot.slane %v811_v28, 7  ;;  %v814_v4 = vshll.u32 %v4962_v39, 16  ;;  %v2175_v36 = vpop.permute.xlu0 %2174  ;;  %5002 = vmatprep.mubr.msk.bf16.mxu0 %vm4173_vm10, %v4141_v49 }
 0x130   : > { %v2549_v15 = vshll.u32 %v2261_v58, 16  ;;  %v2553_v37 = vshrl.u32 %v2261_v58, 16  ;;  %v2806_v42 = vld [vmem:[#allocation2 + $0x94] sm:$0xf]  ;;  %v2546_v63 = vor.u32 %v2545_v45, %v2542_v19  ;;  %v1005_v55 = vld [vmem:[#allocation2 + $0x9c] sm:$0xf]  ;;  %v6217_v44 = vadd.f32 %v6182_v60, %v426_v20  ;;  %v2000_v28 = vpop.permute.xlu1 %1999 }
 0x131   : > { %v2947_v59 = vrot.slane %v2806_v42, 5  ;;  %v5082_v18 = vld [vmem:[#allocation2 + $0x90] sm:$0xff]   ;;  %v808_v51 = vor.u32 %v806_v12, %v805_v61  ;;  %v809_v6 = vrot.slane %v805_v61, 4  ;;  %v495_v22 = vmax.f32 %v6207_v40, 0.0  ;;  %v1009_v0 = vld [vmem:[#allocation2 + $0xa4] sm:$0x1] }
 0x132   : > { %v6214_v46 = vrot.slane %v2549_v15, 5  ;;  %v2555_v27 = vrot.slane %v2553_v37, 4  ;;  %3048 = vrot.lane.b32.xlu0 %v4844_v8, %s5121_s7  ;;  %v6223_v11 = vmul.f32 %v6037_v56, %v388_v2  ;;  %v2547_v34 = vrot.slane %v2546_v63, 4  ;;  %v3301_v30 = vld [vmem:[#allocation2 + $0x90] sm:$0xf]  ;;  %2217 = vst.msk [vmem:[#allocation3 + $0x30] sm:$0xff] %vm2210_vm5, %v2175_v36 }
 0x133   : > { %v2949_v52 = vrot.slane %v2947_v59, 4  ;;  %v816_v31 = vor.u32 %v814_v4, %v6212_v47  ;;  %v3302_v43 = vld [vmem:[#allocation2 + $0x94] sm:$0xf]  ;;  %v6230_v39 = vsel %vm5198_vm8, %v4829_v33, %v2947_v59  ;;  %v1006_v56 = vsel %vm5265_vm13, %v808_v51, %v1005_v55  ;;  %v3846_v20 = vld [vmem:[#allocation2 + $0x90] sm:$0xe]  ;;  %2041 = vst.msk [vmem:[#allocation3 + $0x38] sm:$0xff] %vm2033_vm4, %v2000_v28 }
 0x134   : > { %v2556_v17 = vor.u32 %v2555_v27, %v6214_v46  ;;  %v2262_v7 = vld [vmem:[#allocation2 + $0x98] sm:$0x1]  ;;  %v6234_v41 = vpack.c.bf16 %v494_v57, %v494_v57  ;;  %v6237_v35 = vadd.f32 %v6182_v60, %v427_v38  ;;  %v818_v24 = vrot.slane %v6212_v47, 4  ;;  %1007 = vst [vmem:[#allocation2 + $0x9c] sm:$0xf] %v1006_v56  ;;  %v4142_v57 = vld [vmem:[#allocation3 + $0x28] sm:$0xff] }
 0x135   : > { %v2807_v16 = vld [vmem:[#allocation2 + $0x98] sm:$0x1]  ;;  %v2559_v48 = vshll.u32 %v2262_v7, 16  ;;  %v817_v21 = vsel %vm5274_vm14, %v809_v6, %v816_v31  ;;  %v3560_v50 = vshrl.u32 %v3301_v30, 16  ;;  %v3563_v29 = vshll.u32 %v3301_v30, 16  ;;  %5003 = vmatmul.mubr.msk.bf16.gmra.mrb[8].mxu0 %vm4173_vm10, %v4142_v57  ;;  %v5097_v33 = vld [vmem:[#allocation2 + $0x84] sm:$0xff]  }
 0x136   : > { %v3303_v23 = vld [vmem:[#allocation2 + $0x98] sm:$0x1]  ;;  %v2557_v26 = vrot.slane %v2556_v17, 4  ;;  %v2950_v3 = vrot.slane %v2807_v16, 5  ;;  %3226 = vrot.lane.b32.xlu0 %v5082_v18, %s5120_s6  ;;  %v3569_v62 = vshll.u32 %v3302_v43, 16  ;;  %v2552_v14 = vsel %vm5256_vm12, %v2547_v34, %v6214_v46  ;;  %1173 = vst.msk [vmem:[#allocation3 + $0x58] sm:$0xff] %vm6771_vm15, %v5097_v33 }
 0x137   : > { %v3847_v12 = vld [vmem:[#allocation2 + $0x94] sm:$0xf]  ;;  %v2561_v2 = vrot.slane %v2559_v48, 5  ;;  %1008 = vst.msk [vmem:[#allocation2 + $0xa0] sm:$0xf] %vm237_vm0, %v817_v21  ;;  %v3573_v53 = vshrl.u32 %v3302_v43, 16  ;;  %v1010_v4 = vsel %vm5171_vm3, %v818_v24, %v1009_v0  ;;  %v2720_v0 = vpop.permute.xlu0 %2719  ;;  %v6272_v24 = vpack.c.bf16 %v495_v22, %v495_v22 }
 0x138   : > { %v3579_v58 = vshll.u32 %v3303_v23, 16  ;;  %v1214_v19 = vld [vmem:[#allocation2 + $0x90] sm:$0xf]  ;;  %v5096_v8 = vld [vmem:[#allocation2 + $0x78] sm:$0xff]   ;;  %v2951_v38 = vsel %vm5198_vm8, %v2949_v52, %v2950_v3  ;;  %v3562_v45 = vrot.slane %v3560_v50, 4  ;;  %v3565_v15 = vrot.slane %v3563_v29, 5  ;;  %v2177_v29 = vpop.permute.xlu1 %2176 }
 0x139   : > { %v3571_v37 = vrot.slane %v3569_v62, 5  ;;  %v3848_v42 = vld [vmem:[#allocation2 + $0x98] sm:$0x1]  ;;  %v2562_v59 = vsel %vm5256_vm12, %v2557_v26, %v2561_v2  ;;  %v3575_v61 = vrot.slane %v3573_v53, 4  ;;  %1172 = vst.msk [vmem:[#allocation3 + $0x50] sm:$0xff] %vm6770_vm9, %v5096_v8  ;;  %v4892_v27 = vrot.slane %v3846_v20, 9 }
 0x13a   : > { %v3581_v47 = vrot.slane %v3579_v58, 5  ;;  %v4813_v63 = vcombine.low %v2552_v14, %v2562_v59  ;;  %v3566_v46 = vor.u32 %v3565_v15, %v3562_v45  ;;  %1011 = vst [vmem:[#allocation2 + $0xa4] sm:$0x1] %v1010_v4  ;;  %v3984_v55 = vrot.slane %v3847_v12, 5  ;;  %v1215_v30 = vld [vmem:[#allocation2 + $0x94] sm:$0xf] }
 0x13b   : > { %v3576_v54 = vor.u32 %v3575_v61, %v3571_v37  ;;  %v3987_v18 = vrot.slane %v3848_v42, 5  ;;  %v1518_v51 = vshrl.u32 %v1214_v19, 16  ;;  %v1521_v6 = vshll.u32 %v1214_v19, 16  ;;  %v3304_v17 = vld [vmem:[#allocation2 + $0x9c] sm:$0xf]  ;;  %2762 = vst.msk [vmem:[#allocation3 + $0x30] sm:$0xff] %vm2755_vm6, %v2720_v0 }
 0x13c   : > { %2729 = vrot.lane.b32.xlu1 %v4813_v63, %s5123_s9  ;;  %v4845_v5 = vcombine.low %v6230_v39, %v2951_v38  ;;  %v3567_v34 = vrot.slane %v3566_v46, 4  ;;  %v6263_v52 = vsel %vm5198_vm8, %v4892_v27, %v3984_v55  ;;  %v3986_v31 = vrot.slane %v3984_v55, 4  ;;  %v1216_v56 = vld [vmem:[#allocation2 + $0x98] sm:$0x1]  ;;  %v3849_v50 = vld [vmem:[#allocation2 + $0x9c] sm:$0xe]  ;;  %v3041_v38 = vpop.permute.xlu0 %3040 }
 0x13d   : > { %v3577_v43 = vrot.slane %v3576_v54, 4  ;;  %v3584_v7 = vshrl.u32 %v3304_v17, 16  ;;  %v3587_v16 = vshll.u32 %v3304_v17, 16  ;;  %v1520_v23 = vrot.slane %v1518_v51, 4  ;;  %2218 = vst.msk [vmem:[#allocation3 + $0x38] sm:$0xff] %vm2210_vm5, %v2177_v29  ;;  %v5098_v14 = vld [vmem:[#allocation2 + $0x90] sm:$0xff]  }
 0x13e   : > { %v3572_v26 = vsel %vm5256_vm12, %v3567_v34, %v3571_v37  ;;  %v3305_v48 = vld [vmem:[#allocation2 + $0xa0] sm:$0xf]  ;;  %v3988_v39 = vsel %vm5198_vm8, %v3986_v31, %v3987_v18  ;;  %v1523_v3 = vrot.slane %v1521_v6, 5  ;;  %v1527_v19 = vshll.u32 %v1215_v30, 16  ;;  %1174 = vst.msk [vmem:[#allocation3 + $0x60] sm:$0xff] %vm6771_vm15, %v5098_v14 }
 0x13f   : > { %v3582_v20 = vsel %vm5256_vm12, %v3577_v43, %v3581_v47  ;;  %v3586_v49 = vrot.slane %v3584_v7, 4  ;;  %v3589_v36 = vrot.slane %v3587_v16, 5  ;;  %v3593_v21 = vshll.u32 %v3305_v48, 16  ;;  %v5083_v62 = vld [vmem:[#allocation2 + $0x9c] sm:$0xff]  }
 0x140   : > { %3050 = vrot.lane.b32.xlu1 %v4845_v5, %s5121_s7  ;;  %v4876_v12 = vcombine.low %v3572_v26, %v3582_v20  ;;  %v3597_v28 = vshrl.u32 %v3305_v48, 16  ;;  %v4908_v40 = vcombine.low %v6263_v52, %v3988_v39  ;;  %v1524_v57 = vor.u32 %v1523_v3, %v1520_v23  ;;  %v3850_v22 = vld [vmem:[#allocation2 + $0xa0] sm:$0xf]  ;;  %v1217_v63 = vld [vmem:[#allocation2 + $0x9c] sm:$0xf]  ;;  %v3219_v31 = vpop.permute.xlu0 %3218 }
 0x141   : > { %v3306_v2 = vld [vmem:[#allocation2 + $0xa4] sm:$0x1]  ;;  %v3590_v53 = vor.u32 %v3589_v36, %v3586_v49  ;;  %v3595_v58 = vrot.slane %v3593_v21, 5  ;;  %v1531_v8 = vshrl.u32 %v1215_v30, 16  ;;  %v1537_v42 = vshll.u32 %v1216_v56, 16  ;;  %v5099_v51 = vld [vmem:[#allocation2 + $0x9c] sm:$0xff]  }
 0x142   : > { %3771 = vrot.lane.b32.xlu0 %v4876_v12, %s5124_s10  ;;  %v3599_v45 = vrot.slane %v3597_v28, 4  ;;  %v3603_v15 = vshll.u32 %v3306_v2, 16  ;;  %v1525_v37 = vrot.slane %v1524_v57, 4  ;;  %v3851_v33 = vld [vmem:[#allocation2 + $0xa4] sm:$0x1]  ;;  %vm6772_vm9 = vcmask 195744  }
 0x143   : > { %3083 = vst.msk [vmem:[#allocation3 + $0x30] sm:$0xff] %vm6772_vm9, %v3041_v38  ;;  %v3591_v59 = vrot.slane %v3590_v53, 4  ;;  %v1529_v61 = vrot.slane %v1527_v19, 5  ;;  %v1533_v47 = vrot.slane %v1531_v8, 4  ;;  %v4893_v4 = vrot.slane %v3849_v50, 9 }
 0x144   : > { %3228 = vrot.lane.b32.xlu1 %v5083_v62, %s5120_s6  ;;  %v3600_v46 = vor.u32 %v3599_v45, %v3595_v58  ;;  %v3605_v27 = vrot.slane %v3603_v15, 5  ;;  %v1539_v55 = vrot.slane %v1537_v42, 5  ;;  %v3991_v54 = vrot.slane %v3850_v22, 5  ;;  %v1218_v18 = vld [vmem:[#allocation2 + $0xa0] sm:$0xf]  ;;  %1175 = vst.msk [vmem:[#allocation3 + $0x68] sm:$0xff] %vm6771_vm15, %v5099_v51  ;;  %v2722_v22 = vpop.permute.xlu1 %2721 }
 0x145   : > { %v3596_v6 = vsel %vm5256_vm12, %v3591_v59, %v3595_v58  ;;  %v1530_v5 = vsel %vm5256_vm12, %v1525_v37, %v1529_v61  ;;  %v1534_v34 = vor.u32 %v1533_v47, %v1529_v61  ;;  %v3994_v17 = vrot.slane %v3851_v33, 5  ;;  %v1219_v52 = vld [vmem:[#allocation2 + $0xa4] sm:$0x1]  ;;  %v1762_v56 = vld [vmem:[#allocation2 + $0x90] sm:$0xe]  ;;  %2763 = vst.msk [vmem:[#allocation3 + $0x38] sm:$0xff] %vm2755_vm6, %v2722_v22 }
 0x146   : > { %v3601_v30 = vrot.slane %v3600_v46, 4  ;;  %4092 = vrot.lane.b32.xlu0 %v4908_v40, %s5122_s8  ;;  %v3992_v43 = vsel %vm5198_vm8, %v4893_v4, %v3991_v54  ;;  %v3993_v7 = vrot.slane %v3991_v54, 4  ;;  %v1542_v16 = vshrl.u32 %v1217_v63, 16  ;;  %v1763_v23 = vld [vmem:[#allocation2 + $0x94] sm:$0xf] }
 0x147   : > { %vm6773_vm9 = vcmask 228544   ;;  %v1535_v0 = vrot.slane %v1534_v34, 4  ;;  %v1545_v26 = vshll.u32 %v1217_v63, 16  ;;  %v1551_v48 = vshll.u32 %v1218_v18, 16  ;;  %v1764_v21 = vld [vmem:[#allocation2 + $0x98] sm:$0x1] }
 0x148   : > { %3261 = vst.msk [vmem:[#allocation3 + $0x30] sm:$0xff] %vm6773_vm9, %v3219_v31  ;;  %v1555_v39 = vshrl.u32 %v1218_v18, 16  ;;  %v3606_v3 = vsel %vm5256_vm12, %v3601_v30, %v3605_v27  ;;  %v3995_v20 = vsel %vm5198_vm8, %v3993_v7, %v3994_v17  ;;  %v1544_v49 = vrot.slane %v1542_v16, 4  ;;  %v1765_v50 = vld [vmem:[#allocation2 + $0x9c] sm:$0xe]  ;;  %v3043_v63 = vpop.permute.xlu1 %3042 }
 0x149   : > { %v1561_v36 = vshll.u32 %v1219_v52, 16  ;;  %v4877_v29 = vcombine.low %v3596_v6, %v3606_v3  ;;  %v1540_v62 = vsel %vm5256_vm12, %v1535_v0, %v1539_v55  ;;  %v4909_v12 = vcombine.low %v3992_v43, %v3995_v20  ;;  %v1766_v40 = vld [vmem:[#allocation2 + $0xa0] sm:$0xf]  ;;  %v1767_v57 = vld [vmem:[#allocation2 + $0xa4] sm:$0x1] }
 0x14a   : > { %v1547_v28 = vrot.slane %v1545_v26, 5  ;;  %v4750_v14 = vcombine.low %v1530_v5, %v1540_v62  ;;  %v1553_v2 = vrot.slane %v1551_v48, 5  ;;  %v1557_v53 = vrot.slane %v1555_v39, 4  ;;  %v346_v18 = vld [vmem:[#allocation2 + $0xb0] sm:$0x1]  ;;  %v5084_v0 = vld [vmem:[#allocation2 + $0x9c] sm:$0xff]  }
 0x14b   : > { %v1563_v58 = vrot.slane %v1561_v36, 5  ;;  %3773 = vrot.lane.b32.xlu1 %v4877_v29, %s5124_s10  ;;  %4094 = vrot.lane.b32.xlu0 %v4909_v12, %s5122_s8  ;;  %v4766_v8 = vrot.slane %v1762_v56, 9  ;;  %v1911_v38 = vrot.slane %v1763_v23, 5  ;;  %v1914_v45 = vrot.slane %v1764_v21, 5  ;;  %v2263_v17 = vld [vmem:[#allocation2 + $0x9c] sm:$0xf] }
 0x14c   : > { %v1548_v19 = vor.u32 %v1547_v28, %v1544_v49  ;;  %v1558_v15 = vor.u32 %v1557_v53, %v1553_v2  ;;  %v4767_v37 = vrot.slane %v1765_v50, 9  ;;  %v1918_v42 = vrot.slane %v1766_v40, 5  ;;  %v2264_v52 = vld [vmem:[#allocation2 + $0xa0] sm:$0xf]  ;;  %v1012_v7 = vld [vmem:[#allocation2 + $0xa8] sm:$0xf]  ;;  %v3221_v3 = vpop.permute.xlu1 %3220 }
 0x14d   : > { %v1921_v33 = vrot.slane %v1767_v57, 5  ;;  %v1912_v61 = vsel %vm5198_vm8, %v4766_v8, %v1911_v38  ;;  %v1913_v47 = vrot.slane %v1911_v38, 4  ;;  %v820_v4 = vshrl.u32 %v6234_v41, 16  ;;  %v2265_v16 = vld [vmem:[#allocation2 + $0xa4] sm:$0x1] }
 0x14e   : > { %v1549_v59 = vrot.slane %v1548_v19, 4  ;;  %v1559_v46 = vrot.slane %v1558_v15, 4  ;;  %v1919_v27 = vsel %vm5198_vm8, %v4767_v37, %v1918_v42  ;;  %v1920_v55 = vrot.slane %v1918_v42, 4  ;;  %v6320_v39 = vld [vmem:[#allocation2 + $0x9c] sm:$0xe] }
 0x14f   : > { %v823_v54 = vshll.u32 %v6234_v41, 16  ;;  %vm6774_vm9 = vcmask 195744   ;;  %1685 = vrot.lane.b32.xlu1 %v4750_v14, %s5118_s29  ;;  %v1915_v6 = vsel %vm5198_vm8, %v1913_v47, %v1914_v45  ;;  %v822_v5 = vrot.slane %v820_v4, 7  ;;  %v2809_v50 = vld [vmem:[#allocation2 + $0xa0] sm:$0xf] }
 0x150   : > { %3084 = vst.msk [vmem:[#allocation3 + $0x38] sm:$0xff] %vm6774_vm9, %v3043_v63  ;;  %v1554_v51 = vsel %vm5256_vm12, %v1549_v59, %v1553_v2  ;;  %v828_v34 = vshrl.u32 %v6272_v24, 16  ;;  %v1564_v31 = vsel %vm5256_vm12, %v1559_v46, %v1563_v58  ;;  %v4782_v41 = vcombine.low %v1912_v61, %v1915_v6  ;;  %v2810_v40 = vld [vmem:[#allocation2 + $0xa4] sm:$0x1]  ;;  %v293_v2 = vld [vmem:[#allocation2 + $0xb4] sm:$0x1] }
 0x151   : > { %v1922_v30 = vsel %vm5198_vm8, %v1920_v55, %v1921_v33  ;;  %v831_v43 = vshll.u32 %v6272_v24, 16  ;;  %v4751_v56 = vcombine.low %v1554_v51, %v1564_v31  ;;  %v825_v26 = vor.u32 %v823_v54, %v822_v5  ;;  %v3764_v24 = vpop.permute.xlu0 %3763  ;;  %v349_v45 = vld [vmem:[#allocation2 + $0xbc] sm:$0x1]  ;;  %v296_v59 = vld [vmem:[#allocation2 + $0xc0] sm:$0x1] }
 0x152   : > { %v4783_v23 = vcombine.low %v1919_v27, %v1922_v30  ;;  %v826_v48 = vrot.slane %v822_v5, 4  ;;  %2009 = vrot.lane.b32.xlu0 %v4782_v41, %s5117_s28  ;;  %v6323_v20 = vrot.slane %v828_v34, 7  ;;  %v2564_v49 = vshrl.u32 %v2263_v17, 16  ;;  %3806 = vst.msk [vmem:[#allocation3 + $0x30] sm:$0xff] %vm3799_vm11, %v3764_v24  ;;  %v389_v46 = vld [vmem:[%s5207_s25 + $0xf8] sm:$0xff] }
 0x153   : > { %v2567_v36 = vshll.u32 %v2263_v17, 16  ;;  %v2573_v21 = vshll.u32 %v2264_v52, 16  ;;  %vm6775_vm15 = vcmask 228544   ;;  %1687 = vrot.lane.b32.xlu1 %v4751_v56, %s5118_s29  ;;  %v1013_v29 = vsel %vm5265_vm13, %v825_v26, %v1012_v7  ;;  %v5107_v34 = vld [vmem:[%s6746_s1] ss:$0 sm:$0xff] }
 0x154   : > { %3262 = vst.msk [vmem:[#allocation3 + $0x38] sm:$0xff] %vm6775_vm15, %v3221_v3  ;;  %v2577_v62 = vshrl.u32 %v2264_v52, 16  ;;  %v2583_v12 = vshll.u32 %v2265_v16, 16  ;;  %v347_v28 = vsel %vm5188_vm7, 0, %v346_v18  ;;  %v833_v57 = vor.u32 %v831_v43, %v6323_v20  ;;  %1014 = vst [vmem:[#allocation2 + $0xa8] sm:$0xf] %v1013_v29 }
 0x155   : > { %v2566_v22 = vrot.slane %v2564_v49, 4  ;;  %v2569_v14 = vrot.slane %v2567_v36, 5  ;;  %348 = vst [vmem:[#allocation2 + $0xb0] sm:$0x1] %v347_v28  ;;  %v6335_v53 = vadd.f32 %v6182_v60, %v6223_v11  ;;  %v2575_v58 = vrot.slane %v2573_v21, 5  ;;  %v4085_v61 = vpop.permute.xlu0 %4084 }
 0x156   : > { %v2579_v19 = vrot.slane %v2577_v62, 4  ;;  %v2585_v8 = vrot.slane %v2583_v12, 5  ;;  %v4830_v38 = vrot.slane %v6320_v39, 9  ;;  %2186 = vrot.lane.b32.xlu0 %v5084_v0, %s5119_s30  ;;  %v834_v15 = vsel %vm5274_vm14, %v826_v48, %v833_v57  ;;  %4127 = vst.msk [vmem:[#allocation3 + $0x30] sm:$0xff] %vm4120_vm1, %v4085_v61 }
 0x157   : > { %v2570_v37 = vor.u32 %v2569_v14, %v2566_v22  ;;  %v2954_v42 = vrot.slane %v2809_v50, 5  ;;  %v2957_v33 = vrot.slane %v2810_v40, 5  ;;  %2011 = vrot.lane.b32.xlu1 %v4783_v23, %s5117_s28  ;;  %1015 = vst.msk [vmem:[#allocation2 + $0xac] sm:$0xf] %vm237_vm0, %v834_v15  ;;  %v294_v47 = vsel %vm5171_vm3, 0, %v293_v2  ;;  %v3766_v48 = vpop.permute.xlu1 %3765 }
 0x158   : > { %v2580_v11 = vor.u32 %v2579_v19, %v2575_v58  ;;  %v496_v4 = vmax.f32 %v6217_v44, 0.0  ;;  %v497_v63 = vmax.f32 %v6237_v35, 0.0  ;;  %v835_v27 = vrot.slane %v6323_v20, 4  ;;  %295 = vst [vmem:[#allocation2 + $0xb4] sm:$0x1] %v294_v47  ;;  %3807 = vst.msk [vmem:[#allocation3 + $0x38] sm:$0xff] %vm3799_vm11, %v3766_v48 }
 0x159   : > { %v2571_v55 = vrot.slane %v2570_v37, 4  ;;  %v2956_v54 = vrot.slane %v2954_v42, 4  ;;  %v350_v18 = vsel %vm5188_vm7, 0, %v349_v45  ;;  %v297_v44 = vsel %vm5171_vm3, 0, %v296_v59  ;;  %v4087_v52 = vpop.permute.xlu0 %4086 }
 0x15a   : > { %v2581_v51 = vrot.slane %v2580_v11, 4  ;;  %v4965_v6 = vpack.c.bf16 %v496_v4, %v496_v4  ;;  %v4966_v5 = vpack.c.bf16 %v497_v63, %v497_v63  ;;  %351 = vst [vmem:[#allocation2 + $0xbc] sm:$0x1] %v350_v18  ;;  %298 = vst [vmem:[#allocation2 + $0xc0] sm:$0x1] %v297_v44  ;;  %v429_v17 = vmul.f32 %v5107_v34, %v389_v46 }
 0x15b   : > { %v2576_v35 = vsel %vm5256_vm12, %v2571_v55, %v2575_v58  ;;  %v2266_v30 = vld [vmem:[#allocation2 + $0xa8] sm:$0xf]  ;;  %v2955_v43 = vsel %vm5198_vm8, %v4830_v38, %v2954_v42  ;;  %v2958_v7 = vsel %vm5198_vm8, %v2956_v54, %v2957_v33  ;;  %v498_v49 = vmax.f32 %v6335_v53, 0.0  ;;  %4128 = vst.msk [vmem:[#allocation3 + $0x38] sm:$0xff] %vm4120_vm1, %v4087_v52  ;;  %v1678_v58 = vpop.permute.xlu1 %1677 }
 0x15c   : > { %v2586_v31 = vsel %vm5256_vm12, %v2581_v51, %v2585_v8  ;;  %v1016_v41 = vld [vmem:[#allocation2 + $0xb0] sm:$0x1]  ;;  %v2588_v23 = vshrl.u32 %v2266_v30, 16  ;;  %v2591_v0 = vshll.u32 %v2266_v30, 16  ;;  %v2811_v26 = vld [vmem:[#allocation2 + $0xa8] sm:$0xe]  ;;  %v4846_v24 = vcombine.low %v2955_v43, %v2958_v7 }
 0x15d   : > { %v4814_v16 = vcombine.low %v2576_v35, %v2586_v31  ;;  %v1017_v56 = vsel %vm5171_vm3, %v835_v27, %v1016_v41  ;;  %v837_v39 = vshrl.u32 %v4965_v6, 16  ;;  %v840_v3 = vshll.u32 %v4965_v6, 16  ;;  %v2002_v19 = vpop.permute.xlu0 %2001  ;;  %1718 = vst.msk [vmem:[#allocation3 + $0x40] sm:$0xff] %vm1709_vm2, %v1678_v58  ;;  %v3307_v4 = vld [vmem:[#allocation2 + $0xa8] sm:$0xf] }
 0x15e   : > { %1018 = vst [vmem:[#allocation2 + $0xb0] sm:$0x1] %v1017_v56  ;;  %v845_v20 = vshrl.u32 %v4966_v5, 16  ;;  %v5085_v36 = vld [vmem:[#allocation2 + $0xa8] sm:$0xff]   ;;  %v2590_v50 = vrot.slane %v2588_v23, 4  ;;  %v6371_v29 = vadd.f32 %v6182_v60, %v429_v17  ;;  %v2593_v62 = vrot.slane %v2591_v0, 5 }
 0x15f   : > { %2731 = vrot.lane.b32.xlu0 %v4814_v16, %s5123_s9  ;;  %v2267_v21 = vld [vmem:[#allocation2 + $0xac] sm:$0xf]  ;;  %v4831_v57 = vrot.slane %v2811_v26, 9  ;;  %2188 = vrot.lane.b32.xlu1 %v5085_v36, %s5119_s30  ;;  %v839_v14 = vrot.slane %v837_v39, 7  ;;  %v848_v53 = vshll.u32 %v4966_v5, 16  ;;  %2042 = vst.msk [vmem:[#allocation3 + $0x40] sm:$0xff] %vm2033_vm4, %v2002_v19  ;;  %v6388_v6 = vpack.c.bf16 %v498_v49, %v498_v49  ;;  %v1680_v5 = vpop.permute.xlu1 %1679 }
 0x160   : > { %v2597_v12 = vshll.u32 %v2267_v21, 16  ;;  %v2601_v28 = vshrl.u32 %v2267_v21, 16  ;;  %v2812_v40 = vld [vmem:[#allocation2 + $0xac] sm:$0xf]  ;;  %v6375_v2 = vrot.slane %v845_v20, 7  ;;  %v2594_v8 = vor.u32 %v2593_v62, %v2590_v50  ;;  %1719 = vst.msk [vmem:[#allocation3 + $0x48] sm:$0xff] %vm1709_vm2, %v1680_v5 }
 0x161   : > { %v2961_v22 = vrot.slane %v2812_v40, 5  ;;  %v1019_v45 = vld [vmem:[#allocation2 + $0xb4] sm:$0xf]  ;;  %v5088_v15 = vld [vmem:[#allocation2 + $0xa8] sm:$0xff]   ;;  %v842_v37 = vor.u32 %v840_v3, %v839_v14  ;;  %v843_v42 = vrot.slane %v839_v14, 4  ;;  %v499_v33 = vmax.f32 %v6371_v29, 0.0  ;;  %v2179_v44 = vpop.permute.xlu0 %2178 }
 0x162   : > { %v2599_v38 = vrot.slane %v2597_v12, 5  ;;  %v2603_v60 = vrot.slane %v2601_v28, 4  ;;  %v2595_v59 = vrot.slane %v2594_v8, 4  ;;  %v850_v47 = vor.u32 %v848_v53, %v6375_v2  ;;  %v3308_v63 = vld [vmem:[#allocation2 + $0xac] sm:$0xf]  ;;  %2219 = vst.msk [vmem:[#allocation3 + $0x40] sm:$0xff] %vm2210_vm5, %v2179_v44 }
 0x163   : > { %3052 = vrot.lane.b32.xlu0 %v4846_v24, %s5121_s7  ;;  %v2963_v11 = vrot.slane %v2961_v22, 4  ;;  %v6384_v55 = vsel %vm5198_vm8, %v4831_v57, %v2961_v22  ;;  %v1020_v54 = vsel %vm5265_vm13, %v842_v37, %v1019_v45  ;;  %v1023_v51 = vld [vmem:[#allocation2 + $0xbc] sm:$0x1]  ;;  %v852_v52 = vrot.slane %v6375_v2, 4  ;;  %v3852_v31 = vld [vmem:[#allocation2 + $0xa8] sm:$0xe]  ;;  %v2004_v24 = vpop.permute.xlu1 %2003 }
 0x164   : > { %v2604_v61 = vor.u32 %v2603_v60, %v2599_v38  ;;  %1021 = vst [vmem:[#allocation2 + $0xb4] sm:$0xf] %v1020_v54  ;;  %v4143_v41 = vld [vmem:[#allocation3 + $0x30] sm:$0xff]  ;;  %v851_v30 = vsel %vm5274_vm14, %v843_v42, %v850_v47  ;;  %v3608_v43 = vshrl.u32 %v3307_v4, 16  ;;  %v3611_v7 = vshll.u32 %v3307_v4, 16  ;;  %v4144_v23 = vld [vmem:[#allocation3 + $0x38] sm:$0xff] }
 0x165   : > { %v2268_v46 = vld [vmem:[#allocation2 + $0xb0] sm:$0x1]  ;;  %v3617_v16 = vshll.u32 %v3308_v63, 16  ;;  %v3853_v56 = vld [vmem:[#allocation2 + $0xac] sm:$0xf]  ;;  %5006 = vmatprep.mubr.msk.bf16.mxu0 %vm4173_vm10, %v4143_v41  ;;  %v2600_v0 = vsel %vm5256_vm12, %v2595_v59, %v2599_v38  ;;  %v3621_v48 = vshrl.u32 %v3308_v63, 16  ;;  %v1024_v40 = vsel %vm5171_vm3, %v852_v52, %v1023_v51 }
 0x166   : > { %v2813_v27 = vld [vmem:[#allocation2 + $0xb0] sm:$0x1]  ;;  %v2605_v35 = vrot.slane %v2604_v61, 4  ;;  %v2607_v34 = vshll.u32 %v2268_v46, 16  ;;  %1022 = vst.msk [vmem:[#allocation2 + $0xb8] sm:$0xf] %vm237_vm0, %v851_v30  ;;  %5007 = vmatmul.mubr.msk.bf16.gmra.mrb[12].mxu0 %vm4173_vm10, %v4144_v23 }
 0x167   : > { %v3309_v18 = vld [vmem:[#allocation2 + $0xb0] sm:$0x1]  ;;  %v2964_v17 = vrot.slane %v2813_v27, 5  ;;  %3230 = vrot.lane.b32.xlu0 %v5088_v15, %s5120_s6  ;;  %v1220_v3 = vld [vmem:[#allocation2 + $0xa8] sm:$0xf]  ;;  %v3610_v49 = vrot.slane %v3608_v43, 4 }
 0x168   : > { %v2609_v26 = vrot.slane %v2607_v34, 5  ;;  %v3627_v39 = vshll.u32 %v3309_v18, 16  ;;  %v3613_v36 = vrot.slane %v3611_v7, 5  ;;  %v3619_v21 = vrot.slane %v3617_v16, 5  ;;  %v3854_v50 = vld [vmem:[#allocation2 + $0xb0] sm:$0x1] }
 0x169   : > { %v2965_v20 = vsel %vm5198_vm8, %v2963_v11, %v2964_v17  ;;  %v3623_v12 = vrot.slane %v3621_v48, 4  ;;  %2043 = vst.msk [vmem:[#allocation3 + $0x48] sm:$0xff] %vm2033_vm4, %v2004_v24  ;;  %1025 = vst [vmem:[#allocation2 + $0xbc] sm:$0x1] %v1024_v40  ;;  %v4894_v14 = vrot.slane %v3852_v31, 9  ;;  %v3998_v2 = vrot.slane %v3853_v56, 5 }
 0x16a   : > { %v2610_v62 = vsel %vm5256_vm12, %v2605_v35, %v2609_v26  ;;  %v3629_v28 = vrot.slane %v3627_v39, 5  ;;  %v3614_v22 = vor.u32 %v3613_v36, %v3610_v49  ;;  %v4001_v58 = vrot.slane %v3854_v50, 5  ;;  %v1221_v42 = vld [vmem:[#allocation2 + $0xac] sm:$0xf]  ;;  %v1222_v47 = vld [vmem:[#allocation2 + $0xb0] sm:$0x1]  ;;  %v2724_v63 = vpop.permute.xlu0 %2723 }
 0x16b   : > { %v4815_v57 = vcombine.low %v2600_v0, %v2610_v62  ;;  %v3624_v53 = vor.u32 %v3623_v12, %v3619_v21  ;;  %v1566_v19 = vshrl.u32 %v1220_v3, 16  ;;  %v1569_v8 = vshll.u32 %v1220_v3, 16  ;;  %v3310_v45 = vld [vmem:[#allocation2 + $0xb4] sm:$0xf]  ;;  %2764 = vst.msk [vmem:[#allocation3 + $0x40] sm:$0xff] %vm2755_vm6, %v2724_v63 }
 0x16c   : > { %v4847_v38 = vcombine.low %v6384_v55, %v2965_v20  ;;  %v3615_v60 = vrot.slane %v3614_v22, 4  ;;  %v6412_v15 = vsel %vm5198_vm8, %v4894_v14, %v3998_v2  ;;  %v4000_v37 = vrot.slane %v3998_v2, 4  ;;  %v3855_v34 = vld [vmem:[#allocation2 + $0xb4] sm:$0xe] }
 0x16d   : > { %2733 = vrot.lane.b32.xlu1 %v4815_v57, %s5123_s9  ;;  %v3625_v59 = vrot.slane %v3624_v53, 4  ;;  %v3632_v61 = vshrl.u32 %v3310_v45, 16  ;;  %v3635_v11 = vshll.u32 %v3310_v45, 16  ;;  %v1568_v4 = vrot.slane %v1566_v19, 4  ;;  %v3311_v27 = vld [vmem:[#allocation2 + $0xb8] sm:$0xf]  ;;  %v2181_v49 = vpop.permute.xlu1 %2180 }
 0x16e   : > { %v3620_v46 = vsel %vm5256_vm12, %v3615_v60, %v3619_v21  ;;  %v4002_v55 = vsel %vm5198_vm8, %v4000_v37, %v4001_v58  ;;  %v1571_v54 = vrot.slane %v1569_v8, 5  ;;  %v6421_v18 = vpack.c.bf16 %v499_v33, %v499_v33  ;;  %v5089_v17 = vld [vmem:[#allocation2 + $0xb4] sm:$0xff]   ;;  %v5100_v33 = vld [vmem:[#allocation2 + $0xa8] sm:$0xff]   ;;  %v3045_v0 = vpop.permute.xlu0 %3044  ;;  %2220 = vst.msk [vmem:[#allocation3 + $0x48] sm:$0xff] %vm2210_vm5, %v2181_v49 }
 0x16f   : > { %v3630_v51 = vsel %vm5256_vm12, %v3625_v59, %v3629_v28  ;;  %v3634_v5 = vrot.slane %v3632_v61, 4  ;;  %v3637_v44 = vrot.slane %v3635_v11, 5  ;;  %v3641_v35 = vshll.u32 %v3311_v27, 16  ;;  %v3856_v30 = vld [vmem:[#allocation2 + $0xb8] sm:$0xf]  ;;  %3085 = vst.msk [vmem:[#allocation3 + $0x40] sm:$0xff] %vm6774_vm9, %v3045_v0 }
 0x170   : > { %v4878_v52 = vcombine.low %v3620_v46, %v3630_v51  ;;  %v3645_v31 = vshrl.u32 %v3311_v27, 16  ;;  %v4910_v41 = vcombine.low %v6412_v15, %v4002_v55  ;;  %v1572_v29 = vor.u32 %v1571_v54, %v1568_v4  ;;  %v3312_v43 = vld [vmem:[#allocation2 + $0xbc] sm:$0x1]  ;;  %v1223_v62 = vld [vmem:[#allocation2 + $0xb4] sm:$0xf] }
 0x171   : > { %3054 = vrot.lane.b32.xlu1 %v4847_v38, %s5121_s7  ;;  %v3638_v7 = vor.u32 %v3637_v44, %v3634_v5  ;;  %v3643_v16 = vrot.slane %v3641_v35, 5  ;;  %v1575_v56 = vshll.u32 %v1221_v42, 16  ;;  %v1579_v23 = vshrl.u32 %v1221_v42, 16  ;;  %v3857_v20 = vld [vmem:[#allocation2 + $0xbc] sm:$0x1]  ;;  %v5101_v14 = vld [vmem:[#allocation2 + $0xb4] sm:$0xff]  }
 0x172   : > { %3775 = vrot.lane.b32.xlu0 %v4878_v52, %s5124_s10  ;;  %v3647_v26 = vrot.slane %v3645_v31, 4  ;;  %v3651_v48 = vshll.u32 %v3312_v43, 16  ;;  %v1573_v39 = vrot.slane %v1572_v29, 4  ;;  %v1585_v3 = vshll.u32 %v1222_v47, 16  ;;  %v1224_v22 = vld [vmem:[#allocation2 + $0xb8] sm:$0xf]  ;;  %v3223_v38 = vpop.permute.xlu0 %3222 }
 0x173   : > { %vm6776_vm15 = vcmask 31744   ;;  %v3639_v36 = vrot.slane %v3638_v7, 4  ;;  %v1577_v21 = vrot.slane %v1575_v56, 5  ;;  %v1581_v50 = vrot.slane %v1579_v23, 4  ;;  %v1225_v8 = vld [vmem:[#allocation2 + $0xbc] sm:$0x1] }
 0x174   : > { %1176 = vst.msk [vmem:[#allocation3 + $0x70] sm:$0xff] %vm6776_vm15, %v5100_v33  ;;  %v4895_v24 = vrot.slane %v3855_v34, 9  ;;  %v3648_v12 = vor.u32 %v3647_v26, %v3643_v16  ;;  %v3653_v28 = vrot.slane %v3651_v48, 5  ;;  %v1587_v40 = vrot.slane %v1585_v3, 5  ;;  %v1768_v42 = vld [vmem:[#allocation2 + $0xa8] sm:$0xe] }
 0x175   : > { %3232 = vrot.lane.b32.xlu1 %v5089_v17, %s5120_s6  ;;  %v4005_v57 = vrot.slane %v3856_v30, 5  ;;  %v3644_v2 = vsel %vm5256_vm12, %v3639_v36, %v3643_v16  ;;  %v1578_v53 = vsel %vm5256_vm12, %v1573_v39, %v1577_v21  ;;  %v1582_v58 = vor.u32 %v1581_v50, %v1577_v21  ;;  %v1769_v59 = vld [vmem:[#allocation2 + $0xac] sm:$0xf]  ;;  %1177 = vst.msk [vmem:[#allocation3 + $0x78] sm:$0xff] %vm6776_vm15, %v5101_v14  ;;  %v1770_v54 = vld [vmem:[#allocation2 + $0xb0] sm:$0x1] }
 0x176   : > { %v4008_v19 = vrot.slane %v3857_v20, 5  ;;  %v3649_v60 = vrot.slane %v3648_v12, 4  ;;  %4096 = vrot.lane.b32.xlu0 %v4910_v41, %s5122_s8  ;;  %v1590_v37 = vshrl.u32 %v1223_v62, 16  ;;  %vm6777_vm9 = vcmask 228544   ;;  %v1771_v51 = vld [vmem:[#allocation2 + $0xb4] sm:$0xe] }
 0x177   : > { %v4006_v45 = vsel %vm5198_vm8, %v4895_v24, %v4005_v57  ;;  %v4007_v15 = vrot.slane %v4005_v57, 4  ;;  %3263 = vst.msk [vmem:[#allocation3 + $0x40] sm:$0xff] %vm6777_vm9, %v3223_v38  ;;  %v1583_v61 = vrot.slane %v1582_v58, 4  ;;  %v1593_v11 = vshll.u32 %v1223_v62, 16  ;;  %v1772_v17 = vld [vmem:[#allocation2 + $0xb8] sm:$0xf] }
 0x178   : > { %v1599_v47 = vshll.u32 %v1224_v22, 16  ;;  %v1603_v4 = vshrl.u32 %v1224_v22, 16  ;;  %v3654_v63 = vsel %vm5256_vm12, %v3649_v60, %v3653_v28  ;;  %v1592_v27 = vrot.slane %v1590_v37, 4  ;;  %v1773_v52 = vld [vmem:[#allocation2 + $0xbc] sm:$0x1] }
 0x179   : > { %v4009_v46 = vsel %vm5198_vm8, %v4007_v15, %v4008_v19  ;;  %v1609_v55 = vshll.u32 %v1225_v8, 16  ;;  %v4879_v5 = vcombine.low %v3644_v2, %v3654_v63  ;;  %v1588_v44 = vsel %vm5256_vm12, %v1583_v61, %v1587_v40  ;;  %v352_v62 = vld [vmem:[#allocation2 + $0xc8] sm:$0x1]  ;;  %v2269_v22 = vld [vmem:[#allocation2 + $0xb4] sm:$0xf] }
 0x17a   : > { %v4911_v35 = vcombine.low %v4006_v45, %v4009_v46  ;;  %v1595_v34 = vrot.slane %v1593_v11, 5  ;;  %v4752_v31 = vcombine.low %v1578_v53, %v1588_v44  ;;  %v1601_v41 = vrot.slane %v1599_v47, 5  ;;  %v2270_v14 = vld [vmem:[#allocation2 + $0xb8] sm:$0xf]  ;;  %v1026_v19 = vld [vmem:[#allocation2 + $0xc0] sm:$0xf] }
 0x17b   : > { %v1605_v29 = vrot.slane %v1603_v4, 4  ;;  %v1611_v30 = vrot.slane %v1609_v55, 5  ;;  %3777 = vrot.lane.b32.xlu1 %v4879_v5, %s5124_s10  ;;  %v4768_v43 = vrot.slane %v1768_v42, 9  ;;  %v1925_v7 = vrot.slane %v1769_v59, 5  ;;  %v2271_v8 = vld [vmem:[#allocation2 + $0xbc] sm:$0x1] }
 0x17c   : > { %4098 = vrot.lane.b32.xlu0 %v4911_v35, %s5122_s8  ;;  %v1596_v33 = vor.u32 %v1595_v34, %v1592_v27  ;;  %v1928_v16 = vrot.slane %v1770_v54, 5  ;;  %v4769_v23 = vrot.slane %v1771_v51, 9  ;;  %v1932_v0 = vrot.slane %v1772_v17, 5  ;;  %v2726_v48 = vpop.permute.xlu1 %2725  ;;  %v5090_v15 = vld [vmem:[#allocation2 + $0xb4] sm:$0xff]   ;;  %v299_v63 = vld [vmem:[#allocation2 + $0xcc] sm:$0x1] }
 0x17d   : > { %v1606_v56 = vor.u32 %v1605_v29, %v1601_v41  ;;  %v1935_v26 = vrot.slane %v1773_v52, 5  ;;  %v1926_v3 = vsel %vm5198_vm8, %v4768_v43, %v1925_v7  ;;  %v1927_v20 = vrot.slane %v1925_v7, 4  ;;  %2765 = vst.msk [vmem:[#allocation3 + $0x48] sm:$0xff] %vm2755_vm6, %v2726_v48  ;;  %v2814_v4 = vld [vmem:[#allocation2 + $0xb4] sm:$0xe] }
 0x17e   : > { %v1597_v39 = vrot.slane %v1596_v33, 4  ;;  %v854_v49 = vshrl.u32 %v6388_v6, 16  ;;  %v1933_v21 = vsel %vm5198_vm8, %v4769_v23, %v1932_v0  ;;  %v1934_v50 = vrot.slane %v1932_v0, 4  ;;  %v2815_v54 = vld [vmem:[#allocation2 + $0xb8] sm:$0xf] }
 0x17f   : > { %v1607_v36 = vrot.slane %v1606_v56, 4  ;;  %v857_v24 = vshll.u32 %v6388_v6, 16  ;;  %1689 = vrot.lane.b32.xlu1 %v4752_v31, %s5118_s29  ;;  %v1929_v28 = vsel %vm5198_vm8, %v1927_v20, %v1928_v16  ;;  %v862_v57 = vshrl.u32 %v6421_v18, 16  ;;  %v2816_v35 = vld [vmem:[#allocation2 + $0xbc] sm:$0x1] }
 0x180   : > { %v1602_v12 = vsel %vm5256_vm12, %v1597_v39, %v1601_v41  ;;  %v856_v40 = vrot.slane %v854_v49, 7  ;;  %v4784_v53 = vcombine.low %v1926_v3, %v1929_v28  ;;  %v1936_v6 = vsel %vm5198_vm8, %v1934_v50, %v1935_v26  ;;  %v3047_v38 = vpop.permute.xlu1 %3046  ;;  %v355_v34 = vld [vmem:[#allocation2 + $0xd4] sm:$0x1]  ;;  %v3317_v7 = vld [vmem:[#allocation2 + $0xd0] sm:$0xf] }
 0x181   : > { %v1612_v2 = vsel %vm5256_vm12, %v1607_v36, %v1611_v30  ;;  %v865_v58 = vshll.u32 %v6421_v18, 16  ;;  %v4785_v45 = vcombine.low %v1933_v21, %v1936_v6  ;;  %vm6778_vm9 = vcmask 195744  }
 0x182   : > { %v4753_v60 = vcombine.low %v1602_v12, %v1612_v2  ;;  %v859_v37 = vor.u32 %v857_v24, %v856_v40  ;;  %v860_v42 = vrot.slane %v856_v40, 4  ;;  %3086 = vst.msk [vmem:[#allocation3 + $0x48] sm:$0xff] %vm6778_vm9, %v3047_v38  ;;  %2013 = vrot.lane.b32.xlu0 %v4784_v53, %s5117_s28  ;;  %v864_v59 = vrot.slane %v862_v57, 7  ;;  %v6497_v57 = vld [vmem:[#allocation2 + $0xd0] sm:$0xf] }
 0x183   : > { %v2612_v61 = vshrl.u32 %v2269_v22, 16  ;;  %v2615_v11 = vshll.u32 %v2269_v22, 16  ;;  %v2621_v47 = vshll.u32 %v2270_v14, 16  ;;  %v2625_v46 = vshrl.u32 %v2270_v14, 16 }
 0x184   : > { %1691 = vrot.lane.b32.xlu1 %v4753_v60, %s5118_s29  ;;  %v1027_v18 = vsel %vm5265_vm13, %v859_v37, %v1026_v19  ;;  %v2631_v27 = vshll.u32 %v2271_v8, 16  ;;  %v353_v55 = vsel %vm5188_vm7, 0, %v352_v62  ;;  %v867_v51 = vor.u32 %v865_v58, %v864_v59  ;;  %v3225_v17 = vpop.permute.xlu1 %3224  ;;  %v3768_v52 = vpop.permute.xlu0 %3767 }
 0x185   : > { %1028 = vst [vmem:[#allocation2 + $0xc0] sm:$0xf] %v1027_v18  ;;  %v2614_v5 = vrot.slane %v2612_v61, 4  ;;  %v2617_v44 = vrot.slane %v2615_v11, 5  ;;  %354 = vst [vmem:[#allocation2 + $0xc8] sm:$0x1] %v353_v55 }
 0x186   : > { %v2623_v31 = vrot.slane %v2621_v47, 5  ;;  %v2627_v41 = vrot.slane %v2625_v46, 4  ;;  %v2633_v29 = vrot.slane %v2631_v27, 5  ;;  %vm6779_vm15 = vcmask 228544   ;;  %3808 = vst.msk [vmem:[#allocation3 + $0x40] sm:$0xff] %vm3799_vm11, %v3768_v52  ;;  %2190 = vrot.lane.b32.xlu0 %v5090_v15, %s5119_s30 }
 0x187   : > { %3264 = vst.msk [vmem:[#allocation3 + $0x48] sm:$0xff] %vm6779_vm15, %v3225_v17  ;;  %v868_v25 = vsel %vm5274_vm14, %v860_v42, %v867_v51  ;;  %v2618_v30 = vor.u32 %v2617_v44, %v2614_v5  ;;  %v4832_v33 = vrot.slane %v2814_v4, 9  ;;  %v2968_v43 = vrot.slane %v2815_v54, 5 }
 0x188   : > { %2015 = vrot.lane.b32.xlu1 %v4785_v45, %s5117_s28  ;;  %1029 = vst.msk [vmem:[#allocation2 + $0xc4] sm:$0xf] %vm237_vm0, %v868_v25  ;;  %v2628_v16 = vor.u32 %v2627_v41, %v2623_v31  ;;  %v2971_v56 = vrot.slane %v2816_v35, 5  ;;  %v300_v23 = vsel %vm5171_vm3, 0, %v299_v63  ;;  %v356_v0 = vsel %vm5188_vm7, 0, %v355_v34  ;;  %v4089_v39 = vpop.permute.xlu0 %4088  ;;  %vm6780_vm0 = vmmov %vm6778_vm9 }
 0x189   : > { %v869_v26 = vrot.slane %v864_v59, 4  ;;  %v2619_v48 = vrot.slane %v2618_v30, 4  ;;  %v2970_v32 = vrot.slane %v2968_v43, 4  ;;  %301 = vst [vmem:[#allocation2 + $0xcc] sm:$0x1] %v300_v23  ;;  %v3689_v20 = vshll.u32 %v3317_v7, 16  ;;  %vm6782_vm7 = vmmov %vm6780_vm0 }
 0x18a   : > { %357 = vst [vmem:[#allocation2 + $0xd4] sm:$0x1] %v356_v0  ;;  %v2629_v3 = vrot.slane %v2628_v16, 4  ;;  %4129 = vst.msk [vmem:[#allocation3 + $0x40] sm:$0xff] %vm4120_vm1, %v4089_v39  ;;  %v2969_v9 = vsel %vm5198_vm8, %v4832_v33, %v2968_v43  ;;  %v3693_v53 = vshrl.u32 %v3317_v7, 16  ;;  %v4019_v42 = vrot.slane %v6497_v57, 5 }
 0x18b   : > { %v2624_v49 = vsel %vm5256_vm12, %v2619_v48, %v2623_v31  ;;  %v2972_v24 = vsel %vm5198_vm8, %v2970_v32, %v2971_v56  ;;  %v6499_v2 = vrot.slane %v3689_v20, 5  ;;  %vm6786_vm14 = vcmask 31744  }
 0x18c   : > { %v2634_v36 = vsel %vm5256_vm12, %v2629_v3, %v2633_v29  ;;  %v1030_v21 = vld [vmem:[#allocation2 + $0xc8] sm:$0x1]  ;;  %v2272_v50 = vld [vmem:[#allocation2 + $0xc0] sm:$0xf]  ;;  %v4848_v8 = vcombine.low %v2969_v9, %v2972_v24  ;;  %v3695_v5 = vrot.slane %v3693_v53, 4  ;;  %vm6787_vm9 = vmmov %vm6786_vm14 }
 0x18d   : > { %v4816_v62 = vcombine.low %v2624_v49, %v2634_v36  ;;  %v1031_v12 = vsel %vm5171_vm3, %v869_v26, %v1030_v21  ;;  %v2636_v28 = vshrl.u32 %v2272_v50, 16  ;;  %v2639_v40 = vshll.u32 %v2272_v50, 16  ;;  %v2817_v22 = vld [vmem:[#allocation2 + $0xc0] sm:$0xe]  ;;  %vm6781_vm3 = vmmov %vm6779_vm15 }
 0x18e   : > { %1032 = vst [vmem:[#allocation2 + $0xc8] sm:$0x1] %v1031_v12  ;;  %v3313_v14 = vld [vmem:[#allocation2 + $0xc0] sm:$0xf]  ;;  %v4091_v60 = vpop.permute.xlu0 %4090  ;;  %v4833_v59 = vrot.slane %v2817_v22, 9  ;;  %v3696_v12 = vor.u32 %v3695_v5, %v6499_v2  ;;  %vm6785_vm13 = vmmov %vm6781_vm3 }
 0x18f   : > { %v5091_v6 = vld [vmem:[#allocation2 + $0xc0] sm:$0xff]   ;;  %2735 = vrot.lane.b32.xlu0 %v4816_v62, %s5123_s9  ;;  %v2638_v19 = vrot.slane %v2636_v28, 4  ;;  %v3770_v38 = vpop.permute.xlu1 %3769  ;;  %v2641_v1 = vrot.slane %v2639_v40, 5  ;;  %v3656_v18 = vshrl.u32 %v3313_v14, 16  ;;  %v3659_v54 = vshll.u32 %v3313_v14, 16  ;;  %vm6788_vm15 = vmmov %vm6787_vm9 }
 0x190   : > { %v2273_v58 = vld [vmem:[#allocation2 + $0xc4] sm:$0xf]  ;;  %3809 = vst.msk [vmem:[#allocation3 + $0x48] sm:$0xff] %vm3799_vm11, %v3770_v38  ;;  %2192 = vrot.lane.b32.xlu1 %v5091_v6, %s5119_s30  ;;  %v3316_v31 = vld [vmem:[#allocation2 + $0xcc] sm:$0xf]  ;;  %s6579_s30 = scalar_lea.vmem %s6749_s4, %s4935_s22  ;;  %s4687_s22 = sshll.u32 %s6883_s19, 1 }
 0x191   : > { %v2645_v45 = vshll.u32 %v2273_v58, 16  ;;  %v2649_v15 = vshrl.u32 %v2273_v58, 16  ;;  %v2818_v37 = vld [vmem:[#allocation2 + $0xc4] sm:$0xf]  ;;  %4130 = vst.msk [vmem:[#allocation3 + $0x48] sm:$0xff] %vm4120_vm1, %v4091_v60  ;;  %v2642_v11 = vor.u32 %v2641_v1, %v2638_v19  ;;  %v4145_v46 = vld [vmem:[#allocation3 + $0x40] sm:$0xff] }
 0x192   : > { %v2975_v61 = vrot.slane %v2818_v37, 5  ;;  %v3314_v63 = vld [vmem:[#allocation2 + $0xc4] sm:$0xf]  ;;  %5010 = vmatprep.mubr.msk.bf16.mxu1 %vm4173_vm10, %v4145_v46  ;;  %v3658_v17 = vrot.slane %v3656_v18, 4  ;;  %v3661_v23 = vrot.slane %v3659_v54, 5  ;;  %v3680_v36 = vshrl.u32 %v3316_v31, 16 }
 0x193   : > { %v2647_v47 = vrot.slane %v2645_v45, 5  ;;  %v2651_v4 = vrot.slane %v2649_v15, 4  ;;  %3056 = vrot.lane.b32.xlu0 %v4848_v8, %s5121_s7  ;;  %v5094_v55 = vld [vmem:[#allocation2 + $0xc0] sm:$0xff]   ;;  %v3665_v51 = vshll.u32 %v3314_v63, 16  ;;  %v1682_v44 = vpop.permute.xlu1 %1681  ;;  %v2643_v35 = vrot.slane %v2642_v11, 4  ;;  %v5095_v5 = vld [vmem:[#allocation2 + $0xcc] sm:$0xff]  }
 0x194   : > { %v2977_v27 = vrot.slane %v2975_v61, 4  ;;  %v3669_v52 = vshrl.u32 %v3314_v63, 16  ;;  %1720 = vst.msk [vmem:[#allocation3 + $0x50] sm:$0xff] %vm1709_vm2, %v1682_v44  ;;  %v2976_v25 = vsel %vm5198_vm8, %v4833_v59, %v2975_v61  ;;  %v2006_v33 = vpop.permute.xlu0 %2005  ;;  %v3858_v32 = vld [vmem:[#allocation2 + $0xc0] sm:$0xe]  ;;  %v3683_v21 = vshll.u32 %v3316_v31, 16 }
 0x195   : > { %v2652_v34 = vor.u32 %v2651_v4, %v2647_v47  ;;  %v2274_v41 = vld [vmem:[#allocation2 + $0xc8] sm:$0x1]  ;;  %v2648_v43 = vsel %vm5256_vm12, %v2643_v35, %v2647_v47  ;;  %2044 = vst.msk [vmem:[#allocation3 + $0x50] sm:$0xff] %vm2033_vm4, %v2006_v33  ;;  %v3667_v0 = vrot.slane %v3665_v51, 5  ;;  %v3318_v49 = vld [vmem:[#allocation2 + $0xd4] sm:$0x1]  ;;  %v3662_v9 = vor.u32 %v3661_v23, %v3658_v17 }
 0x196   : > { %v2819_v29 = vld [vmem:[#allocation2 + $0xc8] sm:$0x1]  ;;  %v2655_v16 = vshll.u32 %v2274_v41, 16  ;;  %v3671_v26 = vrot.slane %v3669_v52, 4  ;;  %v3859_v28 = vld [vmem:[#allocation2 + $0xc4] sm:$0xf] }
 0x197   : > { %v3315_v30 = vld [vmem:[#allocation2 + $0xc8] sm:$0x1]  ;;  %v2653_v7 = vrot.slane %v2652_v34, 4  ;;  %v2978_v56 = vrot.slane %v2819_v29, 5  ;;  %3234 = vrot.lane.b32.xlu0 %v5094_v55, %s5120_s6  ;;  %v1684_v39 = vpop.permute.xlu1 %1683  ;;  %v3682_v6 = vrot.slane %v3680_v36, 4  ;;  %v3685_v58 = vrot.slane %v3683_v21, 5 }
 0x198   : > { %v3675_v48 = vshll.u32 %v3315_v30, 16  ;;  %v2657_v3 = vrot.slane %v2655_v16, 5  ;;  %1721 = vst.msk [vmem:[#allocation3 + $0x58] sm:$0xff] %vm1709_vm2, %v1684_v39  ;;  %v4146_v50 = vld [vmem:[#allocation3 + $0x48] sm:$0xff]  ;;  %v3672_v24 = vor.u32 %v3671_v26, %v3667_v0  ;;  %v3860_v40 = vld [vmem:[#allocation2 + $0xc8] sm:$0x1]  ;;  %v2183_v22 = vpop.permute.xlu0 %2182 }
 0x199   : > { %v2979_v20 = vsel %vm5198_vm8, %v2977_v27, %v2978_v56  ;;  %5011 = vmatmul.mubr.msk.bf16.vlgmr.msra.gmra.mrb[0].mxu1 %vm4173_vm10, %v4146_v50  ;;  %2221 = vst.msk [vmem:[#allocation3 + $0x50] sm:$0xff] %vm2210_vm5, %v2183_v22  ;;  %v3663_v8 = vrot.slane %v3662_v9, 4  ;;  %v3699_v60 = vshll.u32 %v3318_v49, 16  ;;  %v3686_v45 = vor.u32 %v3685_v58, %v3682_v6  ;;  %v3861_v55 = vld [vmem:[#allocation2 + $0xcc] sm:$0xe] }
 0x19a   : > { %v3677_v62 = vrot.slane %v3675_v48, 5  ;;  %v2658_v14 = vsel %vm5256_vm12, %v2653_v7, %v2657_v3  ;;  %v4849_v53 = vcombine.low %v2976_v25, %v2979_v20  ;;  %v3673_v38 = vrot.slane %v3672_v24, 4  ;;  %v3863_v54 = vld [vmem:[#allocation2 + $0xd4] sm:$0x1] }
 0x19b   : > { %v4817_v19 = vcombine.low %v2648_v43, %v2658_v14  ;;  %v2008_v1 = vpop.permute.xlu1 %2007  ;;  %v4896_v15 = vrot.slane %v3858_v32, 9  ;;  %v4012_v37 = vrot.slane %v3859_v28, 5  ;;  %v4015_v59 = vrot.slane %v3860_v40, 5 }
 0x19c   : > { %2045 = vst.msk [vmem:[#allocation3 + $0x58] sm:$0xff] %vm2033_vm4, %v2008_v1  ;;  %v3668_v61 = vsel %vm5256_vm12, %v3663_v8, %v3667_v0  ;;  %v3678_v11 = vsel %vm5256_vm12, %v3673_v38, %v3677_v62  ;;  %v3697_v47 = vrot.slane %v3696_v12, 4  ;;  %v3701_v4 = vrot.slane %v3699_v60, 5 }
 0x19d   : > { %2737 = vrot.lane.b32.xlu1 %v4817_v19, %s5123_s9  ;;  %v4880_v63 = vcombine.low %v3668_v61, %v3678_v11  ;;  %v3687_v18 = vrot.slane %v3686_v45, 4  ;;  %v4013_v46 = vsel %vm5198_vm8, %v4896_v15, %v4012_v37  ;;  %v4014_v27 = vrot.slane %v4012_v37, 4 }
 0x19e   : > { %v4897_v35 = vrot.slane %v3861_v55, 9  ;;  %v3702_v52 = vsel %vm5256_vm12, %v3697_v47, %v3701_v4  ;;  %v4021_v31 = vrot.slane %v4019_v42, 4  ;;  %v4022_v41 = vrot.slane %v3863_v54, 5 }
 0x19f   : > { %3779 = vrot.lane.b32.xlu0 %v4880_v63, %s5124_s10  ;;  %v4016_v51 = vsel %vm5198_vm8, %v4014_v27, %v4015_v59  ;;  %v3692_v17 = vsel %vm5256_vm12, %v3687_v18, %v6499_v2  ;;  %vm6784_vm12 = vmmov %vm6780_vm0 }
 0x1a0   : > { %v4912_v44 = vcombine.low %v4013_v46, %v4016_v51  ;;  %v2728_v34 = vpop.permute.xlu0 %2727  ;;  %v4881_v25 = vcombine.low %v3692_v17, %v3702_v52  ;;  %v4020_v10 = vsel %vm5198_vm8, %v4897_v35, %v4019_v42  ;;  %v4023_v2 = vsel %vm5198_vm8, %v4021_v31, %v4022_v41  ;;  %vm6783_vm8 = vmmov %vm6781_vm3 }
 0x1a1   : > { %3058 = vrot.lane.b32.xlu1 %v4849_v53, %s5121_s7  ;;  %2766 = vst.msk [vmem:[#allocation3 + $0x50] sm:$0xff] %vm2755_vm6, %v2728_v34  ;;  %v2185_v29 = vpop.permute.xlu1 %2184  ;;  %v4913_v33 = vcombine.low %v4020_v10, %v4023_v2 }
 0x1a2   : > { %2222 = vst.msk [vmem:[#allocation3 + $0x58] sm:$0xff] %vm2210_vm5, %v2185_v29 }
 0x1a3   : > { %4100 = vrot.lane.b32.xlu0 %v4912_v44, %s5122_s8 }
 0x1a4   : > { %v3049_v30 = vpop.permute.xlu0 %3048 }
 0x1a5   : > { %3236 = vrot.lane.b32.xlu1 %v5095_v5, %s5120_s6  ;;  %3087 = vst.msk [vmem:[#allocation3 + $0x50] sm:$0xff] %vm6780_vm0, %v3049_v30  ;;  %vm6789_vm0 = vmmov %vm6787_vm9 }
 0x1a8   : > { %v3227_v43 = vpop.permute.xlu0 %3226 }
 0x1a9   : > { %3781 = vrot.lane.b32.xlu1 %v4881_v25, %s5124_s10  ;;  %3265 = vst.msk [vmem:[#allocation3 + $0x50] sm:$0xff] %vm6781_vm3, %v3227_v43  ;;  %vm6790_vm3 = vmmov %vm6789_vm0 }
 0x1ad   : > { %4102 = vrot.lane.b32.xlu1 %v4913_v33, %s5122_s8  ;;  %s235_s8 = scalar_lea.vmem %s6750_s5, %s4687_s22 }
 0x1ae   : > { %v2730_v7 = vpop.permute.xlu1 %2729 }
 0x1af   : > { %2767 = vst.msk [vmem:[#allocation3 + $0x58] sm:$0xff] %vm2755_vm6, %v2730_v7 }
 0x1b2   : > { %v3051_v57 = vpop.permute.xlu1 %3050 }
 0x1b3   : > { %3088 = vst.msk [vmem:[#allocation3 + $0x58] sm:$0xff] %vm6782_vm7, %v3051_v57  ;;  %vm6791_vm7 = vmmov %vm6789_vm0 }
 0x1b4   : > { %v3772_v42 = vpop.permute.xlu0 %3771 }
 0x1b5   : > { %3810 = vst.msk [vmem:[#allocation3 + $0x50] sm:$0xff] %vm3799_vm11, %v3772_v42 }
 0x1b6   : > { %v3229_v13 = vpop.permute.xlu1 %3228 }
 0x1b7   : > { %3266 = vst.msk [vmem:[#allocation3 + $0x58] sm:$0xff] %vm6783_vm8, %v3229_v13  ;;  %vm6792_vm8 = vmmov %vm6789_vm0 }
 0x1b8   : > { %v4093_v16 = vpop.permute.xlu0 %4092 }
 0x1b9   : > { %4131 = vst.msk [vmem:[#allocation3 + $0x50] sm:$0xff] %vm4120_vm1, %v4093_v16 }
 0x1bd   : > { %v3774_v56 = vpop.permute.xlu1 %3773  ;;  %v4095_v23 = vpop.permute.xlu0 %4094 }
 0x1be   : > { %3811 = vst.msk [vmem:[#allocation3 + $0x58] sm:$0xff] %vm3799_vm11, %v3774_v56 }
 0x1bf   : > { %4132 = vst.msk [vmem:[#allocation3 + $0x58] sm:$0xff] %vm4120_vm1, %v4095_v23 }
 0x1c0   : > { %v4147_v0 = vld [vmem:[#allocation3 + $0x50] sm:$0xff] }
 0x1c1   : > { %v1686_v26 = vpop.permute.xlu1 %1685  ;;  %5014 = vmatprep.mubr.msk.bf16.mxu1 %vm4173_vm10, %v4147_v0 }
 0x1c2   : > { %1722 = vst.msk [vmem:[#allocation3 + $0x60] sm:$0xff] %vm1709_vm2, %v1686_v26 }
 0x1c4   : > { %v2010_v48 = vpop.permute.xlu0 %2009 }
 0x1c5   : > { %v1688_v32 = vpop.permute.xlu1 %1687  ;;  %2046 = vst.msk [vmem:[#allocation3 + $0x60] sm:$0xff] %vm2033_vm4, %v2010_v48 }
 0x1c6   : > { %1723 = vst.msk [vmem:[#allocation3 + $0x68] sm:$0xff] %vm1709_vm2, %v1688_v32  ;;  %v4148_v39 = vld [vmem:[#allocation3 + $0x58] sm:$0xff] }
 0x1c7   : > { %5015 = vmatmul.mubr.msk.bf16.gmra.mrb[4].mxu1 %vm4173_vm10, %v4148_v39 }
 0x1c8   : > { %v2187_v3 = vpop.permute.xlu0 %2186 }
 0x1c9   : > { %v2012_v20 = vpop.permute.xlu1 %2011  ;;  %2223 = vst.msk [vmem:[#allocation3 + $0x60] sm:$0xff] %vm2210_vm5, %v2187_v3 }
 0x1ca   : > { %2047 = vst.msk [vmem:[#allocation3 + $0x68] sm:$0xff] %vm2033_vm4, %v2012_v20 }
 0x1d1   : > { %v2732_v49 = vpop.permute.xlu0 %2731  ;;  %v2189_v36 = vpop.permute.xlu1 %2188 }
 0x1d2   : > { %2768 = vst.msk [vmem:[#allocation3 + $0x60] sm:$0xff] %vm2755_vm6, %v2732_v49 }
 0x1d3   : > { %2224 = vst.msk [vmem:[#allocation3 + $0x68] sm:$0xff] %vm2210_vm5, %v2189_v36 }
 0x1d5   : > { %v3053_v21 = vpop.permute.xlu0 %3052 }
 0x1d6   : > { %3089 = vst.msk [vmem:[#allocation3 + $0x60] sm:$0xff] %vm6784_vm12, %v3053_v21  ;;  %vm6793_vm12 = vmmov %vm6789_vm0 }
 0x1d9   : > { %v3231_v50 = vpop.permute.xlu0 %3230 }
 0x1da   : > { %3267 = vst.msk [vmem:[#allocation3 + $0x60] sm:$0xff] %vm6785_vm13, %v3231_v50  ;;  %vm6794_vm13 = vmmov %vm6789_vm0 }
 0x1dc   : > { %v4996_v9 = vpop.f32.mrb[0].mxu0 }
 0x1dd   : > { %4389 = vst.msk [vmem:[%s6579_s30 + $0x10] sm:$0xff] %vm6786_vm14, %v4996_v9  ;;  %v4260_v24 = vpop.f32.mrb[1].mxu0  ;;  %v4492_v22 = vmul.f32 %v4996_v9, %v4996_v9  ;;  %v4422_v19 = vsel %vm6792_vm8, %v4996_v9, 0.0  ;;  %vm6795_vm14 = vcmask 195744   ;;  %vm6800_vm8 = vmmov %vm6789_vm0 }
 0x1de   : > { %4387 = vst.msk [vmem:[%s6579_s30] sm:$0xff] %vm6787_vm9, %v4260_v24  ;;  %v4490_v62 = vmul.f32 %v4260_v24, %v4260_v24  ;;  %v4997_v12 = vpop.f32.mrb[2].mxu0  ;;  %v4419_v14 = vsel %vm6789_vm0, %v4260_v24, 0.0  ;;  %vm6796_vm9 = vmmov %vm6789_vm0 }
 0x1df   : > { %v2734_v28 = vpop.permute.xlu1 %2733  ;;  %4390 = vst.msk [vmem:[%s6579_s30 + $0x18] sm:$0xff] %vm6788_vm15, %v4997_v12  ;;  %v4263_v40 = vpop.f32.mrb[3].mxu0  ;;  %v4493_v38 = vmul.f32 %v4997_v12, %v4997_v12  ;;  %v4525_v37 = vsel %vm6796_vm9, %v4492_v22, 0.0  ;;  %vm6797_vm15 = vmmov %vm6789_vm0 }
 0x1e0   : > { %2769 = vst.msk [vmem:[#allocation3 + $0x68] sm:$0xff] %vm2755_vm6, %v2734_v28  ;;  %v4420_v53 = vsel %vm6791_vm7, %v4263_v40, 0.0  ;;  %v4491_v6 = vmul.f32 %v4263_v40, %v4263_v40  ;;  %v4522_v8 = vsel %vm6793_vm12, %v4490_v62, 0.0  ;;  %v4424_v59 = vsel %vm6797_vm15, %v4997_v12, 0.0  ;;  %vm6799_vm7 = vmmov %vm6789_vm0 }
 0x1e1   : > { %4388 = vst.msk [vmem:[%s6579_s30 + $0x8] sm:$0xff] %vm6790_vm3, %v4263_v40  ;;  %v4421_v58 = vadd.f32 %v4420_v53, %v4419_v14  ;;  %vm6798_vm3 = vmmov %vm6789_vm0 }
 0x1e2   : > { %v4523_v60 = vsel %vm6794_vm13, %v4491_v6, 0.0  ;;  %v4527_v18 = vsel %vm6798_vm3, %v4493_v38, 0.0  ;;  %vm6801_vm12 = vmmov %vm6789_vm0  ;;  %vm6802_vm13 = vcmask 228544  }
 0x1e3   : > { %v3055_v1 = vpop.permute.xlu1 %3054  ;;  %v4423_v45 = vadd.f32 %v4422_v19, %v4421_v58  ;;  %v4524_v15 = vadd.f32 %v4523_v60, %v4522_v8  ;;  %vm6804_vm9 = vmmov %vm6789_vm0 }
 0x1e4   : > { %3090 = vst.msk [vmem:[#allocation3 + $0x68] sm:$0xff] %vm6795_vm14, %v3055_v1  ;;  %v5000_v61 = vpop.f32.mrb[4].mxu0  ;;  %v3776_v11 = vpop.permute.xlu0 %3775  ;;  %vm6803_vm14 = vmmov %vm6789_vm0 }
 0x1e5   : > { %v4526_v47 = vadd.f32 %v4525_v37, %v4524_v15  ;;  %4393 = vst.msk [vmem:[%s6579_s30 + $0x30] sm:$0xff] %vm6789_vm0, %v5000_v61  ;;  %v4276_v4 = vpop.f32.mrb[5].mxu0  ;;  %v4425_v63 = vadd.f32 %v4424_v59, %v4423_v45  ;;  %v4496_v35 = vmul.f32 %v5000_v61, %v5000_v61  ;;  %vm6805_vm15 = vmmov %vm6789_vm0  ;;  %v4430_v25 = vsel %vm6789_vm0, %v5000_v61, 0.0 }
 0x1e6   : > { %3812 = vst.msk [vmem:[#allocation3 + $0x60] sm:$0xff] %vm3799_vm11, %v3776_v11  ;;  %v4426_v46 = vsel %vm6800_vm8, %v4276_v4, 0.0  ;;  %v4494_v27 = vmul.f32 %v4276_v4, %v4276_v4  ;;  %v5001_v55 = vpop.f32.mrb[6].mxu0  ;;  %vm6806_vm3 = vmmov %vm6789_vm0 }
 0x1e7   : > { %4391 = vst.msk [vmem:[%s6579_s30 + $0x20] sm:$0xff] %vm6799_vm7, %v4276_v4  ;;  %v3233_v54 = vpop.permute.xlu1 %3232  ;;  %v4427_v51 = vadd.f32 %v4426_v46, %v4425_v63  ;;  %v4528_v5 = vadd.f32 %v4527_v18, %v4526_v47  ;;  %v4279_v44 = vpop.f32.mrb[7].mxu0  ;;  %v4497_v30 = vmul.f32 %v5001_v55, %v5001_v55  ;;  %vm6807_vm7 = vmmov %vm6789_vm0 }
 0x1e8   : > { %4394 = vst.msk [vmem:[%s6579_s30 + $0x38] sm:$0xff] %vm6801_vm12, %v5001_v55  ;;  %v4529_v34 = vsel %vm6803_vm14, %v4494_v27, 0.0  ;;  %v4428_v17 = vsel %vm6805_vm15, %v4279_v44, 0.0  ;;  %v4495_v52 = vmul.f32 %v4279_v44, %v4279_v44  ;;  %v4097_v31 = vpop.permute.xlu0 %4096  ;;  %v4533_v43 = vsel %vm6807_vm7, %v4496_v35, 0.0  ;;  %vm6808_vm8 = vmmov %vm6789_vm0 }
 0x1e9   : > { %3268 = vst.msk [vmem:[#allocation3 + $0x68] sm:$0xff] %vm6802_vm13, %v3233_v54  ;;  %v4530_v41 = vadd.f32 %v4529_v34, %v4528_v5  ;;  %v4429_v29 = vadd.f32 %v4428_v17, %v4427_v51  ;;  %v4432_v7 = vsel %vm6808_vm8, %v5001_v55, 0.0  ;;  %vm6809_vm12 = vmmov %vm6789_vm0 }
 0x1ea   : > { %4392 = vst.msk [vmem:[%s6579_s30 + $0x28] sm:$0xff] %vm6804_vm9, %v4279_v44  ;;  %v4531_v10 = vsel %vm6806_vm3, %v4495_v52, 0.0  ;;  %v4535_v56 = vsel %vm6809_vm12, %v4497_v30, 0.0  ;;  %vm6811_vm14 = vmmov %vm6789_vm0 }
 0x1eb   : > { %4133 = vst.msk [vmem:[#allocation3 + $0x60] sm:$0xff] %vm4120_vm1, %v4097_v31  ;;  %v4431_v2 = vadd.f32 %v4430_v25, %v4429_v29  ;;  %v4532_v33 = vadd.f32 %v4531_v10, %v4530_v41  ;;  %vm6812_vm9 = vmmov %vm6789_vm0 }
 0x1ec   : > { %vm6814_vm15 = vmmov %vm6789_vm0 }
 0x1ed   : > { %v4534_v57 = vadd.f32 %v4533_v43, %v4532_v33  ;;  %v4433_v42 = vadd.f32 %v4432_v7, %v4431_v2  ;;  %v3778_v13 = vpop.permute.xlu1 %3777  ;;  %vm6816_vm3 = vmmov %vm6789_vm0 }
 0x1ee   : > { %v4099_v16 = vpop.permute.xlu0 %4098  ;;  %3813 = vst.msk [vmem:[#allocation3 + $0x68] sm:$0xff] %vm3799_vm11, %v3778_v13  ;;  %vm6817_vm7 = vmmov %vm6789_vm0 }
 0x1ef   : > { %v4536_v23 = vadd.f32 %v4535_v56, %v4534_v57  ;;  %4134 = vst.msk [vmem:[#allocation3 + $0x68] sm:$0xff] %vm4120_vm1, %v4099_v16  ;;  %vm6818_vm8 = vmmov %vm6789_vm0 }
 0x1f0   : > { %vm6819_vm12 = vmmov %vm6789_vm0 }
 0x1f1   : > { %v1690_v26 = vpop.permute.xlu1 %1689 }
 0x1f2   : > { %v4149_v0 = vld [vmem:[#allocation3 + $0x60] sm:$0xff]  ;;  %1724 = vst.msk [vmem:[#allocation3 + $0x70] sm:$0xff] %vm1709_vm2, %v1690_v26 }
 0x1f3   : > { %5018 = vmatprep.mubr.msk.bf16.mxu1 %vm4173_vm10, %v4149_v0 }
 0x1f4   : > { %v2014_v48 = vpop.permute.xlu0 %2013 }
 0x1f5   : > { %2048 = vst.msk [vmem:[#allocation3 + $0x70] sm:$0xff] %vm2033_vm4, %v2014_v48 }
 0x1f6   : > { %v1692_v32 = vpop.permute.xlu1 %1691  ;;  %v4150_v39 = vld [vmem:[#allocation3 + $0x68] sm:$0xff] }
 0x1f7   : > { %1725 = vst.msk [vmem:[#allocation3 + $0x78] sm:$0xff] %vm1709_vm2, %v1692_v32  ;;  %5019 = vmatmul.mubr.msk.bf16.gmra.mrb[8].mxu1 %vm4173_vm10, %v4150_v39  ;;  %vm6810_vm2 = vcmask 195744  }
 0x1f8   : > { %v2191_v3 = vpop.permute.xlu0 %2190 }
 0x1f9   : > { %2225 = vst.msk [vmem:[#allocation3 + $0x70] sm:$0xff] %vm2210_vm5, %v2191_v3 }
 0x1fa   : > { %v2016_v20 = vpop.permute.xlu1 %2015 }
 0x1fb   : > { %2049 = vst.msk [vmem:[#allocation3 + $0x78] sm:$0xff] %vm2033_vm4, %v2016_v20  ;;  %vm6813_vm4 = vmmov %vm6789_vm0 }
 0x201   : > { %v2736_v49 = vpop.permute.xlu0 %2735 }
 0x202   : > { %2770 = vst.msk [vmem:[#allocation3 + $0x70] sm:$0xff] %vm2755_vm6, %v2736_v49  ;;  %v2193_v36 = vpop.permute.xlu1 %2192 }
 0x203   : > { %2226 = vst.msk [vmem:[#allocation3 + $0x78] sm:$0xff] %vm2210_vm5, %v2193_v36  ;;  %vm6815_vm5 = vmmov %vm6789_vm0 }
 0x205   : > { %v3057_v21 = vpop.permute.xlu0 %3056 }
 0x206   : > { %3091 = vst.msk [vmem:[#allocation3 + $0x70] sm:$0xff] %vm6810_vm2, %v3057_v21  ;;  %vm6820_vm2 = vmmov %vm6789_vm0 }
 0x208   : > { %v5004_v9 = vpop.f32.mrb[8].mxu0 }
 0x209   : > { %v3235_v50 = vpop.permute.xlu0 %3234  ;;  %4397 = vst.msk [vmem:[%s6579_s30 + $0x50] sm:$0xff] %vm6811_vm14, %v5004_v9  ;;  %v4292_v24 = vpop.f32.mrb[9].mxu0  ;;  %v4500_v53 = vmul.f32 %v5004_v9, %v5004_v9  ;;  %v4438_v60 = vsel %vm6817_vm7, %v5004_v9, 0.0  ;;  %vm6823_vm14 = vcmask 228544   ;;  %vm6832_vm7 = vmmov %vm6789_vm0 }
 0x20a   : > { %3269 = vst.msk [vmem:[#allocation3 + $0x70] sm:$0xff] %vm6802_vm13, %v3235_v50  ;;  %v4434_v62 = vsel %vm6813_vm4, %v4292_v24, 0.0  ;;  %v4498_v12 = vmul.f32 %v4292_v24, %v4292_v24  ;;  %v5005_v28 = vpop.f32.mrb[10].mxu0  ;;  %vm6821_vm13 = vcmask 195744   ;;  %vm6825_vm4 = vmmov %vm6789_vm0 }
 0x20b   : > { %4395 = vst.msk [vmem:[%s6579_s30 + $0x40] sm:$0xff] %vm6812_vm9, %v4292_v24  ;;  %v4435_v40 = vadd.f32 %v4434_v62, %v4433_v42  ;;  %v4295_v22 = vpop.f32.mrb[11].mxu0  ;;  %v4501_v1 = vmul.f32 %v5005_v28, %v5005_v28  ;;  %v4541_v11 = vsel %vm6819_vm12, %v4500_v53, 0.0  ;;  %v4440_v47 = vsel %vm6820_vm2, %v5005_v28, 0.0  ;;  %vm6824_vm9 = vmmov %vm6789_vm0 }
 0x20c   : > { %4398 = vst.msk [vmem:[%s6579_s30 + $0x58] sm:$0xff] %vm6814_vm15, %v5005_v28  ;;  %v4537_v6 = vsel %vm6815_vm5, %v4498_v12, 0.0  ;;  %v4436_v58 = vsel %vm6816_vm3, %v4295_v22, 0.0  ;;  %v4499_v19 = vmul.f32 %v4295_v22, %v4295_v22  ;;  %vm6826_vm15 = vmmov %vm6789_vm0 }
 0x20d   : > { %4396 = vst.msk [vmem:[%s6579_s30 + $0x48] sm:$0xff] %vm6789_vm0, %v4295_v22  ;;  %v4538_v8 = vadd.f32 %v4537_v6, %v4536_v23  ;;  %v4437_v38 = vadd.f32 %v4436_v58, %v4435_v40  ;;  %vm6828_vm5 = vmmov %vm6789_vm0 }
 0x20e   : > { %v4539_v45 = vsel %vm6818_vm8, %v4499_v19, 0.0  ;;  %vm6831_vm3 = vmmov %vm6789_vm0 }
 0x20f   : > { %v2738_v14 = vpop.permute.xlu1 %2737  ;;  %v4439_v37 = vadd.f32 %v4438_v60, %v4437_v38  ;;  %v4540_v59 = vadd.f32 %v4539_v45, %v4538_v8  ;;  %vm6833_vm8 = vmmov %vm6789_vm0 }
 0x210   : > { %2771 = vst.msk [vmem:[#allocation3 + $0x78] sm:$0xff] %vm2755_vm6, %v2738_v14  ;;  %vm6822_vm6 = vmmov %vm6789_vm0 }
 0x211   : > { %v3780_v15 = vpop.permute.xlu0 %3779  ;;  %v4542_v4 = vadd.f32 %v4541_v11, %v4540_v59  ;;  %v4441_v63 = vadd.f32 %v4440_v47, %v4439_v37  ;;  %v4543_v18 = vsel %vm6822_vm6, %v4501_v1, 0.0  ;;  %vm6834_vm12 = vmmov %vm6789_vm0 }
 0x212   : > { %3814 = vst.msk [vmem:[#allocation3 + $0x70] sm:$0xff] %vm3799_vm11, %v3780_v15  ;;  %vm6835_vm2 = vmmov %vm6789_vm0 }
 0x213   : > { %v3059_v61 = vpop.permute.xlu1 %3058  ;;  %v4544_v27 = vadd.f32 %v4543_v18, %v4542_v4  ;;  %vm6837_vm6 = vmmov %vm6789_vm0 }
 0x214   : > { %3092 = vst.msk [vmem:[#allocation3 + $0x78] sm:$0xff] %vm6821_vm13, %v3059_v61  ;;  %vm6836_vm13 = vmmov %vm6789_vm0 }
 0x215   : > { %v4101_v46 = vpop.permute.xlu0 %4100 }
 0x216   : > { %4135 = vst.msk [vmem:[#allocation3 + $0x70] sm:$0xff] %vm4120_vm1, %v4101_v46 }
 0x217   : > { %v3237_v55 = vpop.permute.xlu1 %3236 }
 0x218   : > { %3270 = vst.msk [vmem:[#allocation3 + $0x78] sm:$0xff] %vm6823_vm14, %v3237_v55  ;;  %vm6838_vm14 = vmmov %vm6789_vm0 }
 0x21b   : > { %v3782_v54 = vpop.permute.xlu1 %3781 }
 0x21c   : > { %3815 = vst.msk [vmem:[#allocation3 + $0x78] sm:$0xff] %vm3799_vm11, %v3782_v54  ;;  %vm6827_vm11 = vmmov %vm6789_vm0 }
 0x21d   : > { %v4151_v51 = vld [vmem:[#allocation3 + $0x70] sm:$0xff] }
 0x21e   : > { %5022 = vmatprep.mubr.msk.bf16.mxu1 %vm4173_vm10, %v4151_v51 }
 0x21f   : > { %v4103_v5 = vpop.permute.xlu1 %4102 }
 0x220   : > { %4136 = vst.msk [vmem:[#allocation3 + $0x78] sm:$0xff] %vm4120_vm1, %v4103_v5  ;;  %vm6829_vm1 = vmmov %vm6789_vm0 }
 0x227   : > { %v4152_v44 = vld [vmem:[#allocation3 + $0x78] sm:$0xff] }
 0x228   : > { %5023 = vmatmul.mubr.msk.bf16.gmra.mrb[12].mxu1 %vm4173_vm10, %v4152_v44  ;;  %vm6830_vm10 = vmmov %vm6789_vm0 }
 0x239   : > { %v5008_v35 = vpop.f32.mrb[12].mxu0 }
 0x23a   : > { %4401 = vst.msk [vmem:[%s6579_s30 + $0x70] sm:$0xff] %vm6824_vm9, %v5008_v35  ;;  %v4308_v34 = vpop.f32.mrb[13].mxu0  ;;  %v4504_v25 = vmul.f32 %v5008_v35, %v5008_v35  ;;  %v4446_v7 = vsel %vm6789_vm0, %v5008_v35, 0.0  ;;  %vm6839_vm9 = vmmov %vm6789_vm0 }
 0x23b   : > { %4399 = vst.msk [vmem:[%s6579_s30 + $0x60] sm:$0xff] %vm6825_vm4, %v4308_v34  ;;  %v4442_v17 = vsel %vm6826_vm15, %v4308_v34, 0.0  ;;  %v4502_v52 = vmul.f32 %v4308_v34, %v4308_v34  ;;  %v5009_v31 = vpop.f32.mrb[14].mxu0  ;;  %vm6840_vm4 = vmmov %vm6789_vm0 }
 0x23c   : > { %v4443_v41 = vadd.f32 %v4442_v17, %v4441_v63  ;;  %4402 = vst.msk [vmem:[%s6579_s30 + $0x78] sm:$0xff] %vm6827_vm11, %v5009_v31  ;;  %v4311_v29 = vpop.f32.mrb[15].mxu0  ;;  %v4505_v57 = vmul.f32 %v5009_v31, %v5009_v31  ;;  %v4549_v56 = vsel %vm6832_vm7, %v4504_v25, 0.0  ;;  %v4448_v23 = vsel %vm6833_vm8, %v5009_v31, 0.0  ;;  %vm6841_vm15 = vmmov %vm6789_vm0 }
 0x23d   : > { %v4545_v30 = vsel %vm6828_vm5, %v4502_v52, 0.0  ;;  %4400 = vst.msk [vmem:[%s6579_s30 + $0x68] sm:$0xff] %vm6829_vm1, %v4311_v29  ;;  %v4444_v10 = vsel %vm6830_vm10, %v4311_v29, 0.0  ;;  %v4503_v2 = vmul.f32 %v4311_v29, %v4311_v29  ;;  %vm6842_vm11 = vmmov %vm6789_vm0 }
 0x23e   : > { %v4546_v33 = vadd.f32 %v4545_v30, %v4544_v27  ;;  %v4445_v43 = vadd.f32 %v4444_v10, %v4443_v41  ;;  %v4551_v48 = vsel %vm6834_vm12, %v4505_v57, 0.0  ;;  %vm6843_vm5 = vmmov %vm6789_vm0 }
 0x23f   : > { %v4547_v42 = vsel %vm6831_vm3, %v4503_v2, 0.0  ;;  %vm6844_vm1 = vmmov %vm6789_vm0 }
 0x240   : > { %v4447_v13 = vadd.f32 %v4446_v7, %v4445_v43  ;;  %v4548_v16 = vadd.f32 %v4547_v42, %v4546_v33  ;;  %vm6845_vm10 = vmmov %vm6789_vm0 }
 0x241   : > { %vm6846_vm3 = vmmov %vm6789_vm0 }
 0x242   : > { %v4550_v0 = vadd.f32 %v4549_v56, %v4548_v16  ;;  %v4449_v26 = vadd.f32 %v4448_v23, %v4447_v13  ;;  %vm6847_vm7 = vmmov %vm6789_vm0 }
 0x243   : > { %vm6848_vm8 = vmmov %vm6789_vm0 }
 0x244   : > { %v4552_v32 = vadd.f32 %v4551_v48, %v4550_v0  ;;  %vm6849_vm12 = vmmov %vm6789_vm0 }
 0x26c   : > { %v5012_v39 = vpop.f32.mrb[0].mxu1 }
 0x26d   : > { %4405 = vst.msk [vmem:[%s6579_s30 + $0x90] sm:$0xff] %vm6835_vm2, %v5012_v39  ;;  %v4324_v3 = vpop.f32.mrb[1].mxu1  ;;  %v4508_v9 = vmul.f32 %v5012_v39, %v5012_v39  ;;  %v4454_v22 = vsel %vm6842_vm11, %v5012_v39, 0.0  ;;  %vm6850_vm2 = vmmov %vm6789_vm0 }
 0x26e   : > { %4403 = vst.msk [vmem:[%s6579_s30 + $0x80] sm:$0xff] %vm6836_vm13, %v4324_v3  ;;  %v4450_v20 = vsel %vm6837_vm6, %v4324_v3, 0.0  ;;  %v4506_v49 = vmul.f32 %v4324_v3, %v4324_v3  ;;  %v5013_v36 = vpop.f32.mrb[2].mxu1  ;;  %vm6851_vm13 = vmmov %vm6789_vm0 }
 0x26f   : > { %v4451_v21 = vadd.f32 %v4450_v20, %v4449_v26  ;;  %4406 = vst.msk [vmem:[%s6579_s30 + $0x98] sm:$0xff] %vm6838_vm14, %v5013_v36  ;;  %v4327_v50 = vpop.f32.mrb[3].mxu1  ;;  %v4509_v14 = vmul.f32 %v5013_v36, %v5013_v36  ;;  %v4557_v19 = vsel %vm6844_vm1, %v4508_v9, 0.0  ;;  %v4456_v8 = vsel %vm6845_vm10, %v5013_v36, 0.0  ;;  %vm6852_vm6 = vmmov %vm6789_vm0 }
 0x270   : > { %v4553_v24 = vsel %vm6839_vm9, %v4506_v49, 0.0  ;;  %4404 = vst.msk [vmem:[%s6579_s30 + $0x88] sm:$0xff] %vm6840_vm4, %v4327_v50  ;;  %v4452_v62 = vsel %vm6841_vm15, %v4327_v50, 0.0  ;;  %v4507_v12 = vmul.f32 %v4327_v50, %v4327_v50  ;;  %vm6853_vm14 = vmmov %vm6789_vm0 }
 0x271   : > { %v4554_v28 = vadd.f32 %v4553_v24, %v4552_v32  ;;  %v4453_v40 = vadd.f32 %v4452_v62, %v4451_v21  ;;  %v4559_v1 = vsel %vm6789_vm0, %v4509_v14, 0.0  ;;  %vm6854_vm9 = vmmov %vm6789_vm0 }
 0x272   : > { %v4555_v53 = vsel %vm6843_vm5, %v4507_v12, 0.0  ;;  %vm6855_vm4 = vmmov %vm6789_vm0 }
 0x273   : > { %v4455_v6 = vadd.f32 %v4454_v22, %v4453_v40  ;;  %v4556_v58 = vadd.f32 %v4555_v53, %v4554_v28  ;;  %vm6856_vm15 = vmmov %vm6789_vm0 }
 0x274   : > { %vm6857_vm11 = vmmov %vm6789_vm0 }
 0x275   : > { %v4558_v38 = vadd.f32 %v4557_v19, %v4556_v58  ;;  %v4457_v60 = vadd.f32 %v4456_v8, %v4455_v6  ;;  %vm6858_vm5 = vmmov %vm6789_vm0 }
 0x276   : > { %vm6859_vm1 = vmmov %vm6789_vm0 }
 0x277   : > { %v4560_v45 = vadd.f32 %v4559_v1, %v4558_v38  ;;  %vm6860_vm10 = vmmov %vm6789_vm0 }
 0x29a   : > { %v5016_v15 = vpop.f32.mrb[4].mxu1 }
 0x29b   : > { %4409 = vst.msk [vmem:[%s6579_s30 + $0xb0] sm:$0xff] %vm6846_vm3, %v5016_v15  ;;  %v4340_v37 = vpop.f32.mrb[5].mxu1  ;;  %v4512_v63 = vmul.f32 %v5016_v15, %v5016_v15  ;;  %v4462_v51 = vsel %vm6853_vm14, %v5016_v15, 0.0  ;;  %vm6861_vm3 = vmmov %vm6789_vm0 }
 0x29c   : > { %4407 = vst.msk [vmem:[%s6579_s30 + $0xa0] sm:$0xff] %vm6847_vm7, %v4340_v37  ;;  %v4458_v59 = vsel %vm6848_vm8, %v4340_v37, 0.0  ;;  %v4510_v61 = vmul.f32 %v4340_v37, %v4340_v37  ;;  %v5017_v11 = vpop.f32.mrb[6].mxu1  ;;  %vm6862_vm7 = vmmov %vm6789_vm0 }
 0x29d   : > { %v4459_v47 = vadd.f32 %v4458_v59, %v4457_v60  ;;  %4410 = vst.msk [vmem:[%s6579_s30 + $0xb8] sm:$0xff] %vm6849_vm12, %v5017_v11  ;;  %v4343_v4 = vpop.f32.mrb[7].mxu1  ;;  %v4513_v5 = vmul.f32 %v5017_v11, %v5017_v11  ;;  %v4565_v17 = vsel %vm6855_vm4, %v4512_v63, 0.0  ;;  %v4464_v52 = vsel %vm6856_vm15, %v5017_v11, 0.0  ;;  %vm6863_vm8 = vmmov %vm6789_vm0 }
 0x29e   : > { %v4561_v18 = vsel %vm6850_vm2, %v4510_v61, 0.0  ;;  %4408 = vst.msk [vmem:[%s6579_s30 + $0xa8] sm:$0xff] %vm6851_vm13, %v4343_v4  ;;  %v4460_v46 = vsel %vm6852_vm6, %v4343_v4, 0.0  ;;  %v4511_v27 = vmul.f32 %v4343_v4, %v4343_v4  ;;  %vm6864_vm12 = vmmov %vm6789_vm0 }
 0x29f   : > { %v4562_v55 = vadd.f32 %v4561_v18, %v4560_v45  ;;  %v4461_v54 = vadd.f32 %v4460_v46, %v4459_v47  ;;  %v4567_v29 = vsel %vm6857_vm11, %v4513_v5, 0.0  ;;  %vm6865_vm2 = vmmov %vm6789_vm0 }
 0x2a0   : > { %v4563_v44 = vsel %vm6854_vm9, %v4511_v27, 0.0  ;;  %vm6866_vm13 = vmmov %vm6789_vm0 }
 0x2a1   : > { %v4463_v35 = vadd.f32 %v4462_v51, %v4461_v54  ;;  %v4564_v34 = vadd.f32 %v4563_v44, %v4562_v55  ;;  %vm6867_vm6 = vmmov %vm6789_vm0 }
 0x2a2   : > { %vm6868_vm14 = vmmov %vm6789_vm0 }
 0x2a3   : > { %v4566_v31 = vadd.f32 %v4565_v17, %v4564_v34  ;;  %v4465_v41 = vadd.f32 %v4464_v52, %v4463_v35  ;;  %vm6869_vm9 = vmmov %vm6789_vm0 }
 0x2a4   : > { %vm6870_vm4 = vmmov %vm6789_vm0 }
 0x2a5   : > { %v4568_v25 = vadd.f32 %v4567_v29, %v4566_v31  ;;  %vm6871_vm15 = vmmov %vm6789_vm0 }
 0x2a6   : > { %vm6872_vm11 = vmmov %vm6789_vm0 }
 0x2ca   : > { %v5020_v30 = vpop.f32.mrb[8].mxu1 }
 0x2cb   : > { %4413 = vst.msk [vmem:[%s6579_s30 + $0xd0] sm:$0xff] %vm6858_vm5, %v5020_v30  ;;  %v4356_v10 = vpop.f32.mrb[9].mxu1  ;;  %v4516_v42 = vmul.f32 %v5020_v30, %v5020_v30  ;;  %v4470_v26 = vsel %vm6864_vm12, %v5020_v30, 0.0  ;;  %vm6873_vm5 = vmmov %vm6789_vm0 }
 0x2cc   : > { %4411 = vst.msk [vmem:[%s6579_s30 + $0xc0] sm:$0xff] %vm6859_vm1, %v4356_v10  ;;  %v4466_v2 = vsel %vm6860_vm10, %v4356_v10, 0.0  ;;  %v4514_v33 = vmul.f32 %v4356_v10, %v4356_v10  ;;  %v5021_v43 = vpop.f32.mrb[10].mxu1  ;;  %vm6874_vm1 = vmmov %vm6789_vm0 }
 0x2cd   : > { %v4467_v7 = vadd.f32 %v4466_v2, %v4465_v41  ;;  %4414 = vst.msk [vmem:[%s6579_s30 + $0xd8] sm:$0xff] %vm6789_vm0, %v5021_v43  ;;  %v4359_v57 = vpop.f32.mrb[11].mxu1  ;;  %v4517_v48 = vmul.f32 %v5021_v43, %v5021_v43  ;;  %v4573_v20 = vsel %vm6866_vm13, %v4516_v42, 0.0  ;;  %v4472_v49 = vsel %vm6867_vm6, %v5021_v43, 0.0  ;;  %vm6875_vm10 = vmmov %vm6789_vm0 }
 0x2ce   : > { %v4569_v13 = vsel %vm6861_vm3, %v4514_v33, 0.0  ;;  %4412 = vst.msk [vmem:[%s6579_s30 + $0xc8] sm:$0xff] %vm6862_vm7, %v4359_v57  ;;  %v4468_v16 = vsel %vm6863_vm8, %v4359_v57, 0.0  ;;  %v4515_v56 = vmul.f32 %v4359_v57, %v4359_v57  ;;  %vm6876_vm3 = vmmov %vm6789_vm0 }
 0x2cf   : > { %v4570_v23 = vadd.f32 %v4569_v13, %v4568_v25  ;;  %v4469_v0 = vadd.f32 %v4468_v16, %v4467_v7  ;;  %v4575_v50 = vsel %vm6868_vm14, %v4517_v48, 0.0  ;;  %vm6877_vm7 = vmmov %vm6789_vm0 }
 0x2d0   : > { %v4571_v32 = vsel %vm6865_vm2, %v4515_v56, 0.0  ;;  %vm6878_vm8 = vmmov %vm6789_vm0  ;;  %vm6880_vm2 = vcmask 24576  }
 0x2d1   : > { %v4471_v39 = vadd.f32 %v4470_v26, %v4469_v0  ;;  %v4572_v3 = vadd.f32 %v4571_v32, %v4570_v23  ;;  %vm6879_vm12 = vmmov %vm6789_vm0 }
 0x2d2   : > { %vm6881_vm13 = vmmov %vm6880_vm2 }
 0x2d3   : > { %v4574_v36 = vadd.f32 %v4573_v20, %v4572_v3  ;;  %v4473_v21 = vadd.f32 %v4472_v49, %v4471_v39 }
 0x2d5   : > { %v4576_v9 = vadd.f32 %v4575_v50, %v4574_v36 }
 0x2fb   : > { %v5024_v24 = vpop.f32.mrb[12].mxu1 }
 0x2fc   : > { %4417 = vst.msk [vmem:[%s6579_s30 + $0xf0] sm:$0xff] %vm6869_vm9, %v5024_v24  ;;  %v4372_v62 = vpop.f32.mrb[13].mxu1  ;;  %v4520_v53 = vmul.f32 %v5024_v24, %v5024_v24  ;;  %v4478_v60 = vsel %vm6789_vm0, %v5024_v24, 0.0 }
 0x2fd   : > { %4415 = vst.msk [vmem:[%s6579_s30 + $0xe0] sm:$0xff] %vm6870_vm4, %v4372_v62  ;;  %v4474_v12 = vsel %vm6871_vm15, %v4372_v62, 0.0  ;;  %v4518_v28 = vmul.f32 %v4372_v62, %v4372_v62  ;;  %v5025_v40 = vpop.f32.mrb[14].mxu1 }
 0x2fe   : > { %v4475_v22 = vadd.f32 %v4474_v12, %v4473_v21  ;;  %4418 = vst.msk [vmem:[%s6579_s30 + $0xf8] sm:$0xff] %vm6872_vm11, %v5025_v40  ;;  %v4375_v14 = vpop.f32.mrb[15].mxu1  ;;  %v4521_v1 = vmul.f32 %v5025_v40, %v5025_v40  ;;  %v4581_v59 = vsel %vm6877_vm7, %v4520_v53, 0.0  ;;  %v4480_v61 = vsel %vm6878_vm8, %v5025_v40, 0.0 }
 0x2ff   : > { %v4577_v6 = vsel %vm6873_vm5, %v4518_v28, 0.0  ;;  %4416 = vst.msk [vmem:[%s6579_s30 + $0xe8] sm:$0xff] %vm6874_vm1, %v4375_v14  ;;  %v4476_v58 = vsel %vm6875_vm10, %v4375_v14, 0.0  ;;  %v4519_v19 = vmul.f32 %v4375_v14, %v4375_v14 }
 0x300   : > { %v4578_v8 = vadd.f32 %v4577_v6, %v4576_v9  ;;  %v4477_v38 = vadd.f32 %v4476_v58, %v4475_v22  ;;  %v4583_v4 = vsel %vm6879_vm12, %v4521_v1, 0.0 }
 0x301   : > { %v4579_v45 = vsel %vm6876_vm3, %v4519_v19, 0.0 }
 0x302   : > { %v4479_v15 = vadd.f32 %v4478_v60, %v4477_v38  ;;  %v4580_v37 = vadd.f32 %v4579_v45, %v4578_v8 }
 0x304   : > { %v4481_v11 = vadd.f32 %v4480_v61, %v4479_v15  ;;  %v4582_v47 = vadd.f32 %v4581_v59, %v4580_v37 }
 0x306   : > { %v4482_v63 = vrot.slane %v4481_v11, 4  ;;  %v4584_v18 = vadd.f32 %v4583_v4, %v4582_v47 }
 0x308   : > { %v4483_v46 = vadd.f32 %v4482_v63, %v4481_v11  ;;  %v4585_v27 = vrot.slane %v4584_v18, 4 }
 0x30a   : > { %v4484_v55 = vrot.slane %v4483_v46, 2  ;;  %v4586_v54 = vadd.f32 %v4585_v27, %v4584_v18 }
 0x30c   : > { %v4485_v51 = vadd.f32 %v4484_v55, %v4483_v46  ;;  %v4587_v5 = vrot.slane %v4586_v54, 2 }
 0x30e   : > { %v4486_v44 = vrot.slane %v4485_v51, 1  ;;  %v4588_v35 = vadd.f32 %v4587_v5, %v4586_v54 }
 0x310   : > { %v4487_v34 = vadd.f32 %v4486_v44, %v4485_v51  ;;  %v4589_v17 = vrot.slane %v4588_v35, 1 }
 0x312   : > { %4489 = vst.msk [vmem:[%s235_s8] sm:$0x1] %vm6880_vm2, %v4487_v34  ;;  %v4590_v52 = vadd.f32 %v4589_v17, %v4588_v35 }
 0x314   : > { %4591 = vst.msk [vmem:[%s235_s8 + $0x1] sm:$0x1] %vm6881_vm13, %v4590_v52 }
 0x315 PF: > { %s16_s18 = sadd.s32 1, %s5114_s18  }
 0x316   : > { %p13_p4 = scmp.ge.s32.totalorder %s16_s18, 4  }
 0x318   :  { %15 = sbr.rel (!%p13_p4) target bundleno = 1 (0x1), region = 81 }

// kernel: block_forward.3
= control target key start
LH: loop header
LB: loop body
LE: loop exit
PB: predicated region body
PF: predicated region fallthrough
CT: control target
= control target key end

     0   :  { %s5037_s18 = smov 0   ;;  %s6486_s0 = inlined_call_operand.vmem [shape: f32[2,16,16,4], index: 0, kind: input, shape index: {}]   ;;  %s6487_s1 = inlined_call_operand.vmem [shape: f32[1,4], index: 1, kind: input, shape index: {}]   ;;  %s6488_s2 = inlined_call_operand.vmem [shape: f32[1,4], index: 2, kind: input, shape index: {}]   ;;  %s6489_s3 = inlined_call_operand.vmem [shape: bf16[36,4], index: 3, kind: input, shape index: {}]   ;;  %s6490_s4 = inlined_call_operand.vmem [shape: f32[2,256,4], index: 4, kind: output, shape index: {0}]   ;;  %s6491_s5 = inlined_call_operand.vmem [shape: f32[2,2,4], index: 5, kind: output, shape index: {1}]  }
   0x1 LB: > { %s4568_s1 = sadd.s32 4294967295, %s4996_s18   ;;  %p4572_p0 = scmp.ge.s32.totalorder %s4996_s18, 1  ;;  %s4996_s18 = sphi %s5037_s18, %s16_s18  }
   0x2   : > { %p190_p1 = scmp.lt.s32.totalorder %s4996_s18, 3 }
   0x4   : > { %p191_p2 = pnand %p4572_p0, %p190_p1 }
   0x5   : > { %p222_p3 = scmp.lt.s32.totalorder (!%p191_p2), %s4568_s1, 1  ;;  %vm237_vm0 = vcmask (!%p191_p2), 27648   ;;  %vm6492_vm1 = vcmask (!%p191_p2), 24576   ;;  %vm246_vm2 = vsmask.f32 (!%p191_p2), 256  ;;  %v4998_v3 = vmov (!%p191_p2), 0  }
   0x6   : > { %194 = sbr.rel (%p191_p2) target bundleno = 769 (0x301), region = 36  ;;  %vm5047_vm3 = vmand (!%p191_p2), %vm6492_vm1, %vm246_vm2  ;;  %v251_v1 = vld [vmem:[#allocation2 + $0xc] sm:$0x1] (!%p191_p2)  ;;  %vm302_vm4 = vsmask.f32 (!%p191_p2), 7938  ;;  %vm1712_vm7 = vcmask (!%p191_p2), 1042432  }
   0x7   : > { %v252_v2 = vsel (!%p191_p2), %vm5047_vm3, 0, %v251_v1  ;;  %238 = vst.msk [vmem:[#allocation2] sm:$0xf] (!%p191_p2), %vm237_vm0, %v4998_v3  ;;  %239 = vst.msk [vmem:[#allocation2 + $0x4] sm:$0xf] (!%p191_p2), %vm237_vm0, %v4998_v3  ;;  %vm1713_vm8 = vcmask (!%p191_p2), 1046532  }
   0x8   : > { %253 = vst [vmem:[#allocation2 + $0xc] sm:$0x1] (!%p191_p2), %v252_v2  ;;  %240 = vst.msk [vmem:[#allocation2 + $0x8] sm:$0xf] (!%p191_p2), %vm237_vm0, %v4998_v3  ;;  %v254_v4 = vld [vmem:[#allocation2 + $0x18] sm:$0x1] (!%p191_p2) }
   0x9   : > { %242 = vst.msk [vmem:[#allocation2 + $0xcc] sm:$0xf] (!%p191_p2), %vm237_vm0, %v4998_v3  ;;  %243 = vst.msk [vmem:[#allocation2 + $0xd0] sm:$0xf] (!%p191_p2), %vm237_vm0, %v4998_v3  ;;  %v255_v5 = vsel (!%p191_p2), %vm5047_vm3, 0, %v254_v4  ;;  %s4999_s22 = smov (!%p191_p2), 12  }
   0xa   : > { %244 = vst.msk [vmem:[#allocation2 + $0xd4] sm:$0xf] (!%p191_p2), %vm237_vm0, %v4998_v3  ;;  %vm5073_vm5 = vmand (!%p191_p2), %vm6492_vm1, %vm302_vm4  ;;  %v257_v7 = vld [vmem:[#allocation2 + $0x24] sm:$0x1] (!%p191_p2)  ;;  %v307_v8 = vld [vmem:[#allocation2 + $0x14] sm:$0x1] (!%p191_p2) }
   0xb   : > { %256 = vst [vmem:[#allocation2 + $0x18] sm:$0x1] (!%p191_p2), %v255_v5  ;;  %v258_v12 = vsel (!%p191_p2), %vm5047_vm3, 0, %v257_v7  ;;  %v308_v13 = vsel (!%p191_p2), %vm5073_vm5, 0, %v307_v8  ;;  %vm486_vm6 = vsmask.f32 (!%p191_p2), 4368  ;;  %vm5100_vm10 = vmor (!%p191_p2), %vm1712_vm7, %vm1713_vm8 }
   0xc   : > { %259 = vst [vmem:[#allocation2 + $0x24] sm:$0x1] (!%p191_p2), %v258_v12  ;;  %309 = vst [vmem:[#allocation2 + $0x14] sm:$0x1] (!%p191_p2), %v308_v13  ;;  %vm1116_vm12 = vsmask.f32 (!%p191_p2), 3328 }
   0xd   : > { %s6620_s1 = smov (!%p222_p3, %s4568_s1), 1  ;;  %vm5088_vm9 = vmor %vm246_vm2, %vm486_vm6  ;;  %vm1117_vm13 = vsmask.f32 7440  ;;  %v310_v3 = vld [vmem:[#allocation2 + $0x20] sm:$0x1]  ;;  %s5000_s23 = smov 8  }
   0xe   : > { %s4823_s2 = sshll.u32 %s6620_s1, 8  ;;  %v1616_v27 = vld [vmem:[#allocation2] sm:$0xe]  ;;  %v1617_v33 = vld [vmem:[#allocation2 + $0x4] sm:$0xf]  ;;  %vm5106_vm11 = vmand %vm237_vm0, %vm302_vm4  ;;  %s5001_s24 = smov 24  }
   0xf   : > { %s5069_s21 = scalar_lea.vmem %s6486_s0, %s4823_s2  ;;  %v304_v26 = vld [vmem:[#allocation2 + $0x8] sm:$0x1]  ;;  %v4642_v35 = vrot.slane %v1616_v27, 9  ;;  %v811_v37 = vld [vmem:[#allocation2 + $0xc] sm:$0xf]  ;;  %v1717_v38 = vrot.slane %v1617_v33, 5  ;;  %vm5166_vm14 = vmor %vm1116_vm12, %vm1117_vm13  ;;  %s6321_s13 = scalar_lea.vmem %s6490_s4, %s4823_s2 }
  0x10   : > { %v358_v9 = vld [vmem:[%s5069_s21] sm:$0xff]  ;;  %v359_v10 = vld [vmem:[%s5069_s21 + $0x8] sm:$0xff]  ;;  %v360_v11 = vld [vmem:[%s5069_s21 + $0x10] sm:$0xff]  ;;  %v305_v32 = vsel %vm5073_vm5, 0, %v304_v26  ;;  %s5002_s25 = smov 4   ;;  %s5003_s26 = smov 20  }
  0x11   : > { %v4825_v14 = vpack.c.bf16 %v358_v9, %v358_v9  ;;  %v4826_v15 = vpack.c.bf16 %v359_v10, %v359_v10  ;;  %v361_v16 = vld [vmem:[%s5069_s21 + $0x18] sm:$0xff]  ;;  %v362_v17 = vld [vmem:[%s5069_s21 + $0x20] sm:$0xff]  ;;  %v4827_v18 = vpack.c.bf16 %v360_v11, %v360_v11  ;;  %v363_v20 = vld [vmem:[%s5069_s21 + $0x28] sm:$0xff]  ;;  %306 = vst [vmem:[#allocation2 + $0x8] sm:$0x1] %v305_v32  ;;  %v5112_v48 = vsel %vm5100_vm10, %v4642_v35, %v1717_v38  ;;  %s5004_s27 = smov 32  }
  0x12   : > { %v4828_v19 = vpack.c.bf16 %v361_v16, %v361_v16  ;;  %v5092_v28 = vpack.c.bf16 %v362_v17, %v362_v17  ;;  %v5094_v29 = vpack.c.bf16 %v363_v20, %v363_v20  ;;  %v248_v46 = vld [vmem:[#allocation2] sm:$0x1]  ;;  %v1069_v47 = vld [vmem:[#allocation2 + $0x4] sm:$0xf]  ;;  %v1719_v49 = vrot.slane %v1717_v38, 4  ;;  %s5005_s28 = smov 16  }
  0x13   : > { %v489_v21 = vshrl.u32 %v4825_v14, 16  ;;  %v492_v22 = vshll.u32 %v4825_v14, 16  ;;  %v497_v23 = vshrl.u32 %v4826_v15, 16  ;;  %v500_v24 = vshll.u32 %v4826_v15, 16  ;;  %v818_v55 = vld [vmem:[#allocation2 + $0x18] sm:$0xf] }
  0x14   : > { %v506_v39 = vshrl.u32 %v4827_v18, 16  ;;  %v509_v40 = vshll.u32 %v4827_v18, 16  ;;  %v514_v41 = vshrl.u32 %v4828_v19, 16  ;;  %v517_v54 = vshll.u32 %v4828_v19, 16  ;;  %v815_v61 = vld [vmem:[#allocation2 + $0x14] sm:$0x1] }
  0x15   : > { %v491_v30 = vrot.slane %v489_v21, 7  ;;  %v499_v31 = vrot.slane %v497_v23, 7  ;;  %v249_v56 = vsel %vm5047_vm3, 0, %v248_v46  ;;  %v1129_v60 = vshll.u32 %v1069_v47, 16  ;;  %v313_v9 = vld [vmem:[#allocation2 + $0x2c] sm:$0x1] }
  0x16   : > { %v508_v50 = vrot.slane %v506_v39, 7  ;;  %v5114_v51 = vrot.slane %v514_v41, 7  ;;  %250 = vst [vmem:[#allocation2] sm:$0x1] %v249_v56  ;;  %v1133_v63 = vshrl.u32 %v1069_v47, 16  ;;  %v523_v1 = vshrl.u32 %v5092_v28, 16 }
  0x17   : > { %v494_v42 = vor.u32 %v492_v22, %v491_v30  ;;  %v495_v43 = vrot.slane %v491_v30, 4  ;;  %v502_v44 = vor.u32 %v500_v24, %v499_v31  ;;  %v504_v45 = vrot.slane %v499_v31, 4  ;;  %v825_v19 = vld [vmem:[#allocation2 + $0x24] sm:$0xf]  ;;  %v364_v30 = vld [vmem:[%s5069_s21 + $0x30] sm:$0xff]  ;;  %s5006_s29 = smov 28  }
  0x18   : > { %v511_v57 = vor.u32 %v509_v40, %v508_v50  ;;  %v512_v58 = vrot.slane %v508_v50, 4  ;;  %v521_v59 = vrot.slane %v5114_v51, 4  ;;  %v519_v62 = vor.u32 %v517_v54, %v5114_v51  ;;  %v1618_v10 = vld [vmem:[#allocation2 + $0x8] sm:$0x1]  ;;  %v6231_v6 = vld [vmem:[#allocation2 + $0xd0] sm:$0xf] }
  0x19   : > { %v503_v52 = vsel %vm5088_vm9, %v495_v43, %v502_v44  ;;  %v812_v53 = vsel %vm5106_vm11, %v494_v42, %v811_v37  ;;  %v526_v2 = vshll.u32 %v5092_v28, 16  ;;  %v5129_v5 = vrot.slane %v1129_v60, 5  ;;  %v1070_v12 = vld [vmem:[#allocation2 + $0x8] sm:$0x1]  ;;  %v260_v37 = vld [vmem:[#allocation2 + $0x30] sm:$0x1] }
  0x1a   : > { %813 = vst [vmem:[#allocation2 + $0xc] sm:$0xf] %v812_v53  ;;  %814 = vst.msk [vmem:[#allocation2 + $0x10] sm:$0xf] %vm237_vm0, %v503_v52  ;;  %v819_v4 = vsel %vm5106_vm11, %v511_v57, %v818_v55  ;;  %v531_v7 = vshrl.u32 %v5094_v29, 16  ;;  %v534_v8 = vshll.u32 %v5094_v29, 16  ;;  %v520_v11 = vsel %vm5088_vm9, %v512_v58, %v519_v62 }
  0x1b   : > { %820 = vst [vmem:[#allocation2 + $0x18] sm:$0xf] %v819_v4  ;;  %v1135_v13 = vrot.slane %v1133_v63, 4  ;;  %v525_v14 = vrot.slane %v523_v1, 7  ;;  %v816_v15 = vsel %vm5047_vm3, %v504_v45, %v815_v61  ;;  %v1720_v16 = vrot.slane %v1618_v10, 5  ;;  %v365_v58 = vld [vmem:[%s5069_s21 + $0x38] sm:$0xff] }
  0x1c   : > { %821 = vst.msk [vmem:[#allocation2 + $0x1c] sm:$0xf] %vm237_vm0, %v520_v11  ;;  %v1139_v17 = vshll.u32 %v1070_v12, 16  ;;  %v5138_v18 = vrot.slane %v531_v7, 7  ;;  %817 = vst [vmem:[#allocation2 + $0x14] sm:$0x1] %v816_v15  ;;  %v5162_v46 = vpack.c.bf16 %v364_v30, %v364_v30  ;;  %v5195_v51 = vpack.c.bf16 %v365_v58, %v365_v58 }
  0x1d   : > { %v311_v20 = vsel %vm5073_vm5, 0, %v310_v3  ;;  %v1136_v21 = vor.u32 %v1135_v13, %v5129_v5  ;;  %v528_v22 = vor.u32 %v526_v2, %v525_v14  ;;  %v529_v23 = vrot.slane %v525_v14, 4  ;;  %v1068_v38 = vld [vmem:[#allocation2] sm:$0xf]  ;;  %s4577_s14 = sshll.u32 %s6620_s1, 1 }
  0x1e   : > { %312 = vst [vmem:[#allocation2 + $0x20] sm:$0x1] %v311_v20  ;;  %v314_v24 = vsel %vm5073_vm5, 0, %v313_v9  ;;  %v1721_v26 = vsel %vm5100_vm10, %v1719_v49, %v1720_v16  ;;  %v5147_v27 = vrot.slane %v1139_v17, 5  ;;  %v536_v28 = vor.u32 %v534_v8, %v5138_v18  ;;  %s235_s17 = scalar_lea.vmem %s6491_s5, %s4577_s14 }
  0x1f   : > { %v538_v29 = vrot.slane %v5138_v18, 4  ;;  %315 = vst [vmem:[#allocation2 + $0x2c] sm:$0x1] %v314_v24  ;;  %v4658_v32 = vcombine.low %v5112_v48, %v1721_v26  ;;  %v5153_v33 = vrot.slane %v1136_v21, 4  ;;  %v826_v35 = vsel %vm5106_vm11, %v528_v22, %v825_v19 }
  0x20   : > { %v537_v39 = vsel %vm5088_vm9, %v529_v23, %v536_v28  ;;  %827 = vst [vmem:[#allocation2 + $0x24] sm:$0xf] %v826_v35  ;;  %v1120_v42 = vshrl.u32 %v1068_v38, 16  ;;  %v1123_v43 = vshll.u32 %v1068_v38, 16  ;;  %v261_v57 = vsel %vm5047_vm3, 0, %v260_v37 }
  0x21   : > { %v4939_v31 = vld [vmem:[#allocation2 + $0xc] sm:$0xff]   ;;  %1875 = vrot.lane.b32.xlu1 %v4658_v32, %s5000_s23  ;;  %828 = vst.msk [vmem:[#allocation2 + $0x28] sm:$0xf] %vm237_vm0, %v537_v39  ;;  %262 = vst [vmem:[#allocation2 + $0x30] sm:$0x1] %v261_v57  ;;  %v540_v63 = vshrl.u32 %v5162_v46, 16  ;;  %v1142_v9 = vsel %vm5166_vm14, %v5153_v33, %v5147_v27 }
  0x22   : > { %v2662_v40 = vld [vmem:[#allocation2 + $0xc] sm:$0xe]  ;;  %v2663_v41 = vld [vmem:[#allocation2 + $0x10] sm:$0xf]  ;;  %2052 = vrot.lane.b32.xlu0 %v4939_v31, %s4999_s22  ;;  %v1122_v50 = vrot.slane %v1120_v42, 4  ;;  %v1125_v54 = vrot.slane %v1123_v43, 5 }
  0x23   : > { %v4706_v44 = vrot.slane %v2662_v40, 9  ;;  %v1619_v45 = vld [vmem:[#allocation2 + $0xc] sm:$0xe]  ;;  %v2760_v47 = vrot.slane %v2663_v41, 5  ;;  %v4940_v49 = vld [vmem:[#allocation2 + $0x18] sm:$0xff]   ;;  %v5192_v19 = vrot.slane %v540_v63, 7 }
  0x24   : > { %v4643_v48 = vrot.slane %v1619_v45, 9  ;;  %v4941_v52 = vld [vmem:[#allocation2 + $0x18] sm:$0xff]   ;;  %v2664_v55 = vld [vmem:[#allocation2 + $0x14] sm:$0x1]  ;;  %v1620_v61 = vld [vmem:[#allocation2 + $0x10] sm:$0xf]  ;;  %v1126_v1 = vor.u32 %v1125_v54, %v1122_v50 }
  0x25   : > { %v2762_v56 = vrot.slane %v2760_v47, 4  ;;  %v2763_v60 = vrot.slane %v2664_v55, 5  ;;  %v1621_v62 = vld [vmem:[#allocation2 + $0x14] sm:$0x1]  ;;  %2054 = vrot.lane.b32.xlu1 %v4941_v52, %s4999_s22  ;;  %v5178_v2 = vsel %vm5100_vm10, %v4706_v44, %v2760_v47  ;;  %v1724_v3 = vrot.slane %v1620_v61, 5 }
  0x26   : > { %3096 = vrot.lane.b32.xlu0 %v4940_v49, %s5001_s24  ;;  %v1727_v4 = vrot.slane %v1621_v62, 5  ;;  %v822_v7 = vld [vmem:[#allocation2 + $0x20] sm:$0x1]  ;;  %v3706_v8 = vld [vmem:[#allocation2 + $0x18] sm:$0xe]  ;;  %v1127_v14 = vrot.slane %v1126_v1, 4 }
  0x27   : > { %v2764_v10 = vsel %vm5100_vm10, %v2762_v56, %v2763_v60  ;;  %v823_v11 = vsel %vm5047_vm3, %v521_v59, %v822_v7  ;;  %v3707_v12 = vld [vmem:[#allocation2 + $0x1c] sm:$0xf]  ;;  %v4770_v13 = vrot.slane %v3706_v8, 9  ;;  %v1725_v16 = vsel %vm5100_vm10, %v4643_v48, %v1724_v3  ;;  %v2665_v22 = vld [vmem:[#allocation2 + $0x18] sm:$0xe] }
  0x28   : > { %v4942_v15 = vld [vmem:[#allocation2 + $0x24] sm:$0xff]   ;;  %v1726_v17 = vrot.slane %v1724_v3, 4  ;;  %824 = vst [vmem:[#allocation2 + $0x20] sm:$0x1] %v823_v11  ;;  %v4722_v20 = vcombine.low %v5178_v2, %v2764_v10  ;;  %v3804_v21 = vrot.slane %v3707_v12, 5  ;;  %v543_v59 = vshll.u32 %v5162_v46, 16 }
  0x29   : > { %v2666_v23 = vld [vmem:[#allocation2 + $0x1c] sm:$0xf]  ;;  %v1132_v24 = vsel %vm5166_vm14, %v1127_v14, %v5129_v5  ;;  %3098 = vrot.lane.b32.xlu1 %v4942_v15, %s5001_s24  ;;  %v4707_v27 = vrot.slane %v2665_v22, 9  ;;  %v829_v30 = vld [vmem:[#allocation2 + $0x2c] sm:$0x1]  ;;  %vm6493_vm15 = vcmask 31744  }
  0x2a   : > { %v1728_v26 = vsel %vm5100_vm10, %v1726_v17, %v1727_v4  ;;  %v2767_v28 = vrot.slane %v2666_v23, 5  ;;  %v3709_v31 = vld [vmem:[#allocation2 + $0x24] sm:$0xe]  ;;  %v4626_v32 = vcombine.low %v1132_v24, %v1142_v9  ;;  %v3805_v35 = vsel %vm5100_vm10, %v4770_v13, %v3804_v21  ;;  %v3710_v38 = vld [vmem:[#allocation2 + $0x28] sm:$0xf] }
  0x2b   : > { %v4659_v33 = vcombine.low %v1725_v16, %v1728_v26  ;;  %v3806_v37 = vrot.slane %v3804_v21, 4  ;;  %v2120_v39 = vld [vmem:[#allocation2 + $0x18] sm:$0xf]  ;;  %v830_v41 = vsel %vm5047_vm3, %v538_v29, %v829_v30  ;;  %v4771_v42 = vrot.slane %v3709_v31, 9  ;;  %v2121_v43 = vld [vmem:[#allocation2 + $0x1c] sm:$0xf] }
  0x2c   : > { %v2768_v5 = vsel %vm5100_vm10, %v4707_v27, %v2767_v28  ;;  %v2769_v40 = vrot.slane %v2767_v28, 4  ;;  %v1071_v44 = vld [vmem:[#allocation2 + $0xc] sm:$0xf]  ;;  %1551 = vrot.lane.b32.xlu0 %v4626_v32, %s5002_s25  ;;  %831 = vst [vmem:[#allocation2 + $0x2c] sm:$0x1] %v830_v41  ;;  %v3811_v45 = vrot.slane %v3710_v38, 5  ;;  %v5217_v60 = vor.u32 %v543_v59, %v5192_v19 }
  0x2d   : > { %v2190_v46 = vshrl.u32 %v2120_v39, 16  ;;  %v2193_v47 = vshll.u32 %v2120_v39, 16  ;;  %v2199_v48 = vshll.u32 %v2121_v43, 16  ;;  %v1072_v49 = vld [vmem:[#allocation2 + $0x10] sm:$0xf]  ;;  %1877 = vrot.lane.b32.xlu1 %v4659_v33, %s5000_s23  ;;  %v2203_v50 = vshrl.u32 %v2121_v43, 16 }
  0x2e   : > { %v1144_v52 = vshrl.u32 %v1071_v44, 16  ;;  %v1147_v18 = vshll.u32 %v1071_v44, 16  ;;  %v1153_v54 = vshll.u32 %v1072_v49, 16  ;;  %v3812_v56 = vsel %vm5100_vm10, %v4771_v42, %v3811_v45  ;;  %v1073_v7 = vld [vmem:[#allocation2 + $0x14] sm:$0x1] }
  0x2f   : > { %v3708_v55 = vld [vmem:[#allocation2 + $0x20] sm:$0x1]  ;;  %v3813_v57 = vrot.slane %v3811_v45, 4  ;;  %v2192_v58 = vrot.slane %v2190_v46, 4  ;;  %v2195_v1 = vrot.slane %v2193_v47, 5  ;;  %v2201_v2 = vrot.slane %v2199_v48, 5 }
  0x30   : > { %v2667_v29 = vld [vmem:[#allocation2 + $0x20] sm:$0x1]  ;;  %v3807_v61 = vrot.slane %v3708_v55, 5  ;;  %2918 = vrot.lane.b32.xlu0 %v4722_v20, %s5003_s26  ;;  %v2205_v3 = vrot.slane %v2203_v50, 4  ;;  %v1146_v8 = vrot.slane %v1144_v52, 4  ;;  %v1149_v9 = vrot.slane %v1147_v18, 5 }
  0x31   : > { %v2770_v62 = vrot.slane %v2667_v29, 5  ;;  %v2122_v63 = vld [vmem:[#allocation2 + $0x20] sm:$0x1]  ;;  %v2196_v12 = vor.u32 %v2195_v1, %v2192_v58  ;;  %v1155_v13 = vrot.slane %v1153_v54, 5  ;;  %v3164_v14 = vld [vmem:[#allocation2 + $0x24] sm:$0xf] }
  0x32   : > { %v2209_v4 = vshll.u32 %v2122_v63, 16  ;;  %v3808_v10 = vsel %vm5100_vm10, %v3806_v37, %v3807_v61  ;;  %v2206_v17 = vor.u32 %v2205_v3, %v2201_v2  ;;  %v1150_v23 = vor.u32 %v1149_v9, %v1146_v8  ;;  %v3165_v28 = vld [vmem:[#allocation2 + $0x28] sm:$0xf]  ;;  %v2117_v42 = vld [vmem:[#allocation2 + $0xc] sm:$0xf] }
  0x33   : > { %v2771_v11 = vsel %vm5100_vm10, %v2769_v40, %v2770_v62  ;;  %v4786_v15 = vcombine.low %v3805_v35, %v3808_v10  ;;  %v3711_v22 = vld [vmem:[#allocation2 + $0x2c] sm:$0x1]  ;;  %v2197_v20 = vrot.slane %v2196_v12, 4  ;;  %v1157_v59 = vshrl.u32 %v1072_v49, 16  ;;  %v2118_v43 = vld [vmem:[#allocation2 + $0x10] sm:$0xf] }
  0x34   : > { %v4723_v16 = vcombine.low %v2768_v5, %v2771_v11  ;;  %v2211_v21 = vrot.slane %v2209_v4, 5  ;;  %v1163_v24 = vshll.u32 %v1073_v7, 16  ;;  %v3814_v26 = vrot.slane %v3711_v22, 5  ;;  %v3166_v38 = vld [vmem:[#allocation2 + $0x2c] sm:$0x1] }
  0x35   : > { %3962 = vrot.lane.b32.xlu0 %v4786_v15, %s5004_s27  ;;  %v2207_v27 = vrot.slane %v2206_v17, 4  ;;  %v3234_v30 = vshrl.u32 %v3164_v14, 16  ;;  %v3237_v31 = vshll.u32 %v3164_v14, 16  ;;  %v2202_v32 = vsel %vm5166_vm14, %v2197_v20, %v2201_v2  ;;  %v2119_v54 = vld [vmem:[#allocation2 + $0x14] sm:$0x1] }
  0x36   : > { %2920 = vrot.lane.b32.xlu1 %v4723_v16, %s5003_s26  ;;  %v1151_v33 = vrot.slane %v1150_v23, 4  ;;  %v1159_v35 = vrot.slane %v1157_v59, 4  ;;  %v1165_v37 = vrot.slane %v1163_v24, 5  ;;  %v3815_v39 = vsel %vm5100_vm10, %v3813_v57, %v3814_v26  ;;  %v1074_v63 = vld [vmem:[#allocation2 + $0x18] sm:$0xf] }
  0x37   : > { %v2212_v5 = vsel %vm5166_vm14, %v2207_v27, %v2211_v21  ;;  %v3236_v40 = vrot.slane %v3234_v30, 4  ;;  %v3239_v41 = vrot.slane %v3237_v31, 5  ;;  %v4787_v44 = vcombine.low %v3812_v56, %v3815_v39  ;;  %v1075_v7 = vld [vmem:[#allocation2 + $0x1c] sm:$0xf]  ;;  %v1076_v14 = vld [vmem:[#allocation2 + $0x20] sm:$0x1] }
  0x38   : > { %v4691_v45 = vcombine.low %v2202_v32, %v2212_v5  ;;  %v1156_v46 = vsel %vm5166_vm14, %v1151_v33, %v1155_v13  ;;  %v1160_v47 = vor.u32 %v1159_v35, %v1155_v13  ;;  %v3243_v49 = vshll.u32 %v3165_v28, 16  ;;  %v3161_v23 = vld [vmem:[#allocation2 + $0x18] sm:$0xf] }
  0x39   : > { %v3240_v48 = vor.u32 %v3239_v41, %v3236_v40  ;;  %v3247_v50 = vshrl.u32 %v3165_v28, 16  ;;  %v3253_v52 = vshll.u32 %v3166_v38, 16  ;;  %3964 = vrot.lane.b32.xlu0 %v4787_v44, %s5004_s27  ;;  %v2166_v55 = vshrl.u32 %v2117_v42, 16  ;;  %v3162_v28 = vld [vmem:[#allocation2 + $0x1c] sm:$0xf] }
  0x3a   : > { %2599 = vrot.lane.b32.xlu1 %v4691_v45, %s5005_s28  ;;  %v1161_v18 = vrot.slane %v1160_v47, 4  ;;  %v2169_v29 = vshll.u32 %v2117_v42, 16  ;;  %v2175_v57 = vshll.u32 %v2118_v43, 16  ;;  %v3245_v58 = vrot.slane %v3243_v49, 5  ;;  %v3163_v41 = vld [vmem:[#allocation2 + $0x20] sm:$0x1] }
  0x3b   : > { %v3241_v56 = vrot.slane %v3240_v48, 4  ;;  %v3249_v61 = vrot.slane %v3247_v50, 4  ;;  %v3255_v62 = vrot.slane %v3253_v52, 5  ;;  %v2168_v2 = vrot.slane %v2166_v55, 4  ;;  %v1077_v48 = vld [vmem:[#allocation2 + $0x24] sm:$0xf] }
  0x3c   : > { %v1166_v1 = vsel %vm5166_vm14, %v1161_v18, %v1165_v37  ;;  %v2171_v3 = vrot.slane %v2169_v29, 5  ;;  %v2177_v4 = vrot.slane %v2175_v57, 5  ;;  %v2179_v11 = vshrl.u32 %v2118_v43, 16 }
  0x3d   : > { %v4627_v8 = vcombine.low %v1156_v46, %v1166_v1  ;;  %v3246_v9 = vsel %vm5166_vm14, %v3241_v56, %v3245_v58  ;;  %v3250_v10 = vor.u32 %v3249_v61, %v3245_v58  ;;  %v2185_v13 = vshll.u32 %v2119_v54, 16  ;;  %v1078_v54 = vld [vmem:[#allocation2 + $0x28] sm:$0xf] }
  0x3e   : > { %v2172_v12 = vor.u32 %v2171_v3, %v2168_v2  ;;  %v1168_v15 = vshrl.u32 %v1074_v63, 16  ;;  %v1171_v16 = vshll.u32 %v1074_v63, 16  ;;  %v2181_v21 = vrot.slane %v2179_v11, 4  ;;  %v1079_v63 = vld [vmem:[#allocation2 + $0x2c] sm:$0x1] }
  0x3f   : > { %1553 = vrot.lane.b32.xlu0 %v4627_v8, %s5002_s25  ;;  %v3251_v17 = vrot.slane %v3250_v10, 4  ;;  %v1177_v22 = vshll.u32 %v1075_v7, 16  ;;  %v1181_v20 = vshrl.u32 %v1075_v7, 16  ;;  %v2187_v24 = vrot.slane %v2185_v13, 5  ;;  %v1622_v2 = vld [vmem:[#allocation2 + $0x18] sm:$0xe] }
  0x40   : > { %v2173_v59 = vrot.slane %v2172_v12, 4  ;;  %v1170_v26 = vrot.slane %v1168_v15, 4  ;;  %v1173_v27 = vrot.slane %v1171_v16, 5  ;;  %v2182_v31 = vor.u32 %v2181_v21, %v2177_v4  ;;  %v1624_v10 = vld [vmem:[#allocation2 + $0x20] sm:$0x1] }
  0x41   : > { %v3256_v30 = vsel %vm5166_vm14, %v3251_v17, %v3255_v62  ;;  %v1179_v32 = vrot.slane %v1177_v22, 5  ;;  %v1183_v33 = vrot.slane %v1181_v20, 4  ;;  %v1187_v39 = vshll.u32 %v1076_v14, 16  ;;  %v1625_v15 = vld [vmem:[#allocation2 + $0x24] sm:$0xe] }
  0x42   : > { %v4755_v35 = vcombine.low %v3246_v9, %v3256_v30  ;;  %v2178_v37 = vsel %vm5166_vm14, %v2173_v59, %v2177_v4  ;;  %v1174_v38 = vor.u32 %v1173_v27, %v1170_v26  ;;  %v2183_v5 = vrot.slane %v2182_v31, 4  ;;  %v1623_v9 = vld [vmem:[#allocation2 + $0x1c] sm:$0xf]  ;;  %v1626_v16 = vld [vmem:[#allocation2 + $0x28] sm:$0xf] }
  0x43   : > { %v1184_v40 = vor.u32 %v1183_v33, %v1179_v32  ;;  %v3210_v42 = vshrl.u32 %v3161_v23, 16  ;;  %v3213_v43 = vshll.u32 %v3161_v23, 16  ;;  %v1189_v45 = vrot.slane %v1187_v39, 5  ;;  %v1627_v17 = vld [vmem:[#allocation2 + $0x2c] sm:$0x1] }
  0x44   : > { %3643 = vrot.lane.b32.xlu1 %v4755_v35, %s5006_s29  ;;  %v1175_v44 = vrot.slane %v1174_v38, 4  ;;  %v3219_v46 = vshll.u32 %v3162_v28, 16  ;;  %v3223_v47 = vshrl.u32 %v3162_v28, 16  ;;  %v2188_v49 = vsel %vm5166_vm14, %v2183_v5, %v2187_v24  ;;  %v832_v33 = vld [vmem:[#allocation2 + $0x30] sm:$0xf] }
  0x45   : > { %v1185_v50 = vrot.slane %v1184_v40, 4  ;;  %v3212_v52 = vrot.slane %v3210_v42, 4  ;;  %v3215_v18 = vrot.slane %v3213_v43, 5  ;;  %v4690_v55 = vcombine.low %v2178_v37, %v2188_v49  ;;  %v2123_v5 = vld [vmem:[#allocation2 + $0x24] sm:$0xf] }
  0x46   : > { %v1180_v29 = vsel %vm5166_vm14, %v1175_v44, %v1179_v32  ;;  %v3221_v57 = vrot.slane %v3219_v46, 5  ;;  %v3225_v56 = vrot.slane %v3223_v47, 4  ;;  %v3229_v62 = vshll.u32 %v3163_v41, 16  ;;  %v2124_v44 = vld [vmem:[#allocation2 + $0x28] sm:$0xf] }
  0x47   : > { %v1190_v58 = vsel %vm5166_vm14, %v1185_v50, %v1189_v45  ;;  %v3216_v61 = vor.u32 %v3215_v18, %v3212_v52  ;;  %v1192_v1 = vshrl.u32 %v1077_v48, 16  ;;  %2597 = vrot.lane.b32.xlu0 %v4690_v55, %s5005_s28  ;;  %v1195_v7 = vshll.u32 %v1077_v48, 16  ;;  %v2125_v49 = vld [vmem:[#allocation2 + $0x2c] sm:$0x1]  ;;  %v316_v55 = vld [vmem:[#allocation2 + $0x38] sm:$0x1] }
  0x48   : > { %v4628_v3 = vcombine.low %v1180_v29, %v1190_v58  ;;  %v3226_v4 = vor.u32 %v3225_v56, %v3221_v57  ;;  %v1201_v8 = vshll.u32 %v1078_v54, 16  ;;  %v3231_v12 = vrot.slane %v3229_v62, 5  ;;  %v366_v29 = vld [vmem:[%s5069_s21 + $0x40] sm:$0xff] }
  0x49   : > { %v3217_v11 = vrot.slane %v3216_v61, 4  ;;  %v1194_v13 = vrot.slane %v1192_v1, 4  ;;  %v1205_v14 = vshrl.u32 %v1078_v54, 16  ;;  %v1197_v22 = vrot.slane %v1195_v7, 5  ;;  %v367_v61 = vld [vmem:[%s5069_s21 + $0x48] sm:$0xff] }
  0x4a   : > { %1555 = vrot.lane.b32.xlu1 %v4628_v3, %s5002_s25  ;;  %v3227_v21 = vrot.slane %v3226_v4, 4  ;;  %v1203_v20 = vrot.slane %v1201_v8, 5  ;;  %v1211_v23 = vshll.u32 %v1079_v63, 16  ;;  %v4644_v26 = vrot.slane %v1622_v2, 9  ;;  %v263_v3 = vld [vmem:[#allocation2 + $0x3c] sm:$0x1] }
  0x4b   : > { %v3222_v59 = vsel %vm5166_vm14, %v3217_v11, %v3221_v57  ;;  %v1207_v24 = vrot.slane %v1205_v14, 4  ;;  %v1731_v27 = vrot.slane %v1623_v9, 5  ;;  %v1198_v30 = vor.u32 %v1197_v22, %v1194_v13  ;;  %v4943_v7 = vld [vmem:[#allocation2 + $0x24] sm:$0xff]  }
  0x4c   : > { %v3232_v28 = vsel %vm5166_vm14, %v3227_v21, %v3231_v12  ;;  %v1213_v31 = vrot.slane %v1211_v23, 5  ;;  %v1734_v32 = vrot.slane %v1624_v10, 5  ;;  %v4645_v41 = vrot.slane %v1625_v15, 9  ;;  %v2668_v9 = vld [vmem:[#allocation2 + $0x24] sm:$0xe] }
  0x4d   : > { %v4754_v35 = vcombine.low %v3222_v59, %v3232_v28  ;;  %v1208_v37 = vor.u32 %v1207_v24, %v1203_v20  ;;  %v1732_v38 = vsel %vm5100_vm10, %v4644_v26, %v1731_v27  ;;  %v1733_v39 = vrot.slane %v1731_v27, 4  ;;  %v2669_v10 = vld [vmem:[#allocation2 + $0x28] sm:$0xf]  ;;  %v2670_v15 = vld [vmem:[#allocation2 + $0x2c] sm:$0x1] }
  0x4e   : > { %v1199_v40 = vrot.slane %v1198_v30, 4  ;;  %v1738_v42 = vrot.slane %v1626_v16, 5  ;;  %v1741_v43 = vrot.slane %v1627_v17, 5  ;;  %v546_v47 = vrot.slane %v5192_v19, 4 }
  0x4f   : > { %3641 = vrot.lane.b32.xlu0 %v4754_v35, %s5006_s29  ;;  %v1209_v45 = vrot.slane %v1208_v37, 4  ;;  %v1735_v46 = vsel %vm5100_vm10, %v1733_v39, %v1734_v32  ;;  %v548_v48 = vshrl.u32 %v5195_v51, 16  ;;  %v551_v19 = vshll.u32 %v5195_v51, 16 }
  0x50   : > { %v1204_v50 = vsel %vm5166_vm14, %v1199_v40, %v1203_v20  ;;  %v4660_v52 = vcombine.low %v1732_v38, %v1735_v46  ;;  %v1739_v18 = vsel %vm5100_vm10, %v4645_v41, %v1738_v42  ;;  %v1740_v54 = vrot.slane %v1738_v42, 4 }
  0x51   : > { %v1214_v57 = vsel %vm5166_vm14, %v1209_v45, %v1213_v31  ;;  %v5272_v56 = vrot.slane %v548_v48, 7  ;;  %v833_v58 = vsel %vm5106_vm11, %v5217_v60, %v832_v33  ;;  %v2214_v1 = vshrl.u32 %v2123_v5, 16 }
  0x52   : > { %v4629_v62 = vcombine.low %v1204_v50, %v1214_v57  ;;  %v1742_v63 = vsel %vm5100_vm10, %v1740_v54, %v1741_v43  ;;  %834 = vst [vmem:[#allocation2 + $0x30] sm:$0xf] %v833_v58  ;;  %v2217_v2 = vshll.u32 %v2123_v5, 16  ;;  %v2223_v51 = vshll.u32 %v2124_v44, 16 }
  0x53   : > { %1879 = vrot.lane.b32.xlu0 %v4660_v52, %s5000_s23  ;;  %v4661_v4 = vcombine.low %v1739_v18, %v1742_v63  ;;  %v553_v8 = vor.u32 %v551_v19, %v5272_v56  ;;  %v4833_v11 = vpack.c.bf16 %v366_v29, %v366_v29  ;;  %v2216_v60 = vrot.slane %v2214_v1, 4 }
  0x54   : > { %1557 = vrot.lane.b32.xlu1 %v4629_v62, %s5002_s25  ;;  %v2219_v12 = vrot.slane %v2217_v2, 5  ;;  %v2227_v13 = vshrl.u32 %v2124_v44, 16  ;;  %v2233_v14 = vshll.u32 %v2125_v49, 16  ;;  %v2225_v17 = vrot.slane %v2223_v51, 5 }
  0x55   : > { %v554_v16 = vsel %vm5088_vm9, %v546_v47, %v553_v8  ;;  %v317_v21 = vsel %vm5073_vm5, 0, %v316_v55  ;;  %v2774_v23 = vrot.slane %v2669_v10, 5  ;;  %v4834_v59 = vpack.c.bf16 %v367_v61, %v367_v61 }
  0x56   : > { %835 = vst.msk [vmem:[#allocation2 + $0x34] sm:$0xf] %vm237_vm0, %v554_v16  ;;  %v2220_v22 = vor.u32 %v2219_v12, %v2216_v60  ;;  %v2229_v20 = vrot.slane %v2227_v13, 4  ;;  %318 = vst [vmem:[#allocation2 + $0x38] sm:$0x1] %v317_v21  ;;  %v4708_v24 = vrot.slane %v2668_v9, 9 }
  0x57   : > { %2056 = vrot.lane.b32.xlu0 %v4943_v7, %s4999_s22  ;;  %v2777_v26 = vrot.slane %v2670_v15, 5  ;;  %v264_v27 = vsel %vm5047_vm3, 0, %v263_v3  ;;  %v557_v28 = vshrl.u32 %v4833_v11, 16  ;;  %v2235_v32 = vrot.slane %v2233_v14, 5 }
  0x58   : > { %1881 = vrot.lane.b32.xlu1 %v4661_v4, %s5000_s23  ;;  %v2221_v30 = vrot.slane %v2220_v22, 4  ;;  %v2230_v31 = vor.u32 %v2229_v20, %v2225_v17  ;;  %v2776_v33 = vrot.slane %v2774_v23, 4  ;;  %265 = vst [vmem:[#allocation2 + $0x3c] sm:$0x1] %v264_v27  ;;  %v555_v35 = vrot.slane %v5272_v56, 4 }
  0x59   : > { %v2126_v37 = vld [vmem:[#allocation2 + $0x30] sm:$0xf]  ;;  %v560_v38 = vshll.u32 %v4833_v11, 16  ;;  %v2775_v42 = vsel %vm5100_vm10, %v4708_v24, %v2774_v23  ;;  %v559_v44 = vrot.slane %v557_v28, 7  ;;  %v565_v45 = vshrl.u32 %v4834_v59, 16 }
  0x5a   : > { %v2226_v39 = vsel %vm5166_vm14, %v2221_v30, %v2225_v17  ;;  %v2231_v5 = vrot.slane %v2230_v31, 4  ;;  %v2238_v40 = vshrl.u32 %v2126_v37, 16  ;;  %v2241_v41 = vshll.u32 %v2126_v37, 16  ;;  %v2671_v49 = vld [vmem:[#allocation2 + $0x30] sm:$0xe] }
  0x5b   : > { %v2778_v43 = vsel %vm5100_vm10, %v2776_v33, %v2777_v26  ;;  %v562_v19 = vor.u32 %v560_v38, %v559_v44  ;;  %v5306_v63 = vrot.slane %v565_v45, 7  ;;  %v3167_v1 = vld [vmem:[#allocation2 + $0x30] sm:$0xf]  ;;  %v563_v2 = vrot.slane %v559_v44, 4  ;;  %v319_v11 = vld [vmem:[#allocation2 + $0x44] sm:$0x1] }
  0x5c   : > { %v2236_v46 = vsel %vm5166_vm14, %v2231_v5, %v2235_v32  ;;  %v2240_v47 = vrot.slane %v2238_v40, 4  ;;  %v2243_v48 = vrot.slane %v2241_v41, 5  ;;  %v4724_v57 = vcombine.low %v2775_v42, %v2778_v43  ;;  %v3712_v15 = vld [vmem:[#allocation2 + $0x30] sm:$0xe] }
  0x5d   : > { %v4944_v50 = vld [vmem:[#allocation2 + $0x30] sm:$0xff]   ;;  %v4692_v52 = vcombine.low %v2226_v39, %v2236_v46  ;;  %v836_v18 = vld [vmem:[#allocation2 + $0x38] sm:$0x1]  ;;  %v568_v3 = vshll.u32 %v4834_v59, 16  ;;  %v4709_v10 = vrot.slane %v2671_v49, 9  ;;  %v3258_v14 = vshrl.u32 %v3167_v1, 16 }
  0x5e   : > { %v837_v54 = vsel %vm5047_vm3, %v555_v35, %v836_v18  ;;  %v2127_v55 = vld [vmem:[#allocation2 + $0x34] sm:$0xf]  ;;  %v2244_v29 = vor.u32 %v2243_v48, %v2240_v47  ;;  %2058 = vrot.lane.b32.xlu1 %v4944_v50, %s4999_s22  ;;  %v572_v21 = vrot.slane %v5306_v63, 4  ;;  %v3261_v22 = vshll.u32 %v3167_v1, 16  ;;  %v5313_v59 = vld [vmem:[#allocation2 + $0x30] sm:$0xf] }
  0x5f   : > { %v2672_v56 = vld [vmem:[#allocation2 + $0x34] sm:$0xf]  ;;  %2601 = vrot.lane.b32.xlu0 %v4692_v52, %s5005_s28  ;;  %838 = vst [vmem:[#allocation2 + $0x38] sm:$0x1] %v837_v54  ;;  %v2247_v58 = vshll.u32 %v2127_v55, 16  ;;  %v2251_v61 = vshrl.u32 %v2127_v55, 16  ;;  %v570_v12 = vor.u32 %v568_v3, %v5306_v63 }
  0x60   : > { %v2781_v62 = vrot.slane %v2672_v56, 5  ;;  %v839_v4 = vld [vmem:[#allocation2 + $0x3c] sm:$0xf]  ;;  %v3168_v7 = vld [vmem:[#allocation2 + $0x34] sm:$0xf]  ;;  %v2245_v8 = vrot.slane %v2244_v29, 4 }
  0x61   : > { %v2249_v51 = vrot.slane %v2247_v58, 5  ;;  %v2253_v9 = vrot.slane %v2251_v61, 4  ;;  %v840_v13 = vsel %vm5106_vm11, %v562_v19, %v839_v4  ;;  %v4945_v17 = vld [vmem:[#allocation2 + $0x30] sm:$0xff]   ;;  %v3267_v20 = vshll.u32 %v3168_v7, 16 }
  0x62   : > { %v2783_v60 = vrot.slane %v2781_v62, 4  ;;  %841 = vst [vmem:[#allocation2 + $0x3c] sm:$0xf] %v840_v13  ;;  %v3713_v23 = vld [vmem:[#allocation2 + $0x34] sm:$0xf]  ;;  %v571_v24 = vsel %vm5088_vm9, %v563_v2, %v570_v12  ;;  %v3260_v26 = vrot.slane %v3258_v14, 4  ;;  %v2782_v39 = vsel %vm5100_vm10, %v4709_v10, %v2781_v62 }
  0x63   : > { %v2254_v16 = vor.u32 %v2253_v9, %v2249_v51  ;;  %2922 = vrot.lane.b32.xlu0 %v4724_v57, %s5003_s26  ;;  %v3271_v27 = vshrl.u32 %v3168_v7, 16  ;;  %v320_v28 = vsel %vm5073_vm5, 0, %v319_v11  ;;  %842 = vst.msk [vmem:[#allocation2 + $0x40] sm:$0xf] %vm237_vm0, %v571_v24  ;;  %v3263_v31 = vrot.slane %v3261_v22, 5 }
  0x64   : > { %v3269_v32 = vrot.slane %v3267_v20, 5  ;;  %321 = vst [vmem:[#allocation2 + $0x44] sm:$0x1] %v320_v28  ;;  %v4772_v33 = vrot.slane %v3712_v15, 9  ;;  %v2250_v37 = vsel %vm5166_vm14, %v2245_v8, %v2249_v51  ;;  %v3818_v46 = vrot.slane %v3713_v23, 5  ;;  %v368_v23 = vld [vmem:[%s5069_s21 + $0x50] sm:$0xff] }
  0x65   : > { %v2255_v30 = vrot.slane %v2254_v16, 4  ;;  %v3264_v42 = vor.u32 %v3263_v31, %v3260_v26  ;;  %v3273_v43 = vrot.slane %v3271_v27, 4  ;;  %v1216_v48 = vshrl.u32 %v5313_v59, 16  ;;  %v1081_v62 = vld [vmem:[#allocation2 + $0x34] sm:$0xf]  ;;  %v369_v31 = vld [vmem:[%s5069_s21 + $0x58] sm:$0xff] }
  0x66   : > { %v2128_v35 = vld [vmem:[#allocation2 + $0x38] sm:$0x1]  ;;  %v3819_v29 = vsel %vm5100_vm10, %v4772_v33, %v3818_v46  ;;  %v3820_v57 = vrot.slane %v3818_v46, 4  ;;  %v1225_v22 = vshll.u32 %v1081_v62, 16  ;;  %v1229_v20 = vshrl.u32 %v1081_v62, 16 }
  0x67   : > { %v2673_v38 = vld [vmem:[#allocation2 + $0x38] sm:$0x1]  ;;  %v2257_v40 = vshll.u32 %v2128_v35, 16  ;;  %3100 = vrot.lane.b32.xlu0 %v4945_v17, %s5001_s24  ;;  %v3265_v52 = vrot.slane %v3264_v42, 4  ;;  %v3274_v18 = vor.u32 %v3273_v43, %v3269_v32  ;;  %v1218_v16 = vrot.slane %v1216_v48, 4 }
  0x68   : > { %v3169_v5 = vld [vmem:[#allocation2 + $0x38] sm:$0x1]  ;;  %v2784_v41 = vrot.slane %v2673_v38, 5  ;;  %v1219_v17 = vshll.u32 %v5313_v59, 16  ;;  %v1227_v33 = vrot.slane %v1225_v22, 5  ;;  %v1231_v35 = vrot.slane %v1229_v20, 4 }
  0x69   : > { %v3714_v44 = vld [vmem:[#allocation2 + $0x38] sm:$0x1]  ;;  %v3277_v45 = vshll.u32 %v3169_v5, 16  ;;  %v2259_v49 = vrot.slane %v2257_v40, 5  ;;  %v3170_v55 = vld [vmem:[#allocation2 + $0x3c] sm:$0xf]  ;;  %v3270_v19 = vsel %vm5166_vm14, %v3265_v52, %v3269_v32  ;;  %v5347_v48 = vpack.c.bf16 %v368_v23, %v368_v23 }
  0x6a   : > { %v3821_v47 = vrot.slane %v3714_v44, 5  ;;  %v2785_v50 = vsel %vm5100_vm10, %v2783_v60, %v2784_v41  ;;  %v3275_v58 = vrot.slane %v3274_v18, 4  ;;  %v3282_v61 = vshrl.u32 %v3170_v55, 16  ;;  %v3171_v51 = vld [vmem:[#allocation2 + $0x40] sm:$0xf] }
  0x6b   : > { %v3279_v54 = vrot.slane %v3277_v45, 5  ;;  %v2260_v56 = vsel %vm5166_vm14, %v2255_v30, %v2259_v49  ;;  %v4725_v1 = vcombine.low %v2782_v39, %v2785_v50  ;;  %v843_v2 = vld [vmem:[#allocation2 + $0x44] sm:$0x1]  ;;  %v3285_v3 = vshll.u32 %v3170_v55, 16  ;;  %v1082_v11 = vld [vmem:[#allocation2 + $0x38] sm:$0x1] }
  0x6c   : > { %v4693_v63 = vcombine.low %v2250_v37, %v2260_v56  ;;  %v3822_v4 = vsel %vm5100_vm10, %v3820_v57, %v3821_v47  ;;  %v844_v8 = vsel %vm5047_vm3, %v572_v21, %v843_v2  ;;  %v3284_v9 = vrot.slane %v3282_v61, 4  ;;  %v3715_v15 = vld [vmem:[#allocation2 + $0x3c] sm:$0xe]  ;;  %v3716_v21 = vld [vmem:[#allocation2 + $0x40] sm:$0xf] }
  0x6d   : > { %v3280_v7 = vsel %vm5166_vm14, %v3275_v58, %v3279_v54  ;;  %v4788_v10 = vcombine.low %v3819_v29, %v3822_v4  ;;  %845 = vst [vmem:[#allocation2 + $0x44] sm:$0x1] %v844_v8  ;;  %v3287_v12 = vrot.slane %v3285_v3, 5  ;;  %v3291_v13 = vshll.u32 %v3171_v51, 16  ;;  %v1083_v30 = vld [vmem:[#allocation2 + $0x3c] sm:$0xf] }
  0x6e   : > { %2603 = vrot.lane.b32.xlu1 %v4693_v63, %s5005_s28  ;;  %v4756_v60 = vcombine.low %v3270_v19, %v3280_v7  ;;  %v3295_v14 = vshrl.u32 %v3171_v51, 16  ;;  %v1235_v28 = vshll.u32 %v1082_v11, 16  ;;  %v1221_v32 = vrot.slane %v1219_v17, 5  ;;  %v4946_v38 = vld [vmem:[#allocation2 + $0x3c] sm:$0xff]   ;;  %v1628_v57 = vld [vmem:[#allocation2 + $0x30] sm:$0xe] }
  0x6f   : > { %v3288_v24 = vor.u32 %v3287_v12, %v3284_v9  ;;  %v3293_v26 = vrot.slane %v3291_v13, 5  ;;  %v4773_v37 = vrot.slane %v3715_v15, 9  ;;  %v3825_v40 = vrot.slane %v3716_v21, 5  ;;  %v1084_v47 = vld [vmem:[#allocation2 + $0x40] sm:$0xf] }
  0x70   : > { %3645 = vrot.lane.b32.xlu0 %v4756_v60, %s5006_s29  ;;  %v3297_v27 = vrot.slane %v3295_v14, 4  ;;  %v1237_v5 = vrot.slane %v1235_v28, 5  ;;  %v1222_v41 = vor.u32 %v1221_v32, %v1218_v16  ;;  %v1232_v42 = vor.u32 %v1231_v35, %v1227_v33  ;;  %v1629_v4 = vld [vmem:[#allocation2 + $0x34] sm:$0xf]  ;;  %v1630_v7 = vld [vmem:[#allocation2 + $0x38] sm:$0x1] }
  0x71   : > { %v3289_v59 = vrot.slane %v3288_v24, 4  ;;  %v1240_v43 = vshrl.u32 %v1083_v30, 16  ;;  %v1243_v44 = vshll.u32 %v1083_v30, 16  ;;  %v3827_v46 = vrot.slane %v3825_v40, 4  ;;  %v1631_v11 = vld [vmem:[#allocation2 + $0x3c] sm:$0xe] }
  0x72   : > { %2924 = vrot.lane.b32.xlu1 %v4725_v1, %s5003_s26  ;;  %v3298_v39 = vor.u32 %v3297_v27, %v3293_v26  ;;  %v5349_v49 = vpack.c.bf16 %v369_v31, %v369_v31  ;;  %v1223_v18 = vrot.slane %v1222_v41, 4  ;;  %v1233_v54 = vrot.slane %v1232_v42, 4  ;;  %v1632_v60 = vld [vmem:[#allocation2 + $0x40] sm:$0xf]  ;;  %v266_v12 = vld [vmem:[#allocation2 + $0x48] sm:$0x1] }
  0x73   : > { %v3294_v52 = vsel %vm5166_vm14, %v3289_v59, %v3293_v26  ;;  %v3826_v29 = vsel %vm5100_vm10, %v4773_v37, %v3825_v40  ;;  %v1242_v61 = vrot.slane %v1240_v43, 4  ;;  %v1245_v62 = vrot.slane %v1243_v44, 5  ;;  %v370_v35 = vld [vmem:[%s5069_s21 + $0x60] sm:$0xff]  ;;  %v2129_v40 = vld [vmem:[#allocation2 + $0x3c] sm:$0xf] }
  0x74   : > { %v3299_v45 = vrot.slane %v3298_v39, 4  ;;  %3966 = vrot.lane.b32.xlu0 %v4788_v10, %s5004_s27  ;;  %v3172_v50 = vld [vmem:[#allocation2 + $0x44] sm:$0x1]  ;;  %v1228_v63 = vsel %vm5166_vm14, %v1223_v18, %v1227_v33  ;;  %v1238_v1 = vsel %vm5166_vm14, %v1233_v54, %v1237_v5  ;;  %v1249_v2 = vshll.u32 %v1084_v47, 16 }
  0x75   : > { %v3717_v55 = vld [vmem:[#allocation2 + $0x44] sm:$0x1]  ;;  %v3301_v56 = vshll.u32 %v3172_v50, 16  ;;  %v1253_v3 = vshrl.u32 %v1084_v47, 16  ;;  %v4630_v51 = vcombine.low %v1228_v63, %v1238_v1  ;;  %v1246_v10 = vor.u32 %v1245_v62, %v1242_v61 }
  0x76   : > { %3102 = vrot.lane.b32.xlu1 %v4946_v38, %s5001_s24  ;;  %v3828_v19 = vrot.slane %v3717_v55, 5  ;;  %v1085_v58 = vld [vmem:[#allocation2 + $0x44] sm:$0x1]  ;;  %v1251_v14 = vrot.slane %v1249_v2, 5  ;;  %v4646_v21 = vrot.slane %v1628_v57, 9  ;;  %v1745_v23 = vrot.slane %v1629_v4, 5 }
  0x77   : > { %v3303_v8 = vrot.slane %v3301_v56, 5  ;;  %v1255_v15 = vrot.slane %v1253_v3, 4  ;;  %v1259_v16 = vshll.u32 %v1085_v58, 16  ;;  %v1633_v17 = vld [vmem:[#allocation2 + $0x44] sm:$0x1]  ;;  %v1247_v20 = vrot.slane %v1246_v10, 4 }
  0x78   : > { %v3829_v9 = vsel %vm5100_vm10, %v3827_v46, %v3828_v19  ;;  %v1748_v28 = vrot.slane %v1630_v7, 5  ;;  %v1746_v31 = vsel %vm5100_vm10, %v4646_v21, %v1745_v23  ;;  %v1747_v32 = vrot.slane %v1745_v23, 4  ;;  %v4960_v37 = vld [vmem:[%s6489_s3] sm:$0xff]   ;;  %v371_v57 = vld [vmem:[%s5069_s21 + $0x68] sm:$0xff] }
  0x79   : > { %v4789_v13 = vcombine.low %v3826_v29, %v3829_v9  ;;  %v3304_v22 = vsel %vm5166_vm14, %v3299_v45, %v3303_v8  ;;  %v1256_v26 = vor.u32 %v1255_v15, %v1251_v14  ;;  %v1261_v27 = vrot.slane %v1259_v16, 5  ;;  %v2130_v45 = vld [vmem:[#allocation2 + $0x40] sm:$0xf]  ;;  %4876 = vmatprep.subr.bf16.mxu0 %v4960_v37  ;;  %4914 = vmatprep.subr.bf16.mxu1 %v4960_v37  ;;  %v4963_v56 = vld [vmem:[%s6489_s3 + $0x8] sm:$0xff]   ;;  %v2131_v61 = vld [vmem:[#allocation2 + $0x44] sm:$0x1] }
  0x7a   : > { %v4757_v24 = vcombine.low %v3294_v52, %v3304_v22  ;;  %v1252_v30 = vsel %vm5166_vm14, %v1247_v20, %v1251_v14  ;;  %v4647_v33 = vrot.slane %v1631_v11, 9  ;;  %v1752_v59 = vrot.slane %v1632_v60, 5  ;;  %v322_v52 = vld [vmem:[#allocation2 + $0x50] sm:$0x1]  ;;  %4877 = vmatpush3.bf16.msra.mxu0 %v4960_v37  ;;  %4917 = vmatpush3.bf16.msra.mxu1 %v4960_v37  ;;  %v4947_v58 = vld [vmem:[#allocation2 + $0x3c] sm:$0xff]  }
  0x7b   : > { %3968 = vrot.lane.b32.xlu0 %v4789_v13, %s5004_s27  ;;  %v1257_v38 = vrot.slane %v1256_v26, 4  ;;  %v1755_v39 = vrot.slane %v1633_v17, 5  ;;  %v267_v5 = vsel %vm5047_vm3, 0, %v266_v12  ;;  %v1749_v41 = vsel %vm5100_vm10, %v1747_v32, %v1748_v28  ;;  %v2675_v7 = vld [vmem:[#allocation2 + $0x40] sm:$0xf]  ;;  %4878 = vmatprep.subr.bf16.mxu0 %v4963_v56 }
  0x7c   : > { %3647 = vrot.lane.b32.xlu1 %v4757_v24, %s5006_s29  ;;  %268 = vst [vmem:[#allocation2 + $0x48] sm:$0x1] %v267_v5  ;;  %v574_v42 = vshrl.u32 %v5347_v48, 16  ;;  %v577_v43 = vshll.u32 %v5347_v48, 16  ;;  %v582_v44 = vshrl.u32 %v5349_v49, 16  ;;  %v4662_v47 = vcombine.low %v1746_v31, %v1749_v41  ;;  %4915 = vmatprep.subr.bf16.mxu1 %v4963_v56 }
  0x7d   : > { %v1262_v46 = vsel %vm5166_vm14, %v1257_v38, %v1261_v27  ;;  %v1754_v50 = vrot.slane %v1752_v59, 4  ;;  %v5383_v18 = vpack.c.bf16 %v370_v35, %v370_v35  ;;  %v1753_v54 = vsel %vm5100_vm10, %v4647_v33, %v1752_v59  ;;  %v269_v8 = vld [vmem:[#allocation2 + $0x54] sm:$0x1]  ;;  %v2674_v11 = vld [vmem:[#allocation2 + $0x3c] sm:$0xe] }
  0x7e   : > { %v576_v48 = vrot.slane %v574_v42, 7  ;;  %v5387_v55 = vrot.slane %v582_v44, 7  ;;  %v585_v29 = vshll.u32 %v5349_v49, 16  ;;  %v4631_v19 = vcombine.low %v1252_v30, %v1262_v46  ;;  %4879 = vmatpush3.bf16.msra.mxu0 %v4963_v56  ;;  %4918 = vmatpush3.bf16.msra.mxu1 %v4963_v56  ;;  %v2676_v16 = vld [vmem:[#allocation2 + $0x44] sm:$0x1] }
  0x7f   : > { %1883 = vrot.lane.b32.xlu0 %v4662_v47, %s5000_s23  ;;  %v2262_v62 = vshrl.u32 %v2129_v40, 16  ;;  %v2265_v63 = vshll.u32 %v2129_v40, 16  ;;  %v2271_v1 = vshll.u32 %v2130_v45, 16  ;;  %v1756_v2 = vsel %vm5100_vm10, %v1754_v50, %v1755_v39  ;;  %v325_v28 = vld [vmem:[#allocation2 + $0x5c] sm:$0x1] }
  0x80   : > { %1559 = vrot.lane.b32.xlu1 %v4630_v51, %s5002_s25  ;;  %v579_v3 = vor.u32 %v577_v43, %v576_v48  ;;  %v580_v49 = vrot.slane %v576_v48, 4  ;;  %v587_v4 = vor.u32 %v585_v29, %v5387_v55  ;;  %v4838_v60 = vpack.c.bf16 %v371_v57, %v371_v57  ;;  %v272_v35 = vld [vmem:[#allocation2 + $0x60] sm:$0x1]  ;;  %v372_v43 = vld [vmem:[%s5069_s21 + $0x70] sm:$0xff] }
  0x81   : > { %v2264_v51 = vrot.slane %v2262_v62, 4  ;;  %v2267_v9 = vrot.slane %v2265_v63, 5  ;;  %v2273_v10 = vrot.slane %v2271_v1, 5  ;;  %v2275_v13 = vshrl.u32 %v2130_v45, 16 }
  0x82   : > { %v588_v12 = vsel %vm5088_vm9, %v580_v49, %v587_v4  ;;  %v2281_v14 = vshll.u32 %v2131_v61, 16  ;;  %v323_v15 = vsel %vm5073_vm5, 0, %v322_v52  ;;  %v4663_v17 = vcombine.low %v1753_v54, %v1756_v2 }
  0x83   : > { %2060 = vrot.lane.b32.xlu0 %v4947_v58, %s4999_s22  ;;  %v846_v22 = vld [vmem:[#allocation2 + $0x48] sm:$0xf]  ;;  %849 = vst.msk [vmem:[#allocation2 + $0x4c] sm:$0xf] %vm237_vm0, %v588_v12  ;;  %v2268_v20 = vor.u32 %v2267_v9, %v2264_v51  ;;  %324 = vst [vmem:[#allocation2 + $0x50] sm:$0x1] %v323_v15  ;;  %v5427_v57 = vpack.c.bf16 %v372_v43, %v372_v43 }
  0x84   : > { %1561 = vrot.lane.b32.xlu1 %v4631_v19, %s5002_s25  ;;  %v2788_v21 = vrot.slane %v2675_v7, 5  ;;  %v847_v23 = vsel %vm5106_vm11, %v579_v3, %v846_v22  ;;  %v2277_v24 = vrot.slane %v2275_v13, 4  ;;  %v4710_v26 = vrot.slane %v2674_v11, 9 }
  0x85   : > { %v270_v27 = vsel %vm5047_vm3, 0, %v269_v8  ;;  %848 = vst [vmem:[#allocation2 + $0x48] sm:$0xf] %v847_v23  ;;  %v2269_v30 = vrot.slane %v2268_v20, 4  ;;  %v2791_v32 = vrot.slane %v2676_v16, 5  ;;  %v591_v33 = vshrl.u32 %v5383_v18, 16 }
  0x86   : > { %v2790_v31 = vrot.slane %v2788_v21, 4  ;;  %271 = vst [vmem:[#allocation2 + $0x54] sm:$0x1] %v270_v27  ;;  %v2278_v37 = vor.u32 %v2277_v24, %v2273_v10  ;;  %v2283_v38 = vrot.slane %v2281_v14, 5  ;;  %v599_v59 = vshrl.u32 %v4838_v60, 16 }
  0x87   : > { %v602_v39 = vshll.u32 %v4838_v60, 16  ;;  %v589_v5 = vrot.slane %v5387_v55, 4  ;;  %v593_v40 = vrot.slane %v591_v33, 7  ;;  %v594_v41 = vshll.u32 %v5383_v18, 16 }
  0x88   : > { %1885 = vrot.lane.b32.xlu1 %v4663_v17, %s5000_s23  ;;  %v326_v42 = vsel %vm5073_vm5, 0, %v325_v28  ;;  %v2274_v44 = vsel %vm5166_vm14, %v2269_v30, %v2273_v10  ;;  %v2279_v45 = vrot.slane %v2278_v37, 4  ;;  %v601_v46 = vrot.slane %v599_v59, 7 }
  0x89   : > { %327 = vst [vmem:[#allocation2 + $0x5c] sm:$0x1] %v326_v42  ;;  %v273_v47 = vsel %vm5047_vm3, 0, %v272_v35  ;;  %v2789_v50 = vsel %vm5100_vm10, %v4710_v26, %v2788_v21  ;;  %v2792_v52 = vsel %vm5100_vm10, %v2790_v31, %v2791_v32  ;;  %v597_v18 = vrot.slane %v593_v40, 4 }
  0x8a   : > { %274 = vst [vmem:[#allocation2 + $0x60] sm:$0x1] %v273_v47  ;;  %v2284_v54 = vsel %vm5166_vm14, %v2279_v45, %v2283_v38  ;;  %v850_v48 = vld [vmem:[#allocation2 + $0x50] sm:$0x1]  ;;  %v2133_v55 = vld [vmem:[#allocation2 + $0x4c] sm:$0xf]  ;;  %v604_v29 = vor.u32 %v602_v39, %v601_v46  ;;  %v4726_v2 = vcombine.low %v2789_v50, %v2792_v52  ;;  %v596_v49 = vor.u32 %v594_v41, %v593_v40 }
  0x8b   : > { %v4694_v56 = vcombine.low %v2274_v44, %v2284_v54  ;;  %v851_v19 = vsel %vm5047_vm3, %v589_v5, %v850_v48  ;;  %v2295_v58 = vshll.u32 %v2133_v55, 16  ;;  %v2299_v61 = vshrl.u32 %v2133_v55, 16  ;;  %v2678_v62 = vld [vmem:[#allocation2 + $0x4c] sm:$0xf]  ;;  %v373_v5 = vld [vmem:[%s5069_s21 + $0x78] sm:$0xff] }
  0x8c   : > { %v4948_v63 = vld [vmem:[#allocation2 + $0x48] sm:$0xff]   ;;  %852 = vst [vmem:[#allocation2 + $0x50] sm:$0x1] %v851_v19  ;;  %v2795_v3 = vrot.slane %v2678_v62, 5  ;;  %v605_v4 = vsel %vm5088_vm9, %v597_v18, %v604_v29  ;;  %v606_v60 = vrot.slane %v601_v46, 4  ;;  %v608_v12 = vshrl.u32 %v5427_v57, 16 }
  0x8d   : > { %v2132_v1 = vld [vmem:[#allocation2 + $0x48] sm:$0xf]  ;;  %2605 = vrot.lane.b32.xlu0 %v4694_v56, %s5005_s28  ;;  %v5434_v51 = vrot.slane %v2295_v58, 5  ;;  %v2301_v9 = vrot.slane %v2299_v61, 4  ;;  %856 = vst.msk [vmem:[#allocation2 + $0x58] sm:$0xf] %vm237_vm0, %v605_v4  ;;  %2062 = vrot.lane.b32.xlu1 %v4948_v63, %s4999_s22  ;;  %v5459_v4 = vpack.c.bf16 %v373_v5, %v373_v5 }
  0x8e   : > { %v2286_v7 = vshrl.u32 %v2132_v1, 16  ;;  %v2289_v8 = vshll.u32 %v2132_v1, 16  ;;  %v2677_v10 = vld [vmem:[#allocation2 + $0x48] sm:$0xe]  ;;  %v611_v13 = vshll.u32 %v5427_v57, 16  ;;  %v2797_v28 = vrot.slane %v2795_v3, 4 }
  0x8f   : > { %v4711_v11 = vrot.slane %v2677_v10, 9  ;;  %v2302_v16 = vor.u32 %v2301_v9, %v5434_v51  ;;  %v853_v17 = vld [vmem:[#allocation2 + $0x54] sm:$0xf]  ;;  %v3173_v22 = vld [vmem:[#allocation2 + $0x48] sm:$0xf]  ;;  %vm1599_vm2 = vcmask 64544  }
  0x90   : > { %v2288_v14 = vrot.slane %v2286_v7, 4  ;;  %v2291_v15 = vrot.slane %v2289_v8, 5  ;;  %v854_v20 = vsel %vm5106_vm11, %v596_v49, %v853_v17  ;;  %v3174_v21 = vld [vmem:[#allocation2 + $0x4c] sm:$0xf]  ;;  %v3306_v23 = vshrl.u32 %v3173_v22, 16 }
  0x91   : > { %v3309_v24 = vshll.u32 %v3173_v22, 16  ;;  %v857_v26 = vld [vmem:[#allocation2 + $0x5c] sm:$0x1]  ;;  %2926 = vrot.lane.b32.xlu0 %v4726_v2, %s5003_s26  ;;  %v4949_v30 = vld [vmem:[#allocation2 + $0x48] sm:$0xff]   ;;  %855 = vst [vmem:[#allocation2 + $0x54] sm:$0xf] %v854_v20  ;;  %v2796_v45 = vsel %vm5100_vm10, %v4711_v11, %v2795_v3 }
  0x92   : > { %v2292_v27 = vor.u32 %v2291_v15, %v2288_v14  ;;  %v3315_v31 = vshll.u32 %v3174_v21, 16  ;;  %v3319_v32 = vshrl.u32 %v3174_v21, 16  ;;  %v2303_v35 = vrot.slane %v2302_v16, 4  ;;  %v3718_v39 = vld [vmem:[#allocation2 + $0x48] sm:$0xe] }
  0x93   : > { %v3308_v37 = vrot.slane %v3306_v23, 4  ;;  %v3311_v38 = vrot.slane %v3309_v24, 5  ;;  %v858_v59 = vsel %vm5047_vm3, %v606_v60, %v857_v26  ;;  %v2134_v40 = vld [vmem:[#allocation2 + $0x50] sm:$0x1]  ;;  %v5451_v52 = vpop.permute.xlu1 %1875  ;;  %v4774_v29 = vrot.slane %v3718_v39, 9 }
  0x94   : > { %v5444_v33 = vpop.permute.xlu0 %2052  ;;  %v2293_v41 = vrot.slane %v2292_v27, 4  ;;  %v2679_v42 = vld [vmem:[#allocation2 + $0x50] sm:$0x1]  ;;  %v3317_v43 = vrot.slane %v3315_v31, 5  ;;  %859 = vst [vmem:[#allocation2 + $0x5c] sm:$0x1] %v858_v59 }
  0x95   : > { %v2305_v44 = vshll.u32 %v2134_v40, 16  ;;  %v2798_v46 = vrot.slane %v2679_v42, 5  ;;  %v3175_v47 = vld [vmem:[#allocation2 + $0x50] sm:$0x1]  ;;  %v3312_v50 = vor.u32 %v3311_v38, %v3308_v37  ;;  %3104 = vrot.lane.b32.xlu0 %v4949_v30, %s5001_s24  ;;  %v3321_v54 = vrot.slane %v3319_v32, 4 }
  0x96   : > { %v2298_v18 = vsel %vm5166_vm14, %v2293_v41, %v5434_v51  ;;  %v3325_v48 = vshll.u32 %v3175_v47, 16  ;;  %v3177_v55 = vld [vmem:[#allocation2 + $0x58] sm:$0xf]  ;;  %v3719_v62 = vld [vmem:[#allocation2 + $0x4c] sm:$0xf]  ;;  %vm1923_vm4 = vcmask 97344  }
  0x97   : > { %v2307_v56 = vrot.slane %v2305_v44, 5  ;;  %v2799_v19 = vsel %vm5100_vm10, %v2797_v28, %v2798_v46  ;;  %v3313_v58 = vrot.slane %v3312_v50, 4  ;;  %v3339_v61 = vshll.u32 %v3177_v55, 16  ;;  %v3720_v3 = vld [vmem:[#allocation2 + $0x50] sm:$0x1]  ;;  %v5467_v24 = vpop.permute.xlu1 %2054 }
  0x98   : > { %v3322_v63 = vor.u32 %v3321_v54, %v3317_v43  ;;  %v3327_v1 = vrot.slane %v3325_v48, 5  ;;  %v3343_v2 = vshrl.u32 %v3177_v55, 16  ;;  %v1086_v49 = vld [vmem:[#allocation2 + $0x48] sm:$0xf]  ;;  %v5461_v7 = vpop.permute.xlu0 %3096  ;;  %v4727_v51 = vcombine.low %v2796_v45, %v2799_v19  ;;  %v3176_v10 = vld [vmem:[#allocation2 + $0x54] sm:$0xf] }
  0x99   : > { %v2308_v8 = vsel %vm5166_vm14, %v2303_v35, %v2307_v56  ;;  %v3318_v9 = vsel %vm5166_vm14, %v3313_v58, %v3317_v43  ;;  %v3341_v11 = vrot.slane %v3339_v61, 5  ;;  %v3330_v15 = vshrl.u32 %v3176_v10, 16  ;;  %v1087_v31 = vld [vmem:[#allocation2 + $0x4c] sm:$0xf]  ;;  %v1088_v59 = vld [vmem:[#allocation2 + $0x50] sm:$0x1] }
  0x9a   : > { %v4695_v60 = vcombine.low %v2298_v18, %v2308_v8  ;;  %v3323_v14 = vrot.slane %v3322_v63, 4  ;;  %v3333_v16 = vshll.u32 %v3176_v10, 16  ;;  %v3345_v22 = vrot.slane %v3343_v2, 4  ;;  %v3721_v39 = vld [vmem:[#allocation2 + $0x54] sm:$0xe] }
  0x9b   : > { %v3178_v17 = vld [vmem:[#allocation2 + $0x5c] sm:$0x1]  ;;  %v3832_v20 = vrot.slane %v3719_v62, 5  ;;  %v3835_v21 = vrot.slane %v3720_v3, 5  ;;  %v1264_v23 = vshrl.u32 %v1086_v49, 16  ;;  %v3332_v27 = vrot.slane %v3330_v15, 4 }
  0x9c   : > { %2607 = vrot.lane.b32.xlu1 %v4695_v60, %s5005_s28  ;;  %v3328_v26 = vsel %vm5166_vm14, %v3323_v14, %v3327_v1  ;;  %v3335_v28 = vrot.slane %v3333_v16, 5  ;;  %v3349_v30 = vshll.u32 %v3178_v17, 16  ;;  %v3346_v35 = vor.u32 %v3345_v22, %v3341_v11  ;;  %v3722_v43 = vld [vmem:[#allocation2 + $0x58] sm:$0xf]  ;;  %v3723_v18 = vld [vmem:[#allocation2 + $0x5c] sm:$0x1]  ;;  %v5482_v1 = vpop.permute.xlu1 %3098 }
  0x9d   : > { %v4758_v32 = vcombine.low %v3318_v9, %v3328_v26  ;;  %v3833_v37 = vsel %vm5100_vm10, %v4774_v29, %v3832_v20  ;;  %v3834_v38 = vrot.slane %v3832_v20, 4  ;;  %v1266_v41 = vrot.slane %v1264_v23, 4  ;;  %v4950_v54 = vld [vmem:[#allocation2 + $0x54] sm:$0xff]   ;;  %v1091_v15 = vld [vmem:[#allocation2 + $0x5c] sm:$0x1] }
  0x9e   : > { %v3336_v5 = vor.u32 %v3335_v28, %v3332_v27  ;;  %v3351_v40 = vrot.slane %v3349_v30, 5  ;;  %v1267_v42 = vshll.u32 %v1086_v49, 16  ;;  %v5474_v44 = vpop.permute.xlu0 %1551  ;;  %v3347_v45 = vrot.slane %v3346_v35, 4  ;;  %v1089_v19 = vld [vmem:[#allocation2 + $0x54] sm:$0xf] }
  0x9f   : > { %3649 = vrot.lane.b32.xlu0 %v4758_v32, %s5006_s29  ;;  %v3836_v46 = vsel %vm5100_vm10, %v3834_v38, %v3835_v21  ;;  %v1273_v47 = vshll.u32 %v1087_v31, 16  ;;  %v1277_v50 = vshrl.u32 %v1087_v31, 16  ;;  %v1283_v56 = vshll.u32 %v1088_v59, 16  ;;  %v1634_v17 = vld [vmem:[#allocation2 + $0x48] sm:$0xe] }
  0xa0   : > { %2928 = vrot.lane.b32.xlu1 %v4727_v51, %s5003_s26  ;;  %v3337_v48 = vrot.slane %v3336_v5, 4  ;;  %v4790_v55 = vcombine.low %v3833_v37, %v3836_v46  ;;  %v1269_v29 = vrot.slane %v1267_v42, 5  ;;  %v3352_v58 = vsel %vm5166_vm14, %v3347_v45, %v3351_v40  ;;  %v1090_v51 = vld [vmem:[#allocation2 + $0x58] sm:$0xf]  ;;  %v1635_v23 = vld [vmem:[#allocation2 + $0x4c] sm:$0xf]  ;;  %v5498_v45 = vpop.permute.xlu1 %1877 }
  0xa1   : > { %v1275_v61 = vrot.slane %v1273_v47, 5  ;;  %v1279_v62 = vrot.slane %v1277_v50, 4  ;;  %v4775_v63 = vrot.slane %v3721_v39, 9  ;;  %v1285_v49 = vrot.slane %v1283_v56, 5  ;;  %v1636_v38 = vld [vmem:[#allocation2 + $0x50] sm:$0x1] }
  0xa2   : > { %v3342_v2 = vsel %vm5166_vm14, %v3337_v48, %v3341_v11  ;;  %v1270_v3 = vor.u32 %v1269_v29, %v1266_v41  ;;  %v3839_v8 = vrot.slane %v3722_v43, 5  ;;  %v5486_v9 = vpop.permute.xlu0 %2918  ;;  %v3842_v14 = vrot.slane %v3723_v18, 5  ;;  %v1637_v59 = vld [vmem:[#allocation2 + $0x54] sm:$0xe]  ;;  %v1638_v42 = vld [vmem:[#allocation2 + $0x58] sm:$0xf] }
  0xa3   : > { %v4759_v10 = vcombine.low %v3342_v2, %v3352_v58  ;;  %3970 = vrot.lane.b32.xlu0 %v4790_v55, %s5004_s27  ;;  %v1280_v60 = vor.u32 %v1279_v62, %v1275_v61  ;;  %v1288_v16 = vshrl.u32 %v1089_v19, 16  ;;  %v1291_v21 = vshll.u32 %v1089_v19, 16  ;;  %v1639_v43 = vld [vmem:[#allocation2 + $0x5c] sm:$0x1] }
  0xa4   : > { %3106 = vrot.lane.b32.xlu1 %v4950_v54, %s5001_s24  ;;  %v1271_v22 = vrot.slane %v1270_v3, 4  ;;  %v3840_v11 = vsel %vm5100_vm10, %v4775_v63, %v3839_v8  ;;  %v3841_v20 = vrot.slane %v3839_v8, 4  ;;  %v1297_v28 = vshll.u32 %v1090_v51, 16  ;;  %v860_v63 = vld [vmem:[#allocation2 + $0x60] sm:$0xf] }
  0xa5   : > { %v1281_v26 = vrot.slane %v1280_v60, 4  ;;  %v1290_v27 = vrot.slane %v1288_v16, 4  ;;  %v1301_v30 = vshrl.u32 %v1090_v51, 16  ;;  %v1293_v35 = vrot.slane %v1291_v21, 5  ;;  %v2135_v51 = vld [vmem:[#allocation2 + $0x54] sm:$0xf] }
  0xa6   : > { %v1276_v31 = vsel %vm5166_vm14, %v1271_v22, %v1275_v61  ;;  %v3843_v32 = vsel %vm5100_vm10, %v3841_v20, %v3842_v14  ;;  %v1307_v37 = vshll.u32 %v1091_v15, 16  ;;  %v1299_v40 = vrot.slane %v1297_v28, 5  ;;  %v2136_v15 = vld [vmem:[#allocation2 + $0x58] sm:$0xf]  ;;  %v328_v16 = vld [vmem:[#allocation2 + $0x68] sm:$0x1] }
  0xa7   : > { %v1286_v39 = vsel %vm5166_vm14, %v1281_v26, %v1285_v49  ;;  %v4791_v5 = vcombine.low %v3840_v11, %v3843_v32  ;;  %v1303_v41 = vrot.slane %v1301_v30, 4  ;;  %v1294_v47 = vor.u32 %v1293_v35, %v1290_v27  ;;  %v5501_v54 = vpop.permute.xlu0 %3962  ;;  %v2137_v28 = vld [vmem:[#allocation2 + $0x5c] sm:$0x1]  ;;  %v275_v30 = vld [vmem:[#allocation2 + $0x6c] sm:$0x1] }
  0xa8   : > { %3651 = vrot.lane.b32.xlu1 %v4759_v10, %s5006_s29  ;;  %v4632_v46 = vcombine.low %v1276_v31, %v1286_v39  ;;  %v1309_v50 = vrot.slane %v1307_v37, 5  ;;  %v4648_v18 = vrot.slane %v1634_v17, 9  ;;  %v1759_v55 = vrot.slane %v1635_v23, 5  ;;  %v374_v17 = vld [vmem:[%s5069_s21 + $0x80] sm:$0xff]  ;;  %v5523_v23 = vpop.permute.xlu1 %2920  ;;  %v375_v31 = vld [vmem:[%s5069_s21 + $0x88] sm:$0xff] }
  0xa9   : > { %3972 = vrot.lane.b32.xlu0 %v4791_v5, %s5004_s27  ;;  %v1304_v48 = vor.u32 %v1303_v41, %v1299_v40  ;;  %v1762_v29 = vrot.slane %v1636_v38, 5  ;;  %v4649_v56 = vrot.slane %v1637_v59, 9  ;;  %v1295_v19 = vrot.slane %v1294_v47, 4  ;;  %v2680_v59 = vld [vmem:[#allocation2 + $0x54] sm:$0xe] }
  0xaa   : > { %v1766_v58 = vrot.slane %v1638_v42, 5  ;;  %v1769_v61 = vrot.slane %v1639_v43, 5  ;;  %v610_v62 = vrot.slane %v608_v12, 7  ;;  %v1760_v3 = vsel %vm5100_vm10, %v4648_v18, %v1759_v55  ;;  %v2681_v39 = vld [vmem:[#allocation2 + $0x58] sm:$0xf] }
  0xab   : > { %v1305_v2 = vrot.slane %v1304_v48, 4  ;;  %v1761_v49 = vrot.slane %v1759_v55, 4  ;;  %v616_v8 = vshrl.u32 %v5459_v4, 16  ;;  %v1300_v10 = vsel %vm5166_vm14, %v1295_v19, %v1299_v40  ;;  %v5529_v32 = vpop.permute.xlu0 %3964  ;;  %v4951_v40 = vld [vmem:[#allocation2 + $0x54] sm:$0xff]  }
  0xac   : > { %1563 = vrot.lane.b32.xlu1 %v4632_v46, %s5002_s25  ;;  %v1767_v60 = vsel %vm5100_vm10, %v4649_v56, %v1766_v58  ;;  %v1768_v14 = vrot.slane %v1766_v58, 4  ;;  %v613_v12 = vor.u32 %v611_v13, %v610_v62  ;;  %v614_v20 = vrot.slane %v610_v62, 4  ;;  %v2682_v46 = vld [vmem:[#allocation2 + $0x5c] sm:$0x1] }
  0xad   : > { %v1310_v22 = vsel %vm5166_vm14, %v1305_v2, %v1309_v50  ;;  %v1763_v11 = vsel %vm5100_vm10, %v1761_v49, %v1762_v29  ;;  %v5521_v21 = vrot.slane %v616_v8, 7  ;;  %v619_v13 = vshll.u32 %v5459_v4, 16  ;;  %v331_v2 = vld [vmem:[#allocation2 + $0x74] sm:$0x1] }
  0xae   : > { %v4633_v26 = vcombine.low %v1300_v10, %v1310_v22  ;;  %v4664_v27 = vcombine.low %v1760_v3, %v1763_v11  ;;  %v1770_v57 = vsel %vm5100_vm10, %v1768_v14, %v1769_v61  ;;  %v861_v37 = vsel %vm5106_vm11, %v613_v12, %v860_v63  ;;  %v5547_v3 = vpop.permute.xlu1 %2599 }
  0xaf   : > { %v4665_v35 = vcombine.low %v1767_v60, %v1770_v57  ;;  %v2310_v38 = vshrl.u32 %v2135_v51, 16  ;;  %v5533_v5 = vpack.c.bf16 %v374_v17, %v374_v17  ;;  %v621_v4 = vor.u32 %v619_v13, %v5521_v21  ;;  %862 = vst [vmem:[#allocation2 + $0x60] sm:$0xf] %v861_v37 }
  0xb0   : > { %1565 = vrot.lane.b32.xlu1 %v4633_v26, %s5002_s25  ;;  %1887 = vrot.lane.b32.xlu0 %v4664_v27, %s5000_s23  ;;  %v2313_v41 = vshll.u32 %v2135_v51, 16  ;;  %v2319_v42 = vshll.u32 %v2136_v15, 16  ;;  %v2323_v43 = vshrl.u32 %v2136_v15, 16  ;;  %v2329_v50 = vshll.u32 %v2137_v28, 16 }
  0xb1   : > { %v2312_v47 = vrot.slane %v2310_v38, 4  ;;  %v329_v18 = vsel %vm5073_vm5, 0, %v328_v16  ;;  %v5540_v48 = vpack.c.bf16 %v375_v31, %v375_v31  ;;  %v622_v55 = vsel %vm5088_vm9, %v614_v20, %v621_v4  ;;  %v5552_v60 = vpop.permute.xlu0 %1553 }
  0xb2   : > { %v2315_v29 = vrot.slane %v2313_v41, 5  ;;  %v2321_v56 = vrot.slane %v2319_v42, 5  ;;  %v2325_v19 = vrot.slane %v2323_v43, 4  ;;  %330 = vst [vmem:[#allocation2 + $0x68] sm:$0x1] %v329_v18  ;;  %v4712_v58 = vrot.slane %v2680_v59, 9 }
  0xb3   : > { %863 = vst.msk [vmem:[#allocation2 + $0x64] sm:$0xf] %vm237_vm0, %v622_v55  ;;  %v2802_v61 = vrot.slane %v2681_v39, 5  ;;  %v2805_v62 = vrot.slane %v2682_v46, 5  ;;  %v276_v63 = vsel %vm5047_vm3, 0, %v275_v30  ;;  %v2331_v51 = vrot.slane %v2329_v50, 5 }
  0xb4   : > { %1889 = vrot.lane.b32.xlu1 %v4665_v35, %s5000_s23  ;;  %2064 = vrot.lane.b32.xlu0 %v4951_v40, %s4999_s22  ;;  %v2316_v49 = vor.u32 %v2315_v29, %v2312_v47  ;;  %v2326_v8 = vor.u32 %v2325_v19, %v2321_v56  ;;  %277 = vst [vmem:[#allocation2 + $0x6c] sm:$0x1] %v276_v63  ;;  %v625_v10 = vshrl.u32 %v5533_v5, 16  ;;  %v623_v14 = vrot.slane %v5521_v21, 4  ;;  %v4961_v63 = vld [vmem:[#allocation2 + $0x24] sm:$0xff]  }
  0xb5   : > { %v2804_v12 = vrot.slane %v2802_v61, 4  ;;  %v628_v15 = vshll.u32 %v5533_v5, 16  ;;  %v633_v22 = vshrl.u32 %v5540_v48, 16  ;;  %v332_v11 = vsel %vm5073_vm5, 0, %v331_v2  ;;  %1055 = vst.msk [vmem:[#allocation3 + $0x18] sm:$0xff] %vm6493_vm15, %v4961_v63 }
  0xb6   : > { %v2317_v16 = vrot.slane %v2316_v49, 4  ;;  %v2327_v17 = vrot.slane %v2326_v8, 4  ;;  %v2138_v20 = vld [vmem:[#allocation2 + $0x60] sm:$0xf]  ;;  %v2803_v26 = vsel %vm5100_vm10, %v4712_v58, %v2802_v61  ;;  %v627_v57 = vrot.slane %v625_v10, 7  ;;  %v5570_v39 = vpop.permute.xlu1 %3643  ;;  %v4958_v61 = vld [vmem:[#allocation2 + $0xc] sm:$0xff]  }
  0xb7   : > { %v2806_v27 = vsel %vm5100_vm10, %v2804_v12, %v2805_v62  ;;  %v636_v21 = vshll.u32 %v5540_v48, 16  ;;  %333 = vst [vmem:[#allocation2 + $0x74] sm:$0x1] %v332_v11  ;;  %v2334_v30 = vshrl.u32 %v2138_v20, 16  ;;  %v2337_v31 = vshll.u32 %v2138_v20, 16  ;;  %v4955_v58 = vld [vmem:[#allocation2] sm:$0xff]  }
  0xb8   : > { %v2322_v13 = vsel %vm5166_vm14, %v2317_v16, %v2321_v56  ;;  %v2332_v28 = vsel %vm5166_vm14, %v2327_v17, %v2331_v51  ;;  %v2683_v38 = vld [vmem:[#allocation2 + $0x60] sm:$0xe]  ;;  %v4728_v42 = vcombine.low %v2803_v26, %v2806_v27  ;;  %v630_v48 = vor.u32 %v628_v15, %v627_v57  ;;  %v4959_v62 = vld [vmem:[#allocation2 + $0x18] sm:$0xff]   ;;  %v4968_v17 = vld [vmem:[#allocation2 + $0x30] sm:$0xff]   ;;  %1052 = vst.msk [vmem:[#allocation3] sm:$0xff] %vm6493_vm15, %v4955_v58 }
  0xb9   : > { %v4696_v35 = vcombine.low %v2322_v13, %v2332_v28  ;;  %v864_v37 = vld [vmem:[#allocation2 + $0x68] sm:$0x1]  ;;  %v5568_v59 = vld [vmem:[#allocation2 + $0x60] sm:$0xf]  ;;  %v2336_v41 = vrot.slane %v2334_v30, 4  ;;  %v5574_v43 = vpop.permute.xlu0 %2597  ;;  %v2339_v46 = vrot.slane %v2337_v31, 5 }
  0xba   : > { %v4952_v5 = vld [vmem:[#allocation2 + $0x60] sm:$0xff]   ;;  %v865_v40 = vsel %vm5047_vm3, %v623_v14, %v864_v37  ;;  %v631_v29 = vrot.slane %v627_v57, 4  ;;  %v635_v56 = vrot.slane %v633_v22, 7  ;;  %v3354_v19 = vshrl.u32 %v5568_v59, 16  ;;  %v376_v13 = vld [vmem:[%s5069_s21 + $0x90] sm:$0xff]  ;;  %1053 = vst.msk [vmem:[#allocation3 + $0x8] sm:$0xff] %vm6493_vm15, %v4958_v61 }
  0xbb   : > { %v2139_v4 = vld [vmem:[#allocation2 + $0x64] sm:$0xf]  ;;  %2609 = vrot.lane.b32.xlu0 %v4696_v35, %s5005_s28  ;;  %866 = vst [vmem:[#allocation2 + $0x68] sm:$0x1] %v865_v40  ;;  %2066 = vrot.lane.b32.xlu1 %v4952_v5, %s4999_s22  ;;  %v2340_v2 = vor.u32 %v2339_v46, %v2336_v41  ;;  %v867_v51 = vld [vmem:[#allocation2 + $0x6c] sm:$0xf] }
  0xbc   : > { %v2343_v47 = vshll.u32 %v2139_v4, 16  ;;  %v2347_v50 = vshrl.u32 %v2139_v4, 16  ;;  %v2684_v18 = vld [vmem:[#allocation2 + $0x64] sm:$0xf]  ;;  %v4713_v14 = vrot.slane %v2683_v38, 9  ;;  %v638_v12 = vor.u32 %v636_v21, %v635_v56  ;;  %v4969_v11 = vld [vmem:[#allocation2 + $0x3c] sm:$0xff]   ;;  %v1556_v28 = vpop.permute.xlu1 %1555 }
  0xbd   : > { %v2809_v55 = vrot.slane %v2684_v18, 5  ;;  %v3180_v10 = vld [vmem:[#allocation2 + $0x64] sm:$0xf]  ;;  %v640_v15 = vrot.slane %v635_v56, 4  ;;  %v5581_v22 = vrot.slane %v2340_v2, 4  ;;  %v868_v57 = vsel %vm5106_vm11, %v630_v48, %v867_v51  ;;  %v377_v41 = vld [vmem:[%s5069_s21 + $0x98] sm:$0xff] }
  0xbe   : > { %v5579_v49 = vrot.slane %v2343_v47, 5  ;;  %v2349_v8 = vrot.slane %v2347_v50, 4  ;;  %v871_v16 = vld [vmem:[#allocation2 + $0x74] sm:$0x1]  ;;  %v4953_v27 = vld [vmem:[#allocation2 + $0x60] sm:$0xff]   ;;  %v639_v21 = vsel %vm5088_vm9, %v631_v29, %v638_v12  ;;  %v3357_v30 = vshll.u32 %v5568_v59, 16 }
  0xbf   : > { %2930 = vrot.lane.b32.xlu0 %v4728_v42, %s5003_s26  ;;  %v2811_v26 = vrot.slane %v2809_v55, 4  ;;  %869 = vst [vmem:[#allocation2 + $0x6c] sm:$0xf] %v868_v57  ;;  %v3363_v31 = vshll.u32 %v3180_v10, 16  ;;  %v3367_v35 = vshrl.u32 %v3180_v10, 16  ;;  %v3356_v5 = vrot.slane %v3354_v19, 4 }
  0xc0   : > { %v2350_v20 = vor.u32 %v2349_v8, %v5579_v49  ;;  %870 = vst.msk [vmem:[#allocation2 + $0x70] sm:$0xf] %vm237_vm0, %v639_v21  ;;  %v872_v40 = vsel %vm5047_vm3, %v640_v15, %v871_v16  ;;  %v3724_v4 = vld [vmem:[#allocation2 + $0x60] sm:$0xe]  ;;  %v2346_v59 = vsel %vm5166_vm14, %v5581_v22, %v5579_v49  ;;  %v5603_v47 = vsel %vm5100_vm10, %v4713_v14, %v2809_v55  ;;  %v3725_v19 = vld [vmem:[#allocation2 + $0x64] sm:$0xf] }
  0xc1   : > { %v5591_v37 = vpop.permute.xlu0 %3641  ;;  %873 = vst [vmem:[#allocation2 + $0x74] sm:$0x1] %v872_v40  ;;  %v5606_v18 = vpack.c.bf16 %v376_v13, %v376_v13  ;;  %1054 = vst.msk [vmem:[#allocation3 + $0x10] sm:$0xff] %vm6493_vm15, %v4959_v62  ;;  %v3359_v29 = vrot.slane %v3357_v30, 5  ;;  %v3365_v56 = vrot.slane %v3363_v31, 5  ;;  %v3369_v58 = vrot.slane %v3367_v35, 4 }
  0xc2   : > { %v2351_v38 = vrot.slane %v2350_v20, 4  ;;  %v2140_v42 = vld [vmem:[#allocation2 + $0x68] sm:$0x1]  ;;  %1056 = vst.msk [vmem:[#allocation3 + $0x20] sm:$0xff] %vm6493_vm15, %v4968_v17  ;;  %1057 = vst.msk [vmem:[#allocation3 + $0x28] sm:$0xff] %vm6493_vm15, %v4969_v11  ;;  %v378_v61 = vld [vmem:[%s5069_s21 + $0xa0] sm:$0xff]  ;;  %v5624_v17 = vpack.c.bf16 %v377_v41, %v377_v41 }
  0xc3   : > { %v2685_v46 = vld [vmem:[#allocation2 + $0x68] sm:$0x1]  ;;  %v2353_v48 = vshll.u32 %v2140_v42, 16  ;;  %3108 = vrot.lane.b32.xlu0 %v4953_v27, %s5001_s24  ;;  %v3360_v8 = vor.u32 %v3359_v29, %v3356_v5  ;;  %1600 = vst.msk [vmem:[#allocation3] sm:$0xff] %vm1599_vm2, %v5474_v44  ;;  %v4776_v10 = vrot.slane %v3724_v4, 9  ;;  %1601 = vst.msk [vmem:[#allocation3 + $0x8] sm:$0xff] %vm1599_vm2, %v5552_v60  ;;  %v3370_v12 = vor.u32 %v3369_v58, %v3365_v56 }
  0xc4   : > { %v3181_v50 = vld [vmem:[#allocation2 + $0x68] sm:$0x1]  ;;  %v2812_v55 = vrot.slane %v2685_v46, 5  ;;  %1602 = vst.msk [vmem:[#allocation3 + $0x10] sm:$0xff] %vm1599_vm2, %v1556_v28  ;;  %v3846_v16 = vrot.slane %v3725_v19, 5  ;;  %vm6494_vm6 = vcmask 130144  }
  0xc5   : > { %v3373_v2 = vshll.u32 %v3181_v50, 16  ;;  %v1880_v49 = vpop.permute.xlu0 %1879  ;;  %v2355_v62 = vrot.slane %v2353_v48, 5  ;;  %v3726_v51 = vld [vmem:[#allocation2 + $0x68] sm:$0x1]  ;;  %1924 = vst.msk [vmem:[#allocation3] sm:$0xff] %vm1923_vm4, %v5451_v52  ;;  %1925 = vst.msk [vmem:[#allocation3 + $0x8] sm:$0xff] %vm1923_vm4, %v5498_v45 }
  0xc6   : > { %v2813_v63 = vsel %vm5100_vm10, %v2811_v26, %v2812_v55  ;;  %v1558_v14 = vpop.permute.xlu1 %1557  ;;  %1926 = vst.msk [vmem:[#allocation3 + $0x10] sm:$0xff] %vm1923_vm4, %v1880_v49  ;;  %v3361_v11 = vrot.slane %v3360_v8, 4  ;;  %v3182_v22 = vld [vmem:[#allocation2 + $0x6c] sm:$0xf]  ;;  %v1092_v20 = vld [vmem:[#allocation2 + $0x60] sm:$0xf]  ;;  %v5633_v26 = vpack.c.bf16 %v378_v61, %v378_v61  ;;  %v3847_v45 = vsel %vm5100_vm10, %v4776_v10, %v3846_v16 }
  0xc7   : > { %v3375_v15 = vrot.slane %v3373_v2, 5  ;;  %1603 = vst.msk [vmem:[#allocation3 + $0x18] sm:$0xff] %vm1599_vm2, %v1558_v14  ;;  %v2356_v44 = vsel %vm5166_vm14, %v2351_v38, %v2355_v62  ;;  %v4729_v60 = vcombine.low %v5603_v47, %v2813_v63  ;;  %v3371_v27 = vrot.slane %v3370_v12, 4  ;;  %v3183_v57 = vld [vmem:[#allocation2 + $0x70] sm:$0xf] }
  0xc8   : > { %v4697_v52 = vcombine.low %v2346_v59, %v2356_v44  ;;  %v3849_v13 = vrot.slane %v3726_v51, 5  ;;  %v3366_v28 = vsel %vm5166_vm14, %v3361_v11, %v3365_v56  ;;  %v3184_v21 = vld [vmem:[#allocation2 + $0x74] sm:$0x1]  ;;  %v3378_v30 = vshrl.u32 %v3182_v22, 16  ;;  %v1093_v42 = vld [vmem:[#allocation2 + $0x64] sm:$0xf] }
  0xc9   : > { %v3381_v31 = vshll.u32 %v3182_v22, 16  ;;  %v3387_v35 = vshll.u32 %v3183_v57, 16  ;;  %v3376_v5 = vsel %vm5166_vm14, %v3371_v27, %v3375_v15  ;;  %v3391_v40 = vshrl.u32 %v3183_v57, 16  ;;  %v5643_v59 = vpop.permute.xlu0 %2056  ;;  %v1094_v55 = vld [vmem:[#allocation2 + $0x68] sm:$0x1]  ;;  %v4954_v10 = vld [vmem:[#allocation2 + $0x6c] sm:$0xff]  }
  0xca   : > { %v1882_v38 = vpop.permute.xlu1 %1881  ;;  %2611 = vrot.lane.b32.xlu1 %v4697_v52, %s5005_s28  ;;  %v3397_v4 = vshll.u32 %v3184_v21, 16  ;;  %v3848_v41 = vrot.slane %v3846_v16, 4  ;;  %v4760_v46 = vcombine.low %v3366_v28, %v3376_v5  ;;  %v3380_v47 = vrot.slane %v3378_v30, 4  ;;  %v3727_v2 = vld [vmem:[#allocation2 + $0x6c] sm:$0xe]  ;;  %2102 = vst.msk [vmem:[#allocation3 + $0x8] sm:$0xff] %vm6494_vm6, %v5467_v24 }
  0xcb   : > { %1927 = vst.msk [vmem:[#allocation3 + $0x18] sm:$0xff] %vm1923_vm4, %v1882_v38  ;;  %v3383_v50 = vrot.slane %v3381_v31, 5  ;;  %v3389_v48 = vrot.slane %v3387_v35, 5  ;;  %v3393_v29 = vrot.slane %v3391_v40, 4  ;;  %v1312_v58 = vshrl.u32 %v1092_v20, 16 }
  0xcc   : > { %v3399_v56 = vrot.slane %v3397_v4, 5  ;;  %v3850_v19 = vsel %vm5100_vm10, %v3848_v41, %v3849_v13  ;;  %3653 = vrot.lane.b32.xlu0 %v4760_v46, %s5006_s29  ;;  %v1315_v62 = vshll.u32 %v1092_v20, 16  ;;  %v1321_v63 = vshll.u32 %v1093_v42, 16  ;;  %v3728_v8 = vld [vmem:[#allocation2 + $0x70] sm:$0xf]  ;;  %2101 = vst.msk [vmem:[#allocation3] sm:$0xff] %vm6494_vm6, %v5444_v33 }
  0xcd   : > { %v3384_v61 = vor.u32 %v3383_v50, %v3380_v47  ;;  %v4792_v49 = vcombine.low %v3847_v45, %v3850_v19  ;;  %v3729_v51 = vld [vmem:[#allocation2 + $0x74] sm:$0x1]  ;;  %v3394_v14 = vor.u32 %v3393_v29, %v3389_v48  ;;  %v1314_v12 = vrot.slane %v1312_v58, 4  ;;  %v1095_v44 = vld [vmem:[#allocation2 + $0x6c] sm:$0xf]  ;;  %2103 = vst.msk [vmem:[#allocation3 + $0x10] sm:$0xff] %vm6494_vm6, %v5643_v59 }
  0xce   : > { %2932 = vrot.lane.b32.xlu1 %v4729_v60, %s5003_s26  ;;  %v1325_v15 = vshrl.u32 %v1093_v42, 16  ;;  %v1331_v16 = vshll.u32 %v1094_v55, 16  ;;  %v1317_v22 = vrot.slane %v1315_v62, 5  ;;  %v1323_v52 = vrot.slane %v1321_v63, 5  ;;  %v1096_v31 = vld [vmem:[#allocation2 + $0x70] sm:$0xf] }
  0xcf   : > { %v3385_v11 = vrot.slane %v3384_v61, 4  ;;  %v4777_v27 = vrot.slane %v3727_v2, 9  ;;  %v3395_v57 = vrot.slane %v3394_v14, 4  ;;  %v3853_v45 = vrot.slane %v3728_v8, 5  ;;  %v1640_v38 = vld [vmem:[#allocation2 + $0x60] sm:$0xe] }
  0xd0   : > { %v1327_v13 = vrot.slane %v1325_v15, 4  ;;  %v1333_v28 = vrot.slane %v1331_v16, 5  ;;  %3974 = vrot.lane.b32.xlu0 %v4792_v49, %s5004_s27  ;;  %v1318_v60 = vor.u32 %v1317_v22, %v1314_v12  ;;  %v3856_v30 = vrot.slane %v3729_v51, 5  ;;  %v1097_v42 = vld [vmem:[#allocation2 + $0x74] sm:$0x1] }
  0xd1   : > { %v5649_v20 = vpop.permute.xlu0 %2601  ;;  %v3390_v21 = vsel %vm5166_vm14, %v3385_v11, %v3389_v48  ;;  %v1336_v35 = vshrl.u32 %v1095_v44, 16  ;;  %v3400_v5 = vsel %vm5166_vm14, %v3395_v57, %v3399_v56  ;;  %v3854_v4 = vsel %vm5100_vm10, %v4777_v27, %v3853_v45  ;;  %v1641_v55 = vld [vmem:[#allocation2 + $0x64] sm:$0xf]  ;;  %v1642_v61 = vld [vmem:[#allocation2 + $0x68] sm:$0x1] }
  0xd2   : > { %3110 = vrot.lane.b32.xlu1 %v4954_v10, %s5001_s24  ;;  %v1328_v40 = vor.u32 %v1327_v13, %v1323_v52  ;;  %v3855_v41 = vrot.slane %v3853_v45, 4  ;;  %v4761_v46 = vcombine.low %v3390_v21, %v3400_v5  ;;  %v1319_v47 = vrot.slane %v1318_v60, 4  ;;  %v1643_v8 = vld [vmem:[#allocation2 + $0x6c] sm:$0xe]  ;;  %v1644_v51 = vld [vmem:[#allocation2 + $0x70] sm:$0xf] }
  0xd3   : > { %v1338_v50 = vrot.slane %v1336_v35, 4  ;;  %v1339_v48 = vshll.u32 %v1095_v44, 16  ;;  %v1345_v58 = vshll.u32 %v1096_v31, 16  ;;  %v1349_v2 = vshrl.u32 %v1096_v31, 16  ;;  %v1645_v44 = vld [vmem:[#allocation2 + $0x74] sm:$0x1] }
  0xd4   : > { %v1329_v29 = vrot.slane %v1328_v40, 4  ;;  %v3857_v19 = vsel %vm5100_vm10, %v3855_v41, %v3856_v30  ;;  %v1324_v56 = vsel %vm5166_vm14, %v1319_v47, %v1323_v52  ;;  %v1355_v63 = vshll.u32 %v1097_v42, 16  ;;  %v278_v57 = vld [vmem:[#allocation2 + $0x78] sm:$0x1]  ;;  %v379_v42 = vld [vmem:[%s5069_s21 + $0xa8] sm:$0xff] }
  0xd5   : > { %v4793_v49 = vcombine.low %v3854_v4, %v3857_v19  ;;  %v1341_v62 = vrot.slane %v1339_v48, 5  ;;  %v5663_v10 = vpop.permute.xlu0 %2922  ;;  %v1347_v12 = vrot.slane %v1345_v58, 5  ;;  %v1351_v15 = vrot.slane %v1349_v2, 4  ;;  %v2687_v33 = vld [vmem:[#allocation2 + $0x70] sm:$0xf] }
  0xd6   : > { %3655 = vrot.lane.b32.xlu1 %v4761_v46, %s5006_s29  ;;  %v1334_v14 = vsel %vm5166_vm14, %v1329_v29, %v1333_v28  ;;  %v4650_v16 = vrot.slane %v1640_v38, 9  ;;  %v1357_v52 = vrot.slane %v1355_v63, 5  ;;  %v1773_v27 = vrot.slane %v1641_v55, 5  ;;  %v2059_v38 = vpop.permute.xlu1 %2058  ;;  %v4974_v46 = vld [vmem:[#allocation2 + $0x48] sm:$0xff]  }
  0xd7   : > { %v4634_v11 = vcombine.low %v1324_v56, %v1334_v14  ;;  %3976 = vrot.lane.b32.xlu0 %v4793_v49, %s5004_s27  ;;  %v1342_v22 = vor.u32 %v1341_v62, %v1338_v50  ;;  %v1352_v13 = vor.u32 %v1351_v15, %v1347_v12  ;;  %v1776_v45 = vrot.slane %v1642_v61, 5  ;;  %v2141_v56 = vld [vmem:[#allocation2 + $0x6c] sm:$0xf]  ;;  %1058 = vst.msk [vmem:[#allocation3 + $0x30] sm:$0xff] %vm6493_vm15, %v4974_v46 }
  0xd8   : > { %v4651_v21 = vrot.slane %v1643_v8, 9  ;;  %v1780_v60 = vrot.slane %v1644_v51, 5  ;;  %v1774_v28 = vsel %vm5100_vm10, %v4650_v16, %v1773_v27  ;;  %v1775_v31 = vrot.slane %v1773_v27, 4  ;;  %v2142_v8 = vld [vmem:[#allocation2 + $0x70] sm:$0xf]  ;;  %v4975_v16 = vld [vmem:[#allocation2 + $0x54] sm:$0xff]  }
  0xd9   : > { %v1343_v30 = vrot.slane %v1342_v22, 4  ;;  %v1783_v35 = vrot.slane %v1645_v44, 5  ;;  %v1353_v5 = vrot.slane %v1352_v13, 4  ;;  %v279_v41 = vsel %vm5047_vm3, 0, %v278_v57  ;;  %v3101_v29 = vpop.permute.xlu0 %3100  ;;  %v5692_v51 = vld [vmem:[#allocation2 + $0x74] sm:$0x1] }
  0xda   : > { %1567 = vrot.lane.b32.xlu1 %v4634_v11, %s5002_s25  ;;  %v5674_v40 = vsel %vm5100_vm10, %v4651_v21, %v1780_v60  ;;  %v1782_v4 = vrot.slane %v1780_v60, 4  ;;  %v1777_v50 = vsel %vm5100_vm10, %v1775_v31, %v1776_v45  ;;  %280 = vst [vmem:[#allocation2 + $0x78] sm:$0x1] %v279_v41  ;;  %v642_v48 = vshrl.u32 %v5606_v18, 16  ;;  %v5705_v22 = vld [vmem:[#allocation2 + $0x6c] sm:$0xe] }
  0xdb   : > { %v1348_v47 = vsel %vm5166_vm14, %v1343_v30, %v1347_v12  ;;  %v645_v55 = vshll.u32 %v5606_v18, 16  ;;  %v1358_v19 = vsel %vm5166_vm14, %v1353_v5, %v1357_v52  ;;  %v4666_v58 = vcombine.low %v1774_v28, %v1777_v50  ;;  %v334_v18 = vld [vmem:[#allocation2 + $0x80] sm:$0x1]  ;;  %v4956_v12 = vld [vmem:[#allocation2 + $0x6c] sm:$0xff]   ;;  %v281_v52 = vld [vmem:[#allocation2 + $0x84] sm:$0x1] }
  0xdc   : > { %v1784_v2 = vsel %vm5100_vm10, %v1782_v4, %v1783_v35  ;;  %v650_v61 = vshrl.u32 %v5624_v17, 16  ;;  %v4635_v49 = vcombine.low %v1348_v47, %v1358_v19  ;;  %v644_v62 = vrot.slane %v642_v48, 7  ;;  %2104 = vst.msk [vmem:[#allocation3 + $0x18] sm:$0xff] %vm6494_vm6, %v2059_v38  ;;  %v4965_v5 = vld [vmem:[%s6489_s3 + $0x10] ss:$0 sps:$4 sm:$0x33]  }
  0xdd   : > { %v653_v63 = vshll.u32 %v5624_v17, 16  ;;  %v5694_v14 = vpack.c.bf16 %v379_v42, %v379_v42  ;;  %1891 = vrot.lane.b32.xlu0 %v4666_v58, %s5000_s23  ;;  %vm2645_vm7 = vcmask 162944   ;;  %vm2966_vm8 = vcmask 195744   ;;  %1059 = vst.msk [vmem:[#allocation3 + $0x38] sm:$0xff] %vm6493_vm15, %v4975_v16  ;;  %v337_v41 = vld [vmem:[#allocation2 + $0x8c] sm:$0x1] }
  0xde   : > { %v5697_v15 = vrot.slane %v650_v61, 7  ;;  %1569 = vrot.lane.b32.xlu1 %v4635_v49, %s5002_s25  ;;  %v4667_v44 = vcombine.low %v5674_v40, %v1784_v2  ;;  %v647_v17 = vor.u32 %v645_v55, %v644_v62  ;;  %v648_v11 = vrot.slane %v644_v62, 4  ;;  %2647 = vst.msk [vmem:[#allocation3 + $0x8] sm:$0xff] %vm2645_vm7, %v5547_v3  ;;  %2646 = vst.msk [vmem:[#allocation3] sm:$0xff] %vm2645_vm7, %v5574_v43  ;;  %v2688_v43 = vld [vmem:[#allocation2 + $0x74] sm:$0x1] }
  0xdf   : > { %vm6495_vm12 = vcmask 228544   ;;  %vm3689_vm13 = vcmask 261344   ;;  %vm4010_vm1 = vcmask 294144   ;;  %v2358_v24 = vshrl.u32 %v2141_v56, 16  ;;  %2648 = vst.msk [vmem:[#allocation3 + $0x10] sm:$0xff] %vm2645_vm7, %v5649_v20 }
  0xe0   : > { %v2604_v27 = vpop.permute.xlu1 %2603  ;;  %v655_v57 = vor.u32 %v653_v63, %v5697_v15  ;;  %2968 = vst.msk [vmem:[#allocation3 + $0x8] sm:$0xff] %vm2966_vm8, %v5523_v23  ;;  %v2361_v59 = vshll.u32 %v2141_v56, 16  ;;  %v2367_v13 = vshll.u32 %v2142_v8, 16  ;;  %v2371_v45 = vshrl.u32 %v2142_v8, 16  ;;  %2967 = vst.msk [vmem:[#allocation3] sm:$0xff] %vm2966_vm8, %v5486_v9 }
  0xe1   : > { %2649 = vst.msk [vmem:[#allocation3 + $0x18] sm:$0xff] %vm2645_vm7, %v2604_v27  ;;  %v2377_v3 = vshll.u32 %v5692_v51, 16  ;;  %2068 = vrot.lane.b32.xlu0 %v4956_v12, %s4999_s22  ;;  %v874_v60 = vld [vmem:[#allocation2 + $0x78] sm:$0xf]  ;;  %v2360_v23 = vrot.slane %v2358_v24, 4  ;;  %v335_v30 = vsel %vm5073_vm5, 0, %v334_v18 }
  0xe2   : > { %2969 = vst.msk [vmem:[#allocation3 + $0x10] sm:$0xff] %vm2966_vm8, %v5663_v10  ;;  %v3646_v20 = vpop.permute.xlu0 %3645  ;;  %v656_v21 = vsel %vm5088_vm9, %v648_v11, %v655_v57  ;;  %v4714_v9 = vrot.slane %v5705_v22, 9  ;;  %1893 = vrot.lane.b32.xlu1 %v4667_v44, %s5000_s23  ;;  %v875_v10 = vsel %vm5106_vm11, %v647_v17, %v874_v60  ;;  %v2369_v28 = vrot.slane %v2367_v13, 5  ;;  %336 = vst [vmem:[#allocation2 + $0x80] sm:$0x1] %v335_v30 }
  0xe3   : > { %3146 = vst.msk [vmem:[#allocation3 + $0x8] sm:$0xff] %vm6495_vm12, %v5482_v1  ;;  %3145 = vst.msk [vmem:[#allocation3] sm:$0xff] %vm6495_vm12, %v5461_v7  ;;  %v2363_v1 = vrot.slane %v2361_v59, 5  ;;  %v2373_v31 = vrot.slane %v2371_v45, 4  ;;  %v2379_v35 = vrot.slane %v2377_v3, 5  ;;  %v2816_v38 = vrot.slane %v2687_v33, 5 }
  0xe4   : > { %3147 = vst.msk [vmem:[#allocation3 + $0x10] sm:$0xff] %vm6495_vm12, %v3101_v29  ;;  %v2925_v7 = vpop.permute.xlu1 %2924  ;;  %876 = vst [vmem:[#allocation2 + $0x78] sm:$0xf] %v875_v10  ;;  %v2819_v4 = vrot.slane %v2688_v43, 5  ;;  %v657_v46 = vrot.slane %v5697_v15, 4  ;;  %v662_v47 = vshll.u32 %v5633_v26, 16 }
  0xe5   : > { %877 = vst.msk [vmem:[#allocation2 + $0x7c] sm:$0xf] %vm237_vm0, %v656_v21  ;;  %v2374_v40 = vor.u32 %v2373_v31, %v2369_v28  ;;  %v667_v50 = vshrl.u32 %v5694_v14, 16  ;;  %v2817_v29 = vsel %vm5100_vm10, %v4714_v9, %v2816_v38  ;;  %vm4112_vm15 = vcmask 1041408   ;;  %v381_v21 = vld [vmem:[%s5069_s21 + $0xb8] sm:$0xff] }
  0xe6   : > { %3691 = vst.msk [vmem:[#allocation3 + $0x8] sm:$0xff] %vm3689_vm13, %v5570_v39  ;;  %3690 = vst.msk [vmem:[#allocation3] sm:$0xff] %vm3689_vm13, %v5591_v37  ;;  %v282_v39 = vsel %vm5047_vm3, 0, %v281_v52  ;;  %v2364_v37 = vor.u32 %v2363_v1, %v2360_v23  ;;  %v3967_v42 = vpop.permute.xlu0 %3966  ;;  %v670_v2 = vshll.u32 %v5694_v14, 16  ;;  %4920 = vmatprep.subr.msk.bf16.mxu0 %vm4112_vm15, %v4965_v5  ;;  %v338_v61 = vsel %vm5073_vm5, 0, %v337_v41  ;;  %4921 = vmatprep.subr.msk.bf16.mxu1 %vm4112_vm15, %v4965_v5 }
  0xe7   : > { %3692 = vst.msk [vmem:[#allocation3 + $0x10] sm:$0xff] %vm3689_vm13, %v3646_v20  ;;  %283 = vst [vmem:[#allocation2 + $0x84] sm:$0x1] %v282_v39  ;;  %v2375_v55 = vrot.slane %v2374_v40, 4  ;;  %v4114_v56 = vsel %vm4112_vm15, %v4965_v5, 0  ;;  %v5773_v63 = vrot.slane %v667_v50, 7 }
  0xe8   : > { %4012 = vst.msk [vmem:[#allocation3 + $0x8] sm:$0xff] %vm4010_vm1, %v5529_v32  ;;  %4011 = vst.msk [vmem:[#allocation3] sm:$0xff] %vm4010_vm1, %v5501_v54  ;;  %v659_v32 = vshrl.u32 %v5633_v26, 16  ;;  %v2818_v54 = vrot.slane %v2816_v38, 4  ;;  %v2365_v48 = vrot.slane %v2364_v37, 4  ;;  %v3103_v19 = vpop.permute.xlu1 %3102  ;;  %4881 = vmatpush3.bf16.msra.mxu0 %v4114_v56  ;;  %4919 = vmatpush3.bf16.msra.mxu1 %v4114_v56  ;;  %v380_v20 = vld [vmem:[%s5069_s21 + $0xb0] sm:$0xff] }
  0xe9   : > { %2970 = vst.msk [vmem:[#allocation3 + $0x18] sm:$0xff] %vm2966_vm8, %v2925_v7  ;;  %v2380_v49 = vsel %vm5166_vm14, %v2375_v55, %v2379_v35  ;;  %339 = vst [vmem:[#allocation2 + $0x8c] sm:$0x1] %v338_v61  ;;  %v878_v51 = vld [vmem:[#allocation2 + $0x80] sm:$0x1]  ;;  %v672_v59 = vor.u32 %v670_v2, %v5773_v63  ;;  %v674_v30 = vrot.slane %v5773_v63, 4  ;;  %v5804_v2 = vpack.c.bf16 %v381_v21, %v381_v21 }
  0xea   : > { %4013 = vst.msk [vmem:[#allocation3 + $0x10] sm:$0xff] %vm4010_vm1, %v3967_v42  ;;  %v661_v58 = vrot.slane %v659_v32, 7  ;;  %v2370_v26 = vsel %vm5166_vm14, %v2365_v48, %v2369_v28  ;;  %v2820_v62 = vsel %vm5100_vm10, %v2818_v54, %v2819_v4  ;;  %v879_v12 = vsel %vm5047_vm3, %v657_v46, %v878_v51 }
  0xeb   : > { %3148 = vst.msk [vmem:[#allocation3 + $0x18] sm:$0xff] %vm6495_vm12, %v3103_v19  ;;  %v4698_v8 = vcombine.low %v2370_v26, %v2380_v49  ;;  %v2144_v15 = vld [vmem:[#allocation2 + $0x78] sm:$0xf]  ;;  %880 = vst [vmem:[#allocation2 + $0x80] sm:$0x1] %v879_v12  ;;  %v4730_v22 = vcombine.low %v2817_v29, %v2820_v62  ;;  %vm4063_vm15 = vcmask 293888  }
  0xec   : > { %v2145_v18 = vld [vmem:[#allocation2 + $0x7c] sm:$0xf]  ;;  %v2382_v44 = vshrl.u32 %v2144_v15, 16  ;;  %v2385_v17 = vshll.u32 %v2144_v15, 16  ;;  %v5778_v52 = vld [vmem:[#allocation2 + $0x78] sm:$0xe]  ;;  %v664_v33 = vor.u32 %v662_v47, %v661_v58 }
  0xed   : > { %v4957_v14 = vld [vmem:[#allocation2 + $0x78] sm:$0xff]   ;;  %v2391_v16 = vshll.u32 %v2145_v18, 16  ;;  %2613 = vrot.lane.b32.xlu0 %v4698_v8, %s5005_s28  ;;  %v2395_v11 = vshrl.u32 %v2145_v18, 16  ;;  %v3969_v27 = vpop.permute.xlu0 %3968  ;;  %v665_v23 = vrot.slane %v661_v58, 4  ;;  %v4715_v31 = vrot.slane %v5778_v52, 9 }
  0xee   : > { %2070 = vrot.lane.b32.xlu1 %v4957_v14, %s4999_s22  ;;  %v5783_v24 = vld [vmem:[#allocation2 + $0x7c] sm:$0xf]  ;;  %v2384_v13 = vrot.slane %v2382_v44, 4  ;;  %v2387_v45 = vrot.slane %v2385_v17, 5  ;;  %v3648_v60 = vpop.permute.xlu1 %3647  ;;  %v881_v9 = vld [vmem:[#allocation2 + $0x84] sm:$0xf]  ;;  %v5802_v58 = vpack.c.bf16 %v380_v20, %v380_v20 }
  0xef   : > { %v5781_v57 = vrot.slane %v2391_v16, 5  ;;  %v2397_v3 = vrot.slane %v2395_v11, 4  ;;  %v2823_v43 = vrot.slane %v5783_v24, 5  ;;  %v3185_v10 = vld [vmem:[#allocation2 + $0x78] sm:$0xf]  ;;  %3693 = vst.msk [vmem:[#allocation3 + $0x18] sm:$0xff] %vm3689_vm13, %v3648_v60  ;;  %v673_v39 = vsel %vm5088_vm9, %v665_v23, %v672_v59 }
  0xf0   : > { %v2388_v1 = vor.u32 %v2387_v45, %v2384_v13  ;;  %v4962_v7 = vld [vmem:[#allocation2 + $0x78] sm:$0xff]   ;;  %v885_v38 = vld [vmem:[#allocation2 + $0x8c] sm:$0x1]  ;;  %4014 = vst.msk [vmem:[#allocation3 + $0x18] sm:$0xff] %vm4010_vm1, %v3969_v27  ;;  %v882_v5 = vsel %vm5106_vm11, %v664_v33, %v881_v9  ;;  %v3402_v37 = vshrl.u32 %v3185_v10, 16  ;;  %v3405_v40 = vshll.u32 %v3185_v10, 16 }
  0xf1   : > { %v2398_v28 = vor.u32 %v2397_v3, %v5781_v57  ;;  %2934 = vrot.lane.b32.xlu0 %v4730_v22, %s5003_s26  ;;  %v3186_v35 = vld [vmem:[#allocation2 + $0x7c] sm:$0xf]  ;;  %v3730_v4 = vld [vmem:[#allocation2 + $0x78] sm:$0xe]  ;;  %v2825_v41 = vrot.slane %v2823_v43, 4  ;;  %v1884_v50 = vpop.permute.xlu0 %1883  ;;  %v886_v19 = vsel %vm5047_vm3, %v674_v30, %v885_v38  ;;  %v382_v17 = vld [vmem:[%s5069_s21 + $0xc0] sm:$0xff]  ;;  %v2824_v22 = vsel %vm5100_vm10, %v4715_v31, %v2823_v43 }
  0xf2   : > { %v2389_v32 = vrot.slane %v2388_v1, 4  ;;  %883 = vst [vmem:[#allocation2 + $0x84] sm:$0xf] %v882_v5  ;;  %884 = vst.msk [vmem:[#allocation2 + $0x88] sm:$0xf] %vm237_vm0, %v673_v39  ;;  %v3411_v42 = vshll.u32 %v3186_v35, 16  ;;  %v1560_v47 = vpop.permute.xlu1 %1559  ;;  %v5825_v60 = vpack.c.bf16 %v382_v17, %v382_v17 }
  0xf3   : > { %v3415_v46 = vshrl.u32 %v3186_v35, 16  ;;  %v3731_v54 = vld [vmem:[#allocation2 + $0x7c] sm:$0xf]  ;;  %v2146_v48 = vld [vmem:[#allocation2 + $0x80] sm:$0x1]  ;;  %1604 = vst.msk [vmem:[#allocation3 + $0x20] sm:$0xff] %vm1599_vm2, %v1560_v47 }
  0xf4   : > { %v2691_v55 = vld [vmem:[#allocation2 + $0x80] sm:$0x1]  ;;  %v2399_v61 = vrot.slane %v2398_v28, 4  ;;  %v2401_v56 = vshll.u32 %v2146_v48, 16  ;;  %v3404_v49 = vrot.slane %v3402_v37, 4  ;;  %1928 = vst.msk [vmem:[#allocation3 + $0x20] sm:$0xff] %vm1923_vm4, %v1884_v50  ;;  %v2394_v14 = vsel %vm5166_vm14, %v2389_v32, %v5781_v57 }
  0xf5   : > { %v3187_v29 = vld [vmem:[#allocation2 + $0x80] sm:$0x1]  ;;  %v2826_v26 = vrot.slane %v2691_v55, 5  ;;  %3112 = vrot.lane.b32.xlu0 %v4962_v7, %s5001_s24  ;;  %887 = vst [vmem:[#allocation2 + $0x8c] sm:$0x1] %v886_v19  ;;  %v3407_v62 = vrot.slane %v3405_v40, 5  ;;  %v2061_v11 = vpop.permute.xlu0 %2060 }
  0xf6   : > { %v3413_v63 = vrot.slane %v3411_v42, 5  ;;  %v3417_v8 = vrot.slane %v3415_v46, 4  ;;  %v3421_v51 = vshll.u32 %v3187_v29, 16  ;;  %v3732_v18 = vld [vmem:[#allocation2 + $0x80] sm:$0x1]  ;;  %v2403_v12 = vrot.slane %v2401_v56, 5  ;;  %v1562_v44 = vpop.permute.xlu1 %1561 }
  0xf7   : > { %v4778_v15 = vrot.slane %v3730_v4, 9  ;;  %v3860_v16 = vrot.slane %v3731_v54, 5  ;;  %v2827_v52 = vsel %vm5100_vm10, %v2825_v41, %v2826_v26  ;;  %v3408_v27 = vor.u32 %v3407_v62, %v3404_v49  ;;  %1605 = vst.msk [vmem:[#allocation3 + $0x28] sm:$0xff] %vm1599_vm2, %v1562_v44  ;;  %v4027_v45 = vld [vmem:[#allocation3] sm:$0xff]  ;;  %v4029_v23 = vld [vmem:[#allocation3 + $0x10] sm:$0xff]  ;;  %v4028_v37 = vld [vmem:[#allocation3 + $0x8] sm:$0xff] }
  0xf8   : > { %v3418_v24 = vor.u32 %v3417_v8, %v3413_v63  ;;  %2105 = vst.msk [vmem:[#allocation3 + $0x20] sm:$0xff] %vm6494_vm6, %v2061_v11  ;;  %v2404_v57 = vsel %vm5166_vm14, %v2399_v61, %v2403_v12  ;;  %v3423_v33 = vrot.slane %v3421_v51, 5  ;;  %v3863_v13 = vrot.slane %v3732_v18, 5  ;;  %v1098_v21 = vld [vmem:[#allocation2 + $0x78] sm:$0xf]  ;;  %4882 = vmatprep.mubr.msk.bf16.mxu0 %vm4063_vm15, %v4027_v45 }
  0xf9   : > { %v3862_v59 = vrot.slane %v3860_v16, 4  ;;  %v4699_v3 = vcombine.low %v2394_v14, %v2404_v57  ;;  %v3409_v20 = vrot.slane %v3408_v27, 4  ;;  %v5823_v43 = vsel %vm5100_vm10, %v4778_v15, %v3860_v16  ;;  %v3188_v10 = vld [vmem:[#allocation2 + $0x84] sm:$0xf]  ;;  %v3189_v1 = vld [vmem:[#allocation2 + $0x88] sm:$0xf]  ;;  %4883 = vmatmul.mubr.msk.bf16.vlgmr.msra.gmra.mrb[0].mxu0 %vm4063_vm15, %v4028_v37 }
  0xfa   : > { %v4731_v30 = vcombine.low %v2824_v22, %v2827_v52  ;;  %v3419_v9 = vrot.slane %v3418_v24, 4  ;;  %v1886_v31 = vpop.permute.xlu1 %1885  ;;  %v3426_v38 = vshrl.u32 %v3188_v10, 16  ;;  %v3429_v39 = vshll.u32 %v3188_v10, 16  ;;  %v1099_v42 = vld [vmem:[#allocation2 + $0x7c] sm:$0xf]  ;;  %4886 = vmatprep.mubr.msk.bf16.mxu0 %vm4063_vm15, %v4029_v23  ;;  %v4964_v49 = vld [vmem:[#allocation2 + $0x84] sm:$0xff]  }
  0xfb   : > { %v3864_v28 = vsel %vm5100_vm10, %v3862_v59, %v3863_v13  ;;  %2615 = vrot.lane.b32.xlu1 %v4699_v3, %s5005_s28  ;;  %v3414_v7 = vsel %vm5166_vm14, %v3409_v20, %v3413_v63  ;;  %v3435_v5 = vshll.u32 %v3189_v1, 16  ;;  %1929 = vst.msk [vmem:[#allocation3 + $0x28] sm:$0xff] %vm1923_vm4, %v1886_v31  ;;  %v3439_v4 = vshrl.u32 %v3189_v1, 16  ;;  %v1100_v46 = vld [vmem:[#allocation2 + $0x80] sm:$0x1]  ;;  %v4030_v57 = vld [vmem:[#allocation3 + $0x18] sm:$0xff] }
  0xfc   : > { %v3190_v35 = vld [vmem:[#allocation2 + $0x8c] sm:$0x1]  ;;  %v3424_v40 = vsel %vm5166_vm14, %v3419_v9, %v3423_v33  ;;  %v4794_v41 = vcombine.low %v5823_v43, %v3864_v28  ;;  %v3428_v47 = vrot.slane %v3426_v38, 4  ;;  %v3431_v50 = vrot.slane %v3429_v39, 5  ;;  %v3733_v55 = vld [vmem:[#allocation2 + $0x84] sm:$0xe] }
  0xfd   : > { %v3445_v32 = vshll.u32 %v3190_v35, 16  ;;  %v4762_v54 = vcombine.low %v3414_v7, %v3424_v40  ;;  %v3437_v48 = vrot.slane %v3435_v5, 5  ;;  %v3441_v29 = vrot.slane %v3439_v4, 4  ;;  %v3734_v26 = vld [vmem:[#allocation2 + $0x88] sm:$0xf] }
  0xfe   : > { %v1360_v61 = vshrl.u32 %v1098_v21, 16  ;;  %v1363_v56 = vshll.u32 %v1098_v21, 16  ;;  %v3432_v62 = vor.u32 %v3431_v50, %v3428_v47  ;;  %v1369_v63 = vshll.u32 %v1099_v42, 16  ;;  %v3735_v18 = vld [vmem:[#allocation2 + $0x8c] sm:$0x1] }
  0xff   : > { %v3447_v19 = vrot.slane %v3445_v32, 5  ;;  %2936 = vrot.lane.b32.xlu1 %v4731_v30, %s5003_s26  ;;  %3657 = vrot.lane.b32.xlu0 %v4762_v54, %s5006_s29  ;;  %v1373_v8 = vshrl.u32 %v1099_v42, 16  ;;  %v1379_v51 = vshll.u32 %v1100_v46, 16  ;;  %v3442_v14 = vor.u32 %v3441_v29, %v3437_v48  ;;  %v1101_v44 = vld [vmem:[#allocation2 + $0x84] sm:$0xf]  ;;  %v2606_v17 = vpop.permute.xlu0 %2605  ;;  %v2063_v24 = vpop.permute.xlu1 %2062 }
 0x100   : > { %v1362_v12 = vrot.slane %v1360_v61, 4  ;;  %v1365_v15 = vrot.slane %v1363_v56, 5  ;;  %v4779_v16 = vrot.slane %v3733_v55, 9  ;;  %v3433_v11 = vrot.slane %v3432_v62, 4  ;;  %2650 = vst.msk [vmem:[#allocation3 + $0x20] sm:$0xff] %vm2645_vm7, %v2606_v17 }
 0x101   : > { %v1371_v22 = vrot.slane %v1369_v63, 5  ;;  %v1375_v52 = vrot.slane %v1373_v8, 4  ;;  %v1381_v27 = vrot.slane %v1379_v51, 5  ;;  %v3443_v33 = vrot.slane %v3442_v14, 4  ;;  %2106 = vst.msk [vmem:[#allocation3 + $0x28] sm:$0xff] %vm6494_vm6, %v2063_v24  ;;  %4887 = vmatmul.mubr.msk.bf16.gmra.mrb[4].mxu0 %vm4063_vm15, %v4030_v57  ;;  %v4980_v63 = vld [vmem:[#allocation2 + $0x60] sm:$0xff]  }
 0x102   : > { %v1366_v59 = vor.u32 %v1365_v15, %v1362_v12  ;;  %v3867_v13 = vrot.slane %v3734_v26, 5  ;;  %v3870_v45 = vrot.slane %v3735_v18, 5  ;;  %v3438_v3 = vsel %vm5166_vm14, %v3433_v11, %v3437_v48  ;;  %v1102_v43 = vld [vmem:[#allocation2 + $0x88] sm:$0xf]  ;;  %v1646_v30 = vld [vmem:[#allocation2 + $0x78] sm:$0xe] }
 0x103   : > { %3114 = vrot.lane.b32.xlu1 %v4964_v49, %s5001_s24  ;;  %3978 = vrot.lane.b32.xlu0 %v4794_v41, %s5004_s27  ;;  %v1376_v20 = vor.u32 %v1375_v52, %v1371_v22  ;;  %v1384_v21 = vshrl.u32 %v1101_v44, 16  ;;  %v1387_v23 = vshll.u32 %v1101_v44, 16  ;;  %v3448_v9 = vsel %vm5166_vm14, %v3443_v33, %v3447_v19  ;;  %v1103_v31 = vld [vmem:[#allocation2 + $0x8c] sm:$0x1]  ;;  %v2927_v7 = vpop.permute.xlu0 %2926  ;;  %v1647_v37 = vld [vmem:[#allocation2 + $0x7c] sm:$0xf] }
 0x104   : > { %v1367_v10 = vrot.slane %v1366_v59, 4  ;;  %v3868_v1 = vsel %vm5100_vm10, %v4779_v16, %v3867_v13  ;;  %v3869_v28 = vrot.slane %v3867_v13, 4  ;;  %v4763_v35 = vcombine.low %v3438_v3, %v3448_v9  ;;  %2971 = vst.msk [vmem:[#allocation3 + $0x20] sm:$0xff] %vm2966_vm8, %v2927_v7  ;;  %v1648_v42 = vld [vmem:[#allocation2 + $0x80] sm:$0x1]  ;;  %v383_v11 = vld [vmem:[%s5069_s21 + $0xc8] sm:$0xff] }
 0x105   : > { %v1377_v38 = vrot.slane %v1376_v20, 4  ;;  %v1386_v39 = vrot.slane %v1384_v21, 4  ;;  %v1389_v5 = vrot.slane %v1387_v23, 5  ;;  %v1393_v32 = vshll.u32 %v1102_v43, 16  ;;  %v1649_v46 = vld [vmem:[#allocation2 + $0x84] sm:$0xe] }
 0x106   : > { %v1372_v40 = vsel %vm5166_vm14, %v1367_v10, %v1371_v22  ;;  %v3871_v4 = vsel %vm5100_vm10, %v3869_v28, %v3870_v45  ;;  %v1397_v41 = vshrl.u32 %v1102_v43, 16  ;;  %v1403_v48 = vshll.u32 %v1103_v31, 16  ;;  %v1650_v55 = vld [vmem:[#allocation2 + $0x88] sm:$0xf]  ;;  %v1651_v29 = vld [vmem:[#allocation2 + $0x8c] sm:$0x1] }
 0x107   : > { %3659 = vrot.lane.b32.xlu1 %v4763_v35, %s5006_s29  ;;  %v1382_v54 = vsel %vm5166_vm14, %v1377_v38, %v1381_v27  ;;  %v4795_v47 = vcombine.low %v3868_v1, %v3871_v4  ;;  %v1390_v50 = vor.u32 %v1389_v5, %v1386_v39  ;;  %v1395_v61 = vrot.slane %v1393_v32, 5  ;;  %v284_v49 = vld [vmem:[#allocation2 + $0x90] sm:$0x1]  ;;  %v3105_v62 = vpop.permute.xlu0 %3104  ;;  %v2147_v17 = vld [vmem:[#allocation2 + $0x84] sm:$0xf] }
 0x108   : > { %v4636_v19 = vcombine.low %v1372_v40, %v1382_v54  ;;  %v1399_v56 = vrot.slane %v1397_v41, 4  ;;  %v4652_v26 = vrot.slane %v1646_v30, 9  ;;  %v1405_v51 = vrot.slane %v1403_v48, 5  ;;  %3149 = vst.msk [vmem:[#allocation3 + $0x20] sm:$0xff] %vm6495_vm12, %v3105_v62  ;;  %v2148_v57 = vld [vmem:[#allocation2 + $0x88] sm:$0xf] }
 0x109   : > { %3980 = vrot.lane.b32.xlu0 %v4795_v47, %s5004_s27  ;;  %v1391_v8 = vrot.slane %v1390_v50, 4  ;;  %v1787_v18 = vrot.slane %v1647_v37, 5  ;;  %v1790_v14 = vrot.slane %v1648_v42, 5  ;;  %v4653_v15 = vrot.slane %v1649_v46, 9  ;;  %v4981_v3 = vld [vmem:[#allocation2 + $0x6c] sm:$0xff]   ;;  %v4966_v5 = vld [vmem:[#allocation2 + $0x84] sm:$0xff]  }
 0x10a   : > { %v1400_v12 = vor.u32 %v1399_v56, %v1395_v61  ;;  %v1794_v16 = vrot.slane %v1650_v55, 5  ;;  %v1797_v44 = vrot.slane %v1651_v29, 5  ;;  %vm6508_vm6 = vcmask 31744   ;;  %v340_v28 = vld [vmem:[#allocation2 + $0x98] sm:$0x1]  ;;  %v384_v48 = vld [vmem:[%s5069_s21 + $0xd0] sm:$0xff] }
 0x10b   : > { %1060 = vst.msk [vmem:[#allocation3 + $0x40] sm:$0xff] %vm6508_vm6, %v4980_v63  ;;  %1571 = vrot.lane.b32.xlu1 %v4636_v19, %s5002_s25  ;;  %v1396_v22 = vsel %vm5166_vm14, %v1391_v8, %v1395_v61  ;;  %v1788_v52 = vsel %vm5100_vm10, %v4652_v26, %v1787_v18  ;;  %v1789_v27 = vrot.slane %v1787_v18, 4  ;;  %v285_v24 = vsel %vm5047_vm3, 0, %v284_v49  ;;  %1061 = vst.msk [vmem:[#allocation3 + $0x48] sm:$0xff] %vm6508_vm6, %v4981_v3  ;;  %v2692_v39 = vld [vmem:[#allocation2 + $0x84] sm:$0xe] }
 0x10c   : > { %v1401_v33 = vrot.slane %v1400_v12, 4  ;;  %v1795_v59 = vsel %vm5100_vm10, %v4653_v15, %v1794_v16  ;;  %v1796_v13 = vrot.slane %v1794_v16, 4  ;;  %286 = vst [vmem:[#allocation2 + $0x90] sm:$0x1] %v285_v24  ;;  %v676_v45 = vshrl.u32 %v5802_v58, 16 }
 0x10d   : > { %v1791_v20 = vsel %vm5100_vm10, %v1789_v27, %v1790_v14  ;;  %v679_v43 = vshll.u32 %v5802_v58, 16  ;;  %v684_v21 = vshrl.u32 %v5804_v2, 16  ;;  %v687_v23 = vshll.u32 %v5804_v2, 16  ;;  %v2149_v58 = vld [vmem:[#allocation2 + $0x8c] sm:$0x1] }
 0x10e   : > { %v1406_v30 = vsel %vm5166_vm14, %v1401_v33, %v1405_v51  ;;  %v4668_v9 = vcombine.low %v1788_v52, %v1791_v20  ;;  %v1798_v10 = vsel %vm5100_vm10, %v1796_v13, %v1797_v44  ;;  %v678_v1 = vrot.slane %v676_v45, 7  ;;  %v2608_v31 = vpop.permute.xlu1 %2607  ;;  %v2693_v41 = vld [vmem:[#allocation2 + $0x88] sm:$0xf]  ;;  %v287_v50 = vld [vmem:[#allocation2 + $0x9c] sm:$0x1] }
 0x10f   : > { %v4637_v7 = vcombine.low %v1396_v22, %v1406_v30  ;;  %v5884_v35 = vrot.slane %v684_v21, 7  ;;  %v2406_v38 = vshrl.u32 %v2147_v17, 16  ;;  %v5886_v2 = vpack.c.bf16 %v383_v11, %v383_v11  ;;  %2651 = vst.msk [vmem:[#allocation3 + $0x28] sm:$0xff] %vm2645_vm7, %v2608_v31  ;;  %v2694_v26 = vld [vmem:[#allocation2 + $0x8c] sm:$0x1] }
 0x110   : > { %1895 = vrot.lane.b32.xlu0 %v4668_v9, %s5000_s23  ;;  %v681_v37 = vor.u32 %v679_v43, %v678_v1  ;;  %v682_v40 = vrot.slane %v678_v1, 4  ;;  %v2409_v4 = vshll.u32 %v2147_v17, 16  ;;  %v2415_v32 = vshll.u32 %v2148_v57, 16  ;;  %v343_v16 = vld [vmem:[#allocation2 + $0xa4] sm:$0x1]  ;;  %v4984_v1 = vld [vmem:[#allocation2 + $0x78] sm:$0xff]  }
 0x111   : > { %1573 = vrot.lane.b32.xlu1 %v4637_v7, %s5002_s25  ;;  %v4669_v42 = vcombine.low %v1795_v59, %v1798_v10  ;;  %v689_v46 = vor.u32 %v687_v23, %v5884_v35  ;;  %v2408_v54 = vrot.slane %v2406_v38, 4  ;;  %v2419_v47 = vshrl.u32 %v2148_v57, 16  ;;  %v3650_v55 = vpop.permute.xlu0 %3649  ;;  %v290_v45 = vld [vmem:[#allocation2 + $0xa8] sm:$0x1]  ;;  %1062 = vst.msk [vmem:[#allocation3 + $0x50] sm:$0xff] %vm6508_vm6, %v4984_v1 }
 0x112   : > { %v2411_v29 = vrot.slane %v2409_v4, 5  ;;  %v2417_v19 = vrot.slane %v2415_v32, 5  ;;  %v2425_v61 = vshll.u32 %v2149_v58, 16  ;;  %v341_v56 = vsel %vm5073_vm5, 0, %v340_v28  ;;  %v2929_v49 = vpop.permute.xlu1 %2928  ;;  %3694 = vst.msk [vmem:[#allocation3 + $0x20] sm:$0xff] %vm3689_vm13, %v3650_v55  ;;  %v4985_v28 = vld [vmem:[#allocation2 + $0x84] sm:$0xff]  }
 0x113   : > { %v690_v62 = vsel %vm5088_vm9, %v682_v40, %v689_v46  ;;  %v888_v63 = vld [vmem:[#allocation2 + $0x90] sm:$0xf]  ;;  %v2421_v8 = vrot.slane %v2419_v47, 4  ;;  %342 = vst [vmem:[#allocation2 + $0x98] sm:$0x1] %v341_v56  ;;  %v4716_v51 = vrot.slane %v2692_v39, 9  ;;  %v5903_v44 = vpack.c.bf16 %v384_v48, %v384_v48 }
 0x114   : > { %v2830_v18 = vrot.slane %v2693_v41, 5  ;;  %2972 = vst.msk [vmem:[#allocation3 + $0x28] sm:$0xff] %vm2966_vm8, %v2929_v49  ;;  %2072 = vrot.lane.b32.xlu0 %v4966_v5, %s4999_s22  ;;  %v889_v14 = vsel %vm5106_vm11, %v681_v37, %v888_v63  ;;  %v2412_v12 = vor.u32 %v2411_v29, %v2408_v54  ;;  %v2427_v15 = vrot.slane %v2425_v61, 5 }
 0x115   : > { %891 = vst.msk [vmem:[#allocation2 + $0x94] sm:$0xf] %vm237_vm0, %v690_v62  ;;  %1897 = vrot.lane.b32.xlu1 %v4669_v42, %s5000_s23  ;;  %890 = vst [vmem:[#allocation2 + $0x90] sm:$0xf] %v889_v14  ;;  %v2422_v17 = vor.u32 %v2421_v8, %v2417_v19  ;;  %v2833_v22 = vrot.slane %v2694_v26, 5  ;;  %v288_v52 = vsel %vm5047_vm3, 0, %v287_v50  ;;  %v3971_v27 = vpop.permute.xlu0 %3970 }
 0x116   : > { %v2832_v11 = vrot.slane %v2830_v18, 4  ;;  %v691_v24 = vrot.slane %v5884_v35, 4  ;;  %v2413_v57 = vrot.slane %v2412_v12, 4  ;;  %289 = vst [vmem:[#allocation2 + $0x9c] sm:$0x1] %v288_v52  ;;  %v693_v33 = vshrl.u32 %v5825_v60, 16  ;;  %v3107_v13 = vpop.permute.xlu1 %3106 }
 0x117   : > { %v701_v59 = vshrl.u32 %v5886_v2, 16  ;;  %4015 = vst.msk [vmem:[#allocation3 + $0x20] sm:$0xff] %vm4010_vm1, %v3971_v27  ;;  %v2423_v3 = vrot.slane %v2422_v17, 4  ;;  %v2831_v20 = vsel %vm5100_vm10, %v4716_v51, %v2830_v18  ;;  %v704_v43 = vshll.u32 %v5886_v2, 16  ;;  %v385_v62 = vld [vmem:[%s5069_s21 + $0xd8] sm:$0xff] }
 0x118   : > { %v344_v21 = vsel %vm5073_vm5, 0, %v343_v16  ;;  %3150 = vst.msk [vmem:[#allocation3 + $0x28] sm:$0xff] %vm6495_vm12, %v3107_v13  ;;  %v2418_v23 = vsel %vm5166_vm14, %v2413_v57, %v2417_v19  ;;  %v695_v30 = vrot.slane %v693_v33, 7  ;;  %v696_v9 = vshll.u32 %v5825_v60, 16  ;;  %vm6509_vm12 = vmmov %vm6508_vm6  ;;  %v386_v13 = vld [vmem:[%s5069_s21 + $0xe0] sm:$0xff] }
 0x119   : > { %v5921_v10 = vrot.slane %v701_v59, 7  ;;  %345 = vst [vmem:[#allocation2 + $0xa4] sm:$0x1] %v344_v21  ;;  %v2428_v31 = vsel %vm5166_vm14, %v2423_v3, %v2427_v15  ;;  %v2834_v7 = vsel %vm5100_vm10, %v2832_v11, %v2833_v22  ;;  %v291_v35 = vsel %vm5047_vm3, 0, %v290_v45  ;;  %1063 = vst.msk [vmem:[#allocation3 + $0x58] sm:$0xff] %vm6509_vm12, %v4985_v28 }
 0x11a   : > { %v710_v58 = vshrl.u32 %v5903_v44, 16  ;;  %v4700_v38 = vcombine.low %v2418_v23, %v2428_v31  ;;  %v892_v39 = vld [vmem:[#allocation2 + $0x98] sm:$0x1]  ;;  %v699_v2 = vrot.slane %v695_v30, 4  ;;  %292 = vst [vmem:[#allocation2 + $0xa8] sm:$0x1] %v291_v35  ;;  %v3652_v37 = vpop.permute.xlu1 %3651  ;;  %v4732_v47 = vcombine.low %v2831_v20, %v2834_v7 }
 0x11b   : > { %v706_v60 = vor.u32 %v704_v43, %v5921_v10  ;;  %v713_v5 = vshll.u32 %v5903_v44, 16  ;;  %v893_v40 = vsel %vm5047_vm3, %v691_v24, %v892_v39  ;;  %3695 = vst.msk [vmem:[#allocation3 + $0x28] sm:$0xff] %vm3689_vm13, %v3652_v37  ;;  %v3973_v41 = vpop.permute.xlu0 %3972  ;;  %v698_v50 = vor.u32 %v696_v9, %v695_v30  ;;  %v387_v23 = vld [vmem:[%s5069_s21 + $0xe8] sm:$0xff] }
 0x11c   : > { %v2151_v4 = vld [vmem:[#allocation2 + $0x94] sm:$0xf]  ;;  %2617 = vrot.lane.b32.xlu0 %v4700_v38, %s5005_s28  ;;  %894 = vst [vmem:[#allocation2 + $0x98] sm:$0x1] %v893_v40  ;;  %v2150_v46 = vld [vmem:[#allocation2 + $0x90] sm:$0xf]  ;;  %v5959_v31 = vpack.c.bf16 %v385_v62, %v385_v62  ;;  %v5968_v39 = vpack.c.bf16 %v386_v13, %v386_v13 }
 0x11d   : > { %v2696_v32 = vld [vmem:[#allocation2 + $0x94] sm:$0xf]  ;;  %v2439_v54 = vshll.u32 %v2151_v4, 16  ;;  %v707_v48 = vsel %vm5088_vm9, %v699_v2, %v706_v60  ;;  %4016 = vst.msk [vmem:[#allocation3 + $0x28] sm:$0xff] %vm4010_vm1, %v3973_v41  ;;  %v2430_v55 = vshrl.u32 %v2150_v46, 16  ;;  %v2433_v29 = vshll.u32 %v2150_v46, 16 }
 0x11e   : > { %v4967_v42 = vld [vmem:[#allocation2 + $0x90] sm:$0xff]   ;;  %v2443_v19 = vshrl.u32 %v2151_v4, 16  ;;  %v2837_v56 = vrot.slane %v2696_v32, 5  ;;  %898 = vst.msk [vmem:[#allocation2 + $0xa0] sm:$0xf] %vm237_vm0, %v707_v48  ;;  %v1564_v63 = vpop.permute.xlu1 %1563  ;;  %v4031_v15 = vld [vmem:[#allocation3 + $0x20] sm:$0xff] }
 0x11f   : > { %v2695_v61 = vld [vmem:[#allocation2 + $0x90] sm:$0xe]  ;;  %2074 = vrot.lane.b32.xlu1 %v4967_v42, %s4999_s22  ;;  %v5943_v26 = vrot.slane %v2439_v54, 5  ;;  %v2432_v8 = vrot.slane %v2430_v55, 4  ;;  %v2435_v51 = vrot.slane %v2433_v29, 5  ;;  %1606 = vst.msk [vmem:[#allocation3 + $0x30] sm:$0xff] %vm1599_vm2, %v1564_v63  ;;  %4890 = vmatprep.mubr.msk.bf16.mxu0 %vm4063_vm15, %v4031_v15 }
 0x120   : > { %v4717_v49 = vrot.slane %v2695_v61, 9  ;;  %v2445_v18 = vrot.slane %v2443_v19, 4  ;;  %v2839_v14 = vrot.slane %v2837_v56, 4  ;;  %v4970_v12 = vld [vmem:[#allocation2 + $0x90] sm:$0xff]   ;;  %2938 = vrot.lane.b32.xlu0 %v4732_v47, %s5003_s26  ;;  %v708_v16 = vrot.slane %v5921_v10, 4 }
 0x121   : > { %v895_v17 = vld [vmem:[#allocation2 + $0x9c] sm:$0xf]  ;;  %v3191_v11 = vld [vmem:[#allocation2 + $0x90] sm:$0xf]  ;;  %v5949_v22 = vrot.slane %v710_v58, 7  ;;  %v2436_v52 = vor.u32 %v2435_v51, %v2432_v8  ;;  %v5976_v61 = vpack.c.bf16 %v387_v23, %v387_v23  ;;  %vm6510_vm12 = vcmask 130144  }
 0x122   : > { %v2446_v27 = vor.u32 %v2445_v18, %v5943_v26  ;;  %v896_v24 = vsel %vm5106_vm11, %v698_v50, %v895_v17  ;;  %v3192_v57 = vld [vmem:[#allocation2 + $0x94] sm:$0xf]  ;;  %v3450_v33 = vshrl.u32 %v3191_v11, 16  ;;  %v899_v59 = vld [vmem:[#allocation2 + $0xa4] sm:$0x1]  ;;  %v3453_v45 = vshll.u32 %v3191_v11, 16  ;;  %v1566_v21 = vpop.permute.xlu1 %1565  ;;  %v1888_v30 = vpop.permute.xlu0 %1887 }
 0x123   : > { %897 = vst [vmem:[#allocation2 + $0x9c] sm:$0xf] %v896_v24  ;;  %v3459_v3 = vshll.u32 %v3192_v57, 16  ;;  %v3463_v20 = vshrl.u32 %v3192_v57, 16  ;;  %v900_v43 = vsel %vm5047_vm3, %v708_v16, %v899_v59  ;;  %v2152_v9 = vld [vmem:[#allocation2 + $0x98] sm:$0x1]  ;;  %v5965_v35 = vsel %vm5100_vm10, %v4717_v49, %v2837_v56 }
 0x124   : > { %v2437_v10 = vrot.slane %v2436_v52, 4  ;;  %v2447_v1 = vrot.slane %v2446_v27, 4  ;;  %v2697_v28 = vld [vmem:[#allocation2 + $0x98] sm:$0x1]  ;;  %901 = vst [vmem:[#allocation2 + $0xa4] sm:$0x1] %v900_v43  ;;  %3116 = vrot.lane.b32.xlu0 %v4970_v12, %s5001_s24  ;;  %v5985_v8 = vor.u32 %v713_v5, %v5949_v22 }
 0x125   : > { %1607 = vst.msk [vmem:[#allocation3 + $0x38] sm:$0xff] %vm1599_vm2, %v1566_v21  ;;  %v2449_v7 = vshll.u32 %v2152_v9, 16  ;;  %v2840_v58 = vrot.slane %v2697_v28, 5  ;;  %v3193_v38 = vld [vmem:[#allocation2 + $0x98] sm:$0x1]  ;;  %v3452_v60 = vrot.slane %v3450_v33, 4 }
 0x126   : > { %1930 = vst.msk [vmem:[#allocation3 + $0x30] sm:$0xff] %vm1923_vm4, %v1888_v30  ;;  %v2442_v2 = vsel %vm5166_vm14, %v2437_v10, %v5943_v26  ;;  %v3455_v37 = vrot.slane %v3453_v45, 5  ;;  %v3461_v40 = vrot.slane %v3459_v3, 5  ;;  %v3195_v4 = vld [vmem:[#allocation2 + $0xa0] sm:$0xf]  ;;  %v3465_v46 = vrot.slane %v3463_v20, 4  ;;  %v1890_v50 = vpop.permute.xlu1 %1889  ;;  %v2065_v48 = vpop.permute.xlu0 %2064 }
 0x127   : > { %v4032_v32 = vld [vmem:[#allocation3 + $0x28] sm:$0xff]  ;;  %v2451_v41 = vrot.slane %v2449_v7, 5  ;;  %v2841_v42 = vsel %vm5100_vm10, %v2839_v14, %v2840_v58  ;;  %v3469_v54 = vshll.u32 %v3193_v38, 16  ;;  %v3736_v47 = vld [vmem:[#allocation2 + $0x90] sm:$0xe]  ;;  %v3483_v29 = vshll.u32 %v3195_v4, 16 }
 0x128   : > { %4891 = vmatmul.mubr.msk.bf16.gmra.mrb[8].mxu0 %vm4063_vm15, %v4032_v32  ;;  %v3456_v55 = vor.u32 %v3455_v37, %v3452_v60  ;;  %v3487_v19 = vshrl.u32 %v3195_v4, 16  ;;  %1931 = vst.msk [vmem:[#allocation3 + $0x38] sm:$0xff] %vm1923_vm4, %v1890_v50  ;;  %v3466_v26 = vor.u32 %v3465_v46, %v3461_v40  ;;  %v3737_v62 = vld [vmem:[#allocation2 + $0x94] sm:$0xf]  ;;  %v3738_v63 = vld [vmem:[#allocation2 + $0x98] sm:$0x1]  ;;  %v4733_v18 = vcombine.low %v5965_v35, %v2841_v42 }
 0x129   : > { %2107 = vst.msk [vmem:[#allocation3 + $0x30] sm:$0xff] %vm6510_vm12, %v2065_v48  ;;  %v2452_v56 = vsel %vm5166_vm14, %v2447_v1, %v2451_v41  ;;  %v3471_v49 = vrot.slane %v3469_v54, 5  ;;  %v4780_v15 = vrot.slane %v3736_v47, 9  ;;  %v1104_v16 = vld [vmem:[#allocation2 + $0x90] sm:$0xf]  ;;  %v3485_v24 = vrot.slane %v3483_v29, 5 }
 0x12a   : > { %v4701_v51 = vcombine.low %v2442_v2, %v2452_v56  ;;  %v3457_v14 = vrot.slane %v3456_v55, 4  ;;  %v3194_v12 = vld [vmem:[#allocation2 + $0x9c] sm:$0xf]  ;;  %v3467_v17 = vrot.slane %v3466_v26, 4  ;;  %v3489_v44 = vrot.slane %v3487_v19, 4  ;;  %v4986_v21 = vld [vmem:[#allocation2 + $0x90] sm:$0xff]  }
 0x12b   : > { %v3196_v11 = vld [vmem:[#allocation2 + $0xa4] sm:$0x1]  ;;  %v3474_v52 = vshrl.u32 %v3194_v12, 16  ;;  %v3477_v27 = vshll.u32 %v3194_v12, 16  ;;  %v3874_v33 = vrot.slane %v3737_v62, 5  ;;  %v3877_v20 = vrot.slane %v3738_v63, 5 }
 0x12c   : > { %2619 = vrot.lane.b32.xlu1 %v4701_v51, %s5005_s28  ;;  %v3462_v57 = vsel %vm5166_vm14, %v3457_v14, %v3461_v40  ;;  %v3493_v5 = vshll.u32 %v3196_v11, 16  ;;  %v1105_v59 = vld [vmem:[#allocation2 + $0x94] sm:$0xf]  ;;  %v3472_v13 = vsel %vm5166_vm14, %v3467_v17, %v3471_v49  ;;  %v1106_v43 = vld [vmem:[#allocation2 + $0x98] sm:$0x1]  ;;  %v4971_v23 = vld [vmem:[#allocation2 + $0x9c] sm:$0xff]   ;;  %v3490_v9 = vor.u32 %v3489_v44, %v3485_v24 }
 0x12d   : > { %v3476_v45 = vrot.slane %v3474_v52, 4  ;;  %v3479_v3 = vrot.slane %v3477_v27, 5  ;;  %v4764_v30 = vcombine.low %v3462_v57, %v3472_v13  ;;  %v3875_v1 = vsel %vm5100_vm10, %v4780_v15, %v3874_v33  ;;  %v2610_v28 = vpop.permute.xlu0 %2609  ;;  %v3739_v2 = vld [vmem:[#allocation2 + $0x9c] sm:$0xe]  ;;  %v2067_v60 = vpop.permute.xlu1 %2066  ;;  %1064 = vst.msk [vmem:[#allocation3 + $0x60] sm:$0xff] %vm6508_vm6, %v4986_v21 }
 0x12e   : > { %v3495_v10 = vrot.slane %v3493_v5, 5  ;;  %v3876_v35 = vrot.slane %v3874_v33, 4  ;;  %v1408_v58 = vshrl.u32 %v1104_v16, 16  ;;  %v1411_v38 = vshll.u32 %v1104_v16, 16  ;;  %2652 = vst.msk [vmem:[#allocation3 + $0x30] sm:$0xff] %vm2645_vm7, %v2610_v28  ;;  %v4987_v37 = vld [vmem:[#allocation2 + $0x9c] sm:$0xff]  }
 0x12f   : > { %v3480_v7 = vor.u32 %v3479_v3, %v3476_v45  ;;  %3661 = vrot.lane.b32.xlu0 %v4764_v30, %s5006_s29  ;;  %v3491_v40 = vrot.slane %v3490_v9, 4  ;;  %v1417_v4 = vshll.u32 %v1105_v59, 16  ;;  %v1421_v32 = vshrl.u32 %v1105_v59, 16  ;;  %v3740_v42 = vld [vmem:[#allocation2 + $0xa0] sm:$0xf]  ;;  %2108 = vst.msk [vmem:[#allocation3 + $0x38] sm:$0xff] %vm6510_vm12, %v2067_v60 }
 0x130   : > { %2940 = vrot.lane.b32.xlu1 %v4733_v18, %s5003_s26  ;;  %v1427_v41 = vshll.u32 %v1106_v43, 16  ;;  %v3878_v54 = vsel %vm5100_vm10, %v3876_v35, %v3877_v20  ;;  %v1410_v47 = vrot.slane %v1408_v58, 4  ;;  %v1413_v50 = vrot.slane %v1411_v38, 5  ;;  %v3741_v48 = vld [vmem:[#allocation2 + $0xa4] sm:$0x1]  ;;  %1065 = vst.msk [vmem:[#allocation3 + $0x68] sm:$0xff] %vm6508_vm6, %v4987_v37 }
 0x131   : > { %v3481_v46 = vrot.slane %v3480_v7, 4  ;;  %v3496_v55 = vsel %vm5166_vm14, %v3491_v40, %v3495_v10  ;;  %v4796_v29 = vcombine.low %v3875_v1, %v3878_v54  ;;  %v1419_v19 = vrot.slane %v1417_v4, 5  ;;  %v1107_v26 = vld [vmem:[#allocation2 + $0x9c] sm:$0xf]  ;;  %v1108_v49 = vld [vmem:[#allocation2 + $0xa0] sm:$0xf]  ;;  %v2931_v62 = vpop.permute.xlu0 %2930 }
 0x132   : > { %v1423_v56 = vrot.slane %v1421_v32, 4  ;;  %v1414_v51 = vor.u32 %v1413_v50, %v1410_v47  ;;  %v1429_v18 = vrot.slane %v1427_v41, 5  ;;  %v4781_v14 = vrot.slane %v3739_v2, 9  ;;  %v1109_v12 = vld [vmem:[#allocation2 + $0xa4] sm:$0x1]  ;;  %2973 = vst.msk [vmem:[#allocation3 + $0x30] sm:$0xff] %vm2966_vm8, %v2931_v62 }
 0x133   : > { %v3486_v63 = vsel %vm5166_vm14, %v3481_v46, %v3485_v24  ;;  %3982 = vrot.lane.b32.xlu0 %v4796_v29, %s5004_s27  ;;  %v3881_v17 = vrot.slane %v3740_v42, 5  ;;  %v3884_v11 = vrot.slane %v3741_v48, 5  ;;  %v1652_v52 = vld [vmem:[#allocation2 + $0x90] sm:$0xe]  ;;  %v1432_v57 = vshrl.u32 %v1107_v26, 16 }
 0x134   : > { %3118 = vrot.lane.b32.xlu1 %v4971_v23, %s5001_s24  ;;  %v4765_v15 = vcombine.low %v3486_v63, %v3496_v55  ;;  %v1424_v16 = vor.u32 %v1423_v56, %v1419_v19  ;;  %v1415_v27 = vrot.slane %v1414_v51, 4  ;;  %v1435_v44 = vshll.u32 %v1107_v26, 16  ;;  %v1653_v24 = vld [vmem:[#allocation2 + $0x94] sm:$0xf]  ;;  %v1654_v3 = vld [vmem:[#allocation2 + $0x98] sm:$0x1] }
 0x135   : > { %v1441_v5 = vshll.u32 %v1108_v49, 16  ;;  %v3882_v59 = vsel %vm5100_vm10, %v4781_v14, %v3881_v17  ;;  %v3883_v13 = vrot.slane %v3881_v17, 4  ;;  %v1445_v45 = vshrl.u32 %v1108_v49, 16  ;;  %v3109_v20 = vpop.permute.xlu0 %3108  ;;  %v1655_v9 = vld [vmem:[#allocation2 + $0x9c] sm:$0xe] }
 0x136   : > { %v1425_v33 = vrot.slane %v1424_v16, 4  ;;  %v1420_v43 = vsel %vm5166_vm14, %v1415_v27, %v1419_v19  ;;  %v1434_v21 = vrot.slane %v1432_v57, 4  ;;  %v1437_v23 = vrot.slane %v1435_v44, 5  ;;  %v1656_v35 = vld [vmem:[#allocation2 + $0xa0] sm:$0xf] }
 0x137   : > { %v1443_v30 = vrot.slane %v1441_v5, 5  ;;  %vm6511_vm12 = vcmask 228544   ;;  %v3885_v1 = vsel %vm5100_vm10, %v3883_v13, %v3884_v11  ;;  %v1447_v28 = vrot.slane %v1445_v45, 4  ;;  %v1657_v58 = vld [vmem:[#allocation2 + $0xa4] sm:$0x1]  ;;  %v4972_v45 = vld [vmem:[#allocation2 + $0x9c] sm:$0xff]  }
 0x138   : > { %3151 = vst.msk [vmem:[#allocation3 + $0x30] sm:$0xff] %vm6511_vm12, %v3109_v20  ;;  %3663 = vrot.lane.b32.xlu1 %v4765_v15, %s5006_s29  ;;  %v1430_v10 = vsel %vm5166_vm14, %v1425_v33, %v1429_v18  ;;  %v1451_v7 = vshll.u32 %v1109_v12, 16  ;;  %v4797_v2 = vcombine.low %v3882_v59, %v3885_v1  ;;  %v1438_v60 = vor.u32 %v1437_v23, %v1434_v21  ;;  %v902_v42 = vld [vmem:[#allocation2 + $0xa8] sm:$0xf]  ;;  %v2153_v48 = vld [vmem:[#allocation2 + $0x9c] sm:$0xf]  ;;  %vm6512_vm6 = vmmov %vm6511_vm12 }
 0x139   : > { %v4638_v38 = vcombine.low %v1420_v43, %v1430_v10  ;;  %v4654_v37 = vrot.slane %v1652_v52, 9  ;;  %v1448_v40 = vor.u32 %v1447_v28, %v1443_v30  ;;  %v1801_v32 = vrot.slane %v1653_v24, 5  ;;  %v2154_v55 = vld [vmem:[#allocation2 + $0xa0] sm:$0xf]  ;;  %v2155_v16 = vld [vmem:[#allocation2 + $0xa4] sm:$0x1] }
 0x13a   : > { %v1453_v4 = vrot.slane %v1451_v7, 5  ;;  %v1804_v41 = vrot.slane %v1654_v3, 5  ;;  %3984 = vrot.lane.b32.xlu0 %v4797_v2, %s5004_s27  ;;  %v1439_v46 = vrot.slane %v1438_v60, 4  ;;  %v4655_v54 = vrot.slane %v1655_v9, 9  ;;  %v346_v17 = vld [vmem:[#allocation2 + $0xb0] sm:$0x1] }
 0x13b   : > { %v1808_v47 = vrot.slane %v1656_v35, 5  ;;  %v1811_v50 = vrot.slane %v1657_v58, 5  ;;  %v1449_v29 = vrot.slane %v1448_v40, 4  ;;  %v1802_v19 = vsel %vm5100_vm10, %v4654_v37, %v1801_v32  ;;  %v2698_v44 = vld [vmem:[#allocation2 + $0x9c] sm:$0xe] }
 0x13c   : > { %1575 = vrot.lane.b32.xlu1 %v4638_v38, %s5002_s25  ;;  %v1803_v56 = vrot.slane %v1801_v32, 4  ;;  %v716_v26 = vrot.slane %v5949_v22, 4  ;;  %v1444_v49 = vsel %vm5166_vm14, %v1439_v46, %v1443_v30  ;;  %v718_v51 = vshrl.u32 %v5959_v31, 16  ;;  %v2612_v18 = vpop.permute.xlu1 %2611  ;;  %v293_v5 = vld [vmem:[#allocation2 + $0xb4] sm:$0x1] }
 0x13d   : > { %v1809_v62 = vsel %vm5100_vm10, %v4655_v54, %v1808_v47  ;;  %v1810_v63 = vrot.slane %v1808_v47, 4  ;;  %v1454_v14 = vsel %vm5166_vm14, %v1449_v29, %v1453_v4  ;;  %v721_v15 = vshll.u32 %v5959_v31, 16  ;;  %2653 = vst.msk [vmem:[#allocation3 + $0x38] sm:$0xff] %vm2645_vm7, %v2612_v18  ;;  %v2699_v13 = vld [vmem:[#allocation2 + $0xa0] sm:$0xf] }
 0x13e   : > { %v1805_v12 = vsel %vm5100_vm10, %v1803_v56, %v1804_v41  ;;  %v903_v22 = vsel %vm5106_vm11, %v5985_v8, %v902_v42  ;;  %v4639_v11 = vcombine.low %v1444_v49, %v1454_v14  ;;  %v6041_v57 = vrot.slane %v718_v51, 7  ;;  %v3654_v8 = vpop.permute.xlu0 %3653  ;;  %v2700_v23 = vld [vmem:[#allocation2 + $0xa4] sm:$0x1] }
 0x13f   : > { %v4670_v52 = vcombine.low %v1802_v19, %v1805_v12  ;;  %v1812_v27 = vsel %vm5100_vm10, %v1810_v63, %v1811_v50  ;;  %904 = vst [vmem:[#allocation2 + $0xa8] sm:$0xf] %v903_v22  ;;  %v2454_v31 = vshrl.u32 %v2153_v48, 16  ;;  %v2457_v33 = vshll.u32 %v2153_v48, 16  ;;  %3696 = vst.msk [vmem:[#allocation3 + $0x30] sm:$0xff] %vm3689_vm13, %v3654_v8 }
 0x140   : > { %v4671_v24 = vcombine.low %v1809_v62, %v1812_v27  ;;  %v2463_v59 = vshll.u32 %v2154_v55, 16  ;;  %1577 = vrot.lane.b32.xlu1 %v4639_v11, %s5002_s25  ;;  %v723_v3 = vor.u32 %v721_v15, %v6041_v57  ;;  %v725_v20 = vrot.slane %v6041_v57, 4  ;;  %v2933_v30 = vpop.permute.xlu1 %2932 }
 0x141   : > { %1899 = vrot.lane.b32.xlu0 %v4670_v52, %s5000_s23  ;;  %v2467_v43 = vshrl.u32 %v2154_v55, 16  ;;  %v2473_v21 = vshll.u32 %v2155_v16, 16  ;;  %v2456_v9 = vrot.slane %v2454_v31, 4  ;;  %v2459_v10 = vrot.slane %v2457_v33, 5  ;;  %2974 = vst.msk [vmem:[#allocation3 + $0x38] sm:$0xff] %vm2966_vm8, %v2933_v30 }
 0x142   : > { %v2465_v1 = vrot.slane %v2463_v59, 5  ;;  %v347_v28 = vsel %vm5073_vm5, 0, %v346_v17  ;;  %v724_v7 = vsel %vm5088_vm9, %v716_v26, %v723_v3  ;;  %v4718_v38 = vrot.slane %v2698_v44, 9  ;;  %v3975_v4 = vpop.permute.xlu0 %3974 }
 0x143   : > { %v2469_v35 = vrot.slane %v2467_v43, 4  ;;  %v2475_v58 = vrot.slane %v2473_v21, 5  ;;  %348 = vst [vmem:[#allocation2 + $0xb0] sm:$0x1] %v347_v28  ;;  %905 = vst.msk [vmem:[#allocation2 + $0xac] sm:$0xf] %vm237_vm0, %v724_v7  ;;  %v2460_v2 = vor.u32 %v2459_v10, %v2456_v9 }
 0x144   : > { %v2844_v60 = vrot.slane %v2699_v13, 5  ;;  %v2847_v37 = vrot.slane %v2700_v23, 5  ;;  %v294_v40 = vsel %vm5047_vm3, 0, %v293_v5  ;;  %1901 = vrot.lane.b32.xlu1 %v4671_v24, %s5000_s23  ;;  %v727_v41 = vshrl.u32 %v5968_v39, 16  ;;  %v3111_v54 = vpop.permute.xlu1 %3110  ;;  %4017 = vst.msk [vmem:[#allocation3 + $0x30] sm:$0xff] %vm4010_vm1, %v3975_v4 }
 0x145   : > { %2076 = vrot.lane.b32.xlu0 %v4972_v45, %s4999_s22  ;;  %v2470_v32 = vor.u32 %v2469_v35, %v2465_v1  ;;  %295 = vst [vmem:[#allocation2 + $0xb4] sm:$0x1] %v294_v40  ;;  %v730_v42 = vshll.u32 %v5968_v39, 16  ;;  %v735_v46 = vshrl.u32 %v5976_v61, 16  ;;  %v2461_v47 = vrot.slane %v2460_v2, 4  ;;  %3152 = vst.msk [vmem:[#allocation3 + $0x38] sm:$0xff] %vm6512_vm6, %v3111_v54 }
 0x146   : > { %v2156_v50 = vld [vmem:[#allocation2 + $0xa8] sm:$0xf]  ;;  %v2846_v48 = vrot.slane %v2844_v60, 4  ;;  %v729_v56 = vrot.slane %v727_v41, 7  ;;  %v2845_v39 = vsel %vm5100_vm10, %v4718_v38, %v2844_v60  ;;  %v738_v11 = vshll.u32 %v5976_v61, 16 }
 0x147   : > { %v2471_v55 = vrot.slane %v2470_v32, 4  ;;  %v2478_v29 = vshrl.u32 %v2156_v50, 16  ;;  %v2481_v19 = vshll.u32 %v2156_v50, 16  ;;  %v2466_v26 = vsel %vm5166_vm14, %v2461_v47, %v2465_v1  ;;  %v6067_v49 = vld [vmem:[#allocation2 + $0xa8] sm:$0xe] }
 0x148   : > { %v6069_v62 = vrot.slane %v735_v46, 7  ;;  %v2848_v14 = vsel %vm5100_vm10, %v2846_v48, %v2847_v37  ;;  %v3656_v12 = vpop.permute.xlu1 %3655  ;;  %v732_v16 = vor.u32 %v730_v42, %v729_v56  ;;  %v733_v17 = vrot.slane %v729_v56, 4  ;;  %v3197_v52 = vld [vmem:[#allocation2 + $0xa8] sm:$0xf]  ;;  %v349_v45 = vld [vmem:[#allocation2 + $0xbc] sm:$0x1] }
 0x149   : > { %v2476_v63 = vsel %vm5166_vm14, %v2471_v55, %v2475_v58  ;;  %v2480_v51 = vrot.slane %v2478_v29, 4  ;;  %v2483_v18 = vrot.slane %v2481_v19, 5  ;;  %3697 = vst.msk [vmem:[#allocation3 + $0x38] sm:$0xff] %vm3689_vm13, %v3656_v12  ;;  %v3977_v27 = vpop.permute.xlu0 %3976  ;;  %v4719_v31 = vrot.slane %v6067_v49, 9  ;;  %v6083_v3 = vld [vmem:[#allocation2 + $0xa8] sm:$0xe] }
 0x14a   : > { %v4702_v15 = vcombine.low %v2466_v26, %v2476_v63  ;;  %v906_v22 = vld [vmem:[#allocation2 + $0xb0] sm:$0x1]  ;;  %v4973_v57 = vld [vmem:[#allocation2 + $0xa8] sm:$0xff]   ;;  %4018 = vst.msk [vmem:[#allocation3 + $0x38] sm:$0xff] %vm4010_vm1, %v3977_v27  ;;  %v4734_v61 = vcombine.low %v2845_v39, %v2848_v14  ;;  %v740_v8 = vor.u32 %v738_v11, %v6069_v62  ;;  %v3498_v21 = vshrl.u32 %v3197_v52, 16 }
 0x14b   : > { %v907_v44 = vsel %vm5047_vm3, %v725_v20, %v906_v22  ;;  %v2157_v5 = vld [vmem:[#allocation2 + $0xac] sm:$0xf]  ;;  %v2484_v24 = vor.u32 %v2483_v18, %v2480_v51  ;;  %2078 = vrot.lane.b32.xlu1 %v4973_v57, %s4999_s22  ;;  %v6086_v23 = vld [vmem:[#allocation2 + $0xa8] sm:$0xf]  ;;  %v742_v38 = vrot.slane %v6069_v62, 4  ;;  %v3501_v60 = vshll.u32 %v3197_v52, 16 }
 0x14c   : > { %2621 = vrot.lane.b32.xlu0 %v4702_v15, %s5005_s28  ;;  %908 = vst [vmem:[#allocation2 + $0xb0] sm:$0x1] %v907_v44  ;;  %v2487_v33 = vshll.u32 %v2157_v5, 16  ;;  %v2491_v59 = vshrl.u32 %v2157_v5, 16  ;;  %v2702_v13 = vld [vmem:[#allocation2 + $0xac] sm:$0xf]  ;;  %v1568_v30 = vpop.permute.xlu1 %1567  ;;  %v741_v1 = vsel %vm5088_vm9, %v733_v17, %v740_v8 }
 0x14d   : > { %v2851_v20 = vrot.slane %v2702_v13, 5  ;;  %v909_v43 = vld [vmem:[#allocation2 + $0xb4] sm:$0xf]  ;;  %v3198_v7 = vld [vmem:[#allocation2 + $0xac] sm:$0xf]  ;;  %1608 = vst.msk [vmem:[#allocation3 + $0x40] sm:$0xff] %vm1599_vm2, %v1568_v30 }
 0x14e   : > { %v6088_v9 = vrot.slane %v2487_v33, 5  ;;  %v2493_v10 = vrot.slane %v2491_v59, 4  ;;  %v910_v28 = vsel %vm5106_vm11, %v732_v16, %v909_v43  ;;  %v3743_v35 = vld [vmem:[#allocation2 + $0xac] sm:$0xf]  ;;  %v6095_v58 = vrot.slane %v2484_v24, 4 }
 0x14f   : > { %911 = vst [vmem:[#allocation2 + $0xb4] sm:$0xf] %v910_v28  ;;  %912 = vst.msk [vmem:[#allocation2 + $0xb8] sm:$0xf] %vm237_vm0, %v741_v1  ;;  %v3500_v2 = vrot.slane %v3498_v21, 4  ;;  %v4033_v37 = vld [vmem:[#allocation3 + $0x30] sm:$0xff]  ;;  %v1892_v48 = vpop.permute.xlu0 %1891  ;;  %v6109_v51 = vsel %vm5100_vm10, %v4719_v31, %v2851_v20 }
 0x150   : > { %v2494_v40 = vor.u32 %v2493_v10, %v6088_v9  ;;  %2942 = vrot.lane.b32.xlu0 %v4734_v61, %s5003_s26  ;;  %v2853_v4 = vrot.slane %v2851_v20, 4  ;;  %v4976_v32 = vld [vmem:[#allocation2 + $0xa8] sm:$0xff]   ;;  %v3507_v41 = vshll.u32 %v3198_v7, 16  ;;  %v3511_v42 = vshrl.u32 %v3198_v7, 16  ;;  %4894 = vmatprep.mubr.msk.bf16.mxu0 %vm4063_vm15, %v4033_v37  ;;  %v1570_v26 = vpop.permute.xlu1 %1569  ;;  %1932 = vst.msk [vmem:[#allocation3 + $0x40] sm:$0xff] %vm1923_vm4, %v1892_v48 }
 0x151   : > { %v3503_v46 = vrot.slane %v3501_v60, 5  ;;  %v350_v54 = vsel %vm5073_vm5, 0, %v349_v45  ;;  %v4782_v47 = vrot.slane %v6083_v3, 9  ;;  %v3888_v50 = vrot.slane %v3743_v35, 5  ;;  %v4034_v39 = vld [vmem:[#allocation3 + $0x38] sm:$0xff]  ;;  %1609 = vst.msk [vmem:[#allocation3 + $0x48] sm:$0xff] %vm1599_vm2, %v1570_v26 }
 0x152   : > { %v2495_v55 = vrot.slane %v2494_v40, 4  ;;  %v3509_v29 = vrot.slane %v3507_v41, 5  ;;  %v3513_v19 = vrot.slane %v3511_v42, 4  ;;  %351 = vst [vmem:[#allocation2 + $0xbc] sm:$0x1] %v350_v54  ;;  %v1456_v56 = vshrl.u32 %v6086_v23, 16  ;;  %4895 = vmatmul.mubr.msk.bf16.gmra.mrb[12].mxu0 %vm4063_vm15, %v4034_v39 }
 0x153   : > { %v2158_v49 = vld [vmem:[#allocation2 + $0xb0] sm:$0x1]  ;;  %v3504_v14 = vor.u32 %v3503_v46, %v3500_v2  ;;  %v2490_v11 = vsel %vm5166_vm14, %v6095_v58, %v6088_v9  ;;  %v3890_v27 = vrot.slane %v3888_v50, 4  ;;  %v2069_v44 = vpop.permute.xlu0 %2068  ;;  %v3889_v31 = vsel %vm5100_vm10, %v4782_v47, %v3888_v50  ;;  %v1111_v10 = vld [vmem:[#allocation2 + $0xac] sm:$0xf] }
 0x154   : > { %v2703_v63 = vld [vmem:[#allocation2 + $0xb0] sm:$0x1]  ;;  %v2497_v12 = vshll.u32 %v2158_v49, 16  ;;  %3120 = vrot.lane.b32.xlu0 %v4976_v32, %s5001_s24  ;;  %v3514_v22 = vor.u32 %v3513_v19, %v3509_v29  ;;  %v6122_v33 = vrot.slane %v1456_v56, 4  ;;  %v1894_v59 = vpop.permute.xlu1 %1893  ;;  %vm6513_vm12 = vcmask 130144  }
 0x155   : > { %v3199_v18 = vld [vmem:[#allocation2 + $0xb0] sm:$0x1]  ;;  %v2854_v15 = vrot.slane %v2703_v63, 5  ;;  %v3505_v52 = vrot.slane %v3504_v14, 4  ;;  %2109 = vst.msk [vmem:[#allocation3 + $0x40] sm:$0xff] %vm6513_vm12, %v2069_v44  ;;  %v1459_v54 = vshll.u32 %v6086_v23, 16 }
 0x156   : > { %v3517_v16 = vshll.u32 %v3199_v18, 16  ;;  %v3744_v17 = vld [vmem:[#allocation2 + $0xb0] sm:$0x1]  ;;  %v2499_v5 = vrot.slane %v2497_v12, 5  ;;  %v3515_v8 = vrot.slane %v3514_v22, 4  ;;  %1933 = vst.msk [vmem:[#allocation3 + $0x48] sm:$0xff] %vm1923_vm4, %v1894_v59 }
 0x157   : > { %v3891_v57 = vrot.slane %v3744_v17, 5  ;;  %v2855_v24 = vsel %vm5100_vm10, %v2853_v4, %v2854_v15  ;;  %v3510_v13 = vsel %vm5166_vm14, %v3505_v52, %v3509_v29  ;;  %v3200_v3 = vld [vmem:[#allocation2 + $0xb4] sm:$0xf]  ;;  %v3201_v20 = vld [vmem:[#allocation2 + $0xb8] sm:$0xf]  ;;  %v1465_v48 = vshll.u32 %v1111_v10, 16 }
 0x158   : > { %v4735_v61 = vcombine.low %v6109_v51, %v2855_v24  ;;  %v3519_v45 = vrot.slane %v3517_v16, 5  ;;  %v2500_v43 = vsel %vm5166_vm14, %v2495_v55, %v2499_v5  ;;  %v3522_v21 = vshrl.u32 %v3200_v3, 16  ;;  %v1112_v2 = vld [vmem:[#allocation2 + $0xb0] sm:$0x1]  ;;  %v3746_v32 = vld [vmem:[#allocation2 + $0xb8] sm:$0xf] }
 0x159   : > { %v3525_v30 = vshll.u32 %v3200_v3, 16  ;;  %v3531_v9 = vshll.u32 %v3201_v20, 16  ;;  %v4703_v1 = vcombine.low %v2490_v11, %v2500_v43  ;;  %v913_v7 = vld [vmem:[#allocation2 + $0xbc] sm:$0x1]  ;;  %v3535_v35 = vshrl.u32 %v3201_v20, 16  ;;  %v388_v50 = vld [vmem:[%s5069_s21 + $0xf0] sm:$0xff] }
 0x15a   : > { %v3520_v28 = vsel %vm5166_vm14, %v3515_v8, %v3519_v45  ;;  %v3892_v58 = vsel %vm5100_vm10, %v3890_v27, %v3891_v57  ;;  %v914_v37 = vsel %vm5047_vm3, %v742_v38, %v913_v7  ;;  %v3524_v40 = vrot.slane %v3522_v21, 4  ;;  %v3745_v47 = vld [vmem:[#allocation2 + $0xb4] sm:$0xe]  ;;  %v6145_v19 = vld [vmem:[#allocation2 + $0xa8] sm:$0xe]  ;;  %v389_v14 = vld [vmem:[%s5069_s21 + $0xf8] sm:$0xff] }
 0x15b   : > { %v4766_v60 = vcombine.low %v3510_v13, %v3520_v28  ;;  %v3527_v4 = vrot.slane %v3525_v30, 5  ;;  %2623 = vrot.lane.b32.xlu1 %v4703_v1, %s5005_s28  ;;  %915 = vst [vmem:[#allocation2 + $0xbc] sm:$0x1] %v914_v37  ;;  %v6140_v41 = vrot.slane %v3531_v9, 5  ;;  %v3537_v42 = vrot.slane %v3535_v35, 4  ;;  %v4988_v63 = vld [vmem:[#allocation2 + $0xa8] sm:$0xff]  }
 0x15c   : > { %v4798_v46 = vcombine.low %v3889_v31, %v3892_v58  ;;  %v1469_v38 = vshrl.u32 %v1111_v10, 16  ;;  %v1475_v55 = vshll.u32 %v1112_v2, 16  ;;  %v1113_v29 = vld [vmem:[#allocation2 + $0xb4] sm:$0xf]  ;;  %v1461_v26 = vrot.slane %v1459_v54, 5 }
 0x15d   : > { %3665 = vrot.lane.b32.xlu0 %v4766_v60, %s5006_s29  ;;  %v3528_v62 = vor.u32 %v3527_v4, %v3524_v40  ;;  %v3538_v56 = vor.u32 %v3537_v42, %v6140_v41  ;;  %v3895_v39 = vrot.slane %v3746_v32, 5  ;;  %v1114_v49 = vld [vmem:[#allocation2 + $0xb8] sm:$0xf]  ;;  %v6148_v51 = vrot.slane %v1465_v48, 5  ;;  %v1659_v13 = vld [vmem:[#allocation2 + $0xac] sm:$0xf] }
 0x15e   : > { %v1471_v23 = vrot.slane %v1469_v38, 4  ;;  %v4783_v18 = vrot.slane %v3745_v47, 9  ;;  %v6151_v12 = vpack.c.bf16 %v388_v50, %v388_v50  ;;  %v4977_v15 = vld [vmem:[#allocation2 + $0xb4] sm:$0xff]   ;;  %v1462_v17 = vor.u32 %v1461_v26, %v6122_v33  ;;  %v1660_v21 = vld [vmem:[#allocation2 + $0xb0] sm:$0x1] }
 0x15f   : > { %2944 = vrot.lane.b32.xlu1 %v4735_v61, %s5003_s26  ;;  %v3529_v22 = vrot.slane %v3528_v62, 4  ;;  %v3539_v16 = vrot.slane %v3538_v56, 4  ;;  %v1477_v11 = vrot.slane %v1475_v55, 5  ;;  %v2614_v52 = vpop.permute.xlu0 %2613  ;;  %vm6514_vm6 = vcmask 31744   ;;  %v4989_v58 = vld [vmem:[#allocation2 + $0xb4] sm:$0xff]  }
 0x160   : > { %1066 = vst.msk [vmem:[#allocation3 + $0x70] sm:$0xff] %vm6514_vm6, %v4988_v63  ;;  %v1472_v27 = vor.u32 %v1471_v23, %v6148_v51  ;;  %v3897_v57 = vrot.slane %v3895_v39, 4  ;;  %v1480_v44 = vshrl.u32 %v1113_v29, 16  ;;  %v1483_v5 = vshll.u32 %v1113_v29, 16  ;;  %v2071_v24 = vpop.permute.xlu1 %2070  ;;  %v1661_v4 = vld [vmem:[#allocation2 + $0xb4] sm:$0xe] }
 0x161   : > { %3986 = vrot.lane.b32.xlu0 %v4798_v46, %s5004_s27  ;;  %2654 = vst.msk [vmem:[#allocation3 + $0x40] sm:$0xff] %vm2645_vm7, %v2614_v52  ;;  %v1463_v31 = vrot.slane %v1462_v17, 4  ;;  %v1489_v59 = vshll.u32 %v1114_v49, 16  ;;  %v1493_v61 = vshrl.u32 %v1114_v49, 16  ;;  %v4656_v33 = vrot.slane %v6145_v19, 9 }
 0x162   : > { %2110 = vst.msk [vmem:[#allocation3 + $0x48] sm:$0xff] %vm6513_vm12, %v2071_v24  ;;  %v3202_v8 = vld [vmem:[#allocation2 + $0xbc] sm:$0x1]  ;;  %v1473_v45 = vrot.slane %v1472_v27, 4  ;;  %v3896_v20 = vsel %vm5100_vm10, %v4783_v18, %v3895_v39  ;;  %v1482_v43 = vrot.slane %v1480_v44, 4  ;;  %v6163_v30 = vpack.c.bf16 %v389_v14, %v389_v14 }
 0x163   : > { %v3747_v3 = vld [vmem:[#allocation2 + $0xbc] sm:$0x1]  ;;  %3122 = vrot.lane.b32.xlu1 %v4977_v15, %s5001_s24  ;;  %v3534_v9 = vsel %vm5166_vm14, %v3529_v22, %v6140_v41  ;;  %v3541_v10 = vshll.u32 %v3202_v8, 16  ;;  %v1485_v7 = vrot.slane %v1483_v5, 5  ;;  %v2935_v35 = vpop.permute.xlu0 %2934  ;;  %v1468_v2 = vsel %vm5166_vm14, %v1463_v31, %v6148_v51  ;;  %v296_v32 = vld [vmem:[#allocation2 + $0xc0] sm:$0x1] }
 0x164   : > { %v3898_v1 = vrot.slane %v3747_v3, 5  ;;  %v1115_v28 = vld [vmem:[#allocation2 + $0xbc] sm:$0x1]  ;;  %v1491_v60 = vrot.slane %v1489_v59, 5  ;;  %v1495_v37 = vrot.slane %v1493_v61, 4  ;;  %2975 = vst.msk [vmem:[#allocation3 + $0x40] sm:$0xff] %vm2966_vm8, %v2935_v35  ;;  %v1478_v41 = vsel %vm5166_vm14, %v1473_v45, %v1477_v11 }
 0x165   : > { %v1499_v40 = vshll.u32 %v1115_v28, 16  ;;  %v3543_v42 = vrot.slane %v3541_v10, 5  ;;  %v1486_v54 = vor.u32 %v1485_v7, %v1482_v43  ;;  %v1662_v47 = vld [vmem:[#allocation2 + $0xb8] sm:$0xf]  ;;  %v1663_v50 = vld [vmem:[#allocation2 + $0xbc] sm:$0x1]  ;;  %v4640_v18 = vcombine.low %v1468_v2, %v1478_v41 }
 0x166   : > { %v3899_v46 = vsel %vm5100_vm10, %v3897_v57, %v3898_v1  ;;  %1067 = vst.msk [vmem:[#allocation3 + $0x78] sm:$0xff] %vm6514_vm6, %v4989_v58  ;;  %v1496_v48 = vor.u32 %v1495_v37, %v1491_v60  ;;  %v1815_v55 = vrot.slane %v1659_v13, 5  ;;  %v1818_v56 = vrot.slane %v1660_v21, 5  ;;  %v2160_v57 = vld [vmem:[#allocation2 + $0xb8] sm:$0xf] }
 0x167   : > { %v4799_v62 = vcombine.low %v3896_v20, %v3899_v46  ;;  %v1501_v38 = vrot.slane %v1499_v40, 5  ;;  %v3544_v29 = vsel %vm5166_vm14, %v3539_v16, %v3543_v42  ;;  %v1487_v19 = vrot.slane %v1486_v54, 4  ;;  %v3113_v39 = vpop.permute.xlu0 %3112  ;;  %v2159_v16 = vld [vmem:[#allocation2 + $0xb4] sm:$0xf]  ;;  %v352_v8 = vld [vmem:[#allocation2 + $0xc8] sm:$0x1] }
 0x168   : > { %v4657_v26 = vrot.slane %v1661_v4, 9  ;;  %v4767_v49 = vcombine.low %v3534_v9, %v3544_v29  ;;  %v1497_v63 = vrot.slane %v1496_v48, 4  ;;  %v1816_v51 = vsel %vm5100_vm10, %v4656_v33, %v1815_v55  ;;  %v4978_v45 = vld [vmem:[#allocation2 + $0xb4] sm:$0xff]   ;;  %v2161_v3 = vld [vmem:[#allocation2 + $0xbc] sm:$0x1] }
 0x169   : > { %3988 = vrot.lane.b32.xlu0 %v4799_v62, %s5004_s27  ;;  %v1817_v23 = vrot.slane %v1815_v55, 4  ;;  %vm6515_vm12 = vcmask 228544   ;;  %v1822_v14 = vrot.slane %v1662_v47, 5  ;;  %v1825_v15 = vrot.slane %v1663_v50, 5  ;;  %v2704_v7 = vld [vmem:[#allocation2 + $0xb4] sm:$0xe] }
 0x16a   : > { %3153 = vst.msk [vmem:[#allocation3 + $0x40] sm:$0xff] %vm6515_vm12, %v3113_v39  ;;  %v297_v22 = vsel %vm5047_vm3, 0, %v296_v32  ;;  %3667 = vrot.lane.b32.xlu1 %v4767_v49, %s5006_s29  ;;  %v1492_v17 = vsel %vm5166_vm14, %v1487_v19, %v1491_v60  ;;  %v744_v52 = vshrl.u32 %v6151_v12, 16  ;;  %v747_v27 = vshll.u32 %v6151_v12, 16  ;;  %v2706_v40 = vld [vmem:[#allocation2 + $0xbc] sm:$0x1] }
 0x16b   : > { %v1819_v11 = vsel %vm5100_vm10, %v1817_v23, %v1818_v56  ;;  %298 = vst [vmem:[#allocation2 + $0xc0] sm:$0x1] %v297_v22  ;;  %v1502_v44 = vsel %vm5166_vm14, %v1497_v63, %v1501_v38  ;;  %v6197_v24 = vsel %vm5100_vm10, %v4657_v26, %v1822_v14  ;;  %v1824_v31 = vrot.slane %v1822_v14, 4  ;;  %v299_v46 = vld [vmem:[#allocation2 + $0xcc] sm:$0x1] }
 0x16c   : > { %v4672_v5 = vcombine.low %v1816_v51, %v1819_v11  ;;  %v746_v59 = vrot.slane %v744_v52, 7  ;;  %v752_v61 = vshrl.u32 %v6163_v30, 16  ;;  %v755_v13 = vshll.u32 %v6163_v30, 16  ;;  %v2705_v30 = vld [vmem:[#allocation2 + $0xb8] sm:$0xf] }
 0x16d   : > { %v2502_v33 = vshrl.u32 %v2159_v16, 16  ;;  %v1826_v12 = vsel %vm5100_vm10, %v1824_v31, %v1825_v15  ;;  %v2505_v20 = vshll.u32 %v2159_v16, 16  ;;  %v2511_v43 = vshll.u32 %v2160_v57, 16  ;;  %v2616_v35 = vpop.permute.xlu1 %2615  ;;  %v355_v54 = vld [vmem:[#allocation2 + $0xd4] sm:$0x1] }
 0x16e   : > { %1903 = vrot.lane.b32.xlu0 %v4672_v5, %s5000_s23  ;;  %v2515_v21 = vshrl.u32 %v2160_v57, 16  ;;  %1579 = vrot.lane.b32.xlu1 %v4640_v18, %s5002_s25  ;;  %v4641_v9 = vcombine.low %v1492_v17, %v1502_v44  ;;  %v749_v10 = vor.u32 %v747_v27, %v746_v59  ;;  %v750_v1 = vrot.slane %v746_v59, 4  ;;  %2655 = vst.msk [vmem:[#allocation3 + $0x48] sm:$0xff] %vm2645_vm7, %v2616_v35  ;;  %v3207_v55 = vld [vmem:[#allocation2 + $0xd0] sm:$0xf] }
 0x16f   : > { %v754_v28 = vrot.slane %v752_v61, 7  ;;  %v2504_v58 = vrot.slane %v2502_v33, 4  ;;  %v2507_v2 = vrot.slane %v2505_v20, 5  ;;  %v2513_v60 = vrot.slane %v2511_v43, 5 }
 0x170   : > { %v2517_v37 = vrot.slane %v2515_v21, 4  ;;  %v4673_v4 = vcombine.low %v6197_v24, %v1826_v12  ;;  %v2521_v42 = vshll.u32 %v2161_v3, 16  ;;  %v353_v41 = vsel %vm5073_vm5, 0, %v352_v8 }
 0x171   : > { %v757_v32 = vor.u32 %v755_v13, %v754_v28  ;;  %v2508_v50 = vor.u32 %v2507_v2, %v2504_v58  ;;  %354 = vst [vmem:[#allocation2 + $0xc8] sm:$0x1] %v353_v41  ;;  %v4720_v48 = vrot.slane %v2704_v7, 9  ;;  %v2858_v38 = vrot.slane %v2705_v30, 5  ;;  %v2937_v39 = vpop.permute.xlu1 %2936  ;;  %v3658_v49 = vpop.permute.xlu0 %3657 }
 0x172   : > { %2080 = vrot.lane.b32.xlu0 %v4978_v45, %s4999_s22  ;;  %v916_v47 = vld [vmem:[#allocation2 + $0xc0] sm:$0xf]  ;;  %v2518_v62 = vor.u32 %v2517_v37, %v2513_v60  ;;  %1581 = vrot.lane.b32.xlu1 %v4641_v9, %s5002_s25  ;;  %v2523_v56 = vrot.slane %v2521_v42, 5  ;;  %v2861_v26 = vrot.slane %v2706_v40, 5  ;;  %v759_v63 = vrot.slane %v754_v28, 4  ;;  %2976 = vst.msk [vmem:[#allocation3 + $0x48] sm:$0xff] %vm2966_vm8, %v2937_v39 }
 0x173   : > { %v758_v29 = vsel %vm5088_vm9, %v750_v1, %v757_v32  ;;  %v917_v19 = vsel %vm5106_vm11, %v749_v10, %v916_v47  ;;  %v2509_v51 = vrot.slane %v2508_v50, 4  ;;  %v2860_v18 = vrot.slane %v2858_v38, 4  ;;  %3698 = vst.msk [vmem:[#allocation3 + $0x40] sm:$0xff] %vm3689_vm13, %v3658_v49 }
 0x174   : > { %918 = vst [vmem:[#allocation2 + $0xc0] sm:$0xf] %v917_v19  ;;  %919 = vst.msk [vmem:[#allocation2 + $0xc4] sm:$0xf] %vm237_vm0, %v758_v29  ;;  %v2519_v23 = vrot.slane %v2518_v62, 4  ;;  %v2859_v25 = vsel %vm5100_vm10, %v4720_v48, %v2858_v38  ;;  %v300_v36 = vsel %vm5047_vm3, 0, %v299_v46 }
 0x175   : > { %v356_v14 = vsel %vm5073_vm5, 0, %v355_v54  ;;  %v3579_v15 = vshll.u32 %v3207_v55, 16  ;;  %v2514_v22 = vsel %vm5166_vm14, %v2509_v51, %v2513_v60  ;;  %v2862_v17 = vsel %vm5100_vm10, %v2860_v18, %v2861_v26  ;;  %301 = vst [vmem:[#allocation2 + $0xcc] sm:$0x1] %v300_v36  ;;  %v3115_v27 = vpop.permute.xlu1 %3114  ;;  %v3979_v57 = vpop.permute.xlu0 %3978  ;;  %vm6516_vm0 = vmmov %vm6515_vm12 }
 0x176   : > { %v2524_v16 = vsel %vm5166_vm14, %v2519_v23, %v2523_v56  ;;  %357 = vst [vmem:[#allocation2 + $0xd4] sm:$0x1] %v356_v14  ;;  %v3583_v11 = vshrl.u32 %v3207_v55, 16  ;;  %1905 = vrot.lane.b32.xlu1 %v4673_v4, %s5000_s23  ;;  %3154 = vst.msk [vmem:[#allocation3 + $0x48] sm:$0xff] %vm6516_vm0, %v3115_v27  ;;  %v4736_v5 = vcombine.low %v2859_v25, %v2862_v17  ;;  %v3909_v13 = vrot.slane %v6231_v6, 5 }
 0x177   : > { %v4704_v52 = vcombine.low %v2514_v22, %v2524_v16  ;;  %4019 = vst.msk [vmem:[#allocation3 + $0x40] sm:$0xff] %vm4010_vm1, %v3979_v57  ;;  %v6238_v31 = vrot.slane %v3579_v15, 5  ;;  %vm6519_vm9 = vmmov %vm6516_vm0  ;;  %vm6524_vm12 = vcmask 31744  }
 0x178   : > { %v920_v44 = vld [vmem:[#allocation2 + $0xc8] sm:$0x1]  ;;  %v6240_v59 = vrot.slane %v3583_v11, 4  ;;  %vm6523_vm6 = vmmov %vm6516_vm0 }
 0x179   : > { %2625 = vrot.lane.b32.xlu0 %v4704_v52, %s5005_s28  ;;  %v921_v24 = vsel %vm5047_vm3, %v759_v63, %v920_v44  ;;  %v3660_v33 = vpop.permute.xlu1 %3659  ;;  %vm6517_vm3 = vcmask 130144  }
 0x17a   : > { %922 = vst [vmem:[#allocation2 + $0xc8] sm:$0x1] %v921_v24  ;;  %3699 = vst.msk [vmem:[#allocation3 + $0x48] sm:$0xff] %vm3689_vm13, %v3660_v33  ;;  %v3586_v62 = vor.u32 %v6240_v59, %v6238_v31 }
 0x17b   : > { %v4979_v61 = vld [vmem:[#allocation2 + $0xc0] sm:$0xff]   ;;  %v3981_v9 = vpop.permute.xlu0 %3980  ;;  %vm6518_vm5 = vmmov %vm6517_vm3 }
 0x17c   : > { %v2162_v8 = vld [vmem:[#allocation2 + $0xc0] sm:$0xf]  ;;  %v2163_v12 = vld [vmem:[#allocation2 + $0xc4] sm:$0xf]  ;;  %2082 = vrot.lane.b32.xlu1 %v4979_v61, %s4999_s22  ;;  %4020 = vst.msk [vmem:[#allocation3 + $0x48] sm:$0xff] %vm4010_vm1, %v3981_v9  ;;  %vm6521_vm11 = vmmov %vm6517_vm3 }
 0x17d   : > { %v2707_v45 = vld [vmem:[#allocation2 + $0xc0] sm:$0xe]  ;;  %v2526_v3 = vshrl.u32 %v2162_v8, 16  ;;  %v2529_v20 = vshll.u32 %v2162_v8, 16  ;;  %v2535_v0 = vshll.u32 %v2163_v12, 16  ;;  %v2539_v43 = vshrl.u32 %v2163_v12, 16  ;;  %2946 = vrot.lane.b32.xlu0 %v4736_v5, %s5003_s26  ;;  %v1572_v2 = vpop.permute.xlu1 %1571 }
 0x17e   : > { %v2708_v21 = vld [vmem:[#allocation2 + $0xc4] sm:$0xf]  ;;  %v4721_v10 = vrot.slane %v2707_v45, 9  ;;  %v3203_v37 = vld [vmem:[#allocation2 + $0xc0] sm:$0xf]  ;;  %1610 = vst.msk [vmem:[#allocation3 + $0x50] sm:$0xff] %vm1599_vm2, %v1572_v2 }
 0x17f   : > { %v2865_v1 = vrot.slane %v2708_v21, 5  ;;  %v2528_v28 = vrot.slane %v2526_v3, 4  ;;  %v2531_v7 = vrot.slane %v2529_v20, 5  ;;  %v2537_v30 = vrot.slane %v2535_v0, 5  ;;  %v4982_v58 = vld [vmem:[#allocation2 + $0xc0] sm:$0xff]   ;;  %v4035_v40 = vld [vmem:[#allocation3 + $0x40] sm:$0xff] }
 0x180   : > { %v2541_v35 = vrot.slane %v2539_v43, 4  ;;  %v3204_v42 = vld [vmem:[#allocation2 + $0xc4] sm:$0xf]  ;;  %v3546_v41 = vshrl.u32 %v3203_v37, 16  ;;  %v3549_v46 = vshll.u32 %v3203_v37, 16  ;;  %4898 = vmatprep.mubr.msk.bf16.mxu1 %vm4063_vm15, %v4035_v40 }
 0x181   : > { %v2867_v60 = vrot.slane %v2865_v1, 4  ;;  %v2532_v4 = vor.u32 %v2531_v7, %v2528_v28  ;;  %3124 = vrot.lane.b32.xlu0 %v4982_v58, %s5001_s24  ;;  %v2164_v54 = vld [vmem:[#allocation2 + $0xc8] sm:$0x1]  ;;  %v3555_v26 = vshll.u32 %v3204_v42, 16  ;;  %v3559_v39 = vshrl.u32 %v3204_v42, 16 }
 0x182   : > { %v2542_v32 = vor.u32 %v2541_v35, %v2537_v30  ;;  %v2709_v47 = vld [vmem:[#allocation2 + $0xc8] sm:$0x1]  ;;  %v2545_v55 = vshll.u32 %v2164_v54, 16  ;;  %v3548_v19 = vrot.slane %v3546_v41, 4  ;;  %v3551_v56 = vrot.slane %v3549_v46, 5  ;;  %v1896_v63 = vpop.permute.xlu0 %1895  ;;  %v4983_v41 = vld [vmem:[#allocation2 + $0xcc] sm:$0xff]  }
 0x183   : > { %v3205_v50 = vld [vmem:[#allocation2 + $0xc8] sm:$0x1]  ;;  %v2533_v48 = vrot.slane %v2532_v4, 4  ;;  %v2868_v29 = vrot.slane %v2709_v47, 5  ;;  %v3206_v49 = vld [vmem:[#allocation2 + $0xcc] sm:$0xf]  ;;  %v2866_v18 = vsel %vm5100_vm10, %v4721_v10, %v2865_v1  ;;  %v1574_v15 = vpop.permute.xlu1 %1573 }
 0x184   : > { %v2543_v38 = vrot.slane %v2542_v32, 4  ;;  %v2547_v23 = vrot.slane %v2545_v55, 5  ;;  %v3565_v25 = vshll.u32 %v3205_v50, 16  ;;  %v3208_v36 = vld [vmem:[#allocation2 + $0xd4] sm:$0x1]  ;;  %1934 = vst.msk [vmem:[#allocation3 + $0x50] sm:$0xff] %vm1923_vm4, %v1896_v63  ;;  %v3552_v16 = vor.u32 %v3551_v56, %v3548_v19 }
 0x185   : > { %v2538_v51 = vsel %vm5166_vm14, %v2533_v48, %v2537_v30  ;;  %v3748_v14 = vld [vmem:[#allocation2 + $0xc0] sm:$0xe]  ;;  %v2869_v22 = vsel %vm5100_vm10, %v2867_v60, %v2868_v29  ;;  %v3557_v17 = vrot.slane %v3555_v26, 5  ;;  %v3561_v11 = vrot.slane %v3559_v39, 4  ;;  %v3749_v52 = vld [vmem:[#allocation2 + $0xc4] sm:$0xf] }
 0x186   : > { %1611 = vst.msk [vmem:[#allocation3 + $0x58] sm:$0xff] %vm1599_vm2, %v1574_v15  ;;  %v4036_v27 = vld [vmem:[#allocation3 + $0x48] sm:$0xff]  ;;  %v2548_v57 = vsel %vm5166_vm14, %v2543_v38, %v2547_v23  ;;  %v3567_v44 = vrot.slane %v3565_v25, 5  ;;  %v3570_v5 = vshrl.u32 %v3206_v49, 16  ;;  %v3573_v24 = vshll.u32 %v3206_v49, 16  ;;  %v2073_v45 = vpop.permute.xlu0 %2072 }
 0x187   : > { %v3750_v59 = vld [vmem:[#allocation2 + $0xc8] sm:$0x1]  ;;  %4899 = vmatmul.mubr.msk.bf16.vlgmr.msra.gmra.mrb[0].mxu1 %vm4063_vm15, %v4036_v27  ;;  %v4705_v61 = vcombine.low %v2538_v51, %v2548_v57  ;;  %v3553_v33 = vrot.slane %v3552_v16, 4  ;;  %v3562_v8 = vor.u32 %v3561_v11, %v3557_v17  ;;  %v3589_v12 = vshll.u32 %v3208_v36, 16  ;;  %v1898_v21 = vpop.permute.xlu1 %1897  ;;  %2111 = vst.msk [vmem:[#allocation3 + $0x50] sm:$0xff] %vm6517_vm3, %v2073_v45 }
 0x188   : > { %v3572_v3 = vrot.slane %v3570_v5, 4  ;;  %v3575_v20 = vrot.slane %v3573_v24, 5  ;;  %v4784_v0 = vrot.slane %v3748_v14, 9  ;;  %v3902_v43 = vrot.slane %v3749_v52, 5  ;;  %1935 = vst.msk [vmem:[#allocation3 + $0x58] sm:$0xff] %vm1923_vm4, %v1898_v21 }
 0x189   : > { %2627 = vrot.lane.b32.xlu1 %v4705_v61, %s5005_s28  ;;  %v4737_v9 = vcombine.low %v2866_v18, %v2869_v22  ;;  %v3558_v10 = vsel %vm5166_vm14, %v3553_v33, %v3557_v17  ;;  %v3563_v1 = vrot.slane %v3562_v8, 4  ;;  %v3905_v28 = vrot.slane %v3750_v59, 5  ;;  %v3751_v2 = vld [vmem:[#allocation2 + $0xcc] sm:$0xe]  ;;  %v3753_v40 = vld [vmem:[#allocation2 + $0xd4] sm:$0x1] }
 0x18a   : > { %v3576_v7 = vor.u32 %v3575_v20, %v3572_v3  ;;  %v3587_v30 = vrot.slane %v3586_v62, 4  ;;  %v3591_v35 = vrot.slane %v3589_v12, 5  ;;  %v3904_v58 = vrot.slane %v3902_v43, 4 }
 0x18b   : > { %v3568_v60 = vsel %vm5166_vm14, %v3563_v1, %v3567_v44  ;;  %v3903_v37 = vsel %vm5100_vm10, %v4784_v0, %v3902_v43  ;;  %v4785_v46 = vrot.slane %v3751_v2, 9  ;;  %v3911_v54 = vrot.slane %v3909_v13, 4 }
 0x18c   : > { %v4768_v4 = vcombine.low %v3558_v10, %v3568_v60  ;;  %v3577_v32 = vrot.slane %v3576_v7, 4  ;;  %v3906_v42 = vsel %vm5100_vm10, %v3904_v58, %v3905_v28  ;;  %v3592_v50 = vsel %vm5166_vm14, %v3587_v30, %v3591_v35 }
 0x18d   : > { %2948 = vrot.lane.b32.xlu1 %v4737_v9, %s5003_s26  ;;  %v4800_v62 = vcombine.low %v3903_v37, %v3906_v42  ;;  %v3912_v48 = vrot.slane %v3753_v40, 5  ;;  %v3910_v19 = vsel %vm5100_vm10, %v4785_v46, %v3909_v13 }
 0x18e   : > { %3669 = vrot.lane.b32.xlu0 %v4768_v4, %s5006_s29  ;;  %v3582_v47 = vsel %vm5166_vm14, %v3577_v32, %v6238_v31  ;;  %v2618_v38 = vpop.permute.xlu0 %2617  ;;  %vm6522_vm14 = vmmov %vm6517_vm3 }
 0x18f   : > { %2656 = vst.msk [vmem:[#allocation3 + $0x50] sm:$0xff] %vm2645_vm7, %v2618_v38  ;;  %v4769_v55 = vcombine.low %v3582_v47, %v3592_v50  ;;  %v3913_v53 = vsel %vm5100_vm10, %v3911_v54, %v3912_v48  ;;  %vm6520_vm10 = vmmov %vm6516_vm0 }
 0x190   : > { %v4801_v56 = vcombine.low %v3910_v19, %v3913_v53  ;;  %vm6525_vm0 = vmmov %vm6524_vm12 }
 0x191   : > { %3126 = vrot.lane.b32.xlu1 %v4983_v41, %s5001_s24  ;;  %v2075_v29 = vpop.permute.xlu1 %2074  ;;  %vm6526_vm3 = vmmov %vm6525_vm0 }
 0x192   : > { %3990 = vrot.lane.b32.xlu0 %v4800_v62, %s5004_s27  ;;  %2112 = vst.msk [vmem:[#allocation3 + $0x58] sm:$0xff] %vm6518_vm5, %v2075_v29  ;;  %v2939_v31 = vpop.permute.xlu0 %2938  ;;  %vm6527_vm5 = vmmov %vm6525_vm0 }
 0x193   : > { %2977 = vst.msk [vmem:[#allocation3 + $0x50] sm:$0xff] %vm2966_vm8, %v2939_v31 }
 0x195   : > { %3671 = vrot.lane.b32.xlu1 %v4769_v55, %s5006_s29 }
 0x196   : > { %v3117_v26 = vpop.permute.xlu0 %3116 }
 0x197   : > { %3155 = vst.msk [vmem:[#allocation3 + $0x50] sm:$0xff] %vm6519_vm9, %v3117_v26  ;;  %vm6528_vm9 = vmmov %vm6525_vm0 }
 0x199   : > { %3992 = vrot.lane.b32.xlu1 %v4801_v56, %s5004_s27 }
 0x19e   : > { %v2620_v6 = vpop.permute.xlu1 %2619 }
 0x19f   : > { %2657 = vst.msk [vmem:[#allocation3 + $0x58] sm:$0xff] %vm2645_vm7, %v2620_v6 }
 0x1a1   : > { %v3662_v39 = vpop.permute.xlu0 %3661 }
 0x1a2   : > { %v2941_v13 = vpop.permute.xlu1 %2940  ;;  %3700 = vst.msk [vmem:[#allocation3 + $0x50] sm:$0xff] %vm3689_vm13, %v3662_v39 }
 0x1a3   : > { %2978 = vst.msk [vmem:[#allocation3 + $0x58] sm:$0xff] %vm2966_vm8, %v2941_v13 }
 0x1a5   : > { %v3983_v49 = vpop.permute.xlu0 %3982 }
 0x1a6   : > { %v3119_v34 = vpop.permute.xlu1 %3118  ;;  %4021 = vst.msk [vmem:[#allocation3 + $0x50] sm:$0xff] %vm4010_vm1, %v3983_v49 }
 0x1a7   : > { %3156 = vst.msk [vmem:[#allocation3 + $0x58] sm:$0xff] %vm6520_vm10, %v3119_v34  ;;  %vm6529_vm10 = vmmov %vm6525_vm0 }
 0x1aa   : > { %v3664_v63 = vpop.permute.xlu1 %3663 }
 0x1ab   : > { %3701 = vst.msk [vmem:[#allocation3 + $0x58] sm:$0xff] %vm3689_vm13, %v3664_v63 }
 0x1ac   : > { %v3985_v51 = vpop.permute.xlu0 %3984 }
 0x1ad   : > { %4022 = vst.msk [vmem:[#allocation3 + $0x58] sm:$0xff] %vm4010_vm1, %v3985_v51  ;;  %v4037_v18 = vld [vmem:[#allocation3 + $0x50] sm:$0xff] }
 0x1ae   : > { %v1576_v23 = vpop.permute.xlu1 %1575  ;;  %4902 = vmatprep.mubr.msk.bf16.mxu1 %vm4063_vm15, %v4037_v18 }
 0x1af   : > { %1612 = vst.msk [vmem:[#allocation3 + $0x60] sm:$0xff] %vm1599_vm2, %v1576_v23 }
 0x1b2   : > { %v1578_v25 = vpop.permute.xlu1 %1577 }
 0x1b3   : > { %v1900_v36 = vpop.permute.xlu0 %1899  ;;  %1613 = vst.msk [vmem:[#allocation3 + $0x68] sm:$0xff] %vm1599_vm2, %v1578_v25 }
 0x1b4   : > { %1936 = vst.msk [vmem:[#allocation3 + $0x60] sm:$0xff] %vm1923_vm4, %v1900_v36  ;;  %v4038_v14 = vld [vmem:[#allocation3 + $0x58] sm:$0xff] }
 0x1b5   : > { %4903 = vmatmul.mubr.msk.bf16.gmra.mrb[4].mxu1 %vm4063_vm15, %v4038_v14 }
 0x1b6   : > { %v1902_v15 = vpop.permute.xlu1 %1901 }
 0x1b7   : > { %v2077_v22 = vpop.permute.xlu0 %2076  ;;  %1937 = vst.msk [vmem:[#allocation3 + $0x68] sm:$0xff] %vm1923_vm4, %v1902_v15 }
 0x1b8   : > { %2113 = vst.msk [vmem:[#allocation3 + $0x60] sm:$0xff] %vm6521_vm11, %v2077_v22  ;;  %vm6530_vm11 = vmmov %vm6523_vm6 }
 0x1bd   : > { %v2079_v17 = vpop.permute.xlu1 %2078 }
 0x1be   : > { %v2622_v16 = vpop.permute.xlu0 %2621  ;;  %2114 = vst.msk [vmem:[#allocation3 + $0x68] sm:$0xff] %vm6522_vm14, %v2079_v17  ;;  %vm6531_vm14 = vmmov %vm6525_vm0 }
 0x1bf   : > { %2658 = vst.msk [vmem:[#allocation3 + $0x60] sm:$0xff] %vm2645_vm7, %v2622_v16 }
 0x1c2   : > { %v2943_v11 = vpop.permute.xlu0 %2942 }
 0x1c3   : > { %2979 = vst.msk [vmem:[#allocation3 + $0x60] sm:$0xff] %vm2966_vm8, %v2943_v11 }
 0x1c6   : > { %v3121_v52 = vpop.permute.xlu0 %3120 }
 0x1c7   : > { %3157 = vst.msk [vmem:[#allocation3 + $0x60] sm:$0xff] %vm6523_vm6, %v3121_v52  ;;  %vm6532_vm6 = vmmov %vm6525_vm0 }
 0x1cc   : > { %v4884_v44 = vpop.f32.mrb[0].mxu0 }
 0x1cd   : > { %v2624_v27 = vpop.permute.xlu1 %2623  ;;  %4279 = vst.msk [vmem:[%s6321_s13 + $0x10] sm:$0xff] %vm6524_vm12, %v4884_v44  ;;  %v4150_v24 = vpop.f32.mrb[1].mxu0  ;;  %v4382_v12 = vmul.f32 %v4884_v44, %v4884_v44  ;;  %v4312_v21 = vsel %vm6531_vm14, %v4884_v44, 0.0  ;;  %vm6533_vm12 = vmmov %vm6525_vm0 }
 0x1ce   : > { %2659 = vst.msk [vmem:[#allocation3 + $0x68] sm:$0xff] %vm2645_vm7, %v2624_v27  ;;  %v4380_v61 = vmul.f32 %v4150_v24, %v4150_v24  ;;  %v4885_v33 = vpop.f32.mrb[2].mxu0  ;;  %v4309_v45 = vsel %vm6527_vm5, %v4150_v24, 0.0  ;;  %vm6535_vm5 = vmmov %vm6525_vm0 }
 0x1cf   : > { %v3666_v57 = vpop.permute.xlu0 %3665  ;;  %4277 = vst.msk [vmem:[%s6321_s13] sm:$0xff] %vm6525_vm0, %v4150_v24  ;;  %v4153_v8 = vpop.f32.mrb[3].mxu0  ;;  %v4383_v10 = vmul.f32 %v4885_v33, %v4885_v33  ;;  %v4415_v30 = vsel %vm6525_vm0, %v4382_v12, 0.0  ;;  %vm6539_vm14 = vmmov %vm6525_vm0 }
 0x1d0   : > { %3702 = vst.msk [vmem:[#allocation3 + $0x60] sm:$0xff] %vm3689_vm13, %v3666_v57  ;;  %v4310_v3 = vsel %vm6529_vm10, %v4153_v8, 0.0  ;;  %v4381_v20 = vmul.f32 %v4153_v8, %v4153_v8  ;;  %v4412_v9 = vsel %vm6532_vm6, %v4380_v61, 0.0  ;;  %vm6537_vm10 = vmmov %vm6525_vm0 }
 0x1d1   : > { %v2945_v5 = vpop.permute.xlu1 %2944  ;;  %4280 = vst.msk [vmem:[%s6321_s13 + $0x18] sm:$0xff] %vm6526_vm3, %v4885_v33  ;;  %v4311_v43 = vadd.f32 %v4310_v3, %v4309_v45  ;;  %vm6534_vm3 = vmmov %vm6525_vm0 }
 0x1d2   : > { %2980 = vst.msk [vmem:[#allocation3 + $0x68] sm:$0xff] %vm2966_vm8, %v2945_v5  ;;  %v4413_v1 = vsel %vm6533_vm12, %v4381_v20, 0.0  ;;  %v4314_v35 = vsel %vm6534_vm3, %v4885_v33, 0.0  ;;  %vm6540_vm6 = vmmov %vm6525_vm0 }
 0x1d3   : > { %v3987_v59 = vpop.permute.xlu0 %3986  ;;  %4278 = vst.msk [vmem:[%s6321_s13 + $0x8] sm:$0xff] %vm6528_vm9, %v4153_v8  ;;  %v4313_v28 = vadd.f32 %v4312_v21, %v4311_v43  ;;  %v4414_v7 = vadd.f32 %v4413_v1, %v4412_v9  ;;  %vm6536_vm9 = vmmov %vm6525_vm0 }
 0x1d4   : > { %4023 = vst.msk [vmem:[#allocation3 + $0x60] sm:$0xff] %vm4010_vm1, %v3987_v59  ;;  %v4888_v58 = vpop.f32.mrb[4].mxu0  ;;  %v4417_v32 = vsel %vm6536_vm9, %v4383_v10, 0.0  ;;  %vm6541_vm12 = vmmov %vm6525_vm0 }
 0x1d5   : > { %v3123_v0 = vpop.permute.xlu1 %3122  ;;  %v4416_v2 = vadd.f32 %v4415_v30, %v4414_v7  ;;  %4283 = vst.msk [vmem:[%s6321_s13 + $0x30] sm:$0xff] %vm6535_vm5, %v4888_v58  ;;  %v4166_v60 = vpop.f32.mrb[5].mxu0  ;;  %v4315_v37 = vadd.f32 %v4314_v35, %v4313_v28  ;;  %v4386_v48 = vmul.f32 %v4888_v58, %v4888_v58  ;;  %vm6542_vm3 = vmmov %vm6525_vm0 }
 0x1d6   : > { %3158 = vst.msk [vmem:[#allocation3 + $0x68] sm:$0xff] %vm6530_vm11, %v3123_v0  ;;  %vm6538_vm11 = vmmov %vm6525_vm0  ;;  %v4384_v41 = vmul.f32 %v4166_v60, %v4166_v60  ;;  %v4889_v46 = vpop.f32.mrb[6].mxu0  ;;  %v4320_v31 = vsel %vm6542_vm3, %v4888_v58, 0.0 }
 0x1d7   : > { %4281 = vst.msk [vmem:[%s6321_s13 + $0x20] sm:$0xff] %vm6537_vm10, %v4166_v60  ;;  %v4316_v42 = vsel %vm6538_vm11, %v4166_v60, 0.0  ;;  %v4418_v47 = vadd.f32 %v4417_v32, %v4416_v2  ;;  %v4169_v50 = vpop.f32.mrb[7].mxu0  ;;  %v4387_v56 = vmul.f32 %v4889_v46, %v4889_v46  ;;  %vm6543_vm5 = vmmov %vm6525_vm0 }
 0x1d8   : > { %v4317_v54 = vadd.f32 %v4316_v42, %v4315_v37  ;;  %4284 = vst.msk [vmem:[%s6321_s13 + $0x38] sm:$0xff] %vm6539_vm14, %v4889_v46  ;;  %v4419_v38 = vsel %vm6540_vm6, %v4384_v41, 0.0  ;;  %v4318_v55 = vsel %vm6525_vm0, %v4169_v50, 0.0  ;;  %v4385_v29 = vmul.f32 %v4169_v50, %v4169_v50  ;;  %vm6544_vm9 = vmmov %vm6525_vm0 }
 0x1d9   : > { %4282 = vst.msk [vmem:[%s6321_s13 + $0x28] sm:$0xff] %vm6541_vm12, %v4169_v50  ;;  %v4420_v19 = vadd.f32 %v4419_v38, %v4418_v47  ;;  %v4423_v49 = vsel %vm6544_vm9, %v4386_v48, 0.0  ;;  %vm6545_vm10 = vmmov %vm6525_vm0  ;;  %vm6547_vm14 = vcmask 130144   ;;  %vm6549_vm12 = vcmask 228544  }
 0x1da   : > { %v4319_v53 = vadd.f32 %v4318_v55, %v4317_v54  ;;  %v4421_v26 = vsel %vm6543_vm5, %v4385_v29, 0.0  ;;  %v4322_v63 = vsel %vm6545_vm10, %v4889_v46, 0.0  ;;  %vm6546_vm11 = vmmov %vm6525_vm0 }
 0x1db   : > { %v3989_v40 = vpop.permute.xlu0 %3988  ;;  %v4039_v4 = vld [vmem:[#allocation3 + $0x60] sm:$0xff]  ;;  %v4422_v39 = vadd.f32 %v4421_v26, %v4420_v19  ;;  %v4425_v18 = vsel %vm6546_vm11, %v4387_v56, 0.0  ;;  %vm6548_vm6 = vmmov %vm6547_vm14 }
 0x1dc   : > { %4906 = vmatprep.mubr.msk.bf16.mxu1 %vm4063_vm15, %v4039_v4  ;;  %v3668_v62 = vpop.permute.xlu1 %3667  ;;  %v4321_v13 = vadd.f32 %v4320_v31, %v4319_v53  ;;  %vm6552_vm3 = vmmov %vm6525_vm0 }
 0x1dd   : > { %3703 = vst.msk [vmem:[#allocation3 + $0x68] sm:$0xff] %vm3689_vm13, %v3668_v62  ;;  %v4424_v51 = vadd.f32 %v4423_v49, %v4422_v39  ;;  %vm6553_vm5 = vmmov %vm6525_vm0 }
 0x1de   : > { %4024 = vst.msk [vmem:[#allocation3 + $0x68] sm:$0xff] %vm4010_vm1, %v3989_v40  ;;  %v4323_v23 = vadd.f32 %v4322_v63, %v4321_v13  ;;  %vm6554_vm9 = vmmov %vm6525_vm0 }
 0x1df   : > { %v4426_v36 = vadd.f32 %v4425_v18, %v4424_v51  ;;  %vm6555_vm10 = vmmov %vm6525_vm0 }
 0x1e0   : > { %v1904_v6 = vpop.permute.xlu0 %1903  ;;  %v1580_v34 = vpop.permute.xlu1 %1579  ;;  %vm6557_vm11 = vmmov %vm6525_vm0 }
 0x1e1   : > { %1614 = vst.msk [vmem:[#allocation3 + $0x70] sm:$0xff] %vm1599_vm2, %v1580_v34 }
 0x1e2   : > { %1938 = vst.msk [vmem:[#allocation3 + $0x70] sm:$0xff] %vm1923_vm4, %v1904_v6 }
 0x1e4   : > { %v2081_v25 = vpop.permute.xlu0 %2080  ;;  %v1582_v14 = vpop.permute.xlu1 %1581 }
 0x1e5   : > { %2115 = vst.msk [vmem:[#allocation3 + $0x70] sm:$0xff] %vm6547_vm14, %v2081_v25  ;;  %v4040_v15 = vld [vmem:[#allocation3 + $0x68] sm:$0xff]  ;;  %vm6558_vm14 = vmmov %vm6525_vm0 }
 0x1e6   : > { %1615 = vst.msk [vmem:[#allocation3 + $0x78] sm:$0xff] %vm1599_vm2, %v1582_v14  ;;  %4907 = vmatmul.mubr.msk.bf16.gmra.mrb[8].mxu1 %vm4063_vm15, %v4040_v15  ;;  %vm6550_vm2 = vmmov %vm6525_vm0 }
 0x1e8   : > { %v1906_v22 = vpop.permute.xlu1 %1905 }
 0x1e9   : > { %1939 = vst.msk [vmem:[#allocation3 + $0x78] sm:$0xff] %vm1923_vm4, %v1906_v22  ;;  %vm6551_vm4 = vmmov %vm6525_vm0 }
 0x1eb   : > { %v2626_v16 = vpop.permute.xlu0 %2625 }
 0x1ec   : > { %2660 = vst.msk [vmem:[#allocation3 + $0x70] sm:$0xff] %vm2645_vm7, %v2626_v16 }
 0x1ee   : > { %v2083_v17 = vpop.permute.xlu1 %2082 }
 0x1ef   : > { %v2947_v11 = vpop.permute.xlu0 %2946  ;;  %2116 = vst.msk [vmem:[#allocation3 + $0x78] sm:$0xff] %vm6548_vm6, %v2083_v17  ;;  %vm6559_vm6 = vmmov %vm6525_vm0 }
 0x1f0   : > { %2981 = vst.msk [vmem:[#allocation3 + $0x70] sm:$0xff] %vm2966_vm8, %v2947_v11 }
 0x1f3   : > { %v3125_v52 = vpop.permute.xlu0 %3124 }
 0x1f4   : > { %3159 = vst.msk [vmem:[#allocation3 + $0x70] sm:$0xff] %vm6549_vm12, %v3125_v52 }
 0x1fb   : > { %v4892_v27 = vpop.f32.mrb[8].mxu0  ;;  %v2628_v57 = vpop.permute.xlu1 %2627 }
 0x1fc   : > { %4287 = vst.msk [vmem:[%s6321_s13 + $0x50] sm:$0xff] %vm6550_vm2, %v4892_v27  ;;  %v4182_v44 = vpop.f32.mrb[9].mxu0  ;;  %v4390_v8 = vmul.f32 %v4892_v27, %v4892_v27  ;;  %vm6561_vm2 = vmmov %vm6525_vm0 }
 0x1fd   : > { %2661 = vst.msk [vmem:[#allocation3 + $0x78] sm:$0xff] %vm2645_vm7, %v2628_v57  ;;  %v4324_v5 = vsel %vm6525_vm0, %v4182_v44, 0.0  ;;  %v4388_v24 = vmul.f32 %v4182_v44, %v4182_v44  ;;  %v4893_v59 = vpop.f32.mrb[10].mxu0  ;;  %vm6556_vm7 = vmmov %vm6525_vm0 }
 0x1fe   : > { %4285 = vst.msk [vmem:[%s6321_s13 + $0x40] sm:$0xff] %vm6551_vm4, %v4182_v44  ;;  %v4325_v61 = vadd.f32 %v4324_v5, %v4323_v23  ;;  %v4185_v33 = vpop.f32.mrb[11].mxu0  ;;  %v4328_v9 = vsel %vm6556_vm7, %v4892_v27, 0.0  ;;  %v4391_v10 = vmul.f32 %v4893_v59, %v4893_v59  ;;  %v4431_v30 = vsel %vm6558_vm14, %v4390_v8, 0.0  ;;  %vm6562_vm4 = vmmov %vm6525_vm0 }
 0x1ff   : > { %4288 = vst.msk [vmem:[%s6321_s13 + $0x58] sm:$0xff] %vm6552_vm3, %v4893_v59  ;;  %v4427_v12 = vsel %vm6553_vm5, %v4388_v24, 0.0  ;;  %v4326_v45 = vsel %vm6555_vm10, %v4185_v33, 0.0  ;;  %v4389_v3 = vmul.f32 %v4185_v33, %v4185_v33  ;;  %v2949_v20 = vpop.permute.xlu1 %2948  ;;  %v4330_v35 = vsel %vm6559_vm6, %v4893_v59, 0.0  ;;  %vm6565_vm3 = vmmov %vm6525_vm0 }
 0x200   : > { %4286 = vst.msk [vmem:[%s6321_s13 + $0x48] sm:$0xff] %vm6554_vm9, %v4185_v33  ;;  %v4428_v0 = vadd.f32 %v4427_v12, %v4426_v36  ;;  %v4327_v43 = vadd.f32 %v4326_v45, %v4325_v61  ;;  %v3670_v21 = vpop.permute.xlu0 %3669  ;;  %vm6567_vm5 = vmmov %vm6525_vm0 }
 0x201   : > { %2982 = vst.msk [vmem:[#allocation3 + $0x78] sm:$0xff] %vm2966_vm8, %v2949_v20  ;;  %v4429_v1 = vsel %vm6557_vm11, %v4389_v3, 0.0  ;;  %vm6560_vm8 = vmmov %vm6525_vm0 }
 0x202   : > { %3704 = vst.msk [vmem:[#allocation3 + $0x70] sm:$0xff] %vm3689_vm13, %v3670_v21  ;;  %v4329_v28 = vadd.f32 %v4328_v9, %v4327_v43  ;;  %v4430_v7 = vadd.f32 %v4429_v1, %v4428_v0  ;;  %v4433_v40 = vsel %vm6560_vm8, %v4391_v10, 0.0  ;;  %vm6568_vm9 = vmmov %vm6525_vm0 }
 0x203   : > { %v3127_v58 = vpop.permute.xlu1 %3126  ;;  %vm6569_vm10 = vmmov %vm6525_vm0 }
 0x204   : > { %v4432_v2 = vadd.f32 %v4431_v30, %v4430_v7  ;;  %v4331_v60 = vadd.f32 %v4330_v35, %v4329_v28  ;;  %3160 = vst.msk [vmem:[#allocation3 + $0x78] sm:$0xff] %vm6549_vm12, %v3127_v58  ;;  %v3991_v37 = vpop.permute.xlu0 %3990  ;;  %vm6570_vm7 = vmmov %vm6525_vm0 }
 0x205   : > { %4025 = vst.msk [vmem:[#allocation3 + $0x70] sm:$0xff] %vm4010_vm1, %v3991_v37  ;;  %vm6571_vm11 = vmmov %vm6525_vm0 }
 0x206   : > { %v4434_v4 = vadd.f32 %v4433_v40, %v4432_v2  ;;  %vm6572_vm14 = vmmov %vm6525_vm0 }
 0x207   : > { %v3672_v32 = vpop.permute.xlu1 %3671  ;;  %vm6573_vm6 = vmmov %vm6525_vm0 }
 0x208   : > { %3705 = vst.msk [vmem:[#allocation3 + $0x78] sm:$0xff] %vm3689_vm13, %v3672_v32  ;;  %vm6563_vm13 = vmmov %vm6525_vm0 }
 0x209   : > { %vm6574_vm12 = vmmov %vm6525_vm0 }
 0x20a   : > { %vm6575_vm8 = vmmov %vm6525_vm0 }
 0x20b   : > { %v3993_v42 = vpop.permute.xlu1 %3992 }
 0x20c   : > { %4026 = vst.msk [vmem:[#allocation3 + $0x78] sm:$0xff] %vm4010_vm1, %v3993_v42  ;;  %v4041_v41 = vld [vmem:[#allocation3 + $0x70] sm:$0xff]  ;;  %vm6564_vm1 = vmmov %vm6525_vm0 }
 0x20d   : > { %4910 = vmatprep.mubr.msk.bf16.mxu1 %vm4063_vm15, %v4041_v41 }
 0x213   : > { %v4042_v46 = vld [vmem:[#allocation3 + $0x78] sm:$0xff] }
 0x214   : > { %4911 = vmatmul.mubr.msk.bf16.gmra.mrb[12].mxu1 %vm4063_vm15, %v4042_v46  ;;  %vm6566_vm15 = vmmov %vm6525_vm0 }
 0x225   : > { %v4896_v54 = vpop.f32.mrb[12].mxu0 }
 0x226   : > { %4291 = vst.msk [vmem:[%s6321_s13 + $0x70] sm:$0xff] %vm6561_vm2, %v4896_v54  ;;  %v4198_v47 = vpop.f32.mrb[13].mxu0  ;;  %v4394_v29 = vmul.f32 %v4896_v54, %v4896_v54  ;;  %v4336_v6 = vsel %vm6567_vm5, %v4896_v54, 0.0  ;;  %vm6576_vm2 = vmmov %vm6525_vm0 }
 0x227   : > { %4289 = vst.msk [vmem:[%s6321_s13 + $0x60] sm:$0xff] %vm6562_vm4, %v4198_v47  ;;  %v4332_v50 = vsel %vm6525_vm0, %v4198_v47, 0.0  ;;  %v4392_v62 = vmul.f32 %v4198_v47, %v4198_v47  ;;  %v4897_v48 = vpop.f32.mrb[14].mxu0  ;;  %vm6577_vm4 = vmmov %vm6525_vm0 }
 0x228   : > { %v4333_v38 = vadd.f32 %v4332_v50, %v4331_v60  ;;  %4292 = vst.msk [vmem:[%s6321_s13 + $0x78] sm:$0xff] %vm6563_vm13, %v4897_v48  ;;  %v4201_v55 = vpop.f32.mrb[15].mxu0  ;;  %v4395_v13 = vmul.f32 %v4897_v48, %v4897_v48  ;;  %v4439_v63 = vsel %vm6569_vm10, %v4394_v29, 0.0  ;;  %v4338_v51 = vsel %vm6570_vm7, %v4897_v48, 0.0  ;;  %vm6578_vm13 = vmmov %vm6525_vm0 }
 0x229   : > { %v4435_v19 = vsel %vm6564_vm1, %v4392_v62, 0.0  ;;  %4290 = vst.msk [vmem:[%s6321_s13 + $0x68] sm:$0xff] %vm6565_vm3, %v4201_v55  ;;  %v4334_v53 = vsel %vm6566_vm15, %v4201_v55, 0.0  ;;  %v4393_v31 = vmul.f32 %v4201_v55, %v4201_v55  ;;  %vm6579_vm1 = vmmov %vm6525_vm0 }
 0x22a   : > { %v4436_v56 = vadd.f32 %v4435_v19, %v4434_v4  ;;  %v4335_v26 = vadd.f32 %v4334_v53, %v4333_v38  ;;  %v4441_v25 = vsel %vm6571_vm11, %v4395_v13, 0.0  ;;  %vm6580_vm3 = vmmov %vm6525_vm0 }
 0x22b   : > { %v4437_v39 = vsel %vm6568_vm9, %v4393_v31, 0.0  ;;  %vm6581_vm15 = vmmov %vm6525_vm0 }
 0x22c   : > { %v4337_v34 = vadd.f32 %v4336_v6, %v4335_v26  ;;  %v4438_v49 = vadd.f32 %v4437_v39, %v4436_v56  ;;  %vm6582_vm5 = vmmov %vm6525_vm0 }
 0x22d   : > { %vm6583_vm9 = vmmov %vm6525_vm0 }
 0x22e   : > { %v4440_v23 = vadd.f32 %v4439_v63, %v4438_v49  ;;  %v4339_v18 = vadd.f32 %v4338_v51, %v4337_v34  ;;  %vm6584_vm10 = vmmov %vm6525_vm0 }
 0x22f   : > { %vm6585_vm7 = vmmov %vm6525_vm0 }
 0x230   : > { %v4442_v36 = vadd.f32 %v4441_v25, %v4440_v23  ;;  %vm6586_vm11 = vmmov %vm6525_vm0 }
 0x25a   : > { %v4900_v14 = vpop.f32.mrb[0].mxu1 }
 0x25b   : > { %4295 = vst.msk [vmem:[%s6321_s13 + $0x90] sm:$0xff] %vm6572_vm14, %v4900_v14  ;;  %v4214_v15 = vpop.f32.mrb[1].mxu1  ;;  %v4398_v27 = vmul.f32 %v4900_v14, %v4900_v14  ;;  %v4344_v61 = vsel %vm6578_vm13, %v4900_v14, 0.0  ;;  %vm6587_vm14 = vmmov %vm6525_vm0 }
 0x25c   : > { %4293 = vst.msk [vmem:[%s6321_s13 + $0x80] sm:$0xff] %vm6573_vm6, %v4214_v15  ;;  %v4340_v22 = vsel %vm6574_vm12, %v4214_v15, 0.0  ;;  %v4396_v16 = vmul.f32 %v4214_v15, %v4214_v15  ;;  %v4901_v17 = vpop.f32.mrb[2].mxu1  ;;  %vm6588_vm6 = vmmov %vm6525_vm0 }
 0x25d   : > { %v4341_v11 = vadd.f32 %v4340_v22, %v4339_v18  ;;  %4296 = vst.msk [vmem:[%s6321_s13 + $0x98] sm:$0xff] %vm6575_vm8, %v4901_v17  ;;  %v4217_v52 = vpop.f32.mrb[3].mxu1  ;;  %v4399_v33 = vmul.f32 %v4901_v17, %v4901_v17  ;;  %v4447_v3 = vsel %vm6580_vm3, %v4398_v27, 0.0  ;;  %v4346_v20 = vsel %vm6581_vm15, %v4901_v17, 0.0  ;;  %vm6589_vm12 = vmmov %vm6525_vm0 }
 0x25e   : > { %v4443_v57 = vsel %vm6576_vm2, %v4396_v16, 0.0  ;;  %4294 = vst.msk [vmem:[%s6321_s13 + $0x88] sm:$0xff] %vm6577_vm4, %v4217_v52  ;;  %v4342_v44 = vsel %vm6525_vm0, %v4217_v52, 0.0  ;;  %v4397_v5 = vmul.f32 %v4217_v52, %v4217_v52  ;;  %vm6590_vm8 = vmmov %vm6525_vm0 }
 0x25f   : > { %v4444_v24 = vadd.f32 %v4443_v57, %v4442_v36  ;;  %v4343_v59 = vadd.f32 %v4342_v44, %v4341_v11  ;;  %v4449_v21 = vsel %vm6582_vm5, %v4399_v33, 0.0  ;;  %vm6591_vm2 = vmmov %vm6525_vm0 }
 0x260   : > { %v4445_v8 = vsel %vm6579_vm1, %v4397_v5, 0.0  ;;  %vm6592_vm4 = vmmov %vm6525_vm0 }
 0x261   : > { %v4345_v12 = vadd.f32 %v4344_v61, %v4343_v59  ;;  %v4446_v45 = vadd.f32 %v4445_v8, %v4444_v24  ;;  %vm6593_vm13 = vmmov %vm6525_vm0 }
 0x262   : > { %vm6594_vm1 = vmmov %vm6525_vm0 }
 0x263   : > { %v4448_v0 = vadd.f32 %v4447_v3, %v4446_v45  ;;  %v4347_v43 = vadd.f32 %v4346_v20, %v4345_v12  ;;  %vm6595_vm3 = vmmov %vm6525_vm0 }
 0x264   : > { %vm6596_vm15 = vmmov %vm6525_vm0 }
 0x265   : > { %v4450_v9 = vadd.f32 %v4449_v21, %v4448_v0  ;;  %vm6597_vm5 = vmmov %vm6525_vm0 }
 0x288   : > { %v4904_v10 = vpop.f32.mrb[4].mxu1 }
 0x289   : > { %4299 = vst.msk [vmem:[%s6321_s13 + $0xb0] sm:$0xff] %vm6583_vm9, %v4904_v10  ;;  %v4230_v1 = vpop.f32.mrb[5].mxu1  ;;  %v4402_v2 = vmul.f32 %v4904_v10, %v4904_v10  ;;  %v4352_v42 = vsel %vm6590_vm8, %v4904_v10, 0.0  ;;  %vm6598_vm9 = vmmov %vm6525_vm0 }
 0x28a   : > { %4297 = vst.msk [vmem:[%s6321_s13 + $0xa0] sm:$0xff] %vm6584_vm10, %v4230_v1  ;;  %v4348_v28 = vsel %vm6585_vm7, %v4230_v1, 0.0  ;;  %v4400_v7 = vmul.f32 %v4230_v1, %v4230_v1  ;;  %v4905_v30 = vpop.f32.mrb[6].mxu1  ;;  %vm6599_vm10 = vmmov %vm6525_vm0 }
 0x28b   : > { %v4349_v35 = vadd.f32 %v4348_v28, %v4347_v43  ;;  %4300 = vst.msk [vmem:[%s6321_s13 + $0xb8] sm:$0xff] %vm6586_vm11, %v4905_v30  ;;  %v4233_v58 = vpop.f32.mrb[7].mxu1  ;;  %v4403_v41 = vmul.f32 %v4905_v30, %v4905_v30  ;;  %v4455_v50 = vsel %vm6592_vm4, %v4402_v2, 0.0  ;;  %v4354_v62 = vsel %vm6525_vm0, %v4905_v30, 0.0  ;;  %vm6600_vm7 = vmmov %vm6525_vm0 }
 0x28c   : > { %v4451_v60 = vsel %vm6587_vm14, %v4400_v7, 0.0  ;;  %4298 = vst.msk [vmem:[%s6321_s13 + $0xa8] sm:$0xff] %vm6588_vm6, %v4233_v58  ;;  %v4350_v37 = vsel %vm6589_vm12, %v4233_v58, 0.0  ;;  %v4401_v40 = vmul.f32 %v4233_v58, %v4233_v58  ;;  %vm6601_vm11 = vmmov %vm6525_vm0 }
 0x28d   : > { %v4452_v4 = vadd.f32 %v4451_v60, %v4450_v9  ;;  %v4351_v32 = vadd.f32 %v4350_v37, %v4349_v35  ;;  %v4457_v55 = vsel %vm6593_vm13, %v4403_v41, 0.0  ;;  %vm6602_vm14 = vmmov %vm6525_vm0 }
 0x28e   : > { %v4453_v46 = vsel %vm6591_vm2, %v4401_v40, 0.0  ;;  %vm6603_vm6 = vmmov %vm6525_vm0 }
 0x28f   : > { %v4353_v54 = vadd.f32 %v4352_v42, %v4351_v32  ;;  %v4454_v47 = vadd.f32 %v4453_v46, %v4452_v4  ;;  %vm6604_vm12 = vmmov %vm6525_vm0 }
 0x290   : > { %vm6605_vm8 = vmmov %vm6525_vm0 }
 0x291   : > { %v4456_v48 = vadd.f32 %v4455_v50, %v4454_v47  ;;  %v4355_v38 = vadd.f32 %v4354_v62, %v4353_v54  ;;  %vm6606_vm2 = vmmov %vm6525_vm0 }
 0x292   : > { %vm6607_vm4 = vmmov %vm6525_vm0 }
 0x293   : > { %v4458_v29 = vadd.f32 %v4457_v55, %v4456_v48  ;;  %vm6608_vm13 = vmmov %vm6525_vm0 }
 0x2b9   : > { %v4908_v19 = vpop.f32.mrb[8].mxu1 }
 0x2ba   : > { %4303 = vst.msk [vmem:[%s6321_s13 + $0xd0] sm:$0xff] %vm6594_vm1, %v4908_v19  ;;  %v4246_v53 = vpop.f32.mrb[9].mxu1  ;;  %v4406_v39 = vmul.f32 %v4908_v19, %v4908_v19  ;;  %v4360_v18 = vsel %vm6601_vm11, %v4908_v19, 0.0  ;;  %vm6609_vm1 = vmmov %vm6525_vm0 }
 0x2bb   : > { %4301 = vst.msk [vmem:[%s6321_s13 + $0xc0] sm:$0xff] %vm6595_vm3, %v4246_v53  ;;  %v4356_v31 = vsel %vm6596_vm15, %v4246_v53, 0.0  ;;  %v4404_v56 = vmul.f32 %v4246_v53, %v4246_v53  ;;  %v4909_v26 = vpop.f32.mrb[10].mxu1  ;;  %vm6610_vm3 = vmmov %vm6525_vm0 }
 0x2bc   : > { %v4357_v6 = vadd.f32 %v4356_v31, %v4355_v38  ;;  %4304 = vst.msk [vmem:[%s6321_s13 + $0xd8] sm:$0xff] %vm6597_vm5, %v4909_v26  ;;  %v4249_v13 = vpop.f32.mrb[11].mxu1  ;;  %v4407_v25 = vmul.f32 %v4909_v26, %v4909_v26  ;;  %v4463_v22 = vsel %vm6603_vm6, %v4406_v39, 0.0  ;;  %v4362_v16 = vsel %vm6604_vm12, %v4909_v26, 0.0  ;;  %vm6611_vm15 = vmmov %vm6525_vm0 }
 0x2bd   : > { %v4459_v34 = vsel %vm6598_vm9, %v4404_v56, 0.0  ;;  %4302 = vst.msk [vmem:[%s6321_s13 + $0xc8] sm:$0xff] %vm6599_vm10, %v4249_v13  ;;  %v4358_v49 = vsel %vm6600_vm7, %v4249_v13, 0.0  ;;  %v4405_v63 = vmul.f32 %v4249_v13, %v4249_v13  ;;  %vm6612_vm5 = vmmov %vm6525_vm0 }
 0x2be   : > { %v4460_v51 = vadd.f32 %v4459_v34, %v4458_v29  ;;  %v4359_v23 = vadd.f32 %v4358_v49, %v4357_v6  ;;  %v4465_v52 = vsel %vm6605_vm8, %v4407_v25, 0.0  ;;  %vm6613_vm9 = vmmov %vm6525_vm0 }
 0x2bf   : > { %v4461_v36 = vsel %vm6602_vm14, %v4405_v63, 0.0  ;;  %vm6614_vm10 = vmmov %vm6525_vm0  ;;  %vm6617_vm14 = vcmask 24576  }
 0x2c0   : > { %v4361_v14 = vadd.f32 %v4360_v18, %v4359_v23  ;;  %v4462_v15 = vadd.f32 %v4461_v36, %v4460_v51  ;;  %vm6615_vm7 = vmmov %vm6525_vm0 }
 0x2c1   : > { %vm6616_vm11 = vmmov %vm6525_vm0 }
 0x2c2   : > { %v4464_v17 = vadd.f32 %v4463_v22, %v4462_v15  ;;  %v4363_v11 = vadd.f32 %v4362_v16, %v4361_v14  ;;  %vm6618_vm6 = vmmov %vm6617_vm14 }
 0x2c4   : > { %v4466_v27 = vadd.f32 %v4465_v52, %v4464_v17 }
 0x2e7   : > { %v4912_v57 = vpop.f32.mrb[12].mxu1 }
 0x2e8   : > { %4307 = vst.msk [vmem:[%s6321_s13 + $0xf0] sm:$0xff] %vm6606_vm2, %v4912_v57  ;;  %v4262_v44 = vpop.f32.mrb[13].mxu1  ;;  %v4410_v8 = vmul.f32 %v4912_v57, %v4912_v57  ;;  %v4368_v43 = vsel %vm6612_vm5, %v4912_v57, 0.0 }
 0x2e9   : > { %4305 = vst.msk [vmem:[%s6321_s13 + $0xe0] sm:$0xff] %vm6607_vm4, %v4262_v44  ;;  %v4364_v5 = vsel %vm6525_vm0, %v4262_v44, 0.0  ;;  %v4408_v24 = vmul.f32 %v4262_v44, %v4262_v44  ;;  %v4913_v59 = vpop.f32.mrb[14].mxu1 }
 0x2ea   : > { %v4365_v61 = vadd.f32 %v4364_v5, %v4363_v11  ;;  %4308 = vst.msk [vmem:[%s6321_s13 + $0xf8] sm:$0xff] %vm6608_vm13, %v4913_v59  ;;  %v4265_v33 = vpop.f32.mrb[15].mxu1  ;;  %v4411_v21 = vmul.f32 %v4913_v59, %v4913_v59  ;;  %v4471_v28 = vsel %vm6614_vm10, %v4410_v8, 0.0  ;;  %v4370_v7 = vsel %vm6615_vm7, %v4913_v59, 0.0 }
 0x2eb   : > { %v4467_v12 = vsel %vm6609_vm1, %v4408_v24, 0.0  ;;  %4306 = vst.msk [vmem:[%s6321_s13 + $0xe8] sm:$0xff] %vm6610_vm3, %v4265_v33  ;;  %v4366_v45 = vsel %vm6611_vm15, %v4265_v33, 0.0  ;;  %v4409_v3 = vmul.f32 %v4265_v33, %v4265_v33 }
 0x2ec   : > { %v4468_v20 = vadd.f32 %v4467_v12, %v4466_v27  ;;  %v4367_v0 = vadd.f32 %v4366_v45, %v4365_v61  ;;  %v4473_v58 = vsel %vm6616_vm11, %v4411_v21, 0.0 }
 0x2ed   : > { %v4469_v9 = vsel %vm6613_vm9, %v4409_v3, 0.0 }
 0x2ee   : > { %v4369_v10 = vadd.f32 %v4368_v43, %v4367_v0  ;;  %v4470_v1 = vadd.f32 %v4469_v9, %v4468_v20 }
 0x2f0   : > { %v4371_v30 = vadd.f32 %v4370_v7, %v4369_v10  ;;  %v4472_v35 = vadd.f32 %v4471_v28, %v4470_v1 }
 0x2f2   : > { %v4372_v2 = vrot.slane %v4371_v30, 4  ;;  %v4474_v60 = vadd.f32 %v4473_v58, %v4472_v35 }
 0x2f4   : > { %v4373_v37 = vadd.f32 %v4372_v2, %v4371_v30  ;;  %v4475_v40 = vrot.slane %v4474_v60, 4 }
 0x2f6   : > { %v4374_v4 = vrot.slane %v4373_v37, 2  ;;  %v4476_v32 = vadd.f32 %v4475_v40, %v4474_v60 }
 0x2f8   : > { %v4375_v42 = vadd.f32 %v4374_v4, %v4373_v37  ;;  %v4477_v41 = vrot.slane %v4476_v32, 2 }
 0x2fa   : > { %v4376_v46 = vrot.slane %v4375_v42, 1  ;;  %v4478_v54 = vadd.f32 %v4477_v41, %v4476_v32 }
 0x2fc   : > { %v4377_v47 = vadd.f32 %v4376_v46, %v4375_v42  ;;  %v4479_v50 = vrot.slane %v4478_v54, 1 }
 0x2fe   : > { %4379 = vst.msk [vmem:[%s235_s17] sm:$0x1] %vm6617_vm14, %v4377_v47  ;;  %v4480_v62 = vadd.f32 %v4479_v50, %v4478_v54 }
 0x300   : > { %4481 = vst.msk [vmem:[%s235_s17 + $0x1] sm:$0x1] %vm6618_vm6, %v4480_v62 }
 0x301 PF: > { %s16_s18 = sadd.s32 1, %s4996_s18  }
 0x302   : > { %p13_p4 = scmp.ge.s32.totalorder %s16_s18, 4  }
 0x304   :  { %15 = sbr.rel (!%p13_p4) target bundleno = 1 (0x1), region = 81 }

</bundles_post_ra>
